<compile_context>
chip_gen: v5e
topology: v5e:2x2
jax: 0.10.0
libtpu: 0.0.40
codegen_flags: <defaults>
</compile_context>

<pallas_src>
import functools

import jax
import jax.numpy as jnp
from jax.experimental import pallas as pl
from jax.experimental.pallas import tpu as pltpu


def _round_up(x, m):
    return (x + m - 1) // m * m


# ---------------------------------------------------------------------------
# Fused Linear (+ bias + activation) on pre-padded operands.
# ---------------------------------------------------------------------------
def _linear_kernel(x_ref, w_ref, b_ref, o_ref, acc_ref, *, activation):
    k = pl.program_id(2)

    @pl.when(k == 0)
    def _():
        acc_ref[...] = jnp.zeros_like(acc_ref)

    x = x_ref[...]
    w = w_ref[...]
    acc_ref[...] += jnp.dot(x.astype(w.dtype), w,
                            preferred_element_type=jnp.float32)

    @pl.when(k == pl.num_programs(2) - 1)
    def _():
        out = acc_ref[...] + b_ref[...]
        if activation == "relu":
            out = jnp.maximum(out, 0.0)
        elif activation == "sigmoid":
            out = jax.nn.sigmoid(out)
        o_ref[...] = out.astype(o_ref.dtype)


def linear_padded(x, w, b, activation="none", *, tn=1024, tk=1024):
    """activation(x @ w + b) on pre-padded, tile-aligned operands.

    x: (M, K) f32, M % 8 == 0, K % 128 == 0 (zero padded)
    w: (K, N) f32/bf16, padded with zeros; b: (1, N) f32, padded with zeros.
    Returns padded (M, N) f32; padded columns hold activation(0).
    """
    M, K = x.shape
    Kw, N = w.shape
    assert K == Kw and b.shape == (1, N)
    assert M % 8 == 0 and K % 128 == 0 and N % 128 == 0
    tm = M
    tn = min(tn, N)
    tk = min(tk, K)
    assert N % tn == 0 and K % tk == 0

    grid = (M // tm, N // tn, K // tk)
    return pl.pallas_call(
        functools.partial(_linear_kernel, activation=activation),
        out_shape=jax.ShapeDtypeStruct((M, N), jnp.float32),
        grid_spec=pltpu.PrefetchScalarGridSpec(
            num_scalar_prefetch=0,
            grid=grid,
            in_specs=[
                pl.BlockSpec((tm, tk), lambda i, j, k: (i, k)),
                pl.BlockSpec((tk, tn), lambda i, j, k: (k, j)),
                pl.BlockSpec((1, tn), lambda i, j, k: (0, j)),
            ],
            out_specs=pl.BlockSpec((tm, tn), lambda i, j, k: (i, j)),
            scratch_shapes=[pltpu.VMEM((tm, tn), jnp.float32)],
        ),
        compiler_params=pltpu.CompilerParams(
            dimension_semantics=("parallel", "parallel", "arbitrary")),
    )(x, w, b)


# ---------------------------------------------------------------------------
# Last encoder linear with code = delay * x + ipd fused into the finalize.
# ---------------------------------------------------------------------------
def _linear_code_kernel(h_ref, w_ref, b_ref, xin_ref, ipd_ref,
                        delay_ref, code_ref, acc_ref):
    k = pl.program_id(2)

    @pl.when(k == 0)
    def _():
        acc_ref[...] = jnp.zeros_like(acc_ref)

    h = h_ref[...]
    w = w_ref[...]
    acc_ref[...] += jnp.dot(h.astype(w.dtype), w,
                            preferred_element_type=jnp.float32)

    @pl.when(k == pl.num_programs(2) - 1)
    def _():
        delay = jnp.maximum(acc_ref[...] + b_ref[...], 0.0)
        delay_ref[...] = delay.astype(delay_ref.dtype)
        code_ref[...] = (delay * xin_ref[...] + ipd_ref[...]).astype(code_ref.dtype)


def linear_relu_code(h, w, b, x_in, ipd, *, tn=1024, tk=1024):
    """delay = relu(h @ w + b); code = delay * x_in + ipd  (padded operands)."""
    M, K = h.shape
    Kw, N = w.shape
    assert K == Kw and b.shape == (1, N)
    assert x_in.shape == (M, N) and ipd.shape == (M, N)
    assert M % 8 == 0 and K % 128 == 0 and N % 128 == 0
    tm = M
    tn = min(tn, N)
    tk = min(tk, K)
    assert N % tn == 0 and K % tk == 0

    grid = (M // tm, N // tn, K // tk)
    return pl.pallas_call(
        _linear_code_kernel,
        out_shape=(jax.ShapeDtypeStruct((M, N), jnp.float32),
                   jax.ShapeDtypeStruct((M, N), jnp.float32)),
        grid_spec=pltpu.PrefetchScalarGridSpec(
            num_scalar_prefetch=0,
            grid=grid,
            in_specs=[
                pl.BlockSpec((tm, tk), lambda i, j, k: (i, k)),
                pl.BlockSpec((tk, tn), lambda i, j, k: (k, j)),
                pl.BlockSpec((1, tn), lambda i, j, k: (0, j)),
                pl.BlockSpec((tm, tn), lambda i, j, k: (i, j)),
                pl.BlockSpec((tm, tn), lambda i, j, k: (i, j)),
            ],
            out_specs=[pl.BlockSpec((tm, tn), lambda i, j, k: (i, j)),
                       pl.BlockSpec((tm, tn), lambda i, j, k: (i, j))],
            scratch_shapes=[pltpu.VMEM((tm, tn), jnp.float32)],
        ),
        compiler_params=pltpu.CompilerParams(
            dimension_semantics=("parallel", "parallel", "arbitrary")),
    )(h, w, b, x_in, ipd)


# ---------------------------------------------------------------------------
# Fused decoder tail: conv1+ReLU -> conv2+ReLU -> flatten -> fc1+ReLU
#                     -> fc2 -> sigmoid, all in one single-block kernel.
# ---------------------------------------------------------------------------
def _decoder_kernel(code_ref, w1_ref, b1_ref, w2_ref, b2_ref,
                    g_ref, fb1_ref, fw2_ref, fb2_ref, out_ref,
                    *, batch, flow_length, k1, k2, c2, n_fc1):
    l1 = flow_length - k1 + 1
    l2 = l1 - k2 + 1

    w1 = w1_ref[...]          # (c1, k1)
    b1 = b1_ref[...]          # (c1, 1)
    w2 = w2_ref[...]          # (c2, k2*c1)   rows flattened as t*c1 + c_in
    b2 = b2_ref[...]          # (c2, 1)
    g = g_ref[...]            # (l2, c2*n_fc1)  g[l, c*n + j] = fc1_w[c*l2 + l, j]
    fb1 = fb1_ref[...]        # (1, n_fc1)
    fw2 = fw2_ref[...]        # (n_fc1, d_out)
    fb2 = fb2_ref[...]        # (1, d_out)

    rows = []
    for b in range(batch):
        xb = code_ref[b:b + 1, :flow_length]                              # (1, F)
        # Conv1d(1, c1, k1): single (c1,k1) x (k1,l1) matmul on an im2col patch.
        patch = jnp.concatenate([xb[:, t:t + l1] for t in range(k1)], axis=0)
        h1 = jnp.maximum(
            jnp.dot(w1, patch, preferred_element_type=jnp.float32) + b1, 0.0)   # (c1, l1)
        # Conv1d(c1, c2, k2): taps collapsed -> one (c2,k2*c1) x (k2*c1,l2) matmul.
        stack = jnp.concatenate([h1[:, t:t + l2] for t in range(k2)], axis=0)   # (k2*c1, l2)
        h2 = jnp.maximum(
            jnp.dot(w2, stack, preferred_element_type=jnp.float32) + b2, 0.0)   # (c2, l2)
        # Flatten (torch order) + Linear(c2*l2, n_fc1) without in-kernel reshape:
        #   z[c, c'*n + j] = sum_l h2[c, l] * fc1_w[c'*l2 + l, j]
        #   fc1[j]         = sum_c z[c, c*n + j]
        z = jnp.dot(h2, g, preferred_element_type=jnp.float32)                  # (c2, c2*n_fc1)
        acc = fb1
        for c in range(c2):
            acc = acc + z[c:c + 1, c * n_fc1:(c + 1) * n_fc1]
        h3 = jnp.maximum(acc, 0.0)                                              # (1, n_fc1)
        logits = jnp.dot(h3, fw2, preferred_element_type=jnp.float32) + fb2     # (1, d_out)
        rows.append(jax.nn.sigmoid(logits))

    out_ref[...] = jnp.concatenate(rows, axis=0).astype(out_ref.dtype)


def decoder_pallas(code_padded, dec, *, batch, flow_length, input_dim):
    c1, k1 = dec["cw1"].shape
    c2 = dec["cb2"].shape[0]
    k2 = dec["cw2f"].shape[1] // c1
    n_fc1 = dec["fb1"].shape[1]
    kernel = functools.partial(
        _decoder_kernel, batch=batch, flow_length=flow_length,
        k1=k1, k2=k2, c2=c2, n_fc1=n_fc1)
    return pl.pallas_call(
        kernel,
        out_shape=jax.ShapeDtypeStruct((batch, input_dim), jnp.float32),
        in_specs=[pl.BlockSpec(memory_space=pltpu.MemorySpace.VMEM)] * 9,
        out_specs=pl.BlockSpec(memory_space=pltpu.MemorySpace.VMEM),
    )(code_padded, dec["cw1"], dec["cb1"], dec["cw2f"], dec["cb2"],
      dec["g"], dec["fb1"], dec["fw2"], dec["fb2"])


# ---------------------------------------------------------------------------
# Full AE_Watermark forward (operates on prepare_params() output).
# ---------------------------------------------------------------------------
def ae_watermark_forward(prepared, x, ipd):
    batch, input_dim = x.shape
    flow_length = input_dim        # AE_Watermark requires F == D for delay * x
    mp = _round_up(batch, 8)
    fp = _round_up(flow_length, 128)

    # Pad the tiny activations once; weights were padded once at prep time.
    xp = jnp.pad(x, ((0, mp - batch), (0, fp - input_dim)))
    ipdp = jnp.pad(ipd, ((0, mp - batch), (0, fp - input_dim)))

    # Encoder: Linear+ReLU chain, activations stay padded between layers.
    h = xp
    for w, b in prepared["enc"][:-1]:
        h = linear_padded(h, w, b, "relu")
    w4, b4 = prepared["enc"][-1]
    delay_p, code_p = linear_relu_code(h, w4, b4, xp, ipdp)

    # Decoder tail, fully fused.
    output = decoder_pallas(code_p, prepared["dec"], batch=batch,
                            flow_length=flow_length, input_dim=input_dim)

    delay = delay_p[:batch, :flow_length]
    code = code_p[:batch, :flow_length]
    return delay, code, output


# ---------------------------------------------------------------------------
# Parameters, one-time prep (pad / re-layout), and pure-JAX reference.
# ---------------------------------------------------------------------------
def init_params(key, input_dim, flow_length):
    ks = jax.random.split(key, 16)

    def lin(kw, kb, fan_in, fan_out, dtype=jnp.float32):
        w = (jax.random.normal(kw, (fan_in, fan_out), jnp.float32)
             * (fan_in ** -0.5)).astype(dtype)
        b = jax.random.normal(kb, (fan_out,), jnp.float32) * 0.01
        return w, b

    p = {}
    # Large encoder weights stored bf16 (model storage); f32 biases.
    p["enc_w1"], p["enc_b1"] = lin(ks[0], ks[1], input_dim, 1000, jnp.bfloat16)
    p["enc_w2"], p["enc_b2"] = lin(ks[2], ks[3], 1000, 2000, jnp.bfloat16)
    p["enc_w3"], p["enc_b3"] = lin(ks[4], ks[5], 2000, 2000, jnp.bfloat16)
    p["enc_w4"], p["enc_b4"] = lin(ks[6], ks[7], 2000, flow_length, jnp.bfloat16)

    k1 = k2 = 10
    p["dec_cw1"] = jax.random.normal(ks[8], (50, k1), jnp.float32) * ((1 * k1) ** -0.5)
    p["dec_cb1"] = jax.random.normal(ks[9], (50, 1), jnp.float32) * 0.01
    # torch Conv1d layout (C_out, C_in, K)
    p["dec_cw2"] = jax.random.normal(ks[10], (10, 50, k2), jnp.float32) * ((50 * k2) ** -0.5)
    p["dec_cb2"] = jax.random.normal(ks[11], (10, 1), jnp.float32) * 0.01

    length = 10 * (flow_length - (k1 - 1) - (k2 - 1))
    p["dec_w1"], p["dec_b1"] = lin(ks[12], ks[13], length, 256)
    p["dec_w2"], p["dec_b2"] = lin(ks[14], ks[15], 256, input_dim)
    return p


def prepare_params(p):
    """One-time (outside jit): pad encoder weights to tile multiples and
    re-lay-out the decoder weights so the kernels never pad/reshape per call."""
    def pad_lin(w, b):
        K, N = w.shape
        kp, np_ = _round_up(K, 128), _round_up(N, 128)
        wp = jnp.pad(w, ((0, kp - K), (0, np_ - N)))
        bp = jnp.pad(b.astype(jnp.float32).reshape(1, N), ((0, 0), (0, np_ - N)))
        return wp, bp

    enc = [pad_lin(p["enc_w1"], p["enc_b1"]),
           pad_lin(p["enc_w2"], p["enc_b2"]),
           pad_lin(p["enc_w3"], p["enc_b3"]),
           pad_lin(p["enc_w4"], p["enc_b4"])]

    c2, c1, k2 = p["dec_cw2"].shape
    # w2f[c_out, t*c1 + c_in] = W2[c_out, c_in, t]
    w2f = jnp.transpose(p["dec_cw2"], (0, 2, 1)).reshape(c2, k2 * c1)

    length, n_fc1 = p["dec_w1"].shape
    l2 = length // c2
    # g[l, c*n_fc1 + n] = fc1_w[c*l2 + l, n]  (flatten folded into the weight)
    g = jnp.transpose(p["dec_w1"].reshape(c2, l2, n_fc1), (1, 0, 2)).reshape(l2, c2 * n_fc1)

    dec = {
        "cw1": p["dec_cw1"], "cb1": p["dec_cb1"],
        "cw2f": w2f, "cb2": p["dec_cb2"],
        "g": g, "fb1": p["dec_b1"].reshape(1, -1),
        "fw2": p["dec_w2"], "fb2": p["dec_b2"].reshape(1, -1),
    }
    return {"enc": enc, "dec": dec}


def ae_watermark_ref(params, x, ipd):
    hp = jax.lax.Precision.HIGHEST

    def lin(h, w, b):
        return jnp.dot(h, w.astype(jnp.float32), precision=hp) + b

    h = jax.nn.relu(lin(x, params["enc_w1"], params["enc_b1"]))
    h = jax.nn.relu(lin(h, params["enc_w2"], params["enc_b2"]))
    h = jax.nn.relu(lin(h, params["enc_w3"], params["enc_b3"]))
    delay = jax.nn.relu(lin(h, params["enc_w4"], params["enc_b4"]))
    code = delay * x + ipd

    xc = code[:, None, :]                                    # (B, 1, L)
    w1 = params["dec_cw1"][:, None, :]                       # (50, 1, 10) OIH
    h1 = jax.nn.relu(jax.lax.conv_general_dilated(
        xc, w1, (1,), "VALID", dimension_numbers=("NCH", "OIH", "NCH"),
        precision=hp) + params["dec_cb1"][None, :, :])
    h2 = jax.nn.relu(jax.lax.conv_general_dilated(
        h1, params["dec_cw2"], (1,), "VALID",
        dimension_numbers=("NCH", "OIH", "NCH"),
        precision=hp) + params["dec_cb2"][None, :, :])
    flat = h2.reshape(h2.shape[0], -1)
    h = jax.nn.relu(lin(flat, params["dec_w1"], params["dec_b1"]))
    out = jax.nn.sigmoid(lin(h, params["dec_w2"], params["dec_b2"]))
    return delay, code, out


if __name__ == "__main__":
    key = jax.random.PRNGKey(0)
    kp, kx, ki = jax.random.split(key, 3)

    batch = 2
    input_dim = 32      # AE_Watermark needs flow_length == input_dim so that
    flow_length = 32    # `delay * input_data` broadcasts elementwise.

    params = init_params(kp, input_dim, flow_length)
    prepared = prepare_params(params)       # pad / re-layout weights ONCE

    x = jax.random.normal(kx, (batch, input_dim), jnp.float32)       # input_data
    ipd = jax.random.normal(ki, (batch, input_dim), jnp.float32) * 0.1

    fwd = jax.jit(ae_watermark_forward)
    delay, code, output = jax.block_until_ready(fwd(prepared, x, ipd))

    d_ref, c_ref, y_ref = ae_watermark_ref(params, x, ipd)
    assert jnp.allclose(delay, d_ref, rtol=2e-2, atol=2e-2)
    assert jnp.allclose(code, c_ref, rtol=2e-2, atol=2e-2)
    assert jnp.allclose(output, y_ref, rtol=2e-2, atol=2e-2)

    print("KERNEL_OK")
</pallas_src>

<mosaic_0001>
module attributes {stable_mosaic.version = 11 : i64} {
  func.func @_linear_kernel(%arg0: i32, %arg1: i32, %arg2: i32, %arg3: memref<8x1024xf32, #tpu.memory_space<vmem>>, %arg4: memref<1024x1024xbf16, #tpu.memory_space<vmem>>, %arg5: memref<1x1024xf32, #tpu.memory_space<vmem>>, %arg6: memref<8x1024xf32, #tpu.memory_space<vmem>>, %arg7: memref<8x1024xf32, #tpu.memory_space<vmem>>) attributes {dimension_semantics = [#tpu.dimension_semantics<parallel>, #tpu.dimension_semantics<parallel>, #tpu.dimension_semantics<arbitrary>], iteration_bounds = array<i64: 1, 2, 2>, scalar_prefetch = 0 : i64, scratch_operands = 1 : i64, tpu.core_type = #tpu.core_type<tc>, window_params = [{transform_indices = @transform_0, window_bounds = array<i64: 8, 1024>}, {transform_indices = @transform_1, window_bounds = array<i64: 1024, 1024>}, {transform_indices = @transform_2, window_bounds = array<i64: 1, 1024>}, {transform_indices = @transform_3, window_bounds = array<i64: 8, 1024>}]} {
    %c0_i32 = arith.constant 0 : i32
    %0 = arith.cmpi eq, %arg2, %c0_i32 : i32
    %1 = arith.extui %0 : i1 to i32
    %c0_i32_0 = arith.constant 0 : i32
    %2 = arith.cmpi ne, %1, %c0_i32_0 : i32
    scf.if %2 {
      %cst_9 = arith.constant 0.000000e+00 : f32
      %13 = vector.broadcast %cst_9 : f32 to vector<8x1024xf32>
      %c0_10 = arith.constant 0 : index
      %c0_11 = arith.constant 0 : index
      %14 = vector.load %arg7[%c0_10, %c0_11] : memref<8x1024xf32, #tpu.memory_space<vmem>>, vector<8x1024xf32>
      tpu.vector_store %arg7[%c0_10, %c0_11], %13 {strides = array<i32>} : memref<8x1024xf32, #tpu.memory_space<vmem>>, vector<8x1024xf32>,
    } else {
    }
    %c0 = arith.constant 0 : index
    %c0_1 = arith.constant 0 : index
    %3 = vector.load %arg3[%c0, %c0_1] : memref<8x1024xf32, #tpu.memory_space<vmem>>, vector<8x1024xf32>
    %c0_2 = arith.constant 0 : index
    %c0_3 = arith.constant 0 : index
    %4 = vector.load %arg4[%c0_2, %c0_3] : memref<1024x1024xbf16, #tpu.memory_space<vmem>>, vector<1024x1024xbf16>
    %c0_4 = arith.constant 0 : index
    %c0_5 = arith.constant 0 : index
    %5 = vector.load %arg7[%c0_4, %c0_5] : memref<8x1024xf32, #tpu.memory_space<vmem>>, vector<8x1024xf32>
    %6 = arith.truncf %3 : vector<8x1024xf32> to vector<8x1024xbf16>
    %cst = arith.constant dense<0.000000e+00> : vector<8x1024xf32>
    %7 = tpu.matmul %6, %4, %cst {dimension_numbers = #tpu.dot_dimension_numbers<[1], [0], [0], [1], [0, 0, 1, 1], [], []>} : vector<8x1024xbf16>, vector<1024x1024xbf16>, vector<8x1024xf32> -> vector<8x1024xf32>
    %8 = arith.addf %5, %7 : vector<8x1024xf32>
    %c0_6 = arith.constant 0 : index
    %c0_7 = arith.constant 0 : index
    %9 = vector.load %arg7[%c0_6, %c0_7] : memref<8x1024xf32, #tpu.memory_space<vmem>>, vector<8x1024xf32>
    tpu.vector_store %arg7[%c0_6, %c0_7], %8 {strides = array<i32>} : memref<8x1024xf32, #tpu.memory_space<vmem>>, vector<8x1024xf32>,
    %c1_i32 = arith.constant 1 : i32
    %10 = arith.cmpi eq, %arg2, %c1_i32 : i32
    %11 = arith.extui %10 : i1 to i32
    %c0_i32_8 = arith.constant 0 : i32
    %12 = arith.cmpi ne, %11, %c0_i32_8 : i32
    scf.if %12 {
      %c0_9 = arith.constant 0 : index
      %c0_10 = arith.constant 0 : index
      %13 = vector.load %arg7[%c0_9, %c0_10] : memref<8x1024xf32, #tpu.memory_space<vmem>>, vector<8x1024xf32>
      %c0_11 = arith.constant 0 : index
      %c0_12 = arith.constant 0 : index
      %14 = vector.load %arg5[%c0_11, %c0_12] : memref<1x1024xf32, #tpu.memory_space<vmem>>, vector<1x1024xf32>
      %15 = vector.broadcast %14 : vector<1x1024xf32> to vector<8x1024xf32>
      %16 = arith.addf %13, %15 : vector<8x1024xf32>
      %cst_13 = arith.constant 0.000000e+00 : f32
      %17 = vector.broadcast %cst_13 : f32 to vector<8x1024xf32>
      %18 = arith.maximumf %16, %17 : vector<8x1024xf32>
      %c0_14 = arith.constant 0 : index
      %c0_15 = arith.constant 0 : index
      %19 = vector.load %arg6[%c0_14, %c0_15] : memref<8x1024xf32, #tpu.memory_space<vmem>>, vector<8x1024xf32>
      tpu.vector_store %arg6[%c0_14, %c0_15], %18 {strides = array<i32>} : memref<8x1024xf32, #tpu.memory_space<vmem>>, vector<8x1024xf32>,
    } else {
    }
    return
  }
  func.func @transform_0(%arg0: i32, %arg1: i32, %arg2: i32) -> (i32, i32) {
    %c0_i32 = arith.constant 0 : i32
    return %arg0, %arg2 : i32, i32
  }
  func.func @transform_1(%arg0: i32, %arg1: i32, %arg2: i32) -> (i32, i32) {
    %c0_i32 = arith.constant 0 : i32
    return %arg2, %arg1 : i32, i32
  }
  func.func @transform_2(%arg0: i32, %arg1: i32, %arg2: i32) -> (i32, i32) {
    %c0_i32 = arith.constant 0 : i32
    %c0_i32_0 = arith.constant 0 : i32
    return %c0_i32, %arg1 : i32, i32
  }
  func.func @transform_3(%arg0: i32, %arg1: i32, %arg2: i32) -> (i32, i32) {
    %c0_i32 = arith.constant 0 : i32
    return %arg0, %arg1 : i32, i32
  }
}

module attributes {stable_mosaic.version = 11 : i64} {
  func.func @_linear_kernel(%arg0: i32, %arg1: i32, %arg2: i32, %arg3: memref<8x128xf32, #tpu.memory_space<vmem>>, %arg4: memref<128x1024xbf16, #tpu.memory_space<vmem>>, %arg5: memref<1x1024xf32, #tpu.memory_space<vmem>>, %arg6: memref<8x1024xf32, #tpu.memory_space<vmem>>, %arg7: memref<8x1024xf32, #tpu.memory_space<vmem>>) attributes {dimension_semantics = [#tpu.dimension_semantics<parallel>, #tpu.dimension_semantics<parallel>, #tpu.dimension_semantics<arbitrary>], iteration_bounds = array<i64: 1, 1, 1>, scalar_prefetch = 0 : i64, scratch_operands = 1 : i64, tpu.core_type = #tpu.core_type<tc>, window_params = [{transform_indices = @transform_0, window_bounds = array<i64: 8, 128>}, {transform_indices = @transform_1, window_bounds = array<i64: 128, 1024>}, {transform_indices = @transform_2, window_bounds = array<i64: 1, 1024>}, {transform_indices = @transform_3, window_bounds = array<i64: 8, 1024>}]} {
    %c0_i32 = arith.constant 0 : i32
    %0 = arith.cmpi eq, %arg2, %c0_i32 : i32
    %1 = arith.extui %0 : i1 to i32
    %c0_i32_0 = arith.constant 0 : i32
    %2 = arith.cmpi ne, %1, %c0_i32_0 : i32
    scf.if %2 {
      %cst_10 = arith.constant 0.000000e+00 : f32
      %13 = vector.broadcast %cst_10 : f32 to vector<8x1024xf32>
      %c0_11 = arith.constant 0 : index
      %c0_12 = arith.constant 0 : index
      %14 = vector.load %arg7[%c0_11, %c0_12] : memref<8x1024xf32, #tpu.memory_space<vmem>>, vector<8x1024xf32>
      tpu.vector_store %arg7[%c0_11, %c0_12], %13 {strides = array<i32>} : memref<8x1024xf32, #tpu.memory_space<vmem>>, vector<8x1024xf32>,
    } else {
    }
    %c0 = arith.constant 0 : index
    %c0_1 = arith.constant 0 : index
    %3 = vector.load %arg3[%c0, %c0_1] : memref<8x128xf32, #tpu.memory_space<vmem>>, vector<8x128xf32>
    %c0_2 = arith.constant 0 : index
    %c0_3 = arith.constant 0 : index
    %4 = vector.load %arg4[%c0_2, %c0_3] : memref<128x1024xbf16, #tpu.memory_space<vmem>>, vector<128x1024xbf16>
    %c0_4 = arith.constant 0 : index
    %c0_5 = arith.constant 0 : index
    %5 = vector.load %arg7[%c0_4, %c0_5] : memref<8x1024xf32, #tpu.memory_space<vmem>>, vector<8x1024xf32>
    %6 = arith.truncf %3 : vector<8x128xf32> to vector<8x128xbf16>
    %cst = arith.constant dense<0.000000e+00> : vector<8x1024xf32>
    %7 = tpu.matmul %6, %4, %cst {dimension_numbers = #tpu.dot_dimension_numbers<[1], [0], [0], [1], [0, 0, 1, 1], [], []>} : vector<8x128xbf16>, vector<128x1024xbf16>, vector<8x1024xf32> -> vector<8x1024xf32>
    %8 = arith.addf %5, %7 : vector<8x1024xf32>
    %c0_6 = arith.constant 0 : index
    %c0_7 = arith.constant 0 : index
    %9 = vector.load %arg7[%c0_6, %c0_7] : memref<8x1024xf32, #tpu.memory_space<vmem>>, vector<8x1024xf32>
    tpu.vector_store %arg7[%c0_6, %c0_7], %8 {strides = array<i32>} : memref<8x1024xf32, #tpu.memory_space<vmem>>, vector<8x1024xf32>,
    %c0_i32_8 = arith.constant 0 : i32
    %10 = arith.cmpi eq, %arg2, %c0_i32_8 : i32
    %11 = arith.extui %10 : i1 to i32
    %c0_i32_9 = arith.constant 0 : i32
    %12 = arith.cmpi ne, %11, %c0_i32_9 : i32
    scf.if %12 {
      %c0_10 = arith.constant 0 : index
      %c0_11 = arith.constant 0 : index
      %13 = vector.load %arg7[%c0_10, %c0_11] : memref<8x1024xf32, #tpu.memory_space<vmem>>, vector<8x1024xf32>
      %c0_12 = arith.constant 0 : index
      %c0_13 = arith.constant 0 : index
      %14 = vector.load %arg5[%c0_12, %c0_13] : memref<1x1024xf32, #tpu.memory_space<vmem>>, vector<1x1024xf32>
      %15 = vector.broadcast %14 : vector<1x1024xf32> to vector<8x1024xf32>
      %16 = arith.addf %13, %15 : vector<8x1024xf32>
      %cst_14 = arith.constant 0.000000e+00 : f32
      %17 = vector.broadcast %cst_14 : f32 to vector<8x1024xf32>
      %18 = arith.maximumf %16, %17 : vector<8x1024xf32>
      %c0_15 = arith.constant 0 : index
      %c0_16 = arith.constant 0 : index
      %19 = vector.load %arg6[%c0_15, %c0_16] : memref<8x1024xf32, #tpu.memory_space<vmem>>, vector<8x1024xf32>
      tpu.vector_store %arg6[%c0_15, %c0_16], %18 {strides = array<i32>} : memref<8x1024xf32, #tpu.memory_space<vmem>>, vector<8x1024xf32>,
    } else {
    }
    return
  }
  func.func @transform_0(%arg0: i32, %arg1: i32, %arg2: i32) -> (i32, i32) {
    %c0_i32 = arith.constant 0 : i32
    return %arg0, %arg2 : i32, i32
  }
  func.func @transform_1(%arg0: i32, %arg1: i32, %arg2: i32) -> (i32, i32) {
    %c0_i32 = arith.constant 0 : i32
    return %arg2, %arg1 : i32, i32
  }
  func.func @transform_2(%arg0: i32, %arg1: i32, %arg2: i32) -> (i32, i32) {
    %c0_i32 = arith.constant 0 : i32
    %c0_i32_0 = arith.constant 0 : i32
    return %c0_i32, %arg1 : i32, i32
  }
  func.func @transform_3(%arg0: i32, %arg1: i32, %arg2: i32) -> (i32, i32) {
    %c0_i32 = arith.constant 0 : i32
    return %arg0, %arg1 : i32, i32
  }
}

module attributes {stable_mosaic.version = 11 : i64} {
  func.func @_linear_kernel(%arg0: i32, %arg1: i32, %arg2: i32, %arg3: memref<8x1024xf32, #tpu.memory_space<vmem>>, %arg4: memref<1024x1024xbf16, #tpu.memory_space<vmem>>, %arg5: memref<1x1024xf32, #tpu.memory_space<vmem>>, %arg6: memref<8x1024xf32, #tpu.memory_space<vmem>>, %arg7: memref<8x1024xf32, #tpu.memory_space<vmem>>) attributes {dimension_semantics = [#tpu.dimension_semantics<parallel>, #tpu.dimension_semantics<parallel>, #tpu.dimension_semantics<arbitrary>], iteration_bounds = array<i64: 1, 2, 1>, scalar_prefetch = 0 : i64, scratch_operands = 1 : i64, tpu.core_type = #tpu.core_type<tc>, window_params = [{transform_indices = @transform_0, window_bounds = array<i64: 8, 1024>}, {transform_indices = @transform_1, window_bounds = array<i64: 1024, 1024>}, {transform_indices = @transform_2, window_bounds = array<i64: 1, 1024>}, {transform_indices = @transform_3, window_bounds = array<i64: 8, 1024>}]} {
    %c0_i32 = arith.constant 0 : i32
    %0 = arith.cmpi eq, %arg2, %c0_i32 : i32
    %1 = arith.extui %0 : i1 to i32
    %c0_i32_0 = arith.constant 0 : i32
    %2 = arith.cmpi ne, %1, %c0_i32_0 : i32
    scf.if %2 {
      %cst_10 = arith.constant 0.000000e+00 : f32
      %13 = vector.broadcast %cst_10 : f32 to vector<8x1024xf32>
      %c0_11 = arith.constant 0 : index
      %c0_12 = arith.constant 0 : index
      %14 = vector.load %arg7[%c0_11, %c0_12] : memref<8x1024xf32, #tpu.memory_space<vmem>>, vector<8x1024xf32>
      tpu.vector_store %arg7[%c0_11, %c0_12], %13 {strides = array<i32>} : memref<8x1024xf32, #tpu.memory_space<vmem>>, vector<8x1024xf32>,
    } else {
    }
    %c0 = arith.constant 0 : index
    %c0_1 = arith.constant 0 : index
    %3 = vector.load %arg3[%c0, %c0_1] : memref<8x1024xf32, #tpu.memory_space<vmem>>, vector<8x1024xf32>
    %c0_2 = arith.constant 0 : index
    %c0_3 = arith.constant 0 : index
    %4 = vector.load %arg4[%c0_2, %c0_3] : memref<1024x1024xbf16, #tpu.memory_space<vmem>>, vector<1024x1024xbf16>
    %c0_4 = arith.constant 0 : index
    %c0_5 = arith.constant 0 : index
    %5 = vector.load %arg7[%c0_4, %c0_5] : memref<8x1024xf32, #tpu.memory_space<vmem>>, vector<8x1024xf32>
    %6 = arith.truncf %3 : vector<8x1024xf32> to vector<8x1024xbf16>
    %cst = arith.constant dense<0.000000e+00> : vector<8x1024xf32>
    %7 = tpu.matmul %6, %4, %cst {dimension_numbers = #tpu.dot_dimension_numbers<[1], [0], [0], [1], [0, 0, 1, 1], [], []>} : vector<8x1024xbf16>, vector<1024x1024xbf16>, vector<8x1024xf32> -> vector<8x1024xf32>
    %8 = arith.addf %5, %7 : vector<8x1024xf32>
    %c0_6 = arith.constant 0 : index
    %c0_7 = arith.constant 0 : index
    %9 = vector.load %arg7[%c0_6, %c0_7] : memref<8x1024xf32, #tpu.memory_space<vmem>>, vector<8x1024xf32>
    tpu.vector_store %arg7[%c0_6, %c0_7], %8 {strides = array<i32>} : memref<8x1024xf32, #tpu.memory_space<vmem>>, vector<8x1024xf32>,
    %c0_i32_8 = arith.constant 0 : i32
    %10 = arith.cmpi eq, %arg2, %c0_i32_8 : i32
    %11 = arith.extui %10 : i1 to i32
    %c0_i32_9 = arith.constant 0 : i32
    %12 = arith.cmpi ne, %11, %c0_i32_9 : i32
    scf.if %12 {
      %c0_10 = arith.constant 0 : index
      %c0_11 = arith.constant 0 : index
      %13 = vector.load %arg7[%c0_10, %c0_11] : memref<8x1024xf32, #tpu.memory_space<vmem>>, vector<8x1024xf32>
      %c0_12 = arith.constant 0 : index
      %c0_13 = arith.constant 0 : index
      %14 = vector.load %arg5[%c0_12, %c0_13] : memref<1x1024xf32, #tpu.memory_space<vmem>>, vector<1x1024xf32>
      %15 = vector.broadcast %14 : vector<1x1024xf32> to vector<8x1024xf32>
      %16 = arith.addf %13, %15 : vector<8x1024xf32>
      %cst_14 = arith.constant 0.000000e+00 : f32
      %17 = vector.broadcast %cst_14 : f32 to vector<8x1024xf32>
      %18 = arith.maximumf %16, %17 : vector<8x1024xf32>
      %c0_15 = arith.constant 0 : index
      %c0_16 = arith.constant 0 : index
      %19 = vector.load %arg6[%c0_15, %c0_16] : memref<8x1024xf32, #tpu.memory_space<vmem>>, vector<8x1024xf32>
      tpu.vector_store %arg6[%c0_15, %c0_16], %18 {strides = array<i32>} : memref<8x1024xf32, #tpu.memory_space<vmem>>, vector<8x1024xf32>,
    } else {
    }
    return
  }
  func.func @transform_0(%arg0: i32, %arg1: i32, %arg2: i32) -> (i32, i32) {
    %c0_i32 = arith.constant 0 : i32
    return %arg0, %arg2 : i32, i32
  }
  func.func @transform_1(%arg0: i32, %arg1: i32, %arg2: i32) -> (i32, i32) {
    %c0_i32 = arith.constant 0 : i32
    return %arg2, %arg1 : i32, i32
  }
  func.func @transform_2(%arg0: i32, %arg1: i32, %arg2: i32) -> (i32, i32) {
    %c0_i32 = arith.constant 0 : i32
    %c0_i32_0 = arith.constant 0 : i32
    return %c0_i32, %arg1 : i32, i32
  }
  func.func @transform_3(%arg0: i32, %arg1: i32, %arg2: i32) -> (i32, i32) {
    %c0_i32 = arith.constant 0 : i32
    return %arg0, %arg1 : i32, i32
  }
}

module attributes {stable_mosaic.version = 11 : i64} {
  func.func @_linear_code_kernel(%arg0: i32, %arg1: i32, %arg2: i32, %arg3: memref<8x1024xf32, #tpu.memory_space<vmem>>, %arg4: memref<1024x128xbf16, #tpu.memory_space<vmem>>, %arg5: memref<1x128xf32, #tpu.memory_space<vmem>>, %arg6: memref<8x128xf32, #tpu.memory_space<vmem>>, %arg7: memref<8x128xf32, #tpu.memory_space<vmem>>, %arg8: memref<8x128xf32, #tpu.memory_space<vmem>>, %arg9: memref<8x128xf32, #tpu.memory_space<vmem>>, %arg10: memref<8x128xf32, #tpu.memory_space<vmem>>) attributes {dimension_semantics = [#tpu.dimension_semantics<parallel>, #tpu.dimension_semantics<parallel>, #tpu.dimension_semantics<arbitrary>], iteration_bounds = array<i64: 1, 1, 2>, scalar_prefetch = 0 : i64, scratch_operands = 1 : i64, tpu.core_type = #tpu.core_type<tc>, window_params = [{transform_indices = @transform_0, window_bounds = array<i64: 8, 1024>}, {transform_indices = @transform_1, window_bounds = array<i64: 1024, 128>}, {transform_indices = @transform_2, window_bounds = array<i64: 1, 128>}, {transform_indices = @transform_3, window_bounds = array<i64: 8, 128>}, {transform_indices = @transform_4, window_bounds = array<i64: 8, 128>}, {transform_indices = @transform_5, window_bounds = array<i64: 8, 128>}, {transform_indices = @transform_6, window_bounds = array<i64: 8, 128>}]} {
    %c0_i32 = arith.constant 0 : i32
    %0 = arith.cmpi eq, %arg2, %c0_i32 : i32
    %1 = arith.extui %0 : i1 to i32
    %c0_i32_0 = arith.constant 0 : i32
    %2 = arith.cmpi ne, %1, %c0_i32_0 : i32
    scf.if %2 {
      %cst_9 = arith.constant 0.000000e+00 : f32
      %13 = vector.broadcast %cst_9 : f32 to vector<8x128xf32>
      %c0_10 = arith.constant 0 : index
      %c0_11 = arith.constant 0 : index
      %14 = vector.load %arg10[%c0_10, %c0_11] : memref<8x128xf32, #tpu.memory_space<vmem>>, vector<8x128xf32>
      tpu.vector_store %arg10[%c0_10, %c0_11], %13 {strides = array<i32>} : memref<8x128xf32, #tpu.memory_space<vmem>>, vector<8x128xf32>,
    } else {
    }
    %c0 = arith.constant 0 : index
    %c0_1 = arith.constant 0 : index
    %3 = vector.load %arg3[%c0, %c0_1] : memref<8x1024xf32, #tpu.memory_space<vmem>>, vector<8x1024xf32>
    %c0_2 = arith.constant 0 : index
    %c0_3 = arith.constant 0 : index
    %4 = vector.load %arg4[%c0_2, %c0_3] : memref<1024x128xbf16, #tpu.memory_space<vmem>>, vector<1024x128xbf16>
    %c0_4 = arith.constant 0 : index
    %c0_5 = arith.constant 0 : index
    %5 = vector.load %arg10[%c0_4, %c0_5] : memref<8x128xf32, #tpu.memory_space<vmem>>, vector<8x128xf32>
    %6 = arith.truncf %3 : vector<8x1024xf32> to vector<8x1024xbf16>
    %cst = arith.constant dense<0.000000e+00> : vector<8x128xf32>
    %7 = tpu.matmul %6, %4, %cst {dimension_numbers = #tpu.dot_dimension_numbers<[1], [0], [0], [1], [0, 0, 1, 1], [], []>} : vector<8x1024xbf16>, vector<1024x128xbf16>, vector<8x128xf32> -> vector<8x128xf32>
    %8 = arith.addf %5, %7 : vector<8x128xf32>
    %c0_6 = arith.constant 0 : index
    %c0_7 = arith.constant 0 : index
    %9 = vector.load %arg10[%c0_6, %c0_7] : memref<8x128xf32, #tpu.memory_space<vmem>>, vector<8x128xf32>
    tpu.vector_store %arg10[%c0_6, %c0_7], %8 {strides = array<i32>} : memref<8x128xf32, #tpu.memory_space<vmem>>, vector<8x128xf32>,
    %c1_i32 = arith.constant 1 : i32
    %10 = arith.cmpi eq, %arg2, %c1_i32 : i32
    %11 = arith.extui %10 : i1 to i32
    %c0_i32_8 = arith.constant 0 : i32
    %12 = arith.cmpi ne, %11, %c0_i32_8 : i32
    scf.if %12 {
      %c0_9 = arith.constant 0 : index
      %c0_10 = arith.constant 0 : index
      %13 = vector.load %arg10[%c0_9, %c0_10] : memref<8x128xf32, #tpu.memory_space<vmem>>, vector<8x128xf32>
      %c0_11 = arith.constant 0 : index
      %c0_12 = arith.constant 0 : index
      %14 = vector.load %arg5[%c0_11, %c0_12] : memref<1x128xf32, #tpu.memory_space<vmem>>, vector<1x128xf32>
      %15 = vector.broadcast %14 : vector<1x128xf32> to vector<8x128xf32>
      %16 = arith.addf %13, %15 : vector<8x128xf32>
      %cst_13 = arith.constant 0.000000e+00 : f32
      %17 = vector.broadcast %cst_13 : f32 to vector<8x128xf32>
      %18 = arith.maximumf %16, %17 : vector<8x128xf32>
      %c0_14 = arith.constant 0 : index
      %c0_15 = arith.constant 0 : index
      %19 = vector.load %arg8[%c0_14, %c0_15] : memref<8x128xf32, #tpu.memory_space<vmem>>, vector<8x128xf32>
      tpu.vector_store %arg8[%c0_14, %c0_15], %18 {strides = array<i32>} : memref<8x128xf32, #tpu.memory_space<vmem>>, vector<8x128xf32>,
      %c0_16 = arith.constant 0 : index
      %c0_17 = arith.constant 0 : index
      %20 = vector.load %arg6[%c0_16, %c0_17] : memref<8x128xf32, #tpu.memory_space<vmem>>, vector<8x128xf32>
      %21 = arith.mulf %18, %20 : vector<8x128xf32>
      %c0_18 = arith.constant 0 : index
      %c0_19 = arith.constant 0 : index
      %22 = vector.load %arg7[%c0_18, %c0_19] : memref<8x128xf32, #tpu.memory_space<vmem>>, vector<8x128xf32>
      %23 = arith.addf %21, %22 : vector<8x128xf32>
      %c0_20 = arith.constant 0 : index
      %c0_21 = arith.constant 0 : index
      %24 = vector.load %arg9[%c0_20, %c0_21] : memref<8x128xf32, #tpu.memory_space<vmem>>, vector<8x128xf32>
      tpu.vector_store %arg9[%c0_20, %c0_21], %23 {strides = array<i32>} : memref<8x128xf32, #tpu.memory_space<vmem>>, vector<8x128xf32>,
    } else {
    }
    return
  }
  func.func @transform_0(%arg0: i32, %arg1: i32, %arg2: i32) -> (i32, i32) {
    %c0_i32 = arith.constant 0 : i32
    return %arg0, %arg2 : i32, i32
  }
  func.func @transform_1(%arg0: i32, %arg1: i32, %arg2: i32) -> (i32, i32) {
    %c0_i32 = arith.constant 0 : i32
    return %arg2, %arg1 : i32, i32
  }
  func.func @transform_2(%arg0: i32, %arg1: i32, %arg2: i32) -> (i32, i32) {
    %c0_i32 = arith.constant 0 : i32
    %c0_i32_0 = arith.constant 0 : i32
    return %c0_i32, %arg1 : i32, i32
  }
  func.func @transform_3(%arg0: i32, %arg1: i32, %arg2: i32) -> (i32, i32) {
    %c0_i32 = arith.constant 0 : i32
    return %arg0, %arg1 : i32, i32
  }
  func.func @transform_4(%arg0: i32, %arg1: i32, %arg2: i32) -> (i32, i32) {
    %c0_i32 = arith.constant 0 : i32
    return %arg0, %arg1 : i32, i32
  }
  func.func @transform_5(%arg0: i32, %arg1: i32, %arg2: i32) -> (i32, i32) {
    %c0_i32 = arith.constant 0 : i32
    return %arg0, %arg1 : i32, i32
  }
  func.func @transform_6(%arg0: i32, %arg1: i32, %arg2: i32) -> (i32, i32) {
    %c0_i32 = arith.constant 0 : i32
    return %arg0, %arg1 : i32, i32
  }
}

module attributes {stable_mosaic.version = 11 : i64} {
  func.func @_decoder_kernel(%arg0: memref<8x128xf32, #tpu.memory_space<vmem>>, %arg1: memref<50x10xf32, #tpu.memory_space<vmem>>, %arg2: memref<50x1xf32, #tpu.memory_space<vmem>>, %arg3: memref<10x500xf32, #tpu.memory_space<vmem>>, %arg4: memref<10x1xf32, #tpu.memory_space<vmem>>, %arg5: memref<14x2560xf32, #tpu.memory_space<vmem>>, %arg6: memref<1x256xf32, #tpu.memory_space<vmem>>, %arg7: memref<256x32xf32, #tpu.memory_space<vmem>>, %arg8: memref<1x32xf32, #tpu.memory_space<vmem>>, %arg9: memref<2x32xf32, #tpu.memory_space<vmem>>) attributes {dimension_semantics = [], scalar_prefetch = 0 : i64, scratch_operands = 0 : i64, tpu.core_type = #tpu.core_type<tc>} {
    %c0 = arith.constant 0 : index
    %c0_0 = arith.constant 0 : index
    %0 = vector.load %arg1[%c0, %c0_0] : memref<50x10xf32, #tpu.memory_space<vmem>>, vector<50x10xf32>
    %c0_1 = arith.constant 0 : index
    %c0_2 = arith.constant 0 : index
    %1 = vector.load %arg2[%c0_1, %c0_2] : memref<50x1xf32, #tpu.memory_space<vmem>>, vector<50x1xf32>
    %c0_3 = arith.constant 0 : index
    %c0_4 = arith.constant 0 : index
    %2 = vector.load %arg3[%c0_3, %c0_4] : memref<10x500xf32, #tpu.memory_space<vmem>>, vector<10x500xf32>
    %c0_5 = arith.constant 0 : index
    %c0_6 = arith.constant 0 : index
    %3 = vector.load %arg4[%c0_5, %c0_6] : memref<10x1xf32, #tpu.memory_space<vmem>>, vector<10x1xf32>
    %c0_7 = arith.constant 0 : index
    %c0_8 = arith.constant 0 : index
    %4 = vector.load %arg5[%c0_7, %c0_8] : memref<14x2560xf32, #tpu.memory_space<vmem>>, vector<14x2560xf32>
    %c0_9 = arith.constant 0 : index
    %c0_10 = arith.constant 0 : index
    %5 = vector.load %arg6[%c0_9, %c0_10] : memref<1x256xf32, #tpu.memory_space<vmem>>, vector<1x256xf32>
    %c0_11 = arith.constant 0 : index
    %c0_12 = arith.constant 0 : index
    %6 = vector.load %arg7[%c0_11, %c0_12] : memref<256x32xf32, #tpu.memory_space<vmem>>, vector<256x32xf32>
    %c0_13 = arith.constant 0 : index
    %c0_14 = arith.constant 0 : index
    %7 = vector.load %arg8[%c0_13, %c0_14] : memref<1x32xf32, #tpu.memory_space<vmem>>, vector<1x32xf32>
    %c0_15 = arith.constant 0 : index
    %c0_16 = arith.constant 0 : index
    %8 = vector.load %arg0[%c0_15, %c0_16] : memref<8x128xf32, #tpu.memory_space<vmem>>, vector<1x32xf32>
    %9 = vector.extract_strided_slice %8 {offsets = [0, 0], sizes = [1, 23], strides = [1, 1]} : vector<1x32xf32> to vector<1x23xf32>
    %10 = vector.extract_strided_slice %8 {offsets = [0, 1], sizes = [1, 23], strides = [1, 1]} : vector<1x32xf32> to vector<1x23xf32>
    %11 = vector.extract_strided_slice %8 {offsets = [0, 2], sizes = [1, 23], strides = [1, 1]} : vector<1x32xf32> to vector<1x23xf32>
    %12 = vector.extract_strided_slice %8 {offsets = [0, 3], sizes = [1, 23], strides = [1, 1]} : vector<1x32xf32> to vector<1x23xf32>
    %13 = vector.extract_strided_slice %8 {offsets = [0, 4], sizes = [1, 23], strides = [1, 1]} : vector<1x32xf32> to vector<1x23xf32>
    %14 = vector.extract_strided_slice %8 {offsets = [0, 5], sizes = [1, 23], strides = [1, 1]} : vector<1x32xf32> to vector<1x23xf32>
    %15 = vector.extract_strided_slice %8 {offsets = [0, 6], sizes = [1, 23], strides = [1, 1]} : vector<1x32xf32> to vector<1x23xf32>
    %16 = vector.extract_strided_slice %8 {offsets = [0, 7], sizes = [1, 23], strides = [1, 1]} : vector<1x32xf32> to vector<1x23xf32>
    %17 = vector.extract_strided_slice %8 {offsets = [0, 8], sizes = [1, 23], strides = [1, 1]} : vector<1x32xf32> to vector<1x23xf32>
    %18 = vector.extract_strided_slice %8 {offsets = [0, 9], sizes = [1, 23], strides = [1, 1]} : vector<1x32xf32> to vector<1x23xf32>
    %19 = tpu.concatenate %9, %10, %11, %12, %13, %14, %15, %16, %17, %18 in 0 : vector<1x23xf32>, vector<1x23xf32>, vector<1x23xf32>, vector<1x23xf32>, vector<1x23xf32>, vector<1x23xf32>, vector<1x23xf32>, vector<1x23xf32>, vector<1x23xf32>, vector<1x23xf32> -> vector<10x23xf32>
    %cst = arith.constant dense<0.000000e+00> : vector<50x23xf32>
    %20 = tpu.matmul %0, %19, %cst {dimension_numbers = #tpu.dot_dimension_numbers<[1], [0], [0], [1], [0, 0, 1, 1], [], []>} : vector<50x10xf32>, vector<10x23xf32>, vector<50x23xf32> -> vector<50x23xf32>
    %21 = vector.broadcast %1 : vector<50x1xf32> to vector<50x23xf32>
    %22 = arith.addf %20, %21 : vector<50x23xf32>
    %cst_17 = arith.constant 0.000000e+00 : f32
    %23 = vector.broadcast %cst_17 : f32 to vector<50x23xf32>
    %24 = arith.maximumf %22, %23 : vector<50x23xf32>
    %25 = vector.extract_strided_slice %24 {offsets = [0, 0], sizes = [50, 14], strides = [1, 1]} : vector<50x23xf32> to vector<50x14xf32>
    %26 = vector.extract_strided_slice %24 {offsets = [0, 1], sizes = [50, 14], strides = [1, 1]} : vector<50x23xf32> to vector<50x14xf32>
    %27 = vector.extract_strided_slice %24 {offsets = [0, 2], sizes = [50, 14], strides = [1, 1]} : vector<50x23xf32> to vector<50x14xf32>
    %28 = vector.extract_strided_slice %24 {offsets = [0, 3], sizes = [50, 14], strides = [1, 1]} : vector<50x23xf32> to vector<50x14xf32>
    %29 = vector.extract_strided_slice %24 {offsets = [0, 4], sizes = [50, 14], strides = [1, 1]} : vector<50x23xf32> to vector<50x14xf32>
    %30 = vector.extract_strided_slice %24 {offsets = [0, 5], sizes = [50, 14], strides = [1, 1]} : vector<50x23xf32> to vector<50x14xf32>
    %31 = vector.extract_strided_slice %24 {offsets = [0, 6], sizes = [50, 14], strides = [1, 1]} : vector<50x23xf32> to vector<50x14xf32>
    %32 = vector.extract_strided_slice %24 {offsets = [0, 7], sizes = [50, 14], strides = [1, 1]} : vector<50x23xf32> to vector<50x14xf32>
    %33 = vector.extract_strided_slice %24 {offsets = [0, 8], sizes = [50, 14], strides = [1, 1]} : vector<50x23xf32> to vector<50x14xf32>
    %34 = vector.extract_strided_slice %24 {offsets = [0, 9], sizes = [50, 14], strides = [1, 1]} : vector<50x23xf32> to vector<50x14xf32>
    %35 = tpu.concatenate %25, %26, %27, %28, %29, %30, %31, %32, %33, %34 in 0 : vector<50x14xf32>, vector<50x14xf32>, vector<50x14xf32>, vector<50x14xf32>, vector<50x14xf32>, vector<50x14xf32>, vector<50x14xf32>, vector<50x14xf32>, vector<50x14xf32>, vector<50x14xf32> -> vector<500x14xf32>
    %cst_18 = arith.constant dense<0.000000e+00> : vector<10x14xf32>
    %36 = tpu.matmul %2, %35, %cst_18 {dimension_numbers = #tpu.dot_dimension_numbers<[1], [0], [0], [1], [0, 0, 1, 1], [], []>} : vector<10x500xf32>, vector<500x14xf32>, vector<10x14xf32> -> vector<10x14xf32>
    %37 = vector.broadcast %3 : vector<10x1xf32> to vector<10x14xf32>
    %38 = arith.addf %36, %37 : vector<10x14xf32>
    %cst_19 = arith.constant 0.000000e+00 : f32
    %39 = vector.broadcast %cst_19 : f32 to vector<10x14xf32>
    %40 = arith.maximumf %38, %39 : vector<10x14xf32>
    %cst_20 = arith.constant dense<0.000000e+00> : vector<10x2560xf32>
    %41 = tpu.matmul %40, %4, %cst_20 {dimension_numbers = #tpu.dot_dimension_numbers<[1], [0], [0], [1], [0, 0, 1, 1], [], []>} : vector<10x14xf32>, vector<14x2560xf32>, vector<10x2560xf32> -> vector<10x2560xf32>
    %42 = vector.extract_strided_slice %41 {offsets = [0, 0], sizes = [1, 256], strides = [1, 1]} : vector<10x2560xf32> to vector<1x256xf32>
    %43 = arith.addf %5, %42 : vector<1x256xf32>
    %44 = vector.extract_strided_slice %41 {offsets = [1, 256], sizes = [1, 256], strides = [1, 1]} : vector<10x2560xf32> to vector<1x256xf32>
    %45 = arith.addf %43, %44 : vector<1x256xf32>
    %46 = vector.extract_strided_slice %41 {offsets = [2, 512], sizes = [1, 256], strides = [1, 1]} : vector<10x2560xf32> to vector<1x256xf32>
    %47 = arith.addf %45, %46 : vector<1x256xf32>
    %48 = vector.extract_strided_slice %41 {offsets = [3, 768], sizes = [1, 256], strides = [1, 1]} : vector<10x2560xf32> to vector<1x256xf32>
    %49 = arith.addf %47, %48 : vector<1x256xf32>
    %50 = vector.extract_strided_slice %41 {offsets = [4, 1024], sizes = [1, 256], strides = [1, 1]} : vector<10x2560xf32> to vector<1x256xf32>
    %51 = arith.addf %49, %50 : vector<1x256xf32>
    %52 = vector.extract_strided_slice %41 {offsets = [5, 1280], sizes = [1, 256], strides = [1, 1]} : vector<10x2560xf32> to vector<1x256xf32>
    %53 = arith.addf %51, %52 : vector<1x256xf32>
    %54 = vector.extract_strided_slice %41 {offsets = [6, 1536], sizes = [1, 256], strides = [1, 1]} : vector<10x2560xf32> to vector<1x256xf32>
    %55 = arith.addf %53, %54 : vector<1x256xf32>
    %56 = vector.extract_strided_slice %41 {offsets = [7, 1792], sizes = [1, 256], strides = [1, 1]} : vector<10x2560xf32> to vector<1x256xf32>
    %57 = arith.addf %55, %56 : vector<1x256xf32>
    %58 = vector.extract_strided_slice %41 {offsets = [8, 2048], sizes = [1, 256], strides = [1, 1]} : vector<10x2560xf32> to vector<1x256xf32>
    %59 = arith.addf %57, %58 : vector<1x256xf32>
    %60 = vector.extract_strided_slice %41 {offsets = [9, 2304], sizes = [1, 256], strides = [1, 1]} : vector<10x2560xf32> to vector<1x256xf32>
    %61 = arith.addf %59, %60 : vector<1x256xf32>
    %cst_21 = arith.constant 0.000000e+00 : f32
    %62 = vector.broadcast %cst_21 : f32 to vector<1x256xf32>
    %63 = arith.maximumf %61, %62 : vector<1x256xf32>
    %cst_22 = arith.constant dense<0.000000e+00> : vector<1x32xf32>
    %64 = tpu.matmul %63, %6, %cst_22 {dimension_numbers = #tpu.dot_dimension_numbers<[1], [0], [0], [1], [0, 0, 1, 1], [], []>} : vector<1x256xf32>, vector<256x32xf32>, vector<1x32xf32> -> vector<1x32xf32>
    %65 = arith.addf %64, %7 : vector<1x32xf32>
    %66 = arith.negf %65 : vector<1x32xf32>
    %67 = math.exp %66 : vector<1x32xf32>
    %cst_23 = arith.constant 1.000000e+00 : f32
    %68 = vector.broadcast %cst_23 : f32 to vector<1x32xf32>
    %69 = arith.addf %68, %67 : vector<1x32xf32>
    %70 = arith.divf %68, %69 : vector<1x32xf32>
    %c1 = arith.constant 1 : index
    %c0_24 = arith.constant 0 : index
    %71 = vector.load %arg0[%c1, %c0_24] : memref<8x128xf32, #tpu.memory_space<vmem>>, vector<1x32xf32>
    %72 = vector.extract_strided_slice %71 {offsets = [0, 0], sizes = [1, 23], strides = [1, 1]} : vector<1x32xf32> to vector<1x23xf32>
    %73 = vector.extract_strided_slice %71 {offsets = [0, 1], sizes = [1, 23], strides = [1, 1]} : vector<1x32xf32> to vector<1x23xf32>
    %74 = vector.extract_strided_slice %71 {offsets = [0, 2], sizes = [1, 23], strides = [1, 1]} : vector<1x32xf32> to vector<1x23xf32>
    %75 = vector.extract_strided_slice %71 {offsets = [0, 3], sizes = [1, 23], strides = [1, 1]} : vector<1x32xf32> to vector<1x23xf32>
    %76 = vector.extract_strided_slice %71 {offsets = [0, 4], sizes = [1, 23], strides = [1, 1]} : vector<1x32xf32> to vector<1x23xf32>
    %77 = vector.extract_strided_slice %71 {offsets = [0, 5], sizes = [1, 23], strides = [1, 1]} : vector<1x32xf32> to vector<1x23xf32>
    %78 = vector.extract_strided_slice %71 {offsets = [0, 6], sizes = [1, 23], strides = [1, 1]} : vector<1x32xf32> to vector<1x23xf32>
    %79 = vector.extract_strided_slice %71 {offsets = [0, 7], sizes = [1, 23], strides = [1, 1]} : vector<1x32xf32> to vector<1x23xf32>
    %80 = vector.extract_strided_slice %71 {offsets = [0, 8], sizes = [1, 23], strides = [1, 1]} : vector<1x32xf32> to vector<1x23xf32>
    %81 = vector.extract_strided_slice %71 {offsets = [0, 9], sizes = [1, 23], strides = [1, 1]} : vector<1x32xf32> to vector<1x23xf32>
    %82 = tpu.concatenate %72, %73, %74, %75, %76, %77, %78, %79, %80, %81 in 0 : vector<1x23xf32>, vector<1x23xf32>, vector<1x23xf32>, vector<1x23xf32>, vector<1x23xf32>, vector<1x23xf32>, vector<1x23xf32>, vector<1x23xf32>, vector<1x23xf32>, vector<1x23xf32> -> vector<10x23xf32>
    %cst_25 = arith.constant dense<0.000000e+00> : vector<50x23xf32>
    %83 = tpu.matmul %0, %82, %cst_25 {dimension_numbers = #tpu.dot_dimension_numbers<[1], [0], [0], [1], [0, 0, 1, 1], [], []>} : vector<50x10xf32>, vector<10x23xf32>, vector<50x23xf32> -> vector<50x23xf32>
    %84 = vector.broadcast %1 : vector<50x1xf32> to vector<50x23xf32>
    %85 = arith.addf %83, %84 : vector<50x23xf32>
    %cst_26 = arith.constant 0.000000e+00 : f32
    %86 = vector.broadcast %cst_26 : f32 to vector<50x23xf32>
    %87 = arith.maximumf %85, %86 : vector<50x23xf32>
    %88 = vector.extract_strided_slice %87 {offsets = [0, 0], sizes = [50, 14], strides = [1, 1]} : vector<50x23xf32> to vector<50x14xf32>
    %89 = vector.extract_strided_slice %87 {offsets = [0, 1], sizes = [50, 14], strides = [1, 1]} : vector<50x23xf32> to vector<50x14xf32>
    %90 = vector.extract_strided_slice %87 {offsets = [0, 2], sizes = [50, 14], strides = [1, 1]} : vector<50x23xf32> to vector<50x14xf32>
    %91 = vector.extract_strided_slice %87 {offsets = [0, 3], sizes = [50, 14], strides = [1, 1]} : vector<50x23xf32> to vector<50x14xf32>
    %92 = vector.extract_strided_slice %87 {offsets = [0, 4], sizes = [50, 14], strides = [1, 1]} : vector<50x23xf32> to vector<50x14xf32>
    %93 = vector.extract_strided_slice %87 {offsets = [0, 5], sizes = [50, 14], strides = [1, 1]} : vector<50x23xf32> to vector<50x14xf32>
    %94 = vector.extract_strided_slice %87 {offsets = [0, 6], sizes = [50, 14], strides = [1, 1]} : vector<50x23xf32> to vector<50x14xf32>
    %95 = vector.extract_strided_slice %87 {offsets = [0, 7], sizes = [50, 14], strides = [1, 1]} : vector<50x23xf32> to vector<50x14xf32>
    %96 = vector.extract_strided_slice %87 {offsets = [0, 8], sizes = [50, 14], strides = [1, 1]} : vector<50x23xf32> to vector<50x14xf32>
    %97 = vector.extract_strided_slice %87 {offsets = [0, 9], sizes = [50, 14], strides = [1, 1]} : vector<50x23xf32> to vector<50x14xf32>
    %98 = tpu.concatenate %88, %89, %90, %91, %92, %93, %94, %95, %96, %97 in 0 : vector<50x14xf32>, vector<50x14xf32>, vector<50x14xf32>, vector<50x14xf32>, vector<50x14xf32>, vector<50x14xf32>, vector<50x14xf32>, vector<50x14xf32>, vector<50x14xf32>, vector<50x14xf32> -> vector<500x14xf32>
    %cst_27 = arith.constant dense<0.000000e+00> : vector<10x14xf32>
    %99 = tpu.matmul %2, %98, %cst_27 {dimension_numbers = #tpu.dot_dimension_numbers<[1], [0], [0], [1], [0, 0, 1, 1], [], []>} : vector<10x500xf32>, vector<500x14xf32>, vector<10x14xf32> -> vector<10x14xf32>
    %100 = vector.broadcast %3 : vector<10x1xf32> to vector<10x14xf32>
    %101 = arith.addf %99, %100 : vector<10x14xf32>
    %cst_28 = arith.constant 0.000000e+00 : f32
    %102 = vector.broadcast %cst_28 : f32 to vector<10x14xf32>
    %103 = arith.maximumf %101, %102 : vector<10x14xf32>
    %cst_29 = arith.constant dense<0.000000e+00> : vector<10x2560xf32>
    %104 = tpu.matmul %103, %4, %cst_29 {dimension_numbers = #tpu.dot_dimension_numbers<[1], [0], [0], [1], [0, 0, 1, 1], [], []>} : vector<10x14xf32>, vector<14x2560xf32>, vector<10x2560xf32> -> vector<10x2560xf32>
    %105 = vector.extract_strided_slice %104 {offsets = [0, 0], sizes = [1, 256], strides = [1, 1]} : vector<10x2560xf32> to vector<1x256xf32>
    %106 = arith.addf %5, %105 : vector<1x256xf32>
    %107 = vector.extract_strided_slice %104 {offsets = [1, 256], sizes = [1, 256], strides = [1, 1]} : vector<10x2560xf32> to vector<1x256xf32>
    %108 = arith.addf %106, %107 : vector<1x256xf32>
    %109 = vector.extract_strided_slice %104 {offsets = [2, 512], sizes = [1, 256], strides = [1, 1]} : vector<10x2560xf32> to vector<1x256xf32>
    %110 = arith.addf %108, %109 : vector<1x256xf32>
    %111 = vector.extract_strided_slice %104 {offsets = [3, 768], sizes = [1, 256], strides = [1, 1]} : vector<10x2560xf32> to vector<1x256xf32>
    %112 = arith.addf %110, %111 : vector<1x256xf32>
    %113 = vector.extract_strided_slice %104 {offsets = [4, 1024], sizes = [1, 256], strides = [1, 1]} : vector<10x2560xf32> to vector<1x256xf32>
    %114 = arith.addf %112, %113 : vector<1x256xf32>
    %115 = vector.extract_strided_slice %104 {offsets = [5, 1280], sizes = [1, 256], strides = [1, 1]} : vector<10x2560xf32> to vector<1x256xf32>
    %116 = arith.addf %114, %115 : vector<1x256xf32>
    %117 = vector.extract_strided_slice %104 {offsets = [6, 1536], sizes = [1, 256], strides = [1, 1]} : vector<10x2560xf32> to vector<1x256xf32>
    %118 = arith.addf %116, %117 : vector<1x256xf32>
    %119 = vector.extract_strided_slice %104 {offsets = [7, 1792], sizes = [1, 256], strides = [1, 1]} : vector<10x2560xf32> to vector<1x256xf32>
    %120 = arith.addf %118, %119 : vector<1x256xf32>
    %121 = vector.extract_strided_slice %104 {offsets = [8, 2048], sizes = [1, 256], strides = [1, 1]} : vector<10x2560xf32> to vector<1x256xf32>
    %122 = arith.addf %120, %121 : vector<1x256xf32>
    %123 = vector.extract_strided_slice %104 {offsets = [9, 2304], sizes = [1, 256], strides = [1, 1]} : vector<10x2560xf32> to vector<1x256xf32>
    %124 = arith.addf %122, %123 : vector<1x256xf32>
    %cst_30 = arith.constant 0.000000e+00 : f32
    %125 = vector.broadcast %cst_30 : f32 to vector<1x256xf32>
    %126 = arith.maximumf %124, %125 : vector<1x256xf32>
    %cst_31 = arith.constant dense<0.000000e+00> : vector<1x32xf32>
    %127 = tpu.matmul %126, %6, %cst_31 {dimension_numbers = #tpu.dot_dimension_numbers<[1], [0], [0], [1], [0, 0, 1, 1], [], []>} : vector<1x256xf32>, vector<256x32xf32>, vector<1x32xf32> -> vector<1x32xf32>
    %128 = arith.addf %127, %7 : vector<1x32xf32>
    %129 = arith.negf %128 : vector<1x32xf32>
    %130 = math.exp %129 : vector<1x32xf32>
    %cst_32 = arith.constant 1.000000e+00 : f32
    %131 = vector.broadcast %cst_32 : f32 to vector<1x32xf32>
    %132 = arith.addf %131, %130 : vector<1x32xf32>
    %133 = arith.divf %131, %132 : vector<1x32xf32>
    %134 = tpu.concatenate %70, %133 in 0 : vector<1x32xf32>, vector<1x32xf32> -> vector<2x32xf32>
    %c0_33 = arith.constant 0 : index
    %c0_34 = arith.constant 0 : index
    %135 = vector.load %arg9[%c0_33, %c0_34] : memref<2x32xf32, #tpu.memory_space<vmem>>, vector<2x32xf32>
    tpu.vector_store %arg9[%c0_33, %c0_34], %134 {strides = array<i32>} : memref<2x32xf32, #tpu.memory_space<vmem>>, vector<2x32xf32>,
    return
  }
}

</mosaic_0001>

<bundles_post_ra>
// kernel: ae_watermark_forward.5
= control target key start
LH: loop header
LB: loop body
LE: loop exit
PB: predicated region body
PF: predicated region fallthrough
CT: control target
= control target key end

     0   :  { %8 = vsyncpa [#allocation4], 0  ;;  %s1072_s0 = inlined_call_operand.vmem [shape: f32[8,128], index: 0, kind: input, shape index: {}]   ;;  %s1073_s1 = inlined_call_operand.hbm [shape: bf16[128,1024], index: 1, kind: input, shape index: {}]   ;;  %s1074_s2 = inlined_call_operand.hbm [shape: f32[1,1024], index: 2, kind: input, shape index: {}]   ;;  %s1075_s3 = inlined_call_operand.vmem [shape: f32[8,1024], index: 3, kind: output, shape index: {}]  }
   0x1   :  { %s16_s14 = sshll.u32 %s1073_s1, 4  ;;  %s17_s14 = int_to_ptr.hbm [resolvable:$true] %s16_s14 }
   0x2   :  { %9 = vsyncpa [#allocation6], 0  ;;  %s1005_s15 = smov [#allocation3]   ;;  %s30_s19 = sshll.u32 %s1074_s2, 4  ;;  %s31_s19 = int_to_ptr.hbm [resolvable:$true] %s30_s19 }
   0x3   :  { %s18_s16 = sshll.u32 %s1005_s15, 4  ;;  %s1006_s20 = smov 512   ;;  %s19_s16 = int_to_ptr.vmem [resolvable:$true] %s18_s16 }
   0x4   :  { %s1007_s21 = smov 32   ;;  %s1008_s22 = smov [#allocation5]  }
   0x5   :  { %24 = dma.hbm_to_vmem [thread:$0]  %s17_s14, 8192, %s19_s16, [#allocation4], %s1006_s20, %s1006_s20, %s1007_s21  }
   0x6   :  { %s32_s23 = sshll.u32 %s1008_s22, 4  ;;  %s33_s23 = int_to_ptr.vmem [resolvable:$true] %s32_s23 }
   0x7   :  { %35 = dma.hbm_to_vmem [thread:$0]  %s31_s19, 128, %s33_s23, [#allocation6]  }
   0x8   :  { %1001 = dma.done.wait [#allocation4], 8192  }
   0x9   :  { %1002 = vsyncadd [#allocation4], 4294959104 }
   0xa   :  { %1003 = dma.done.wait [#allocation6], 128  }
   0xb   :  { %1004 = vsyncadd [#allocation6], 4294967168  ;;  %v855_v0 = vld [vmem:[#allocation3 + $0x1c0] sm:$0xf]  ;;  %v941_v2 = vld [vmem:[#allocation3 + $0x1c4] sm:$0xf] }
   0xc   :  { %v945_v1 = vld [vmem:[#allocation3 + $0x1dc] sm:$0xf0]  ;;  %v857_v4 = vld [vmem:[#allocation3 + $0x1e0] sm:$0xf0]  ;;  %v863_v5 = vld [vmem:[#allocation3 + $0x1c8] sm:$0xf] }
   0xd   :  { %v856_v3 = vor.u32 %v945_v1, %v855_v0  ;;  %v946_v6 = vld [vmem:[#allocation3 + $0x1e4] sm:$0xf0]  ;;  %v860_v7 = vor.u32 %v941_v2, %v857_v4  ;;  %v942_v9 = vld [vmem:[#allocation3 + $0x1cc] sm:$0xf]  ;;  %v823_v11 = vld [vmem:[#allocation3 + $0x180] sm:$0xf] }
   0xe   :  { %v864_v8 = vor.u32 %v946_v6, %v863_v5  ;;  %v865_v10 = vld [vmem:[#allocation3 + $0x1e8] sm:$0xf0]  ;;  %v937_v13 = vld [vmem:[#allocation3 + $0x19c] sm:$0xf0]  ;;  %v933_v14 = vld [vmem:[#allocation3 + $0x184] sm:$0xf] }
   0xf   :  { %450 = vmatpush.bf16.msra.mxu0 %v856_v3  ;;  %v868_v12 = vor.u32 %v942_v9, %v865_v10  ;;  %v825_v15 = vld [vmem:[#allocation3 + $0x1a0] sm:$0xf0]  ;;  %463 = vmatpush.bf16.msra.mxu1 %v860_v7  ;;  %v824_v16 = vor.u32 %v937_v13, %v823_v11  ;;  %v831_v18 = vld [vmem:[#allocation3 + $0x188] sm:$0xf]  ;;  %v934_v20 = vld [vmem:[#allocation3 + $0x18c] sm:$0xf] }
  0x10   :  { %476 = vmatpush.bf16.msra.mxu2 %v864_v8  ;;  %v828_v17 = vor.u32 %v933_v14, %v825_v15  ;;  %v938_v19 = vld [vmem:[#allocation3 + $0x1a4] sm:$0xf0]  ;;  %v833_v22 = vld [vmem:[#allocation3 + $0x1a8] sm:$0xf0]  ;;  %v791_v23 = vld [vmem:[#allocation3 + $0x140] sm:$0xf] }
  0x11   :  { %489 = vmatpush.bf16.msra.mxu3 %v868_v12  ;;  %v832_v21 = vor.u32 %v938_v19, %v831_v18  ;;  %v929_v24 = vld [vmem:[#allocation3 + $0x15c] sm:$0xf0]  ;;  %v836_v25 = vor.u32 %v934_v20, %v833_v22  ;;  %v925_v26 = vld [vmem:[#allocation3 + $0x144] sm:$0xf]  ;;  %v799_v28 = vld [vmem:[#allocation3 + $0x148] sm:$0xf] }
  0x12   :  { %v793_v27 = vld [vmem:[#allocation3 + $0x160] sm:$0xf0]  ;;  %v792_v29 = vor.u32 %v929_v24, %v791_v23  ;;  %v930_v30 = vld [vmem:[#allocation3 + $0x164] sm:$0xf0]  ;;  %v926_v31 = vld [vmem:[#allocation3 + $0x14c] sm:$0xf] }
  0x13   :  { %451 = vmatpush.bf16.msra.mxu0 %v824_v16  ;;  %v801_v32 = vld [vmem:[#allocation3 + $0x168] sm:$0xf0]  ;;  %464 = vmatpush.bf16.msra.mxu1 %v828_v17  ;;  %v796_v33 = vor.u32 %v925_v26, %v793_v27  ;;  %v800_v34 = vor.u32 %v930_v30, %v799_v28  ;;  %v759_v35 = vld [vmem:[#allocation3 + $0x100] sm:$0xf]  ;;  %v917_v37 = vld [vmem:[#allocation3 + $0x104] sm:$0xf] }
  0x14   :  { %477 = vmatpush.bf16.msra.mxu2 %v832_v21  ;;  %v921_v36 = vld [vmem:[#allocation3 + $0x11c] sm:$0xf0]  ;;  %v804_v38 = vor.u32 %v926_v31, %v801_v32  ;;  %v761_v39 = vld [vmem:[#allocation3 + $0x120] sm:$0xf0]  ;;  %v767_v40 = vld [vmem:[#allocation3 + $0x108] sm:$0xf] }
  0x15   :  { %490 = vmatpush.bf16.msra.mxu3 %v836_v25  ;;  %v922_v41 = vld [vmem:[#allocation3 + $0x124] sm:$0xf0]  ;;  %v918_v42 = vld [vmem:[#allocation3 + $0x10c] sm:$0xf]  ;;  %v760_v44 = vor.u32 %v921_v36, %v759_v35  ;;  %v764_v45 = vor.u32 %v917_v37, %v761_v39  ;;  %v727_v47 = vld [vmem:[#allocation3 + $0xc0] sm:$0xf] }
  0x16   :  { %v769_v43 = vld [vmem:[#allocation3 + $0x128] sm:$0xf0]  ;;  %v768_v46 = vor.u32 %v922_v41, %v767_v40  ;;  %v913_v48 = vld [vmem:[#allocation3 + $0xdc] sm:$0xf0]  ;;  %v909_v49 = vld [vmem:[#allocation3 + $0xc4] sm:$0xf] }
  0x17   :  { %452 = vmatpush.bf16.msra.mxu0 %v792_v29  ;;  %465 = vmatpush.bf16.msra.mxu1 %v796_v33  ;;  %v772_v50 = vor.u32 %v918_v42, %v769_v43  ;;  %v729_v51 = vld [vmem:[#allocation3 + $0xe0] sm:$0xf0]  ;;  %v735_v52 = vld [vmem:[#allocation3 + $0xc8] sm:$0xf]  ;;  %v910_v54 = vld [vmem:[#allocation3 + $0xcc] sm:$0xf]  ;;  %v728_v56 = vor.u32 %v913_v48, %v727_v47 }
  0x18   :  { %478 = vmatpush.bf16.msra.mxu2 %v800_v34  ;;  %v914_v53 = vld [vmem:[#allocation3 + $0xe4] sm:$0xf0]  ;;  %v737_v55 = vld [vmem:[#allocation3 + $0xe8] sm:$0xf0]  ;;  %v732_v57 = vor.u32 %v909_v49, %v729_v51  ;;  %v695_v59 = vld [vmem:[#allocation3 + $0x80] sm:$0xf] }
  0x19   :  { %491 = vmatpush.bf16.msra.mxu3 %v804_v38  ;;  %v736_v58 = vor.u32 %v914_v53, %v735_v52  ;;  %v905_v60 = vld [vmem:[#allocation3 + $0x9c] sm:$0xf0]  ;;  %v901_v61 = vld [vmem:[#allocation3 + $0x84] sm:$0xf]  ;;  %v740_v62 = vor.u32 %v910_v54, %v737_v55  ;;  %v703_v0 = vld [vmem:[#allocation3 + $0x88] sm:$0xf] }
  0x1a   :  { %v697_v63 = vld [vmem:[#allocation3 + $0xa0] sm:$0xf0]  ;;  %v906_v1 = vld [vmem:[#allocation3 + $0xa4] sm:$0xf0]  ;;  %v902_v2 = vld [vmem:[#allocation3 + $0x8c] sm:$0xf]  ;;  %v696_v4 = vor.u32 %v905_v60, %v695_v59 }
  0x1b   :  { %453 = vmatpush.bf16.msra.mxu0 %v760_v44  ;;  %466 = vmatpush.bf16.msra.mxu1 %v764_v45  ;;  %v705_v3 = vld [vmem:[#allocation3 + $0xa8] sm:$0xf0]  ;;  %v700_v5 = vor.u32 %v901_v61, %v697_v63  ;;  %v704_v6 = vor.u32 %v906_v1, %v703_v0  ;;  %v663_v7 = vld [vmem:[#allocation3 + $0x40] sm:$0xf]  ;;  %v893_v9 = vld [vmem:[#allocation3 + $0x44] sm:$0xf] }
  0x1c   :  { %479 = vmatpush.bf16.msra.mxu2 %v768_v46  ;;  %v897_v8 = vld [vmem:[#allocation3 + $0x5c] sm:$0xf0]  ;;  %v708_v10 = vor.u32 %v902_v2, %v705_v3  ;;  %v665_v11 = vld [vmem:[#allocation3 + $0x60] sm:$0xf0]  ;;  %v671_v12 = vld [vmem:[#allocation3 + $0x48] sm:$0xf] }
  0x1d   :  { %492 = vmatpush.bf16.msra.mxu3 %v772_v50  ;;  %v898_v13 = vld [vmem:[#allocation3 + $0x64] sm:$0xf0]  ;;  %v894_v14 = vld [vmem:[#allocation3 + $0x4c] sm:$0xf]  ;;  %v664_v16 = vor.u32 %v897_v8, %v663_v7  ;;  %v631_v17 = vld [vmem:[#allocation3] sm:$0xf]  ;;  %v668_v19 = vor.u32 %v893_v9, %v665_v11 }
  0x1e   :  { %v673_v15 = vld [vmem:[#allocation3 + $0x68] sm:$0xf0]  ;;  %v889_v18 = vld [vmem:[#allocation3 + $0x1c] sm:$0xf0]  ;;  %v672_v20 = vor.u32 %v898_v13, %v671_v12  ;;  %v885_v21 = vld [vmem:[#allocation3 + $0x4] sm:$0xf] }
  0x1f   :  { %454 = vmatpush.bf16.msra.mxu0 %v728_v56  ;;  %467 = vmatpush.bf16.msra.mxu1 %v732_v57  ;;  %v633_v22 = vld [vmem:[#allocation3 + $0x20] sm:$0xf0]  ;;  %v639_v23 = vld [vmem:[#allocation3 + $0x8] sm:$0xf]  ;;  %v676_v24 = vor.u32 %v894_v14, %v673_v15  ;;  %v886_v26 = vld [vmem:[#allocation3 + $0xc] sm:$0xf]  ;;  %v632_v31 = vor.u32 %v889_v18, %v631_v17 }
  0x20   :  { %480 = vmatpush.bf16.msra.mxu2 %v736_v58  ;;  %v890_v25 = vld [vmem:[#allocation3 + $0x24] sm:$0xf0]  ;;  %v641_v27 = vld [vmem:[#allocation3 + $0x28] sm:$0xf0]  ;;  %v871_v28 = vld [vmem:[#allocation3 + $0x1d0] sm:$0xf]  ;;  %v636_v35 = vor.u32 %v885_v21, %v633_v22 }
  0x21   :  { %493 = vmatpush.bf16.msra.mxu3 %v740_v62  ;;  %v947_v29 = vld [vmem:[#allocation3 + $0x1ec] sm:$0xf0]  ;;  %v943_v30 = vld [vmem:[#allocation3 + $0x1d4] sm:$0xf]  ;;  %v879_v33 = vld [vmem:[#allocation3 + $0x1d8] sm:$0xf]  ;;  %v640_v36 = vor.u32 %v890_v25, %v639_v23  ;;  %v644_v40 = vor.u32 %v886_v26, %v641_v27 }
  0x22   :  { %v873_v32 = vld [vmem:[#allocation3 + $0x1f0] sm:$0xf0]  ;;  %v948_v34 = vld [vmem:[#allocation3 + $0x1f4] sm:$0xf0]  ;;  %v944_v37 = vld [vmem:[#allocation3 + $0x1dc] sm:$0xf]  ;;  %v872_v41 = vor.u32 %v947_v29, %v871_v28 }
  0x23   :  { %455 = vmatpush.bf16.msra.mxu0 %v696_v4  ;;  %468 = vmatpush.bf16.msra.mxu1 %v700_v5  ;;  %v881_v38 = vld [vmem:[#allocation3 + $0x1f8] sm:$0xf0]  ;;  %v56_v39 = vld [vmem:[%s1072_s0] sm:$0xff]  ;;  %v876_v42 = vor.u32 %v943_v30, %v873_v32  ;;  %v880_v43 = vor.u32 %v948_v34, %v879_v33  ;;  %v839_v44 = vld [vmem:[#allocation3 + $0x190] sm:$0xf] }
  0x24   :  { %481 = vmatpush.bf16.msra.mxu2 %v704_v6  ;;  %v939_v45 = vld [vmem:[#allocation3 + $0x1ac] sm:$0xf0]  ;;  %v935_v46 = vld [vmem:[#allocation3 + $0x194] sm:$0xf]  ;;  %v884_v47 = vor.u32 %v944_v37, %v881_v38  ;;  %v847_v49 = vld [vmem:[#allocation3 + $0x198] sm:$0xf]  ;;  %v1038_v51 = vpack.c.bf16 %v56_v39, %v56_v39 }
  0x25   :  { %494 = vmatpush.bf16.msra.mxu3 %v708_v10  ;;  %v841_v48 = vld [vmem:[#allocation3 + $0x1b0] sm:$0xf0]  ;;  %v940_v50 = vld [vmem:[#allocation3 + $0x1b4] sm:$0xf0]  ;;  %v936_v52 = vld [vmem:[#allocation3 + $0x19c] sm:$0xf]  ;;  %v840_v54 = vor.u32 %v939_v45, %v839_v44 }
  0x26   :  { %v849_v53 = vld [vmem:[#allocation3 + $0x1b8] sm:$0xf0]  ;;  %v844_v55 = vor.u32 %v935_v46, %v841_v48  ;;  %v848_v56 = vor.u32 %v940_v50, %v847_v49  ;;  %v807_v57 = vld [vmem:[#allocation3 + $0x150] sm:$0xf]  ;;  %v927_v59 = vld [vmem:[#allocation3 + $0x154] sm:$0xf] }
  0x27   :  { %456 = vmatpush.bf16.msra.mxu0 %v664_v16  ;;  %469 = vmatpush.bf16.msra.mxu1 %v668_v19  ;;  %v931_v58 = vld [vmem:[#allocation3 + $0x16c] sm:$0xf0]  ;;  %v852_v60 = vor.u32 %v936_v52, %v849_v53  ;;  %v809_v61 = vld [vmem:[#allocation3 + $0x170] sm:$0xf0]  ;;  %v815_v62 = vld [vmem:[#allocation3 + $0x158] sm:$0xf] }
  0x28   :  { %482 = vmatpush.bf16.msra.mxu2 %v672_v20  ;;  %v932_v63 = vld [vmem:[#allocation3 + $0x174] sm:$0xf0]  ;;  %v928_v0 = vld [vmem:[#allocation3 + $0x15c] sm:$0xf]  ;;  %v808_v2 = vor.u32 %v931_v58, %v807_v57  ;;  %v812_v3 = vor.u32 %v927_v59, %v809_v61  ;;  %v775_v5 = vld [vmem:[#allocation3 + $0x110] sm:$0xf] }
  0x29   :  { %495 = vmatpush.bf16.msra.mxu3 %v676_v24  ;;  %v817_v1 = vld [vmem:[#allocation3 + $0x178] sm:$0xf0]  ;;  %v816_v4 = vor.u32 %v932_v63, %v815_v62  ;;  %v923_v6 = vld [vmem:[#allocation3 + $0x12c] sm:$0xf0]  ;;  %v919_v7 = vld [vmem:[#allocation3 + $0x114] sm:$0xf] }
  0x2a   :  { %v820_v8 = vor.u32 %v928_v0, %v817_v1  ;;  %v777_v9 = vld [vmem:[#allocation3 + $0x130] sm:$0xf0]  ;;  %v783_v10 = vld [vmem:[#allocation3 + $0x118] sm:$0xf]  ;;  %v920_v12 = vld [vmem:[#allocation3 + $0x11c] sm:$0xf]  ;;  %v776_v14 = vor.u32 %v923_v6, %v775_v5 }
  0x2b   :  { %457 = vmatpush.bf16.msra.mxu0 %v632_v31  ;;  %470 = vmatpush.bf16.msra.mxu1 %v636_v35  ;;  %v924_v11 = vld [vmem:[#allocation3 + $0x134] sm:$0xf0]  ;;  %v785_v13 = vld [vmem:[#allocation3 + $0x138] sm:$0xf0]  ;;  %v780_v15 = vor.u32 %v919_v7, %v777_v9  ;;  %v743_v17 = vld [vmem:[#allocation3 + $0xd0] sm:$0xf] }
  0x2c   :  { %483 = vmatpush.bf16.msra.mxu2 %v640_v36  ;;  %v784_v16 = vor.u32 %v924_v11, %v783_v10  ;;  %v915_v18 = vld [vmem:[#allocation3 + $0xec] sm:$0xf0]  ;;  %v911_v19 = vld [vmem:[#allocation3 + $0xd4] sm:$0xf]  ;;  %v788_v20 = vor.u32 %v920_v12, %v785_v13  ;;  %v751_v22 = vld [vmem:[#allocation3 + $0xd8] sm:$0xf] }
  0x2d   :  { %496 = vmatpush.bf16.msra.mxu3 %v644_v40  ;;  %v745_v21 = vld [vmem:[#allocation3 + $0xf0] sm:$0xf0]  ;;  %v916_v23 = vld [vmem:[#allocation3 + $0xf4] sm:$0xf0]  ;;  %v912_v24 = vld [vmem:[#allocation3 + $0xdc] sm:$0xf]  ;;  %v744_v26 = vor.u32 %v915_v18, %v743_v17 }
  0x2e   :  { %458 = vmatmul.bf16.vlgmr.msra.gmra.mxu0 %v1038_v51  ;;  %471 = vmatmul.bf16.vlgmr.msra.gmra.mxu1 %v1038_v51  ;;  %v753_v25 = vld [vmem:[#allocation3 + $0xf8] sm:$0xf0]  ;;  %v748_v27 = vor.u32 %v911_v19, %v745_v21  ;;  %v752_v28 = vor.u32 %v916_v23, %v751_v22  ;;  %v711_v29 = vld [vmem:[#allocation3 + $0x90] sm:$0xf]  ;;  %v903_v31 = vld [vmem:[#allocation3 + $0x94] sm:$0xf] }
  0x2f   :  { %502 = vmatpush.bf16.msrb.mxu0 %v872_v41  ;;  %515 = vmatpush.bf16.msrb.mxu1 %v876_v42  ;;  %v907_v30 = vld [vmem:[#allocation3 + $0xac] sm:$0xf0]  ;;  %v756_v32 = vor.u32 %v912_v24, %v753_v25  ;;  %v713_v33 = vld [vmem:[#allocation3 + $0xb0] sm:$0xf0]  ;;  %v719_v34 = vld [vmem:[#allocation3 + $0x98] sm:$0xf] }
  0x30   :  { %528 = vmatpush.bf16.msrb.mxu2 %v880_v43  ;;  %497 = vmatmul.bf16.vlgmr.msra.gmra.mxu3 %v1038_v51  ;;  %v908_v35 = vld [vmem:[#allocation3 + $0xb4] sm:$0xf0]  ;;  %v904_v36 = vld [vmem:[#allocation3 + $0x9c] sm:$0xf]  ;;  %v712_v38 = vor.u32 %v907_v30, %v711_v29  ;;  %v716_v39 = vor.u32 %v903_v31, %v713_v33  ;;  %v679_v41 = vld [vmem:[#allocation3 + $0x50] sm:$0xf] }
  0x31   :  { %541 = vmatpush.bf16.msrb.mxu3 %v884_v47  ;;  %484 = vmatmul.bf16.vlgmr.msra.gmra.mxu2 %v1038_v51  ;;  %v721_v37 = vld [vmem:[#allocation3 + $0xb8] sm:$0xf0]  ;;  %v720_v40 = vor.u32 %v908_v35, %v719_v34  ;;  %v899_v42 = vld [vmem:[#allocation3 + $0x6c] sm:$0xf0]  ;;  %v895_v43 = vld [vmem:[#allocation3 + $0x54] sm:$0xf] }
  0x32   :  { %v724_v44 = vor.u32 %v904_v36, %v721_v37  ;;  %v681_v45 = vld [vmem:[#allocation3 + $0x70] sm:$0xf0]  ;;  %v687_v46 = vld [vmem:[#allocation3 + $0x58] sm:$0xf]  ;;  %v896_v48 = vld [vmem:[#allocation3 + $0x5c] sm:$0xf]  ;;  %v680_v50 = vor.u32 %v899_v42, %v679_v41 }
  0x33   :  { %503 = vmatpush.bf16.msrb.mxu0 %v840_v54  ;;  %516 = vmatpush.bf16.msrb.mxu1 %v844_v55  ;;  %v900_v47 = vld [vmem:[#allocation3 + $0x74] sm:$0xf0]  ;;  %v689_v49 = vld [vmem:[#allocation3 + $0x78] sm:$0xf0]  ;;  %v684_v52 = vor.u32 %v895_v43, %v681_v45  ;;  %v647_v54 = vld [vmem:[#allocation3 + $0x10] sm:$0xf] }
  0x34   :  { %529 = vmatpush.bf16.msrb.mxu2 %v848_v56  ;;  %v688_v53 = vor.u32 %v900_v47, %v687_v46  ;;  %v891_v55 = vld [vmem:[#allocation3 + $0x2c] sm:$0xf0]  ;;  %v887_v56 = vld [vmem:[#allocation3 + $0x14] sm:$0xf]  ;;  %v692_v57 = vor.u32 %v896_v48, %v689_v49  ;;  %v655_v59 = vld [vmem:[#allocation3 + $0x18] sm:$0xf] }
  0x35   :  { %542 = vmatpush.bf16.msrb.mxu3 %v852_v60  ;;  %v649_v58 = vld [vmem:[#allocation3 + $0x30] sm:$0xf0]  ;;  %v892_v60 = vld [vmem:[#allocation3 + $0x34] sm:$0xf0]  ;;  %v888_v61 = vld [vmem:[#allocation3 + $0x1c] sm:$0xf]  ;;  %v648_v63 = vor.u32 %v891_v55, %v647_v54 }
  0x36   :  { %v657_v62 = vld [vmem:[#allocation3 + $0x38] sm:$0xf0]  ;;  %v652_v0 = vor.u32 %v887_v56, %v649_v58  ;;  %v656_v1 = vor.u32 %v892_v60, %v655_v59 }
  0x37   :  { %504 = vmatpush.bf16.msrb.mxu0 %v808_v2  ;;  %517 = vmatpush.bf16.msrb.mxu1 %v812_v3  ;;  %v660_v2 = vor.u32 %v888_v61, %v657_v62  ;;  %v581_v3 = vld [vmem:[#allocation5] sm:$0xff] }
  0x38   :  { %530 = vmatpush.bf16.msrb.mxu2 %v816_v4  ;;  %v583_v4 = vperm.slane %v581_v3, 0  ;;  %v584_v5 = vperm.slane %v581_v3, 1  ;;  %v585_v10 = vperm.slane %v581_v3, 2  ;;  %v586_v12 = vperm.slane %v581_v3, 3 }
  0x39   :  { %543 = vmatpush.bf16.msrb.mxu3 %v820_v8  ;;  %v587_v23 = vperm.slane %v581_v3, 4  ;;  %v588_v24 = vperm.slane %v581_v3, 5  ;;  %v589_v31 = vperm.slane %v581_v3, 6 }
  0x3b   :  { %505 = vmatpush.bf16.msrb.mxu0 %v776_v14  ;;  %518 = vmatpush.bf16.msrb.mxu1 %v780_v15 }
  0x3c   :  { %531 = vmatpush.bf16.msrb.mxu2 %v784_v16 }
  0x3d   :  { %544 = vmatpush.bf16.msrb.mxu3 %v788_v20 }
  0x3f   :  { %506 = vmatpush.bf16.msrb.mxu0 %v744_v26  ;;  %519 = vmatpush.bf16.msrb.mxu1 %v748_v27 }
  0x40   :  { %532 = vmatpush.bf16.msrb.mxu2 %v752_v28 }
  0x41   :  { %545 = vmatpush.bf16.msrb.mxu3 %v756_v32  ;;  %v590_v32 = vperm.slane %v581_v3, 7 }
  0x43   :  { %507 = vmatpush.bf16.msrb.mxu0 %v712_v38  ;;  %520 = vmatpush.bf16.msrb.mxu1 %v716_v39 }
  0x44   :  { %533 = vmatpush.bf16.msrb.mxu2 %v720_v40 }
  0x45   :  { %546 = vmatpush.bf16.msrb.mxu3 %v724_v44 }
  0x47   :  { %508 = vmatpush.bf16.msrb.mxu0 %v680_v50  ;;  %521 = vmatpush.bf16.msrb.mxu1 %v684_v52 }
  0x48   :  { %534 = vmatpush.bf16.msrb.mxu2 %v688_v53 }
  0x49   :  { %547 = vmatpush.bf16.msrb.mxu3 %v692_v57 }
  0x4b   :  { %509 = vmatpush.bf16.msrb.mxu0 %v648_v63  ;;  %522 = vmatpush.bf16.msrb.mxu1 %v652_v0 }
  0x4c   :  { %535 = vmatpush.bf16.msrb.mxu2 %v656_v1 }
  0x4d   :  { %548 = vmatpush.bf16.msrb.mxu3 %v660_v2 }
  0x4e   :  { %510 = vmatmul.bf16.vlgmr.msrb.gmra.mxu0 %v1038_v51  ;;  %523 = vmatmul.bf16.vlgmr.msrb.gmra.mxu1 %v1038_v51 }
  0x4f   :  { %536 = vmatmul.bf16.vlgmr.msrb.gmra.mxu2 %v1038_v51 }
  0x50   :  { %549 = vmatmul.bf16.vlgmr.msrb.gmra.mxu3 %v1038_v51 }
  0xab   :  { %v459_v6 = vpop.f32.mrf.mxu0  ;;  %v472_v8 = vpop.f32.mrf.mxu1 }
  0xac   :  { %v599_v7 = vadd.f32 %v583_v4, %v459_v6  ;;  %v600_v9 = vadd.f32 %v584_v5, %v472_v8 }
  0xae   :  { %v607_v11 = vmax.f32 %v599_v7, 0.0  ;;  %v608_v13 = vmax.f32 %v600_v9, 0.0 }
  0xb0   :  { %615 = vst [vmem:[%s1075_s3] sm:$0xff] %v607_v11 }
  0xb1   :  { %616 = vst [vmem:[%s1075_s3 + $0x8] sm:$0xff] %v608_v13 }
  0xb3   :  { %v498_v15 = vpop.f32.mrf.mxu3  ;;  %v461_v18 = vpop.f32.mrf.mxu0 }
  0xb4   :  { %v485_v14 = vpop.f32.mrf.mxu2  ;;  %v602_v16 = vadd.f32 %v586_v12, %v498_v15  ;;  %v474_v20 = vpop.f32.mrf.mxu1 }
  0xb5   :  { %v601_v51 = vadd.f32 %v585_v10, %v485_v14 }
  0xb6   :  { %v610_v19 = vmax.f32 %v602_v16, 0.0 }
  0xb7   :  { %v609_v17 = vmax.f32 %v601_v51, 0.0 }
  0xb8   :  { %618 = vst [vmem:[%s1075_s3 + $0x18] sm:$0xff] %v610_v19 }
  0xb9   :  { %617 = vst [vmem:[%s1075_s3 + $0x10] sm:$0xff] %v609_v17 }
  0xbb   :  { %v500_v22 = vpop.f32.mrf.mxu3 }
  0xbc   :  { %v487_v21 = vpop.f32.mrf.mxu2 }
  0xcb   :  { %v511_v25 = vpop.f32.mrf.mxu0  ;;  %v524_v27 = vpop.f32.mrf.mxu1 }
  0xcc   :  { %v603_v26 = vadd.f32 %v587_v23, %v511_v25  ;;  %v604_v28 = vadd.f32 %v588_v24, %v524_v27 }
  0xce   :  { %v611_v29 = vmax.f32 %v603_v26, 0.0  ;;  %v612_v30 = vmax.f32 %v604_v28, 0.0 }
  0xd0   :  { %619 = vst [vmem:[%s1075_s3 + $0x20] sm:$0xff] %v611_v29 }
  0xd1   :  { %620 = vst [vmem:[%s1075_s3 + $0x28] sm:$0xff] %v612_v30 }
  0xd2   :  { %v537_v33 = vpop.f32.mrf.mxu2 }
  0xd3   :  { %v605_v34 = vadd.f32 %v589_v31, %v537_v33  ;;  %v550_v35 = vpop.f32.mrf.mxu3  ;;  %v513_v36 = vpop.f32.mrf.mxu0 }
  0xd4   :  { %v606_v37 = vadd.f32 %v590_v32, %v550_v35  ;;  %v526_v38 = vpop.f32.mrf.mxu1 }
  0xd5   :  { %v613_v39 = vmax.f32 %v605_v34, 0.0 }
  0xd6   :  { %v614_v40 = vmax.f32 %v606_v37, 0.0 }
  0xd7   :  { %621 = vst [vmem:[%s1075_s3 + $0x30] sm:$0xff] %v613_v39 }
  0xd8   :  { %622 = vst [vmem:[%s1075_s3 + $0x38] sm:$0xff] %v614_v40 }
  0xda   :  { %v539_v41 = vpop.f32.mrf.mxu2 }
  0xdb   :  { %v552_v42 = vpop.f32.mrf.mxu3 }
  0xdc   :  { %627 = vsyncpa [#allocation4], 1 }
  0xdd   :  { %628 = vsyncpa [#allocation6], 1 }

// kernel: ae_watermark_forward.8
= control target key start
LH: loop header
LB: loop body
LE: loop exit
PB: predicated region body
PF: predicated region fallthrough
CT: control target
= control target key end

     0   :  { %s2054_s0 = inlined_call_operand.vmem [shape: f32[8,2048], index: 0, kind: input, shape index: {}]   ;;  %s2055_s1 = inlined_call_operand.hbm [shape: bf16[2048,128], index: 1, kind: input, shape index: {}]   ;;  %s2056_s2 = inlined_call_operand.hbm [shape: f32[1,128], index: 2, kind: input, shape index: {}]   ;;  %s2057_s3 = inlined_call_operand.vmem [shape: f32[8,128], index: 3, kind: input, shape index: {}]   ;;  %s2058_s4 = inlined_call_operand.vmem [shape: f32[8,128], index: 4, kind: input, shape index: {}]   ;;  %s2059_s5 = inlined_call_operand.vmem [shape: f32[8,128], index: 5, kind: output, shape index: {0}]   ;;  %s2060_s6 = inlined_call_operand.vmem [shape: f32[8,128], index: 6, kind: output, shape index: {1}]  }
   0x1   :  { %2061 = sst [smem:[#allocation9_spill]] %s2056_s2 }
   0x2   :  { %12 = vsyncpa [#allocation4], 0 }
   0x3   :  { %14 = vsyncpa [#allocation4 + $0x1], 0 }
   0x4   :  { %15 = vsyncpa [#allocation6], 0  ;;  %s1846_s21 = smov 0   ;;  %s1848_s22 = smov 0  }
   0x5   :  { %s1850_s23 = smov 0   ;;  %s1852_s24 = smov 0  }
   0x6   :  { %s1854_s25 = smov 0   ;;  %s1856_s26 = smov 0  }
   0x7 LB: > { %s1280_s27 = sadd.s32 4294967295, %s1805_s26   ;;  %s77_s28 = sadd.s32 1, %s1793_s23  ;;  %s1805_s26 = sphi %s1856_s26, %s21_s26   ;;  %s1801_s25 = sphi %s1854_s25, %s2072_s25   ;;  %s1797_s24 = sphi %s1852_s24, %s2071_s24   ;;  %s1793_s23 = sphi %s1850_s23, %s2070_s23   ;;  %s1789_s22 = sphi %s1848_s22, %s2069_s22   ;;  %s1785_s21 = sphi %s1846_s21, %s2068_s21  }
   0x8   : > { %p84_p0 = scmp.ne.s32.totalorder %s1793_s23, %s1789_s22  ;;  %p85_p1 = scmp.eq.s32.totalorder %s1805_s26, 0 }
   0x9   : > { %p90_p2 = scmp.ne.s32.totalorder %s1789_s22, %s1785_s21  ;;  %p1880_p3 = scmp.eq.s32.totalorder %s1280_s27, 0 }
   0xa   : > { %p1884_p4 = por %p85_p1, %p84_p0  ;;  %p1281_p5 = scmp.ge.s32.totalorder %s1805_s26, 1 }
   0xb   : > { %p1891_p6 = por %p1880_p3, %p90_p2  ;;  %p239_p7 = scmp.lt.s32.totalorder %s1805_s26, 3 }
   0xc   : > { %s2065_s2 = sld [smem:[#allocation9_spill]]  ;;  %s1807_s12 = smov [#allocation5]  }
   0xd   : > { %p1899_p8 = pnand %p1281_p5, %p239_p7  ;;  %s254_s13 = sshll.u32 %s1807_s12, 4  ;;  %s255_s13 = int_to_ptr.vmem [resolvable:$true] %s254_s13 }
   0xe   : > { %p1636_p10 = scmp.lt.s32.totalorder %s1805_s26, 2  ;;  %s33_s15 = sadd.s32 1, %s1801_s25 }
   0xf   : > { %p1627_p9 = pneg %p1899_p8  ;;  %p34_p13 = scmp.ge.s32.totalorder %s33_s15, 2 }
  0x10   : > { %p1910_p12 = pnand %p1636_p10, %p1884_p4  ;;  %s298_s16 = sand.u32 1, %s1793_s23  }
  0x11   : > { %p1628_p11 = pnand %p1627_p9, %p1880_p3  ;;  %s1556_s17 = sshll.u32 %s1801_s25, 9 }
  0x12   : > { %s252_s10 = sshll.u32 %s2065_s2, 4  ;;  %s2074_s15 = smov (%p34_p13, %s33_s15), 0  ;;  %s253_s10 = int_to_ptr.hbm [resolvable:$true] %s252_s10 }
  0x13   : > { %1630 = dma.hbm_to_vmem [thread:$0]  (!%p1628_p11), %s253_s10, 16, %s255_s13, [#allocation6]  }
  0x14   : > { %s1286_s18 = sshll.u32 %s298_s16, 9  ;;  %s72_s19 = ssub.s32 %s1801_s25, %s2074_s15 }
  0x15   : > { %p75_p0 = scmp.eq.s32.totalorder %s72_s19, 0  ;;  %s308_s27 = scalar_lea.hbm %s2055_s1, %s1556_s17 }
  0x16   : > { %s309_s30 = sshll.u32 %s308_s27, 4  ;;  %s302_s8 = scalar_lea.vmem [#allocation3], %s1286_s18  ;;  %s310_s30 = int_to_ptr.hbm [resolvable:$true] %s309_s30 }
  0x17   : > { %s311_s9 = sshll.u32 %s302_s8, 4  ;;  %s299_s10 = scalar_lea.sflag [#allocation4], %s298_s16  ;;  %s312_s9 = int_to_ptr.vmem [resolvable:$true] %s311_s9 }
  0x18   : > { %s1927_s12 = scalar_select %p75_p0, %s1793_s23, %s77_s28  }
  0x19   : > { %s1808_s13 = smov 64   ;;  %s1809_s2 = smov 4  }
  0x1a   : > { %1634 = dma.hbm_to_vmem [thread:$0]  (!%p1910_p12), %s310_s30, 8192, %s312_s9, %s299_s10, %s1808_s13, %s1808_s13, %s1809_s2  }
  0x1b   : > { %323 = sbr.rel (%p1899_p8) target bundleno = 265 (0x109), region = 40  ;;  %s325_s19 = sand.u32 (!%p1899_p8), 1, %s1789_s22  }
  0x1c   : > { %s1290_s17 = sshll.u32 (!%p1899_p8), %s325_s19, 9  ;;  %s326_s20 = scalar_lea.sflag (!%p1899_p8), [#allocation4], %s325_s19 }
  0x1d   : > { %s1934_s18 = scalar_lea.vmem (!%p1899_p8), [#allocation3], %s1290_s17 }
  0x20   : > { %1776 = dma.done.wait (%p1891_p6), %s326_s20, 8192  }
  0x21   : > { %1778 = vsyncadd (%p1891_p6), %s326_s20, 4294959104 }
  0x22   : > { %1780 = dma.done.wait (%p1880_p3), [#allocation6], 16  }
  0x23   : > { %1782 = vsyncadd (%p1880_p3), [#allocation6], 4294967280  ;;  %s1292_s2 = sshll.u32 %s1797_s24, 3  ;;  %p1294_p2 = scmp.ne.s32.totalorder %s1797_s24, 0 }
  0x24   : > { %p399_p1 = scmp.lt.s32.totalorder %s1292_s2, 15 }
  0x25   : > { %438 = sbr.rel (%p1294_p2) target bundleno = 44 (0x2c), region = 52 }
  0x26   : > { %s2076_s2 = smov (!%p399_p1, %s1292_s2), 15 }
  0x27   : > { %s1293_s28 = sshll.u32 %s2076_s2, 3 }
  0x28   : > { %s1948_s16 = scalar_lea.vmem %s2054_s0, %s1293_s28 }
  0x2a   : > { %v1810_v0 = vmov 0.0  }
  0x2b   : > { %439 = vst [vmem:[#allocation2] sm:$0xff] %v1810_v0 }
  0x2c PF: > { %v1564_v1 = vld [vmem:[%s1934_s18 + $0x38] sm:$0xff]  ;;  %v1563_v5 = vld [vmem:[%s1934_s18 + $0x30] sm:$0xff]  ;;  %v1562_v9 = vld [vmem:[%s1934_s18 + $0x28] sm:$0xff]  ;;  %p1551_p3 = scmp.ne.s32.totalorder %s1797_s24, 1 }
  0x2d   : > { %v1572_v2 = vld [vmem:[%s1934_s18 + $0x78] sm:$0xff]  ;;  %969 = vmatpush.bf16.msra.mxu0 %v1564_v1  ;;  %v1571_v6 = vld [vmem:[%s1934_s18 + $0x70] sm:$0xff]  ;;  %v1570_v10 = vld [vmem:[%s1934_s18 + $0x68] sm:$0xff] }
  0x2e   : > { %v1580_v3 = vld [vmem:[%s1934_s18 + $0xb8] sm:$0xff]  ;;  %982 = vmatpush.bf16.msra.mxu1 %v1572_v2  ;;  %v1579_v7 = vld [vmem:[%s1934_s18 + $0xb0] sm:$0xff]  ;;  %v1578_v11 = vld [vmem:[%s1934_s18 + $0xa8] sm:$0xff] }
  0x2f   : > { %v1588_v4 = vld [vmem:[%s1934_s18 + $0xf8] sm:$0xff]  ;;  %995 = vmatpush.bf16.msra.mxu2 %v1580_v3  ;;  %v1587_v8 = vld [vmem:[%s1934_s18 + $0xf0] sm:$0xff]  ;;  %v1586_v12 = vld [vmem:[%s1934_s18 + $0xe8] sm:$0xff] }
  0x30   : > { %1008 = vmatpush.bf16.msra.mxu3 %v1588_v4  ;;  %v1561_v13 = vld [vmem:[%s1934_s18 + $0x20] sm:$0xff]  ;;  %v1560_v17 = vld [vmem:[%s1934_s18 + $0x18] sm:$0xff]  ;;  %v1559_v21 = vld [vmem:[%s1934_s18 + $0x10] sm:$0xff] }
  0x31   : > { %970 = vmatpush.bf16.msra.mxu0 %v1563_v5  ;;  %v1569_v14 = vld [vmem:[%s1934_s18 + $0x60] sm:$0xff]  ;;  %v1568_v18 = vld [vmem:[%s1934_s18 + $0x58] sm:$0xff]  ;;  %v1567_v22 = vld [vmem:[%s1934_s18 + $0x50] sm:$0xff] }
  0x32   : > { %983 = vmatpush.bf16.msra.mxu1 %v1571_v6  ;;  %v1577_v15 = vld [vmem:[%s1934_s18 + $0xa0] sm:$0xff]  ;;  %v1576_v19 = vld [vmem:[%s1934_s18 + $0x98] sm:$0xff]  ;;  %v1575_v23 = vld [vmem:[%s1934_s18 + $0x90] sm:$0xff] }
  0x33   : > { %996 = vmatpush.bf16.msra.mxu2 %v1579_v7  ;;  %v1585_v16 = vld [vmem:[%s1934_s18 + $0xe0] sm:$0xff]  ;;  %v1584_v20 = vld [vmem:[%s1934_s18 + $0xd8] sm:$0xff]  ;;  %v1583_v24 = vld [vmem:[%s1934_s18 + $0xd0] sm:$0xff] }
  0x34   : > { %1009 = vmatpush.bf16.msra.mxu3 %v1587_v8  ;;  %v1558_v25 = vld [vmem:[%s1934_s18 + $0x8] sm:$0xff]  ;;  %v1557_v29 = vld [vmem:[%s1934_s18] sm:$0xff]  ;;  %v1596_v33 = vld [vmem:[%s1934_s18 + $0x138] sm:$0xff] }
  0x35   : > { %971 = vmatpush.bf16.msra.mxu0 %v1562_v9  ;;  %v1566_v26 = vld [vmem:[%s1934_s18 + $0x48] sm:$0xff]  ;;  %v1565_v30 = vld [vmem:[%s1934_s18 + $0x40] sm:$0xff]  ;;  %v443_v35 = vld [vmem:[%s1948_s16 + $0x18] sm:$0xff] }
  0x36   : > { %984 = vmatpush.bf16.msra.mxu1 %v1570_v10  ;;  %v1574_v27 = vld [vmem:[%s1934_s18 + $0x88] sm:$0xff]  ;;  %v1573_v31 = vld [vmem:[%s1934_s18 + $0x80] sm:$0xff]  ;;  %v1604_v36 = vld [vmem:[%s1934_s18 + $0x178] sm:$0xff]  ;;  %v580_v42 = vpack.c.bf16 %v443_v35, %v443_v35 }
  0x37   : > { %997 = vmatpush.bf16.msra.mxu2 %v1578_v11  ;;  %v1582_v28 = vld [vmem:[%s1934_s18 + $0xc8] sm:$0xff]  ;;  %v1581_v32 = vld [vmem:[%s1934_s18 + $0xc0] sm:$0xff]  ;;  %v440_v37 = vld [vmem:[%s1948_s16] sm:$0xff] }
  0x38   : > { %1010 = vmatpush.bf16.msra.mxu3 %v1586_v12  ;;  %v442_v34 = vld [vmem:[%s1948_s16 + $0x10] sm:$0xff]  ;;  %v441_v38 = vld [vmem:[%s1948_s16 + $0x8] sm:$0xff]  ;;  %v1612_v39 = vld [vmem:[%s1934_s18 + $0x1b8] sm:$0xff]  ;;  %v577_v43 = vpack.c.bf16 %v440_v37, %v440_v37 }
  0x39   : > { %972 = vmatpush.bf16.msra.mxu0 %v1561_v13  ;;  %v1620_v40 = vld [vmem:[%s1934_s18 + $0x1f8] sm:$0xff]  ;;  %v579_v41 = vpack.c.bf16 %v442_v34, %v442_v34  ;;  %v578_v44 = vpack.c.bf16 %v441_v38, %v441_v38  ;;  %v1595_v45 = vld [vmem:[%s1934_s18 + $0x130] sm:$0xff]  ;;  %v1594_v49 = vld [vmem:[%s1934_s18 + $0x128] sm:$0xff] }
  0x3a   : > { %985 = vmatpush.bf16.msra.mxu1 %v1569_v14  ;;  %v1603_v46 = vld [vmem:[%s1934_s18 + $0x170] sm:$0xff]  ;;  %v1602_v50 = vld [vmem:[%s1934_s18 + $0x168] sm:$0xff]  ;;  %v1593_v53 = vld [vmem:[%s1934_s18 + $0x120] sm:$0xff] }
  0x3b   : > { %998 = vmatpush.bf16.msra.mxu2 %v1577_v15  ;;  %v1611_v47 = vld [vmem:[%s1934_s18 + $0x1b0] sm:$0xff]  ;;  %v1610_v51 = vld [vmem:[%s1934_s18 + $0x1a8] sm:$0xff]  ;;  %v1601_v54 = vld [vmem:[%s1934_s18 + $0x160] sm:$0xff] }
  0x3c   : > { %1011 = vmatpush.bf16.msra.mxu3 %v1585_v16  ;;  %v1619_v48 = vld [vmem:[%s1934_s18 + $0x1f0] sm:$0xff]  ;;  %v1618_v52 = vld [vmem:[%s1934_s18 + $0x1e8] sm:$0xff]  ;;  %v1609_v55 = vld [vmem:[%s1934_s18 + $0x1a0] sm:$0xff] }
  0x3d   : > { %973 = vmatpush.bf16.msra.mxu0 %v1560_v17  ;;  %v1617_v56 = vld [vmem:[%s1934_s18 + $0x1e0] sm:$0xff]  ;;  %v1592_v57 = vld [vmem:[%s1934_s18 + $0x118] sm:$0xff]  ;;  %v1591_v61 = vld [vmem:[%s1934_s18 + $0x110] sm:$0xff] }
  0x3e   : > { %986 = vmatpush.bf16.msra.mxu1 %v1568_v18  ;;  %v1600_v58 = vld [vmem:[%s1934_s18 + $0x158] sm:$0xff]  ;;  %v1599_v62 = vld [vmem:[%s1934_s18 + $0x150] sm:$0xff]  ;;  %v1590_v1 = vld [vmem:[%s1934_s18 + $0x108] sm:$0xff] }
  0x3f   : > { %999 = vmatpush.bf16.msra.mxu2 %v1576_v19  ;;  %v1608_v59 = vld [vmem:[%s1934_s18 + $0x198] sm:$0xff]  ;;  %v1607_v63 = vld [vmem:[%s1934_s18 + $0x190] sm:$0xff]  ;;  %v1598_v2 = vld [vmem:[%s1934_s18 + $0x148] sm:$0xff] }
  0x40   : > { %1012 = vmatpush.bf16.msra.mxu3 %v1584_v20  ;;  %v1616_v60 = vld [vmem:[%s1934_s18 + $0x1d8] sm:$0xff]  ;;  %v1615_v0 = vld [vmem:[%s1934_s18 + $0x1d0] sm:$0xff]  ;;  %v1606_v3 = vld [vmem:[%s1934_s18 + $0x188] sm:$0xff] }
  0x41   : > { %974 = vmatpush.bf16.msra.mxu0 %v1559_v21  ;;  %v1614_v4 = vld [vmem:[%s1934_s18 + $0x1c8] sm:$0xff]  ;;  %v1589_v5 = vld [vmem:[%s1934_s18 + $0x100] sm:$0xff]  ;;  %v444_v8 = vld [vmem:[%s1948_s16 + $0x20] sm:$0xff] }
  0x42   : > { %987 = vmatpush.bf16.msra.mxu1 %v1567_v22  ;;  %v1597_v6 = vld [vmem:[%s1934_s18 + $0x140] sm:$0xff]  ;;  %v446_v11 = vld [vmem:[%s1948_s16 + $0x30] sm:$0xff]  ;;  %v447_v12 = vld [vmem:[%s1948_s16 + $0x38] sm:$0xff]  ;;  %v581_v13 = vpack.c.bf16 %v444_v8, %v444_v8 }
  0x43   : > { %1000 = vmatpush.bf16.msra.mxu2 %v1575_v23  ;;  %v1605_v7 = vld [vmem:[%s1934_s18 + $0x180] sm:$0xff]  ;;  %v583_v15 = vpack.c.bf16 %v446_v11, %v446_v11  ;;  %v584_v16 = vpack.c.bf16 %v447_v12, %v447_v12  ;;  %v576_v37 = vld [vmem:[#allocation2] sm:$0xff] }
  0x44   : > { %1013 = vmatpush.bf16.msra.mxu3 %v1583_v24  ;;  %v445_v9 = vld [vmem:[%s1948_s16 + $0x28] sm:$0xff] }
  0x45   : > { %975 = vmatpush.bf16.msra.mxu0 %v1558_v25  ;;  %v1613_v10 = vld [vmem:[%s1934_s18 + $0x1c0] sm:$0xff]  ;;  %v582_v14 = vpack.c.bf16 %v445_v9, %v445_v9 }
  0x46   : > { %988 = vmatpush.bf16.msra.mxu1 %v1566_v26 }
  0x47   : > { %1001 = vmatpush.bf16.msra.mxu2 %v1574_v27 }
  0x48   : > { %1014 = vmatpush.bf16.msra.mxu3 %v1582_v28 }
  0x49   : > { %976 = vmatpush.bf16.msra.mxu0 %v1557_v29 }
  0x4a   : > { %989 = vmatpush.bf16.msra.mxu1 %v1565_v30 }
  0x4b   : > { %1002 = vmatpush.bf16.msra.mxu2 %v1573_v31 }
  0x4c   : > { %1015 = vmatpush.bf16.msra.mxu3 %v1581_v32  ;;  %977 = vmatmul.bf16.vlgmr.msra.gmra.mxu0 %v577_v43 }
  0x4d   : > { %1021 = vmatpush.bf16.msrb.mxu0 %v1596_v33  ;;  %990 = vmatmul.bf16.vlgmr.msra.gmra.mxu1 %v578_v44 }
  0x4e   : > { %1034 = vmatpush.bf16.msrb.mxu1 %v1604_v36  ;;  %1003 = vmatmul.bf16.vlgmr.msra.gmra.mxu2 %v579_v41 }
  0x4f   : > { %1047 = vmatpush.bf16.msrb.mxu2 %v1612_v39  ;;  %1016 = vmatmul.bf16.vlgmr.msra.gmra.mxu3 %v580_v42 }
  0x50   : > { %1060 = vmatpush.bf16.msrb.mxu3 %v1620_v40 }
  0x51   : > { %1022 = vmatpush.bf16.msrb.mxu0 %v1595_v45 }
  0x52   : > { %1035 = vmatpush.bf16.msrb.mxu1 %v1603_v46 }
  0x53   : > { %1048 = vmatpush.bf16.msrb.mxu2 %v1611_v47 }
  0x54   : > { %1061 = vmatpush.bf16.msrb.mxu3 %v1619_v48 }
  0x55   : > { %1023 = vmatpush.bf16.msrb.mxu0 %v1594_v49 }
  0x56   : > { %1036 = vmatpush.bf16.msrb.mxu1 %v1602_v50 }
  0x57   : > { %1049 = vmatpush.bf16.msrb.mxu2 %v1610_v51 }
  0x58   : > { %1062 = vmatpush.bf16.msrb.mxu3 %v1618_v52 }
  0x59   : > { %1024 = vmatpush.bf16.msrb.mxu0 %v1593_v53 }
  0x5a   : > { %1037 = vmatpush.bf16.msrb.mxu1 %v1601_v54 }
  0x5b   : > { %1050 = vmatpush.bf16.msrb.mxu2 %v1609_v55 }
  0x5c   : > { %1063 = vmatpush.bf16.msrb.mxu3 %v1617_v56 }
  0x5d   : > { %1025 = vmatpush.bf16.msrb.mxu0 %v1592_v57 }
  0x5e   : > { %1038 = vmatpush.bf16.msrb.mxu1 %v1600_v58 }
  0x5f   : > { %1051 = vmatpush.bf16.msrb.mxu2 %v1608_v59 }
  0x60   : > { %1064 = vmatpush.bf16.msrb.mxu3 %v1616_v60 }
  0x61   : > { %1026 = vmatpush.bf16.msrb.mxu0 %v1591_v61 }
  0x62   : > { %1039 = vmatpush.bf16.msrb.mxu1 %v1599_v62 }
  0x63   : > { %1052 = vmatpush.bf16.msrb.mxu2 %v1607_v63 }
  0x64   : > { %1065 = vmatpush.bf16.msrb.mxu3 %v1615_v0 }
  0x65   : > { %1027 = vmatpush.bf16.msrb.mxu0 %v1590_v1 }
  0x66   : > { %1040 = vmatpush.bf16.msrb.mxu1 %v1598_v2 }
  0x67   : > { %1053 = vmatpush.bf16.msrb.mxu2 %v1606_v3 }
  0x68   : > { %1066 = vmatpush.bf16.msrb.mxu3 %v1614_v4 }
  0x69   : > { %1028 = vmatpush.bf16.msrb.mxu0 %v1589_v5 }
  0x6a   : > { %1041 = vmatpush.bf16.msrb.mxu1 %v1597_v6 }
  0x6b   : > { %1054 = vmatpush.bf16.msrb.mxu2 %v1605_v7 }
  0x6c   : > { %1067 = vmatpush.bf16.msrb.mxu3 %v1613_v10  ;;  %1029 = vmatmul.bf16.vlgmr.msrb.gmra.mxu0 %v581_v13 }
  0x6d   : > { %1042 = vmatmul.bf16.vlgmr.msrb.gmra.mxu1 %v582_v14 }
  0x6e   : > { %1055 = vmatmul.bf16.vlgmr.msrb.gmra.mxu2 %v583_v15 }
  0x6f   : > { %1068 = vmatmul.bf16.vlgmr.msrb.gmra.mxu3 %v584_v16 }
  0xc9   : > { %v978_v17 = vpop.f32.mrf.mxu0 }
  0xca   : > { %v991_v18 = vpop.f32.mrf.mxu1 }
  0xcb   : > { %v992_v25 = vadd.f32 %v991_v18, %v978_v17 }
  0xd1   : > { %v1004_v19 = vpop.f32.mrf.mxu2  ;;  %v980_v21 = vpop.f32.mrf.mxu0 }
  0xd2   : > { %v1017_v20 = vpop.f32.mrf.mxu3  ;;  %v993_v22 = vpop.f32.mrf.mxu1  ;;  %v1005_v26 = vadd.f32 %v1004_v19, %v992_v25 }
  0xd4   : > { %v1018_v27 = vadd.f32 %v1017_v20, %v1005_v26 }
  0xd9   : > { %v1006_v23 = vpop.f32.mrf.mxu2 }
  0xda   : > { %v1019_v24 = vpop.f32.mrf.mxu3 }
  0xe9   : > { %v1030_v28 = vpop.f32.mrf.mxu0 }
  0xea   : > { %v1043_v29 = vpop.f32.mrf.mxu1  ;;  %v1031_v30 = vadd.f32 %v1030_v28, %v1018_v27 }
  0xec   : > { %v1044_v31 = vadd.f32 %v1043_v29, %v1031_v30 }
  0xf1   : > { %v1056_v32 = vpop.f32.mrf.mxu2  ;;  %v1032_v35 = vpop.f32.mrf.mxu0 }
  0xf2   : > { %v1069_v33 = vpop.f32.mrf.mxu3  ;;  %v1057_v34 = vadd.f32 %v1056_v32, %v1044_v31  ;;  %v1045_v36 = vpop.f32.mrf.mxu1 }
  0xf4   : > { %v1070_v38 = vadd.f32 %v1069_v33, %v1057_v34 }
  0xf6   : > { %v1073_v39 = vadd.f32 %v1070_v38, %v576_v37  ;;  %1078 = sbr.rel (%p1551_p3) target bundleno = 265 (0x109), region = 56 }
  0xf8   : > { %1074 = vst [vmem:[#allocation2] sm:$0xff] %v1073_v39 }
  0xf9   : > { %v1058_v40 = vpop.f32.mrf.mxu2 }
  0xfa   : > { %v1071_v41 = vpop.f32.mrf.mxu3 }
  0xfb   : > { %v1690_v43 = vld [vmem:[#allocation5] ss:$0 sm:$0xff]  ;;  %v1087_v45 = vld [vmem:[%s2057_s3] sm:$0xff] }
  0xfc   : > { %v1089_v47 = vld [vmem:[%s2058_s4] sm:$0xff] }
  0xff   : > { %v1079_v42 = vld [vmem:[#allocation2] sm:$0xff] }
 0x100   : > { %v1084_v44 = vadd.f32 %v1690_v43, %v1079_v42 }
 0x102   : > { %v1085_v46 = vmax.f32 %v1084_v44, 0.0 }
 0x104   : > { %1086 = vst [vmem:[%s2059_s5] sm:$0xff] %v1085_v46  ;;  %v1088_v48 = vmul.f32 %v1087_v45, %v1085_v46 }
 0x106   : > { %v1090_v49 = vadd.f32 %v1089_v47, %v1088_v48 }
 0x108   : > { %1091 = vst [vmem:[%s2060_s6] sm:$0xff] %v1090_v49 }
 0x109 PF: > { %s21_s26 = sadd.s32 1, %s1805_s26   ;;  %s2068_s21 = smov %s1789_s22 }
 0x10a   : > { %p18_p4 = scmp.ge.s32.totalorder %s21_s26, 4   ;;  %s2069_s22 = smov %s1793_s23 }
 0x10b   : > { %s2070_s23 = smov %s1927_s12  ;;  %s2071_s24 = smov %s1801_s25 }
 0x10c   : > { %s2072_s25 = smov %s2074_s15  ;;  %20 = sbr.rel (!%p18_p4) target bundleno = 7 (0x7), region = 114 }
 0x111   :  { %1137 = vsyncpa [#allocation4], 1 }
 0x112   :  { %1139 = vsyncpa [#allocation4 + $0x1], 1 }
 0x113   :  { %1140 = vsyncpa [#allocation6], 1 }

// kernel: ae_watermark_forward.7
= control target key start
LH: loop header
LB: loop body
LE: loop exit
PB: predicated region body
PF: predicated region fallthrough
CT: control target
= control target key end

     0   :  { %s8701_s0 = inlined_call_operand.vmem [shape: f32[8,2048], index: 0, kind: input, shape index: {}]   ;;  %s8702_s1 = inlined_call_operand.hbm [shape: bf16[2048,2048], index: 1, kind: input, shape index: {}]   ;;  %s8703_s2 = inlined_call_operand.hbm [shape: f32[1,2048], index: 2, kind: input, shape index: {}]   ;;  %s8704_s3 = inlined_call_operand.vmem [shape: f32[8,2048], index: 3, kind: output, shape index: {}]  }
   0x1   :  { %8707 = sst [smem:[#allocation11_spill]] %s8702_s1 }
   0x2   :  { %8 = vsyncpa [#allocation4], 0 }
   0x3   :  { %10 = vsyncpa [#allocation4 + $0x1], 0 }
   0x4   :  { %11 = vsyncpa [#allocation6], 0 }
   0x5   :  { %13 = vsyncpa [#allocation6 + $0x1], 0  ;;  %s7325_s12 = smov 0   ;;  %s7327_s13 = smov 0  }
   0x6   :  { %s7329_s14 = smov 0   ;;  %s7331_s15 = smov 0  }
   0x7   :  { %s7333_s16 = smov 0   ;;  %s7335_s17 = smov 0  }
   0x8   :  { %s7337_s18 = smov 0   ;;  %s7339_s19 = smov 0  }
   0x9   :  { %s7341_s20 = smov 0   ;;  %s7343_s21 = smov 0  }
   0xa   :  { %s7345_s22 = smov 0  }
   0xb LB: > { %s31_s23 = sadd.s32 1, %s7291_s20  ;;  %s34_s24 = sadd.s32 1, %s7295_s21  ;;  %s7299_s22 = sphi %s7345_s22, %s19_s22   ;;  %s7295_s21 = sphi %s7343_s21, %s8726_s21   ;;  %s7291_s20 = sphi %s7341_s20, %s8725_s20   ;;  %s7287_s19 = sphi %s7339_s19, %s8724_s19   ;;  %s7283_s18 = sphi %s7337_s18, %s8723_s18   ;;  %s7279_s17 = sphi %s7335_s17, %s8722_s17   ;;  %s7275_s16 = sphi %s7333_s16, %s8721_s16   ;;  %s7271_s15 = sphi %s7331_s15, %s8720_s15   ;;  %s7267_s14 = sphi %s7329_s14, %s8719_s14   ;;  %s7263_s13 = sphi %s7327_s13, %s8718_s13   ;;  %s7259_s12 = sphi %s7325_s12, %s8717_s12  }
   0xc   : > { %p32_p0 = scmp.ge.s32.totalorder %s31_s23, 2  ;;  %p82_p1 = scmp.ne.s32.totalorder %s7279_s17, %s7275_s16 }
   0xd   : > { %p83_p2 = scmp.eq.s32.totalorder %s7299_s22, 0  ;;  %s75_s25 = sadd.s32 1, %s7279_s17 }
   0xe   : > { %s8728_s23 = smov (%p32_p0, %s31_s23), 0  ;;  %s8730_s24 = smov (!%p32_p0, %s34_s24), %s7295_s21 }
   0xf   : > { %8708 = sst [smem:[#allocation9_spill]] %s8728_s23  ;;  %p84_p3 = por %p83_p2, %p82_p1 }
  0x10   : > { %p7052_p4 = scmp.lt.s32.totalorder %s7299_s22, 4  ;;  %s179_s26 = sand.u32 1, %s7279_s17  }
  0x11   : > { %s4464_s27 = sshll.u32 %s7295_s21, 3  ;;  %s4462_s28 = sshll.u32 %s179_s26, 12 }
  0x12   : > { %s6528_s29 = sshll.u32 %s7291_s20, 11  ;;  %s183_s4 = scalar_lea.vmem [#allocation3], %s4462_s28 }
  0x13   : > { %s189_s30 = sadd.s32 %s6528_s29, %s4464_s27  ;;  %s194_s5 = sshll.u32 %s183_s4, 4  ;;  %s195_s5 = int_to_ptr.vmem [resolvable:$true] %s194_s5 }
  0x14   : > { %s4466_s6 = sshll.u32 %s189_s30, 2  ;;  %s8709_s1 = sld [smem:[#allocation11_spill]] }
  0x15   : > { %p7046_p5 = pnand %p7052_p4, %p84_p3  ;;  %s180_s11 = scalar_lea.sflag [#allocation4], %s179_s26 }
  0x16   : > { %s7301_s28 = smov 1024   ;;  %s7302_s29 = smov 512  }
  0x17   : > { %s7303_s30 = smov 32   ;;  %p4469_p6 = scmp.ge.s32.totalorder %s7299_s22, 1 }
  0x18   : > { %p221_p7 = scmp.lt.s32.totalorder %s7299_s22, 5  ;;  %s70_s4 = ssub.s32 %s7291_s20, %s8728_s23 }
  0x19   : > { %s4458_s26 = sadd.s32 4294967295, %s7299_s22   ;;  %p36_p9 = scmp.ge.s32.totalorder %s8730_s24, 2 }
  0x1a   : > { %s191_s9 = scalar_lea.hbm %s8709_s1, %s4466_s6  ;;  %p7408_p8 = pnand %p4469_p6, %p221_p7 }
  0x1b   : > { %s192_s10 = sshll.u32 %s191_s9, 4  ;;  %p88_p10 = scmp.ne.s32.totalorder %s7275_s16, %s7271_s15  ;;  %s193_s10 = int_to_ptr.hbm [resolvable:$true] %s192_s10 }
  0x1c   : > { %7048 = dma.hbm_to_vmem [thread:$0]  (!%p7046_p5), %s193_s10, 65536, %s195_s5, %s180_s11, %s7301_s28, %s7302_s29, %s7303_s30  }
  0x1d   : > { %p89_p11 = scmp.eq.s32.totalorder %s4458_s26, 0  ;;  %s8732_s24 = smov (%p36_p9, %s8730_s24), 0 }
  0x1e   : > { %8711 = sst [smem:[#allocation10_spill]] %s8732_s24  ;;  %s101_s7 = sadd.s32 1, %s7267_s14 }
  0x1f   : > { %p7419_p12 = por %p89_p11, %p88_p10  ;;  %s71_s8 = ssub.s32 %s7295_s21, %s8732_s24 }
  0x20   : > { %p114_p13 = scmp.ne.s32.totalorder %s7263_s13, %s7259_s12  ;;  %s72_s9 = sor.u32 %s71_s8, %s70_s4 }
  0x21   : > { %p99_p0 = scmp.eq.s32.totalorder %s71_s8, 0  ;;  %p73_p1 = scmp.eq.s32.totalorder %s72_s9, 0 }
  0x22   : > { %p108_p3 = scmp.ne.s32.totalorder %s7267_s14, %s7263_s13  ;;  %p7438_p5 = por %p114_p13, %p89_p11 }
  0x23   : > { %s7431_s10 = scalar_select %p99_p0, %s7267_s14, %s101_s7  }
  0x24   : > { %s7436_s15 = scalar_select %p73_p1, %s7279_s17, %s75_s25  }
  0x25   : > { %s204_s28 = sand.u32 1, %s7267_s14   ;;  %p110_p6 = por %p108_p3, %p83_p2 }
  0x26   : > { %s4467_s29 = sshll.u32 %s204_s28, 3  ;;  %s212_s4 = scalar_lea.hbm %s8703_s2, %s4464_s27 }
  0x27   : > { %s214_s26 = sshll.u32 %s212_s4, 4  ;;  %s208_s8 = scalar_lea.vmem [#allocation5], %s4467_s29  ;;  %s215_s26 = int_to_ptr.hbm [resolvable:$true] %s214_s26 }
  0x28   : > { %s216_s7 = sshll.u32 %s208_s8, 4  ;;  %p7049_p7 = pnand %p7052_p4, %p110_p6  ;;  %s217_s7 = int_to_ptr.vmem [resolvable:$true] %s216_s7 }
  0x29   : > { %s205_s25 = scalar_lea.sflag [#allocation6], %s204_s28  ;;  %225 = sbr.rel (%p7408_p8) target bundleno = 1001 (0x3e9), region = 32 }
  0x2a   : > { %7051 = dma.hbm_to_vmem [thread:$0]  (!%p7049_p7), %s215_s26, 128, %s217_s7, %s205_s25  }
  0x2b   : > { %s227_s9 = sand.u32 (!%p7408_p8), 1, %s7275_s16  }
  0x2c   : > { %s4470_s1 = sshll.u32 (!%p7408_p8), %s227_s9, 12  ;;  %s228_s24 = scalar_lea.sflag (!%p7408_p8), [#allocation4], %s227_s9 }
  0x2d   : > { %s7455_s23 = scalar_lea.vmem (!%p7408_p8), [#allocation3], %s4470_s1 }
  0x2e   : > { %7250 = dma.done.wait (%p7419_p12), %s228_s24, 65536  }
  0x2f   : > { %7252 = vsyncadd (%p7419_p12), %s228_s24, 4294901760  ;;  %s237_s27 = sand.u32 1, %s7263_s13  }
  0x30   : > { %s7462_s28 = sshll.u32 %s237_s27, 3  ;;  %s238_s6 = scalar_lea.sflag [#allocation6], %s237_s27 }
  0x31   : > { %s241_s29 = scalar_lea.vmem [#allocation5], %s7462_s28 }
  0x32   : > { %7254 = dma.done.wait (%p7438_p5), %s238_s6, 128  }
  0x33   : > { %7256 = vsyncadd (%p7438_p5), %s238_s6, 4294967168  ;;  %s4472_s1 = sshll.u32 %s7283_s18, 3  ;;  %s4474_s12 = sshll.u32 %s7287_s19, 3 }
  0x34   : > { %p286_p2 = scmp.lt.s32.totalorder %s4472_s1, 15  ;;  %p299_p4 = scmp.lt.s32.totalorder %s4474_s12, 15 }
  0x35   : > { %p4476_p8 = scmp.ne.s32.totalorder %s7283_s18, 0 }
  0x36   : > { %s8734_s1 = smov (!%p286_p2, %s4472_s1), 15  ;;  %s8736_s12 = smov (!%p299_p4, %s4474_s12), 15 }
  0x37   : > { %s4473_s24 = sshll.u32 %s8734_s1, 3  ;;  %s4475_s26 = sshll.u32 %s8736_s12, 3 }
  0x38   : > { %s7474_s4 = scalar_lea.vmem %s8701_s0, %s4473_s24  ;;  %s7479_s11 = scalar_lea.vmem %s8704_s3, %s4475_s26 }
  0x39   : > { %309 = sbr.rel (%p4476_p8) target bundleno = 71 (0x47), region = 44 }
  0x3e   : > { %v7304_v0 = vmov 0.0  }
  0x3f   : > { %310 = vst [vmem:[#allocation2 + $0x30] sm:$0xff] %v7304_v0 }
  0x40   : > { %311 = vst [vmem:[#allocation2] sm:$0xff] %v7304_v0 }
  0x41   : > { %312 = vst [vmem:[#allocation2 + $0x18] sm:$0xff] %v7304_v0 }
  0x42   : > { %313 = vst [vmem:[#allocation2 + $0x10] sm:$0xff] %v7304_v0 }
  0x43   : > { %314 = vst [vmem:[#allocation2 + $0x8] sm:$0xff] %v7304_v0 }
  0x44   : > { %315 = vst [vmem:[#allocation2 + $0x20] sm:$0xff] %v7304_v0 }
  0x45   : > { %316 = vst [vmem:[#allocation2 + $0x28] sm:$0xff] %v7304_v0 }
  0x46   : > { %317 = vst [vmem:[#allocation2 + $0x38] sm:$0xff] %v7304_v0 }
  0x47 PF: > { %v4703_v1 = vld [vmem:[%s7455_s23 + $0x1c0] sm:$0xf]  ;;  %p6525_p9 = scmp.ne.s32.totalorder %s7283_s18, 1 }
  0x48   : > { %v6589_v2 = vld [vmem:[%s7455_s23 + $0x1dc] sm:$0xf0] }
  0x49   : > { %v4959_v3 = vld [vmem:[%s7455_s23 + $0x3c0] sm:$0xf]  ;;  %v4704_v4 = vor.u32 %v6589_v2, %v4703_v1 }
  0x4a   : > { %v6653_v5 = vld [vmem:[%s7455_s23 + $0x3dc] sm:$0xf0] }
  0x4b   : > { %v5215_v6 = vld [vmem:[%s7455_s23 + $0x5c0] sm:$0xf]  ;;  %v4960_v8 = vor.u32 %v6653_v5, %v4959_v3  ;;  %3414 = vmatpush.bf16.msra.mxu0 %v4704_v4 }
  0x4c   : > { %v6717_v7 = vld [vmem:[%s7455_s23 + $0x5dc] sm:$0xf0] }
  0x4d   : > { %v5216_v9 = vor.u32 %v6717_v7, %v5215_v6  ;;  %v5471_v10 = vld [vmem:[%s7455_s23 + $0x7c0] sm:$0xf]  ;;  %3427 = vmatpush.bf16.msra.mxu1 %v4960_v8 }
  0x4e   : > { %v6781_v11 = vld [vmem:[%s7455_s23 + $0x7dc] sm:$0xf0] }
  0x4f   : > { %v4671_v12 = vld [vmem:[%s7455_s23 + $0x180] sm:$0xf]  ;;  %v5472_v13 = vor.u32 %v6781_v11, %v5471_v10  ;;  %3440 = vmatpush.bf16.msra.mxu2 %v5216_v9 }
  0x50   : > { %v6581_v14 = vld [vmem:[%s7455_s23 + $0x19c] sm:$0xf0] }
  0x51   : > { %v4927_v15 = vld [vmem:[%s7455_s23 + $0x380] sm:$0xf]  ;;  %v4672_v17 = vor.u32 %v6581_v14, %v4671_v12  ;;  %3453 = vmatpush.bf16.msra.mxu3 %v5472_v13 }
  0x52   : > { %v6645_v16 = vld [vmem:[%s7455_s23 + $0x39c] sm:$0xf0] }
  0x53   : > { %v4928_v18 = vor.u32 %v6645_v16, %v4927_v15  ;;  %v5183_v19 = vld [vmem:[%s7455_s23 + $0x580] sm:$0xf]  ;;  %3415 = vmatpush.bf16.msra.mxu0 %v4672_v17 }
  0x54   : > { %v6709_v20 = vld [vmem:[%s7455_s23 + $0x59c] sm:$0xf0] }
  0x55   : > { %v5439_v21 = vld [vmem:[%s7455_s23 + $0x780] sm:$0xf]  ;;  %v5184_v22 = vor.u32 %v6709_v20, %v5183_v19  ;;  %3428 = vmatpush.bf16.msra.mxu1 %v4928_v18 }
  0x56   : > { %v6773_v23 = vld [vmem:[%s7455_s23 + $0x79c] sm:$0xf0] }
  0x57   : > { %v4639_v24 = vld [vmem:[%s7455_s23 + $0x140] sm:$0xf]  ;;  %v5440_v26 = vor.u32 %v6773_v23, %v5439_v21  ;;  %3441 = vmatpush.bf16.msra.mxu2 %v5184_v22 }
  0x58   : > { %v6573_v25 = vld [vmem:[%s7455_s23 + $0x15c] sm:$0xf0] }
  0x59   : > { %v4895_v27 = vld [vmem:[%s7455_s23 + $0x340] sm:$0xf]  ;;  %v4640_v30 = vor.u32 %v6573_v25, %v4639_v24  ;;  %3454 = vmatpush.bf16.msra.mxu3 %v5440_v26 }
  0x5a   : > { %v6637_v28 = vld [vmem:[%s7455_s23 + $0x35c] sm:$0xf0] }
  0x5b   : > { %v5151_v29 = vld [vmem:[%s7455_s23 + $0x540] sm:$0xf]  ;;  %v4896_v34 = vor.u32 %v6637_v28, %v4895_v27  ;;  %3416 = vmatpush.bf16.msra.mxu0 %v4640_v30 }
  0x5c   : > { %v6701_v31 = vld [vmem:[%s7455_s23 + $0x55c] sm:$0xf0] }
  0x5d   : > { %v5407_v32 = vld [vmem:[%s7455_s23 + $0x740] sm:$0xf]  ;;  %v5152_v35 = vor.u32 %v6701_v31, %v5151_v29  ;;  %3429 = vmatpush.bf16.msra.mxu1 %v4896_v34 }
  0x5e   : > { %v6765_v33 = vld [vmem:[%s7455_s23 + $0x75c] sm:$0xf0] }
  0x5f   : > { %v4607_v36 = vld [vmem:[%s7455_s23 + $0x100] sm:$0xf]  ;;  %v5408_v39 = vor.u32 %v6765_v33, %v5407_v32  ;;  %3442 = vmatpush.bf16.msra.mxu2 %v5152_v35 }
  0x60   : > { %v6565_v37 = vld [vmem:[%s7455_s23 + $0x11c] sm:$0xf0] }
  0x61   : > { %v4863_v38 = vld [vmem:[%s7455_s23 + $0x300] sm:$0xf]  ;;  %v4608_v45 = vor.u32 %v6565_v37, %v4607_v36  ;;  %3455 = vmatpush.bf16.msra.mxu3 %v5408_v39 }
  0x62   : > { %v6629_v40 = vld [vmem:[%s7455_s23 + $0x31c] sm:$0xf0] }
  0x63   : > { %v5119_v41 = vld [vmem:[%s7455_s23 + $0x500] sm:$0xf]  ;;  %v4864_v46 = vor.u32 %v6629_v40, %v4863_v38  ;;  %3417 = vmatpush.bf16.msra.mxu0 %v4608_v45 }
  0x64   : > { %v6693_v42 = vld [vmem:[%s7455_s23 + $0x51c] sm:$0xf0] }
  0x65   : > { %v5375_v43 = vld [vmem:[%s7455_s23 + $0x700] sm:$0xf]  ;;  %v5120_v47 = vor.u32 %v6693_v42, %v5119_v41  ;;  %3430 = vmatpush.bf16.msra.mxu1 %v4864_v46 }
  0x66   : > { %v6757_v44 = vld [vmem:[%s7455_s23 + $0x71c] sm:$0xf0] }
  0x67   : > { %v4575_v48 = vld [vmem:[%s7455_s23 + $0xc0] sm:$0xf]  ;;  %v5376_v51 = vor.u32 %v6757_v44, %v5375_v43  ;;  %3443 = vmatpush.bf16.msra.mxu2 %v5120_v47 }
  0x68   : > { %v6557_v49 = vld [vmem:[%s7455_s23 + $0xdc] sm:$0xf0] }
  0x69   : > { %v4831_v50 = vld [vmem:[%s7455_s23 + $0x2c0] sm:$0xf]  ;;  %v4576_v57 = vor.u32 %v6557_v49, %v4575_v48  ;;  %3456 = vmatpush.bf16.msra.mxu3 %v5376_v51 }
  0x6a   : > { %v6621_v52 = vld [vmem:[%s7455_s23 + $0x2dc] sm:$0xf0] }
  0x6b   : > { %v5087_v53 = vld [vmem:[%s7455_s23 + $0x4c0] sm:$0xf]  ;;  %v4832_v58 = vor.u32 %v6621_v52, %v4831_v50  ;;  %3418 = vmatpush.bf16.msra.mxu0 %v4576_v57 }
  0x6c   : > { %v6685_v54 = vld [vmem:[%s7455_s23 + $0x4dc] sm:$0xf0] }
  0x6d   : > { %v5343_v55 = vld [vmem:[%s7455_s23 + $0x6c0] sm:$0xf]  ;;  %v5088_v59 = vor.u32 %v6685_v54, %v5087_v53  ;;  %3431 = vmatpush.bf16.msra.mxu1 %v4832_v58 }
  0x6e   : > { %v6749_v56 = vld [vmem:[%s7455_s23 + $0x6dc] sm:$0xf0] }
  0x6f   : > { %v4543_v60 = vld [vmem:[%s7455_s23 + $0x80] sm:$0xf]  ;;  %v5344_v63 = vor.u32 %v6749_v56, %v5343_v55  ;;  %3444 = vmatpush.bf16.msra.mxu2 %v5088_v59  ;;  %v320_v59 = vld [vmem:[%s7474_s4 + $0x10] sm:$0xff] }
  0x70   : > { %v6549_v61 = vld [vmem:[%s7455_s23 + $0x9c] sm:$0xf0] }
  0x71   : > { %v4799_v62 = vld [vmem:[%s7455_s23 + $0x280] sm:$0xf]  ;;  %v4544_v5 = vor.u32 %v6549_v61, %v4543_v60  ;;  %3457 = vmatpush.bf16.msra.mxu3 %v5344_v63 }
  0x72   : > { %v6613_v0 = vld [vmem:[%s7455_s23 + $0x29c] sm:$0xf0] }
  0x73   : > { %v5055_v1 = vld [vmem:[%s7455_s23 + $0x480] sm:$0xf]  ;;  %v4800_v6 = vor.u32 %v6613_v0, %v4799_v62  ;;  %3419 = vmatpush.bf16.msra.mxu0 %v4544_v5  ;;  %v7569_v0 = vpack.c.bf16 %v320_v59, %v320_v59 }
  0x74   : > { %v6677_v2 = vld [vmem:[%s7455_s23 + $0x49c] sm:$0xf0] }
  0x75   : > { %v5311_v3 = vld [vmem:[%s7455_s23 + $0x680] sm:$0xf]  ;;  %v5056_v7 = vor.u32 %v6677_v2, %v5055_v1  ;;  %3432 = vmatpush.bf16.msra.mxu1 %v4800_v6 }
  0x76   : > { %v6741_v4 = vld [vmem:[%s7455_s23 + $0x69c] sm:$0xf0] }
  0x77   : > { %v4511_v8 = vld [vmem:[%s7455_s23 + $0x40] sm:$0xf]  ;;  %v5312_v11 = vor.u32 %v6741_v4, %v5311_v3  ;;  %3445 = vmatpush.bf16.msra.mxu2 %v5056_v7 }
  0x78   : > { %v6541_v9 = vld [vmem:[%s7455_s23 + $0x5c] sm:$0xf0] }
  0x79   : > { %v4767_v10 = vld [vmem:[%s7455_s23 + $0x240] sm:$0xf]  ;;  %v4512_v17 = vor.u32 %v6541_v9, %v4511_v8  ;;  %3458 = vmatpush.bf16.msra.mxu3 %v5312_v11  ;;  %v321_v11 = vld [vmem:[%s7474_s4 + $0x18] sm:$0xff] }
  0x7a   : > { %v6605_v12 = vld [vmem:[%s7455_s23 + $0x25c] sm:$0xf0] }
  0x7b   : > { %v5023_v13 = vld [vmem:[%s7455_s23 + $0x440] sm:$0xf]  ;;  %v4768_v20 = vor.u32 %v6605_v12, %v4767_v10  ;;  %3420 = vmatpush.bf16.msra.mxu0 %v4512_v17  ;;  %v319_v12 = vld [vmem:[%s7474_s4 + $0x8] sm:$0xff]  ;;  %v7585_v17 = vpack.c.bf16 %v321_v11, %v321_v11  ;;  %v4961_v11 = vld [vmem:[%s7455_s23 + $0x3e0] sm:$0xf0] }
  0x7c   : > { %v6669_v14 = vld [vmem:[%s7455_s23 + $0x45c] sm:$0xf0] }
  0x7d   : > { %v5279_v15 = vld [vmem:[%s7455_s23 + $0x640] sm:$0xf]  ;;  %v5024_v21 = vor.u32 %v6669_v14, %v5023_v13  ;;  %3433 = vmatpush.bf16.msra.mxu1 %v4768_v20 }
  0x7e   : > { %v6733_v16 = vld [vmem:[%s7455_s23 + $0x65c] sm:$0xf0] }
  0x7f   : > { %v4479_v18 = vld [vmem:[%s7455_s23] sm:$0xf]  ;;  %v5280_v25 = vor.u32 %v6733_v16, %v5279_v15  ;;  %3446 = vmatpush.bf16.msra.mxu2 %v5024_v21 }
  0x80   : > { %v6533_v19 = vld [vmem:[%s7455_s23 + $0x1c] sm:$0xf0] }
  0x81   : > { %v4735_v22 = vld [vmem:[%s7455_s23 + $0x200] sm:$0xf]  ;;  %v4480_v32 = vor.u32 %v6533_v19, %v4479_v18  ;;  %3459 = vmatpush.bf16.msra.mxu3 %v5280_v25  ;;  %v7587_v18 = vpack.c.bf16 %v319_v12, %v319_v12  ;;  %v6713_v12 = vld [vmem:[%s7455_s23 + $0x5c4] sm:$0xf] }
  0x82   : > { %v6597_v23 = vld [vmem:[%s7455_s23 + $0x21c] sm:$0xf0] }
  0x83   : > { %v4991_v24 = vld [vmem:[%s7455_s23 + $0x400] sm:$0xf]  ;;  %v4736_v36 = vor.u32 %v6597_v23, %v4735_v22  ;;  %3421 = vmatpush.bf16.msra.mxu0 %v4480_v32 }
  0x84   : > { %v6661_v26 = vld [vmem:[%s7455_s23 + $0x41c] sm:$0xf0] }
  0x85   : > { %v5247_v27 = vld [vmem:[%s7455_s23 + $0x600] sm:$0xf]  ;;  %v4992_v37 = vor.u32 %v6661_v26, %v4991_v24  ;;  %3434 = vmatpush.bf16.msra.mxu1 %v4736_v36 }
  0x86   : > { %v6725_v28 = vld [vmem:[%s7455_s23 + $0x61c] sm:$0xf0] }
  0x87   : > { %v5727_v29 = vld [vmem:[%s7455_s23 + $0x9c0] sm:$0xf]  ;;  %v5248_v40 = vor.u32 %v6725_v28, %v5247_v27  ;;  %3447 = vmatpush.bf16.msra.mxu2 %v4992_v37 }
  0x88   : > { %v6845_v30 = vld [vmem:[%s7455_s23 + $0x9dc] sm:$0xf0]  ;;  %3435 = vmatmul.bf16.vlgmr.msra.gmra.mxu1 %v7587_v18 }
  0x89   : > { %v5983_v31 = vld [vmem:[%s7455_s23 + $0xbc0] sm:$0xf]  ;;  %v5728_v41 = vor.u32 %v6845_v30, %v5727_v29  ;;  %3460 = vmatpush.bf16.msra.mxu3 %v5248_v40 }
  0x8a   : > { %v6909_v33 = vld [vmem:[%s7455_s23 + $0xbdc] sm:$0xf0]  ;;  %3448 = vmatmul.bf16.vlgmr.msra.gmra.mxu2 %v7569_v0 }
  0x8b   : > { %v6239_v34 = vld [vmem:[%s7455_s23 + $0xdc0] sm:$0xf]  ;;  %v5984_v42 = vor.u32 %v6909_v33, %v5983_v31  ;;  %3466 = vmatpush.bf16.msrb.mxu0 %v5728_v41 }
  0x8c   : > { %v6973_v35 = vld [vmem:[%s7455_s23 + $0xddc] sm:$0xf0]  ;;  %3461 = vmatmul.bf16.vlgmr.msra.gmra.mxu3 %v7585_v17 }
  0x8d   : > { %v6495_v38 = vld [vmem:[%s7455_s23 + $0xfc0] sm:$0xf]  ;;  %v6240_v43 = vor.u32 %v6973_v35, %v6239_v34  ;;  %3479 = vmatpush.bf16.msrb.mxu1 %v5984_v42 }
  0x8e   : > { %v7037_v39 = vld [vmem:[%s7455_s23 + $0xfdc] sm:$0xf0] }
  0x8f   : > { %v5695_v44 = vld [vmem:[%s7455_s23 + $0x980] sm:$0xf]  ;;  %v6496_v47 = vor.u32 %v7037_v39, %v6495_v38  ;;  %3492 = vmatpush.bf16.msrb.mxu2 %v6240_v43 }
  0x90   : > { %v6837_v45 = vld [vmem:[%s7455_s23 + $0x99c] sm:$0xf0] }
  0x91   : > { %v5951_v46 = vld [vmem:[%s7455_s23 + $0xb80] sm:$0xf]  ;;  %v5696_v53 = vor.u32 %v6837_v45, %v5695_v44  ;;  %3505 = vmatpush.bf16.msrb.mxu3 %v6496_v47 }
  0x92   : > { %v6901_v48 = vld [vmem:[%s7455_s23 + $0xb9c] sm:$0xf0] }
  0x93   : > { %v6207_v49 = vld [vmem:[%s7455_s23 + $0xd80] sm:$0xf]  ;;  %v5952_v55 = vor.u32 %v6901_v48, %v5951_v46  ;;  %3467 = vmatpush.bf16.msrb.mxu0 %v5696_v53 }
  0x94   : > { %v6965_v50 = vld [vmem:[%s7455_s23 + $0xd9c] sm:$0xf0] }
  0x95   : > { %v6463_v51 = vld [vmem:[%s7455_s23 + $0xf80] sm:$0xf]  ;;  %v6208_v56 = vor.u32 %v6965_v50, %v6207_v49  ;;  %3480 = vmatpush.bf16.msrb.mxu1 %v5952_v55 }
  0x96   : > { %v7029_v52 = vld [vmem:[%s7455_s23 + $0xf9c] sm:$0xf0] }
  0x97   : > { %v5663_v54 = vld [vmem:[%s7455_s23 + $0x940] sm:$0xf]  ;;  %v6464_v60 = vor.u32 %v7029_v52, %v6463_v51  ;;  %3493 = vmatpush.bf16.msrb.mxu2 %v6208_v56 }
  0x98   : > { %v6829_v57 = vld [vmem:[%s7455_s23 + $0x95c] sm:$0xf0] }
  0x99   : > { %v5919_v58 = vld [vmem:[%s7455_s23 + $0xb40] sm:$0xf]  ;;  %v5664_v3 = vor.u32 %v6829_v57, %v5663_v54  ;;  %3506 = vmatpush.bf16.msrb.mxu3 %v6464_v60 }
  0x9a   : > { %v6893_v61 = vld [vmem:[%s7455_s23 + $0xb5c] sm:$0xf0] }
  0x9b   : > { %v6175_v62 = vld [vmem:[%s7455_s23 + $0xd40] sm:$0xf]  ;;  %v5920_v7 = vor.u32 %v6893_v61, %v5919_v58  ;;  %3468 = vmatpush.bf16.msrb.mxu0 %v5664_v3 }
  0x9c   : > { %v6957_v63 = vld [vmem:[%s7455_s23 + $0xd5c] sm:$0xf0] }
  0x9d   : > { %v6431_v1 = vld [vmem:[%s7455_s23 + $0xf40] sm:$0xf]  ;;  %v6176_v8 = vor.u32 %v6957_v63, %v6175_v62  ;;  %3481 = vmatpush.bf16.msrb.mxu1 %v5920_v7  ;;  %v4705_v7 = vld [vmem:[%s7455_s23 + $0x1e0] sm:$0xf0] }
  0x9e   : > { %v7021_v2 = vld [vmem:[%s7455_s23 + $0xf5c] sm:$0xf0] }
  0x9f   : > { %v5631_v4 = vld [vmem:[%s7455_s23 + $0x900] sm:$0xf]  ;;  %v6432_v13 = vor.u32 %v7021_v2, %v6431_v1  ;;  %3494 = vmatpush.bf16.msrb.mxu2 %v6176_v8  ;;  %v6649_v8 = vld [vmem:[%s7455_s23 + $0x3c4] sm:$0xf] }
  0xa0   : > { %v6821_v5 = vld [vmem:[%s7455_s23 + $0x91c] sm:$0xf0] }
  0xa1   : > { %v318_v6 = vld [vmem:[%s7474_s4] sm:$0xff]  ;;  %v5632_v21 = vor.u32 %v6821_v5, %v5631_v4  ;;  %3507 = vmatpush.bf16.msrb.mxu3 %v6432_v13 }
  0xa2   : > { %v5887_v9 = vld [vmem:[%s7455_s23 + $0xb00] sm:$0xf]  ;;  %v7578_v10 = vpack.c.bf16 %v318_v6, %v318_v6  ;;  %v6585_v6 = vld [vmem:[%s7455_s23 + $0x1c4] sm:$0xf] }
  0xa3   : > { %v6885_v14 = vld [vmem:[%s7455_s23 + $0xb1c] sm:$0xf0]  ;;  %3469 = vmatpush.bf16.msrb.mxu0 %v5632_v21  ;;  %v5217_v13 = vld [vmem:[%s7455_s23 + $0x5e0] sm:$0xf0] }
  0xa4   : > { %v6143_v15 = vld [vmem:[%s7455_s23 + $0xd00] sm:$0xf]  ;;  %3422 = vmatmul.bf16.vlgmr.msra.gmra.mxu0 %v7578_v10  ;;  %v5888_v22 = vor.u32 %v6885_v14, %v5887_v9 }
  0xa5   : > { %v6949_v16 = vld [vmem:[%s7455_s23 + $0xd1c] sm:$0xf0] }
  0xa6   : > { %v6399_v19 = vld [vmem:[%s7455_s23 + $0xf00] sm:$0xf]  ;;  %v6144_v23 = vor.u32 %v6949_v16, %v6143_v15  ;;  %3482 = vmatpush.bf16.msrb.mxu1 %v5888_v22  ;;  %v6777_v16 = vld [vmem:[%s7455_s23 + $0x7c4] sm:$0xf]  ;;  %v4708_v22 = vor.u32 %v6585_v6, %v4705_v7 }
  0xa7   : > { %v7013_v20 = vld [vmem:[%s7455_s23 + $0xf1c] sm:$0xf0]  ;;  %v4577_v6 = vld [vmem:[%s7455_s23 + $0xe0] sm:$0xf0] }
  0xa8   : > { %v5599_v24 = vld [vmem:[%s7455_s23 + $0x8c0] sm:$0xf]  ;;  %v6400_v27 = vor.u32 %v7013_v20, %v6399_v19  ;;  %3495 = vmatpush.bf16.msrb.mxu2 %v6144_v23  ;;  %v5473_v19 = vld [vmem:[%s7455_s23 + $0x7e0] sm:$0xf0]  ;;  %v324_v20 = vld [vmem:[%s7474_s4 + $0x30] sm:$0xff] }
  0xa9   : > { %v6813_v25 = vld [vmem:[%s7455_s23 + $0x8dc] sm:$0xf0]  ;;  %v6577_v23 = vld [vmem:[%s7455_s23 + $0x184] sm:$0xf] }
  0xaa   : > { %v5855_v26 = vld [vmem:[%s7455_s23 + $0xac0] sm:$0xf]  ;;  %v5600_v33 = vor.u32 %v6813_v25, %v5599_v24  ;;  %3508 = vmatpush.bf16.msrb.mxu3 %v6400_v27  ;;  %v325_v25 = vld [vmem:[%s7474_s4 + $0x38] sm:$0xff]  ;;  %v5220_v27 = vor.u32 %v6713_v12, %v5217_v13  ;;  %v6617_v7 = vld [vmem:[%s7455_s23 + $0x2c4] sm:$0xf] }
  0xab   : > { %v6877_v28 = vld [vmem:[%s7455_s23 + $0xadc] sm:$0xf0]  ;;  %v5089_v12 = vld [vmem:[%s7455_s23 + $0x4e0] sm:$0xf0] }
  0xac   : > { %v6111_v29 = vld [vmem:[%s7455_s23 + $0xcc0] sm:$0xf]  ;;  %v5856_v34 = vor.u32 %v6877_v28, %v5855_v26  ;;  %3470 = vmatpush.bf16.msrb.mxu0 %v5600_v33  ;;  %v4964_v26 = vor.u32 %v6649_v8, %v4961_v11  ;;  %v4673_v28 = vld [vmem:[%s7455_s23 + $0x1a0] sm:$0xf0] }
  0xad   : > { %v6941_v30 = vld [vmem:[%s7455_s23 + $0xcdc] sm:$0xf0]  ;;  %v6705_v33 = vld [vmem:[%s7455_s23 + $0x584] sm:$0xf] }
  0xae   : > { %v6367_v31 = vld [vmem:[%s7455_s23 + $0xec0] sm:$0xf]  ;;  %v6112_v35 = vor.u32 %v6941_v30, %v6111_v29  ;;  %3483 = vmatpush.bf16.msrb.mxu1 %v5856_v34  ;;  %v6641_v29 = vld [vmem:[%s7455_s23 + $0x384] sm:$0xf]  ;;  %v323_v30 = vld [vmem:[%s7474_s4 + $0x28] sm:$0xff] }
  0xaf   : > { %v7005_v32 = vld [vmem:[%s7455_s23 + $0xedc] sm:$0xf0]  ;;  %v5185_v34 = vld [vmem:[%s7455_s23 + $0x5a0] sm:$0xf0] }
  0xb0   : > { %v5567_v36 = vld [vmem:[%s7455_s23 + $0x880] sm:$0xf]  ;;  %v6368_v39 = vor.u32 %v7005_v32, %v6367_v31  ;;  %3496 = vmatpush.bf16.msrb.mxu2 %v6112_v35  ;;  %v5476_v31 = vor.u32 %v6777_v16, %v5473_v19  ;;  %v4929_v32 = vld [vmem:[%s7455_s23 + $0x3a0] sm:$0xf0]  ;;  %v7644_v35 = vpack.c.bf16 %v324_v20, %v324_v20 }
  0xb1   : > { %v6805_v37 = vld [vmem:[%s7455_s23 + $0x89c] sm:$0xf0]  ;;  %v6681_v11 = vld [vmem:[%s7455_s23 + $0x4c4] sm:$0xf] }
  0xb2   : > { %v5823_v38 = vld [vmem:[%s7455_s23 + $0xa80] sm:$0xf]  ;;  %v5568_v45 = vor.u32 %v6805_v37, %v5567_v36  ;;  %3509 = vmatpush.bf16.msrb.mxu3 %v6368_v39  ;;  %v6769_v36 = vld [vmem:[%s7455_s23 + $0x784] sm:$0xf]  ;;  %v7650_v39 = vpack.c.bf16 %v325_v25, %v325_v25  ;;  %v5092_v19 = vor.u32 %v6681_v11, %v5089_v12 }
  0xb3   : > { %v6869_v40 = vld [vmem:[%s7455_s23 + $0xa9c] sm:$0xf0]  ;;  %v5441_v37 = vld [vmem:[%s7455_s23 + $0x7a0] sm:$0xf0] }
  0xb4   : > { %v6079_v41 = vld [vmem:[%s7455_s23 + $0xc80] sm:$0xf]  ;;  %v5824_v46 = vor.u32 %v6869_v40, %v5823_v38  ;;  %3471 = vmatpush.bf16.msrb.mxu0 %v5568_v45  ;;  %v4676_v40 = vor.u32 %v6577_v23, %v4673_v28  ;;  %v4641_v45 = vld [vmem:[%s7455_s23 + $0x160] sm:$0xf0] }
  0xb5   : > { %v6933_v42 = vld [vmem:[%s7455_s23 + $0xc9c] sm:$0xf0]  ;;  %v6745_v13 = vld [vmem:[%s7455_s23 + $0x6c4] sm:$0xf] }
  0xb6   : > { %v6335_v43 = vld [vmem:[%s7455_s23 + $0xe80] sm:$0xf]  ;;  %v6080_v47 = vor.u32 %v6933_v42, %v6079_v41  ;;  %3484 = vmatpush.bf16.msrb.mxu1 %v5824_v46  ;;  %v7652_v41 = vpack.c.bf16 %v323_v30, %v323_v30  ;;  %v4932_v42 = vor.u32 %v6641_v29, %v4929_v32  ;;  %v6633_v46 = vld [vmem:[%s7455_s23 + $0x344] sm:$0xf] }
  0xb7   : > { %v6997_v44 = vld [vmem:[%s7455_s23 + $0xe9c] sm:$0xf0]  ;;  %v6545_v20 = vld [vmem:[%s7455_s23 + $0x84] sm:$0xf] }
  0xb8   : > { %v5535_v48 = vld [vmem:[%s7455_s23 + $0x840] sm:$0xf]  ;;  %v6336_v51 = vor.u32 %v6997_v44, %v6335_v43  ;;  %3497 = vmatpush.bf16.msrb.mxu2 %v6080_v47  ;;  %v5188_v43 = vor.u32 %v6705_v33, %v5185_v34  ;;  %v6569_v44 = vld [vmem:[%s7455_s23 + $0x144] sm:$0xf]  ;;  %v5444_v47 = vor.u32 %v6769_v36, %v5441_v37 }
  0xb9   : > { %v6797_v49 = vld [vmem:[%s7455_s23 + $0x85c] sm:$0xf0]  ;;  %v6673_v25 = vld [vmem:[%s7455_s23 + $0x484] sm:$0xf] }
  0xba   : > { %v5791_v50 = vld [vmem:[%s7455_s23 + $0xa40] sm:$0xf]  ;;  %v5536_v57 = vor.u32 %v6797_v49, %v5535_v48  ;;  %3510 = vmatpush.bf16.msrb.mxu3 %v6336_v51  ;;  %v4897_v48 = vld [vmem:[%s7455_s23 + $0x360] sm:$0xf0] }
  0xbb   : > { %v6861_v52 = vld [vmem:[%s7455_s23 + $0xa5c] sm:$0xf0]  ;;  %v6697_v49 = vld [vmem:[%s7455_s23 + $0x544] sm:$0xf] }
  0xbc   : > { %v6047_v53 = vld [vmem:[%s7455_s23 + $0xc40] sm:$0xf]  ;;  %v5792_v60 = vor.u32 %v6861_v52, %v5791_v50  ;;  %3472 = vmatpush.bf16.msrb.mxu0 %v5536_v57  ;;  %v5153_v50 = vld [vmem:[%s7455_s23 + $0x560] sm:$0xf0] }
  0xbd   : > { %v6925_v54 = vld [vmem:[%s7455_s23 + $0xc5c] sm:$0xf0]  ;;  %v6761_v51 = vld [vmem:[%s7455_s23 + $0x744] sm:$0xf] }
  0xbe   : > { %v6303_v55 = vld [vmem:[%s7455_s23 + $0xe40] sm:$0xf]  ;;  %v6048_v61 = vor.u32 %v6925_v54, %v6047_v53  ;;  %3485 = vmatpush.bf16.msrb.mxu1 %v5792_v60  ;;  %v5409_v52 = vld [vmem:[%s7455_s23 + $0x760] sm:$0xf0]  ;;  %v4644_v53 = vor.u32 %v6569_v44, %v4641_v45  ;;  %v4900_v54 = vor.u32 %v6633_v46, %v4897_v48 }
  0xbf   : > { %v6989_v56 = vld [vmem:[%s7455_s23 + $0xe5c] sm:$0xf0]  ;;  %v4609_v57 = vld [vmem:[%s7455_s23 + $0x120] sm:$0xf0] }
  0xc0   : > { %v5503_v58 = vld [vmem:[%s7455_s23 + $0x800] sm:$0xf]  ;;  %v6304_v2 = vor.u32 %v6989_v56, %v6303_v55  ;;  %3498 = vmatpush.bf16.msrb.mxu2 %v6048_v61  ;;  %v5156_v55 = vor.u32 %v6697_v49, %v5153_v50  ;;  %v6561_v56 = vld [vmem:[%s7455_s23 + $0x104] sm:$0xf] }
  0xc1   : > { %v6789_v59 = vld [vmem:[%s7455_s23 + $0x81c] sm:$0xf0]  ;;  %v4865_v60 = vld [vmem:[%s7455_s23 + $0x320] sm:$0xf0] }
  0xc2   : > { %v5759_v62 = vld [vmem:[%s7455_s23 + $0xa00] sm:$0xf]  ;;  %v5504_v9 = vor.u32 %v6789_v59, %v5503_v58  ;;  %3511 = vmatpush.bf16.msrb.mxu3 %v6304_v2  ;;  %v6625_v58 = vld [vmem:[%s7455_s23 + $0x304] sm:$0xf]  ;;  %v5412_v59 = vor.u32 %v6761_v51, %v5409_v52  ;;  %v4612_v2 = vor.u32 %v6561_v56, %v4609_v57 }
  0xc3   : > { %v6853_v63 = vld [vmem:[%s7455_s23 + $0xa1c] sm:$0xf0]  ;;  %v6689_v61 = vld [vmem:[%s7455_s23 + $0x504] sm:$0xf] }
  0xc4   : > { %v6015_v1 = vld [vmem:[%s7455_s23 + $0xc00] sm:$0xf]  ;;  %v5760_v14 = vor.u32 %v6853_v63, %v5759_v62  ;;  %3473 = vmatpush.bf16.msrb.mxu0 %v5504_v9  ;;  %v5121_v62 = vld [vmem:[%s7455_s23 + $0x520] sm:$0xf0] }
  0xc5   : > { %v6917_v3 = vld [vmem:[%s7455_s23 + $0xc1c] sm:$0xf0]  ;;  %v6753_v63 = vld [vmem:[%s7455_s23 + $0x704] sm:$0xf] }
  0xc6   : > { %v6271_v4 = vld [vmem:[%s7455_s23 + $0xe00] sm:$0xf]  ;;  %v6016_v15 = vor.u32 %v6917_v3, %v6015_v1  ;;  %3486 = vmatpush.bf16.msrb.mxu1 %v5760_v14  ;;  %v5377_v1 = vld [vmem:[%s7455_s23 + $0x720] sm:$0xf0]  ;;  %v4868_v3 = vor.u32 %v6625_v58, %v4865_v60 }
  0xc7   : > { %v6981_v5 = vld [vmem:[%s7455_s23 + $0xe1c] sm:$0xf0]  ;;  %v5380_v8 = vor.u32 %v6753_v63, %v5377_v1  ;;  %v4833_v9 = vld [vmem:[%s7455_s23 + $0x2e0] sm:$0xf0] }
  0xc8   : > { %v6272_v21 = vor.u32 %v6981_v5, %v6271_v4  ;;  %v322_v24 = vld [vmem:[%s7474_s4 + $0x20] sm:$0xff]  ;;  %3499 = vmatpush.bf16.msrb.mxu2 %v6016_v15  ;;  %3518 = vmatpush.bf16.msra.mxu0 %v4708_v22  ;;  %v5124_v4 = vor.u32 %v6689_v61, %v5121_v62  ;;  %v4836_v16 = vor.u32 %v6617_v7, %v4833_v9 }
  0xc9   : > { %v7648_v38 = vpack.c.bf16 %v322_v24, %v322_v24  ;;  %3487 = vmatmul.bf16.vlgmr.msrb.gmra.mxu1 %v7652_v41  ;;  %v6553_v5 = vld [vmem:[%s7455_s23 + $0xc4] sm:$0xf] }
  0xca   : > { %3512 = vmatpush.bf16.msrb.mxu3 %v6272_v21  ;;  %3531 = vmatpush.bf16.msra.mxu1 %v4964_v26  ;;  %v5345_v14 = vld [vmem:[%s7455_s23 + $0x6e0] sm:$0xf0]  ;;  %v4580_v15 = vor.u32 %v6553_v5, %v4577_v6 }
  0xcb   : > { %3500 = vmatmul.bf16.vlgmr.msrb.gmra.mxu2 %v7644_v35  ;;  %3474 = vmatmul.bf16.vlgmr.msrb.gmra.mxu0 %v7648_v38  ;;  %v4545_v21 = vld [vmem:[%s7455_s23 + $0xa0] sm:$0xf0]  ;;  %v5348_v23 = vor.u32 %v6745_v13, %v5345_v14 }
  0xcc   : > { %3544 = vmatpush.bf16.msra.mxu2 %v5220_v27  ;;  %3519 = vmatpush.bf16.msra.mxu0 %v4676_v40  ;;  %v6609_v22 = vld [vmem:[%s7455_s23 + $0x284] sm:$0xf]  ;;  %v4548_v29 = vor.u32 %v6545_v20, %v4545_v21 }
  0xcd   : > { %3513 = vmatmul.bf16.vlgmr.msrb.gmra.mxu3 %v7650_v39  ;;  %v4801_v24 = vld [vmem:[%s7455_s23 + $0x2a0] sm:$0xf0] }
  0xce   : > { %3557 = vmatpush.bf16.msra.mxu3 %v5476_v31  ;;  %3532 = vmatpush.bf16.msra.mxu1 %v4932_v42  ;;  %v5057_v26 = vld [vmem:[%s7455_s23 + $0x4a0] sm:$0xf0]  ;;  %v4804_v30 = vor.u32 %v6609_v22, %v4801_v24 }
  0xcf   : > { %v6737_v27 = vld [vmem:[%s7455_s23 + $0x684] sm:$0xf]  ;;  %v5060_v31 = vor.u32 %v6673_v25, %v5057_v26 }
  0xd0   : > { %3545 = vmatpush.bf16.msra.mxu2 %v5188_v43  ;;  %3520 = vmatpush.bf16.msra.mxu0 %v4644_v53  ;;  %v5313_v28 = vld [vmem:[%s7455_s23 + $0x6a0] sm:$0xf0] }
  0xd1   : > { %v6537_v32 = vld [vmem:[%s7455_s23 + $0x44] sm:$0xf]  ;;  %v5316_v36 = vor.u32 %v6737_v27, %v5313_v28 }
  0xd2   : > { %3558 = vmatpush.bf16.msra.mxu3 %v5444_v47  ;;  %3533 = vmatpush.bf16.msra.mxu1 %v4900_v54  ;;  %v4513_v33 = vld [vmem:[%s7455_s23 + $0x60] sm:$0xf0] }
  0xd3   : > { %v6601_v34 = vld [vmem:[%s7455_s23 + $0x244] sm:$0xf]  ;;  %v4516_v45 = vor.u32 %v6537_v32, %v4513_v33 }
  0xd4   : > { %3546 = vmatpush.bf16.msra.mxu2 %v5156_v55  ;;  %3521 = vmatpush.bf16.msra.mxu0 %v4612_v2  ;;  %v4769_v37 = vld [vmem:[%s7455_s23 + $0x260] sm:$0xf0] }
  0xd5   : > { %v6665_v40 = vld [vmem:[%s7455_s23 + $0x444] sm:$0xf]  ;;  %v4772_v48 = vor.u32 %v6601_v34, %v4769_v37 }
  0xd6   : > { %3559 = vmatpush.bf16.msra.mxu3 %v5412_v59  ;;  %3534 = vmatpush.bf16.msra.mxu1 %v4868_v3  ;;  %v5025_v42 = vld [vmem:[%s7455_s23 + $0x460] sm:$0xf0] }
  0xd7   : > { %v6729_v43 = vld [vmem:[%s7455_s23 + $0x644] sm:$0xf]  ;;  %v5028_v49 = vor.u32 %v6665_v40, %v5025_v42 }
  0xd8   : > { %3547 = vmatpush.bf16.msra.mxu2 %v5124_v4  ;;  %3522 = vmatpush.bf16.msra.mxu0 %v4580_v15  ;;  %v5281_v44 = vld [vmem:[%s7455_s23 + $0x660] sm:$0xf0] }
  0xd9   : > { %v6529_v46 = vld [vmem:[%s7455_s23 + $0x4] sm:$0xf]  ;;  %v5284_v53 = vor.u32 %v6729_v43, %v5281_v44 }
  0xda   : > { %3560 = vmatpush.bf16.msra.mxu3 %v5380_v8  ;;  %3535 = vmatpush.bf16.msra.mxu1 %v4836_v16  ;;  %v4481_v47 = vld [vmem:[%s7455_s23 + $0x20] sm:$0xf0] }
  0xdb   : > { %v6593_v50 = vld [vmem:[%s7455_s23 + $0x204] sm:$0xf]  ;;  %v4484_v60 = vor.u32 %v6529_v46, %v4481_v47 }
  0xdc   : > { %3548 = vmatpush.bf16.msra.mxu2 %v5092_v19  ;;  %3523 = vmatpush.bf16.msra.mxu0 %v4548_v29  ;;  %v4737_v51 = vld [vmem:[%s7455_s23 + $0x220] sm:$0xf0] }
  0xdd   : > { %v6657_v52 = vld [vmem:[%s7455_s23 + $0x404] sm:$0xf]  ;;  %v4740_v1 = vor.u32 %v6593_v50, %v4737_v51 }
  0xde   : > { %3561 = vmatpush.bf16.msra.mxu3 %v5348_v23  ;;  %3536 = vmatpush.bf16.msra.mxu1 %v4804_v30  ;;  %v4993_v54 = vld [vmem:[%s7455_s23 + $0x420] sm:$0xf0] }
  0xdf   : > { %v6721_v55 = vld [vmem:[%s7455_s23 + $0x604] sm:$0xf]  ;;  %v4996_v2 = vor.u32 %v6657_v52, %v4993_v54 }
  0xe0   : > { %3549 = vmatpush.bf16.msra.mxu2 %v5060_v31  ;;  %v5249_v56 = vld [vmem:[%s7455_s23 + $0x620] sm:$0xf0]  ;;  %3524 = vmatpush.bf16.msra.mxu0 %v4516_v45 }
  0xe1   : > { %v6841_v57 = vld [vmem:[%s7455_s23 + $0x9c4] sm:$0xf]  ;;  %v5252_v5 = vor.u32 %v6721_v55, %v5249_v56 }
  0xe2   : > { %3562 = vmatpush.bf16.msra.mxu3 %v5316_v36  ;;  %v5729_v58 = vld [vmem:[%s7455_s23 + $0x9e0] sm:$0xf0]  ;;  %3537 = vmatpush.bf16.msra.mxu1 %v4772_v48 }
  0xe3   : > { %v6905_v59 = vld [vmem:[%s7455_s23 + $0xbc4] sm:$0xf]  ;;  %v5732_v6 = vor.u32 %v6841_v57, %v5729_v58 }
  0xe4   : > { %v5985_v61 = vld [vmem:[%s7455_s23 + $0xbe0] sm:$0xf0]  ;;  %3550 = vmatpush.bf16.msra.mxu2 %v5028_v49  ;;  %3525 = vmatpush.bf16.msra.mxu0 %v4484_v60 }
  0xe5   : > { %v6969_v62 = vld [vmem:[%s7455_s23 + $0xdc4] sm:$0xf]  ;;  %v5988_v7 = vor.u32 %v6905_v59, %v5985_v61 }
  0xe6   : > { %v6241_v63 = vld [vmem:[%s7455_s23 + $0xde0] sm:$0xf0]  ;;  %3563 = vmatpush.bf16.msra.mxu3 %v5284_v53  ;;  %3538 = vmatpush.bf16.msra.mxu1 %v4740_v1 }
  0xe7   : > { %v7033_v3 = vld [vmem:[%s7455_s23 + $0xfc4] sm:$0xf]  ;;  %v6244_v8 = vor.u32 %v6969_v62, %v6241_v63  ;;  %3526 = vmatmul.bf16.vlgmr.msra.gmra.mxu0 %v7578_v10 }
  0xe8   : > { %v6497_v4 = vld [vmem:[%s7455_s23 + $0xfe0] sm:$0xf0]  ;;  %3551 = vmatpush.bf16.msra.mxu2 %v4996_v2  ;;  %3570 = vmatpush.bf16.msrb.mxu0 %v5732_v6 }
  0xe9   : > { %v6833_v9 = vld [vmem:[%s7455_s23 + $0x984] sm:$0xf]  ;;  %v6500_v13 = vor.u32 %v7033_v3, %v6497_v4  ;;  %3539 = vmatmul.bf16.vlgmr.msra.gmra.mxu1 %v7587_v18 }
  0xea   : > { %v5697_v11 = vld [vmem:[%s7455_s23 + $0x9a0] sm:$0xf0]  ;;  %3564 = vmatpush.bf16.msra.mxu3 %v5252_v5  ;;  %3583 = vmatpush.bf16.msrb.mxu1 %v5988_v7 }
  0xeb   : > { %v6897_v12 = vld [vmem:[%s7455_s23 + $0xb84] sm:$0xf]  ;;  %v5700_v21 = vor.u32 %v6833_v9, %v5697_v11  ;;  %3552 = vmatmul.bf16.vlgmr.msra.gmra.mxu2 %v7569_v0 }
  0xec   : > { %v5953_v14 = vld [vmem:[%s7455_s23 + $0xba0] sm:$0xf0]  ;;  %3596 = vmatpush.bf16.msrb.mxu2 %v6244_v8 }
  0xed   : > { %v6961_v15 = vld [vmem:[%s7455_s23 + $0xd84] sm:$0xf]  ;;  %v5956_v22 = vor.u32 %v6897_v12, %v5953_v14  ;;  %3565 = vmatmul.bf16.vlgmr.msra.gmra.mxu3 %v7585_v17  ;;  %3571 = vmatpush.bf16.msrb.mxu0 %v5700_v21 }
  0xee   : > { %v6209_v16 = vld [vmem:[%s7455_s23 + $0xda0] sm:$0xf0]  ;;  %3609 = vmatpush.bf16.msrb.mxu3 %v6500_v13 }
  0xef   : > { %v7025_v19 = vld [vmem:[%s7455_s23 + $0xf84] sm:$0xf]  ;;  %v6212_v23 = vor.u32 %v6961_v15, %v6209_v16  ;;  %3584 = vmatpush.bf16.msrb.mxu1 %v5956_v22 }
  0xf0   : > { %v6465_v20 = vld [vmem:[%s7455_s23 + $0xfa0] sm:$0xf0] }
  0xf1   : > { %v6825_v24 = vld [vmem:[%s7455_s23 + $0x944] sm:$0xf]  ;;  %v6468_v27 = vor.u32 %v7025_v19, %v6465_v20  ;;  %3597 = vmatpush.bf16.msrb.mxu2 %v6212_v23 }
  0xf2   : > { %v5665_v25 = vld [vmem:[%s7455_s23 + $0x960] sm:$0xf0] }
  0xf3   : > { %v6889_v26 = vld [vmem:[%s7455_s23 + $0xb44] sm:$0xf]  ;;  %v5668_v33 = vor.u32 %v6825_v24, %v5665_v25  ;;  %3610 = vmatpush.bf16.msrb.mxu3 %v6468_v27 }
  0xf4   : > { %v5921_v28 = vld [vmem:[%s7455_s23 + $0xb60] sm:$0xf0] }
  0xf5   : > { %v6953_v29 = vld [vmem:[%s7455_s23 + $0xd44] sm:$0xf]  ;;  %v5924_v34 = vor.u32 %v6889_v26, %v5921_v28  ;;  %3572 = vmatpush.bf16.msrb.mxu0 %v5668_v33 }
  0xf6   : > { %v6177_v30 = vld [vmem:[%s7455_s23 + $0xd60] sm:$0xf0] }
  0xf7   : > { %v7017_v31 = vld [vmem:[%s7455_s23 + $0xf44] sm:$0xf]  ;;  %v6180_v36 = vor.u32 %v6953_v29, %v6177_v30  ;;  %3585 = vmatpush.bf16.msrb.mxu1 %v5924_v34 }
  0xf8   : > { %v6433_v32 = vld [vmem:[%s7455_s23 + $0xf60] sm:$0xf0] }
  0xf9   : > { %v6817_v37 = vld [vmem:[%s7455_s23 + $0x904] sm:$0xf]  ;;  %v6436_v43 = vor.u32 %v7017_v31, %v6433_v32  ;;  %3598 = vmatpush.bf16.msrb.mxu2 %v6180_v36 }
  0xfa   : > { %v5633_v40 = vld [vmem:[%s7455_s23 + $0x920] sm:$0xf0] }
  0xfb   : > { %v6881_v42 = vld [vmem:[%s7455_s23 + $0xb04] sm:$0xf]  ;;  %v5636_v49 = vor.u32 %v6817_v37, %v5633_v40  ;;  %3611 = vmatpush.bf16.msrb.mxu3 %v6436_v43  ;;  %v4711_v40 = vld [vmem:[%s7455_s23 + $0x1c8] sm:$0xf] }
  0xfc   : > { %v5889_v44 = vld [vmem:[%s7455_s23 + $0xb20] sm:$0xf0]  ;;  %v4967_v43 = vld [vmem:[%s7455_s23 + $0x3c8] sm:$0xf] }
  0xfd   : > { %v6945_v45 = vld [vmem:[%s7455_s23 + $0xd04] sm:$0xf]  ;;  %v5892_v50 = vor.u32 %v6881_v42, %v5889_v44  ;;  %3573 = vmatpush.bf16.msrb.mxu0 %v5636_v49  ;;  %v6590_v42 = vld [vmem:[%s7455_s23 + $0x1e4] sm:$0xf0] }
  0xfe   : > { %v6145_v46 = vld [vmem:[%s7455_s23 + $0xd20] sm:$0xf0] }
  0xff   : > { %v7009_v47 = vld [vmem:[%s7455_s23 + $0xf04] sm:$0xf]  ;;  %v6148_v51 = vor.u32 %v6945_v45, %v6145_v46  ;;  %3586 = vmatpush.bf16.msrb.mxu1 %v5892_v50  ;;  %v6654_v45 = vld [vmem:[%s7455_s23 + $0x3e4] sm:$0xf0] }
 0x100   : > { %v6401_v48 = vld [vmem:[%s7455_s23 + $0xf20] sm:$0xf0]  ;;  %v5223_v46 = vld [vmem:[%s7455_s23 + $0x5c8] sm:$0xf] }
 0x101   : > { %v6809_v52 = vld [vmem:[%s7455_s23 + $0x8c4] sm:$0xf]  ;;  %v6404_v55 = vor.u32 %v7009_v47, %v6401_v48  ;;  %3599 = vmatpush.bf16.msrb.mxu2 %v6148_v51  ;;  %v6718_v47 = vld [vmem:[%s7455_s23 + $0x5e4] sm:$0xf0] }
 0x102   : > { %v5601_v53 = vld [vmem:[%s7455_s23 + $0x8e0] sm:$0xf0]  ;;  %v5479_v50 = vld [vmem:[%s7455_s23 + $0x7c8] sm:$0xf] }
 0x103   : > { %v6873_v54 = vld [vmem:[%s7455_s23 + $0xac4] sm:$0xf]  ;;  %v5604_v61 = vor.u32 %v6809_v52, %v5601_v53  ;;  %3612 = vmatpush.bf16.msrb.mxu3 %v6404_v55  ;;  %v6782_v51 = vld [vmem:[%s7455_s23 + $0x7e4] sm:$0xf0]  ;;  %v4712_v53 = vor.u32 %v6590_v42, %v4711_v40  ;;  %v5224_v55 = vor.u32 %v6718_v47, %v5223_v46 }
 0x104   : > { %v5857_v56 = vld [vmem:[%s7455_s23 + $0xae0] sm:$0xf0]  ;;  %v5095_v40 = vld [vmem:[%s7455_s23 + $0x4c8] sm:$0xf] }
 0x105   : > { %v6937_v57 = vld [vmem:[%s7455_s23 + $0xcc4] sm:$0xf]  ;;  %v5860_v62 = vor.u32 %v6873_v54, %v5857_v56  ;;  %3574 = vmatpush.bf16.msrb.mxu0 %v5604_v61  ;;  %v4968_v54 = vor.u32 %v6654_v45, %v4967_v43  ;;  %v4679_v56 = vld [vmem:[%s7455_s23 + $0x188] sm:$0xf] }
 0x106   : > { %v6113_v58 = vld [vmem:[%s7455_s23 + $0xce0] sm:$0xf0]  ;;  %v5191_v61 = vld [vmem:[%s7455_s23 + $0x588] sm:$0xf] }
 0x107   : > { %v7001_v59 = vld [vmem:[%s7455_s23 + $0xec4] sm:$0xf]  ;;  %v6116_v63 = vor.u32 %v6937_v57, %v6113_v58  ;;  %3587 = vmatpush.bf16.msrb.mxu1 %v5860_v62  ;;  %v6582_v57 = vld [vmem:[%s7455_s23 + $0x1a4] sm:$0xf0] }
 0x108   : > { %v6369_v60 = vld [vmem:[%s7455_s23 + $0xee0] sm:$0xf0]  ;;  %v4935_v58 = vld [vmem:[%s7455_s23 + $0x388] sm:$0xf] }
 0x109   : > { %v6801_v1 = vld [vmem:[%s7455_s23 + $0x884] sm:$0xf]  ;;  %v6372_v4 = vor.u32 %v7001_v59, %v6369_v60  ;;  %3600 = vmatpush.bf16.msrb.mxu2 %v6116_v63  ;;  %v5480_v59 = vor.u32 %v6782_v51, %v5479_v50  ;;  %v6646_v60 = vld [vmem:[%s7455_s23 + $0x3a4] sm:$0xf0] }
 0x10a   : > { %v5569_v2 = vld [vmem:[%s7455_s23 + $0x8a0] sm:$0xf0]  ;;  %v6710_v62 = vld [vmem:[%s7455_s23 + $0x5a4] sm:$0xf0] }
 0x10b   : > { %v6865_v3 = vld [vmem:[%s7455_s23 + $0xa84] sm:$0xf]  ;;  %v5572_v11 = vor.u32 %v6801_v1, %v5569_v2  ;;  %3613 = vmatpush.bf16.msrb.mxu3 %v6372_v4  ;;  %v5447_v63 = vld [vmem:[%s7455_s23 + $0x788] sm:$0xf]  ;;  %v4680_v2 = vor.u32 %v6582_v57, %v4679_v56  ;;  %v5192_v4 = vor.u32 %v6710_v62, %v5191_v61 }
 0x10c   : > { %v5825_v5 = vld [vmem:[%s7455_s23 + $0xaa0] sm:$0xf0]  ;;  %v6774_v1 = vld [vmem:[%s7455_s23 + $0x7a4] sm:$0xf0] }
 0x10d   : > { %v6929_v6 = vld [vmem:[%s7455_s23 + $0xc84] sm:$0xf]  ;;  %v5828_v12 = vor.u32 %v6865_v3, %v5825_v5  ;;  %3575 = vmatpush.bf16.msrb.mxu0 %v5572_v11  ;;  %v4936_v3 = vor.u32 %v6646_v60, %v4935_v58  ;;  %v4647_v5 = vld [vmem:[%s7455_s23 + $0x148] sm:$0xf] }
 0x10e   : > { %v6081_v7 = vld [vmem:[%s7455_s23 + $0xca0] sm:$0xf0]  ;;  %v5159_v11 = vld [vmem:[%s7455_s23 + $0x548] sm:$0xf] }
 0x10f   : > { %v6993_v8 = vld [vmem:[%s7455_s23 + $0xe84] sm:$0xf]  ;;  %v6084_v13 = vor.u32 %v6929_v6, %v6081_v7  ;;  %3588 = vmatpush.bf16.msrb.mxu1 %v5828_v12  ;;  %v6574_v6 = vld [vmem:[%s7455_s23 + $0x164] sm:$0xf0] }
 0x110   : > { %v6337_v9 = vld [vmem:[%s7455_s23 + $0xea0] sm:$0xf0]  ;;  %v4903_v7 = vld [vmem:[%s7455_s23 + $0x348] sm:$0xf] }
 0x111   : > { %v6793_v14 = vld [vmem:[%s7455_s23 + $0x844] sm:$0xf]  ;;  %v6340_v19 = vor.u32 %v6993_v8, %v6337_v9  ;;  %3601 = vmatpush.bf16.msrb.mxu2 %v6084_v13  ;;  %v5448_v8 = vor.u32 %v6774_v1, %v5447_v63  ;;  %v6638_v9 = vld [vmem:[%s7455_s23 + $0x364] sm:$0xf0] }
 0x112   : > { %v5537_v15 = vld [vmem:[%s7455_s23 + $0x860] sm:$0xf0]  ;;  %v6702_v12 = vld [vmem:[%s7455_s23 + $0x564] sm:$0xf0] }
 0x113   : > { %v6857_v16 = vld [vmem:[%s7455_s23 + $0xa44] sm:$0xf]  ;;  %v5540_v25 = vor.u32 %v6793_v14, %v5537_v15  ;;  %3614 = vmatpush.bf16.msrb.mxu3 %v6340_v19  ;;  %v5415_v13 = vld [vmem:[%s7455_s23 + $0x748] sm:$0xf]  ;;  %v4648_v15 = vor.u32 %v6574_v6, %v4647_v5  ;;  %v5160_v19 = vor.u32 %v6702_v12, %v5159_v11 }
 0x114   : > { %v5793_v20 = vld [vmem:[%s7455_s23 + $0xa60] sm:$0xf0]  ;;  %v6766_v14 = vld [vmem:[%s7455_s23 + $0x764] sm:$0xf0] }
 0x115   : > { %v6921_v21 = vld [vmem:[%s7455_s23 + $0xc44] sm:$0xf]  ;;  %v5796_v28 = vor.u32 %v6857_v16, %v5793_v20  ;;  %3576 = vmatpush.bf16.msrb.mxu0 %v5540_v25  ;;  %v4904_v16 = vor.u32 %v6638_v9, %v4903_v7  ;;  %v4615_v20 = vld [vmem:[%s7455_s23 + $0x108] sm:$0xf] }
 0x116   : > { %v6049_v22 = vld [vmem:[%s7455_s23 + $0xc60] sm:$0xf0]  ;;  %v5127_v25 = vld [vmem:[%s7455_s23 + $0x508] sm:$0xf] }
 0x117   : > { %v6985_v23 = vld [vmem:[%s7455_s23 + $0xe44] sm:$0xf]  ;;  %v6052_v29 = vor.u32 %v6921_v21, %v6049_v22  ;;  %3589 = vmatpush.bf16.msrb.mxu1 %v5796_v28  ;;  %v6566_v21 = vld [vmem:[%s7455_s23 + $0x124] sm:$0xf0] }
 0x118   : > { %v6305_v24 = vld [vmem:[%s7455_s23 + $0xe60] sm:$0xf0]  ;;  %v4871_v22 = vld [vmem:[%s7455_s23 + $0x308] sm:$0xf] }
 0x119   : > { %v6785_v26 = vld [vmem:[%s7455_s23 + $0x804] sm:$0xf]  ;;  %v6308_v33 = vor.u32 %v6985_v23, %v6305_v24  ;;  %3602 = vmatpush.bf16.msrb.mxu2 %v6052_v29  ;;  %v5416_v23 = vor.u32 %v6766_v14, %v5415_v13  ;;  %v6630_v24 = vld [vmem:[%s7455_s23 + $0x324] sm:$0xf0]  ;;  %v4616_v29 = vor.u32 %v6566_v21, %v4615_v20 }
 0x11a   : > { %v5505_v27 = vld [vmem:[%s7455_s23 + $0x820] sm:$0xf0]  ;;  %v6758_v28 = vld [vmem:[%s7455_s23 + $0x724] sm:$0xf0] }
 0x11b   : > { %v6849_v30 = vld [vmem:[%s7455_s23 + $0xa04] sm:$0xf]  ;;  %v5508_v44 = vor.u32 %v6785_v26, %v5505_v27  ;;  %3615 = vmatpush.bf16.msrb.mxu3 %v6308_v33  ;;  %v6694_v26 = vld [vmem:[%s7455_s23 + $0x524] sm:$0xf0] }
 0x11c   : > { %v5761_v31 = vld [vmem:[%s7455_s23 + $0xa20] sm:$0xf0]  ;;  %v5383_v27 = vld [vmem:[%s7455_s23 + $0x708] sm:$0xf] }
 0x11d   : > { %v6913_v32 = vld [vmem:[%s7455_s23 + $0xc04] sm:$0xf]  ;;  %v5764_v48 = vor.u32 %v6849_v30, %v5761_v31  ;;  %3577 = vmatpush.bf16.msrb.mxu0 %v5508_v44  ;;  %v4872_v30 = vor.u32 %v6630_v24, %v4871_v22  ;;  %v5128_v31 = vor.u32 %v6694_v26, %v5127_v25  ;;  %v6558_v33 = vld [vmem:[%s7455_s23 + $0xe4] sm:$0xf0] }
 0x11e   : > { %v6017_v34 = vld [vmem:[%s7455_s23 + $0xc20] sm:$0xf0]  ;;  %v6686_v42 = vld [vmem:[%s7455_s23 + $0x4e4] sm:$0xf0] }
 0x11f   : > { %v6977_v36 = vld [vmem:[%s7455_s23 + $0xe04] sm:$0xf]  ;;  %v6020_v49 = vor.u32 %v6913_v32, %v6017_v34  ;;  %3590 = vmatpush.bf16.msrb.mxu1 %v5764_v48  ;;  %v4583_v32 = vld [vmem:[%s7455_s23 + $0xc8] sm:$0xf]  ;;  %v5096_v47 = vor.u32 %v6686_v42, %v5095_v40 }
 0x120   : > { %v6273_v37 = vld [vmem:[%s7455_s23 + $0xe20] sm:$0xf0]  ;;  %3578 = vmatmul.bf16.vlgmr.msrb.gmra.mxu0 %v7648_v38  ;;  %v4839_v34 = vld [vmem:[%s7455_s23 + $0x2c8] sm:$0xf]  ;;  %v4584_v45 = vor.u32 %v6558_v33, %v4583_v32 }
 0x121   : > { %v6276_v52 = vor.u32 %v6977_v36, %v6273_v37  ;;  %3603 = vmatpush.bf16.msrb.mxu2 %v6020_v49  ;;  %3622 = vmatpush.bf16.msra.mxu0 %v4712_v53  ;;  %v5384_v36 = vor.u32 %v6758_v28, %v5383_v27  ;;  %v6622_v37 = vld [vmem:[%s7455_s23 + $0x2e4] sm:$0xf0] }
 0x122   : > { %3591 = vmatmul.bf16.vlgmr.msrb.gmra.mxu1 %v7652_v41  ;;  %v5351_v43 = vld [vmem:[%s7455_s23 + $0x6c8] sm:$0xf]  ;;  %v4840_v46 = vor.u32 %v6622_v37, %v4839_v34 }
 0x123   : > { %3616 = vmatpush.bf16.msrb.mxu3 %v6276_v52  ;;  %3635 = vmatpush.bf16.msra.mxu1 %v4968_v54  ;;  %v6750_v44 = vld [vmem:[%s7455_s23 + $0x6e4] sm:$0xf0] }
 0x124   : > { %3604 = vmatmul.bf16.vlgmr.msrb.gmra.mxu2 %v7644_v35  ;;  %v4551_v48 = vld [vmem:[%s7455_s23 + $0x88] sm:$0xf]  ;;  %v5352_v51 = vor.u32 %v6750_v44, %v5351_v43 }
 0x125   : > { %3648 = vmatpush.bf16.msra.mxu2 %v5224_v55  ;;  %3623 = vmatpush.bf16.msra.mxu0 %v4680_v2  ;;  %v6550_v49 = vld [vmem:[%s7455_s23 + $0xa4] sm:$0xf0] }
 0x126   : > { %3617 = vmatmul.bf16.vlgmr.msrb.gmra.mxu3 %v7650_v39  ;;  %v4807_v50 = vld [vmem:[%s7455_s23 + $0x288] sm:$0xf]  ;;  %v4552_v57 = vor.u32 %v6550_v49, %v4551_v48 }
 0x127   : > { %3661 = vmatpush.bf16.msra.mxu3 %v5480_v59  ;;  %3636 = vmatpush.bf16.msra.mxu1 %v4936_v3  ;;  %v6614_v52 = vld [vmem:[%s7455_s23 + $0x2a4] sm:$0xf0] }
 0x128   : > { %v5063_v53 = vld [vmem:[%s7455_s23 + $0x488] sm:$0xf]  ;;  %v4808_v58 = vor.u32 %v6614_v52, %v4807_v50 }
 0x129   : > { %3649 = vmatpush.bf16.msra.mxu2 %v5192_v4  ;;  %3624 = vmatpush.bf16.msra.mxu0 %v4648_v15  ;;  %v6678_v54 = vld [vmem:[%s7455_s23 + $0x4a4] sm:$0xf0] }
 0x12a   : > { %v5319_v55 = vld [vmem:[%s7455_s23 + $0x688] sm:$0xf]  ;;  %v5064_v59 = vor.u32 %v6678_v54, %v5063_v53 }
 0x12b   : > { %3662 = vmatpush.bf16.msra.mxu3 %v5448_v8  ;;  %3637 = vmatpush.bf16.msra.mxu1 %v4904_v16  ;;  %v6742_v56 = vld [vmem:[%s7455_s23 + $0x6a4] sm:$0xf0] }
 0x12c   : > { %v4519_v60 = vld [vmem:[%s7455_s23 + $0x48] sm:$0xf]  ;;  %v5320_v63 = vor.u32 %v6742_v56, %v5319_v55 }
 0x12d   : > { %3650 = vmatpush.bf16.msra.mxu2 %v5160_v19  ;;  %3625 = vmatpush.bf16.msra.mxu0 %v4616_v29  ;;  %v6542_v61 = vld [vmem:[%s7455_s23 + $0x64] sm:$0xf0] }
 0x12e   : > { %v4775_v62 = vld [vmem:[%s7455_s23 + $0x248] sm:$0xf]  ;;  %v4520_v6 = vor.u32 %v6542_v61, %v4519_v60 }
 0x12f   : > { %3663 = vmatpush.bf16.msra.mxu3 %v5416_v23  ;;  %3638 = vmatpush.bf16.msra.mxu1 %v4872_v30  ;;  %v6606_v1 = vld [vmem:[%s7455_s23 + $0x264] sm:$0xf0] }
 0x130   : > { %v5031_v2 = vld [vmem:[%s7455_s23 + $0x448] sm:$0xf]  ;;  %v4776_v9 = vor.u32 %v6606_v1, %v4775_v62 }
 0x131   : > { %3651 = vmatpush.bf16.msra.mxu2 %v5128_v31  ;;  %3626 = vmatpush.bf16.msra.mxu0 %v4584_v45  ;;  %v6670_v3 = vld [vmem:[%s7455_s23 + $0x464] sm:$0xf0] }
 0x132   : > { %v5287_v4 = vld [vmem:[%s7455_s23 + $0x648] sm:$0xf]  ;;  %v5032_v11 = vor.u32 %v6670_v3, %v5031_v2 }
 0x133   : > { %3664 = vmatpush.bf16.msra.mxu3 %v5384_v36  ;;  %3639 = vmatpush.bf16.msra.mxu1 %v4840_v46  ;;  %v6734_v5 = vld [vmem:[%s7455_s23 + $0x664] sm:$0xf0] }
 0x134   : > { %v4487_v7 = vld [vmem:[%s7455_s23 + $0x8] sm:$0xf]  ;;  %v5288_v15 = vor.u32 %v6734_v5, %v5287_v4 }
 0x135   : > { %3652 = vmatpush.bf16.msra.mxu2 %v5096_v47  ;;  %3627 = vmatpush.bf16.msra.mxu0 %v4552_v57  ;;  %v6534_v8 = vld [vmem:[%s7455_s23 + $0x24] sm:$0xf0] }
 0x136   : > { %v4743_v12 = vld [vmem:[%s7455_s23 + $0x208] sm:$0xf]  ;;  %v4488_v24 = vor.u32 %v6534_v8, %v4487_v7 }
 0x137   : > { %3665 = vmatpush.bf16.msra.mxu3 %v5352_v51  ;;  %3640 = vmatpush.bf16.msra.mxu1 %v4808_v58  ;;  %v6598_v13 = vld [vmem:[%s7455_s23 + $0x224] sm:$0xf0] }
 0x138   : > { %v4999_v14 = vld [vmem:[%s7455_s23 + $0x408] sm:$0xf]  ;;  %v4744_v28 = vor.u32 %v6598_v13, %v4743_v12 }
 0x139   : > { %3653 = vmatpush.bf16.msra.mxu2 %v5064_v59  ;;  %v6662_v16 = vld [vmem:[%s7455_s23 + $0x424] sm:$0xf0]  ;;  %3628 = vmatpush.bf16.msra.mxu0 %v4520_v6 }
 0x13a   : > { %v5255_v19 = vld [vmem:[%s7455_s23 + $0x608] sm:$0xf]  ;;  %v5000_v29 = vor.u32 %v6662_v16, %v4999_v14 }
 0x13b   : > { %3666 = vmatpush.bf16.msra.mxu3 %v5320_v63  ;;  %v6726_v20 = vld [vmem:[%s7455_s23 + $0x624] sm:$0xf0]  ;;  %3641 = vmatpush.bf16.msra.mxu1 %v4776_v9 }
 0x13c   : > { %v5735_v21 = vld [vmem:[%s7455_s23 + $0x9c8] sm:$0xf]  ;;  %v5256_v32 = vor.u32 %v6726_v20, %v5255_v19 }
 0x13d   : > { %v6846_v22 = vld [vmem:[%s7455_s23 + $0x9e4] sm:$0xf0]  ;;  %3654 = vmatpush.bf16.msra.mxu2 %v5032_v11  ;;  %3629 = vmatpush.bf16.msra.mxu0 %v4488_v24 }
 0x13e   : > { %v5991_v23 = vld [vmem:[%s7455_s23 + $0xbc8] sm:$0xf]  ;;  %v5736_v33 = vor.u32 %v6846_v22, %v5735_v21 }
 0x13f   : > { %v6910_v25 = vld [vmem:[%s7455_s23 + $0xbe4] sm:$0xf0]  ;;  %3667 = vmatpush.bf16.msra.mxu3 %v5288_v15  ;;  %3642 = vmatpush.bf16.msra.mxu1 %v4744_v28 }
 0x140   : > { %v6247_v26 = vld [vmem:[%s7455_s23 + $0xdc8] sm:$0xf]  ;;  %v5992_v34 = vor.u32 %v6910_v25, %v5991_v23  ;;  %3630 = vmatmul.bf16.vlgmr.msra.gmra.mxu0 %v7578_v10 }
 0x141   : > { %v6974_v27 = vld [vmem:[%s7455_s23 + $0xde4] sm:$0xf0]  ;;  %3655 = vmatpush.bf16.msra.mxu2 %v5000_v29  ;;  %3674 = vmatpush.bf16.msrb.mxu0 %v5736_v33 }
 0x142   : > { %v6503_v30 = vld [vmem:[%s7455_s23 + $0xfc8] sm:$0xf]  ;;  %v6248_v36 = vor.u32 %v6974_v27, %v6247_v26  ;;  %3643 = vmatmul.bf16.vlgmr.msra.gmra.mxu1 %v7587_v18  ;;  %v7886_v26 = vpop.f32.mrf.mxu0 }
 0x143   : > { %v7038_v31 = vld [vmem:[%s7455_s23 + $0xfe4] sm:$0xf0]  ;;  %3668 = vmatpush.bf16.msra.mxu3 %v5256_v32  ;;  %3687 = vmatpush.bf16.msrb.mxu1 %v5992_v34 }
 0x144   : > { %v5703_v37 = vld [vmem:[%s7455_s23 + $0x988] sm:$0xf]  ;;  %v6504_v43 = vor.u32 %v7038_v31, %v6503_v30  ;;  %3656 = vmatmul.bf16.vlgmr.msra.gmra.mxu2 %v7569_v0 }
 0x145   : > { %v6838_v40 = vld [vmem:[%s7455_s23 + $0x9a4] sm:$0xf0]  ;;  %3700 = vmatpush.bf16.msrb.mxu2 %v6248_v36 }
 0x146   : > { %v5959_v42 = vld [vmem:[%s7455_s23 + $0xb88] sm:$0xf]  ;;  %v5704_v49 = vor.u32 %v6838_v40, %v5703_v37  ;;  %3669 = vmatmul.bf16.vlgmr.msra.gmra.mxu3 %v7585_v17 }
 0x147   : > { %v6902_v44 = vld [vmem:[%s7455_s23 + $0xba4] sm:$0xf0]  ;;  %3713 = vmatpush.bf16.msrb.mxu3 %v6504_v43  ;;  %v7896_v43 = vpop.f32.mrf.mxu2 }
 0x148   : > { %v6215_v45 = vld [vmem:[%s7455_s23 + $0xd88] sm:$0xf]  ;;  %v5960_v50 = vor.u32 %v6902_v44, %v5959_v42  ;;  %3675 = vmatpush.bf16.msrb.mxu0 %v5704_v49  ;;  %v3436_v42 = vpop.f32.mrf.mxu1 }
 0x149   : > { %v6966_v46 = vld [vmem:[%s7455_s23 + $0xda4] sm:$0xf0] }
 0x14a   : > { %v6471_v47 = vld [vmem:[%s7455_s23 + $0xf88] sm:$0xf]  ;;  %v6216_v51 = vor.u32 %v6966_v46, %v6215_v45  ;;  %3688 = vmatpush.bf16.msrb.mxu1 %v5960_v50 }
 0x14b   : > { %v7030_v48 = vld [vmem:[%s7455_s23 + $0xfa4] sm:$0xf0] }
 0x14c   : > { %v5671_v52 = vld [vmem:[%s7455_s23 + $0x948] sm:$0xf]  ;;  %v6472_v55 = vor.u32 %v7030_v48, %v6471_v47  ;;  %3701 = vmatpush.bf16.msrb.mxu2 %v6216_v51 }
 0x14d   : > { %v6830_v53 = vld [vmem:[%s7455_s23 + $0x964] sm:$0xf0] }
 0x14e   : > { %v5927_v54 = vld [vmem:[%s7455_s23 + $0xb48] sm:$0xf]  ;;  %v5672_v61 = vor.u32 %v6830_v53, %v5671_v52  ;;  %3714 = vmatpush.bf16.msrb.mxu3 %v6472_v55 }
 0x14f   : > { %v6894_v56 = vld [vmem:[%s7455_s23 + $0xb64] sm:$0xf0] }
 0x150   : > { %v6183_v57 = vld [vmem:[%s7455_s23 + $0xd48] sm:$0xf]  ;;  %v5928_v62 = vor.u32 %v6894_v56, %v5927_v54  ;;  %3676 = vmatpush.bf16.msrb.mxu0 %v5672_v61  ;;  %v7906_v56 = vpop.f32.mrf.mxu3 }
 0x151   : > { %v6958_v58 = vld [vmem:[%s7455_s23 + $0xd64] sm:$0xf0] }
 0x152   : > { %v6439_v59 = vld [vmem:[%s7455_s23 + $0xf48] sm:$0xf]  ;;  %v6184_v63 = vor.u32 %v6958_v58, %v6183_v57  ;;  %3689 = vmatpush.bf16.msrb.mxu1 %v5928_v62 }
 0x153   : > { %v7022_v60 = vld [vmem:[%s7455_s23 + $0xf64] sm:$0xf0] }
 0x154   : > { %v5639_v1 = vld [vmem:[%s7455_s23 + $0x908] sm:$0xf]  ;;  %v6440_v4 = vor.u32 %v7022_v60, %v6439_v59  ;;  %3702 = vmatpush.bf16.msrb.mxu2 %v6184_v63  ;;  %v3425_v60 = vpop.f32.mrf.mxu0 }
 0x155   : > { %v6822_v2 = vld [vmem:[%s7455_s23 + $0x924] sm:$0xf0]  ;;  %v6562_v60 = vld [vmem:[%s7455_s23 + $0x10c] sm:$0xf] }
 0x156   : > { %v5895_v3 = vld [vmem:[%s7455_s23 + $0xb08] sm:$0xf]  ;;  %v5640_v11 = vor.u32 %v6822_v2, %v5639_v1  ;;  %3715 = vmatpush.bf16.msrb.mxu3 %v6440_v4 }
 0x157   : > { %v6886_v5 = vld [vmem:[%s7455_s23 + $0xb24] sm:$0xf0] }
 0x158   : > { %v6151_v6 = vld [vmem:[%s7455_s23 + $0xd08] sm:$0xf]  ;;  %v5896_v12 = vor.u32 %v6886_v5, %v5895_v3  ;;  %3677 = vmatpush.bf16.msrb.mxu0 %v5640_v11  ;;  %v3438_v11 = vpop.f32.mrf.mxu1 }
 0x159   : > { %v6950_v7 = vld [vmem:[%s7455_s23 + $0xd24] sm:$0xf0]  ;;  %v4585_v11 = vld [vmem:[%s7455_s23 + $0xe8] sm:$0xf0] }
 0x15a   : > { %v6407_v8 = vld [vmem:[%s7455_s23 + $0xf08] sm:$0xf]  ;;  %v6152_v13 = vor.u32 %v6950_v7, %v6151_v6  ;;  %3690 = vmatpush.bf16.msrb.mxu1 %v5896_v12  ;;  %v6586_v7 = vld [vmem:[%s7455_s23 + $0x1cc] sm:$0xf]  ;;  %v3451_v12 = vpop.f32.mrf.mxu2 }
 0x15b   : > { %v7014_v9 = vld [vmem:[%s7455_s23 + $0xf24] sm:$0xf0]  ;;  %v6618_v12 = vld [vmem:[%s7455_s23 + $0x2cc] sm:$0xf] }
 0x15c   : > { %v5607_v14 = vld [vmem:[%s7455_s23 + $0x8c8] sm:$0xf]  ;;  %v6408_v19 = vor.u32 %v7014_v9, %v6407_v8  ;;  %3703 = vmatpush.bf16.msrb.mxu2 %v6152_v13  ;;  %v4713_v8 = vld [vmem:[%s7455_s23 + $0x1e8] sm:$0xf0] }
 0x15d   : > { %v6814_v15 = vld [vmem:[%s7455_s23 + $0x8e4] sm:$0xf0]  ;;  %v6650_v9 = vld [vmem:[%s7455_s23 + $0x3cc] sm:$0xf] }
 0x15e   : > { %v5863_v16 = vld [vmem:[%s7455_s23 + $0xac8] sm:$0xf]  ;;  %v5608_v25 = vor.u32 %v6814_v15, %v5607_v14  ;;  %3716 = vmatpush.bf16.msrb.mxu3 %v6408_v19  ;;  %v4969_v14 = vld [vmem:[%s7455_s23 + $0x3e8] sm:$0xf0] }
 0x15f   : > { %v6878_v20 = vld [vmem:[%s7455_s23 + $0xae4] sm:$0xf0]  ;;  %v6714_v15 = vld [vmem:[%s7455_s23 + $0x5cc] sm:$0xf] }
 0x160   : > { %v6119_v21 = vld [vmem:[%s7455_s23 + $0xcc8] sm:$0xf]  ;;  %v5864_v27 = vor.u32 %v6878_v20, %v5863_v16  ;;  %3678 = vmatpush.bf16.msrb.mxu0 %v5608_v25  ;;  %v5225_v16 = vld [vmem:[%s7455_s23 + $0x5e8] sm:$0xf0]  ;;  %v4972_v25 = vor.u32 %v6650_v9, %v4969_v14  ;;  %v3488_v14 = vpop.f32.mrf.mxu1 }
 0x161   : > { %v6942_v22 = vld [vmem:[%s7455_s23 + $0xce4] sm:$0xf0]  ;;  %v6554_v9 = vld [vmem:[%s7455_s23 + $0xcc] sm:$0xf] }
 0x162   : > { %v6375_v23 = vld [vmem:[%s7455_s23 + $0xec8] sm:$0xf]  ;;  %v6120_v28 = vor.u32 %v6942_v22, %v6119_v21  ;;  %3691 = vmatpush.bf16.msrb.mxu1 %v5864_v27  ;;  %v6778_v21 = vld [vmem:[%s7455_s23 + $0x7cc] sm:$0xf]  ;;  %v5228_v27 = vor.u32 %v6714_v15, %v5225_v16 }
 0x163   : > { %v7006_v24 = vld [vmem:[%s7455_s23 + $0xee4] sm:$0xf0]  ;;  %v5481_v22 = vld [vmem:[%s7455_s23 + $0x7e8] sm:$0xf0] }
 0x164   : > { %v5575_v29 = vld [vmem:[%s7455_s23 + $0x888] sm:$0xf]  ;;  %v6376_v32 = vor.u32 %v7006_v24, %v6375_v23  ;;  %3704 = vmatpush.bf16.msrb.mxu2 %v6120_v28  ;;  %v4716_v24 = vor.u32 %v6586_v7, %v4713_v8  ;;  %v3437_v28 = vadd.f32 %v3436_v42, %v7886_v26  ;;  %v4841_v16 = vld [vmem:[%s7455_s23 + $0x2e8] sm:$0xf0] }
 0x165   : > { %v6806_v30 = vld [vmem:[%s7455_s23 + $0x8a4] sm:$0xf0] }
 0x166   : > { %v5831_v31 = vld [vmem:[%s7455_s23 + $0xa88] sm:$0xf]  ;;  %v5576_v44 = vor.u32 %v6806_v30, %v5575_v29  ;;  %3717 = vmatpush.bf16.msrb.mxu3 %v6376_v32  ;;  %v6578_v29 = vld [vmem:[%s7455_s23 + $0x18c] sm:$0xf]  ;;  %v3464_v32 = vpop.f32.mrf.mxu3 }
 0x167   : > { %v6870_v33 = vld [vmem:[%s7455_s23 + $0xaa4] sm:$0xf0]  ;;  %v4681_v30 = vld [vmem:[%s7455_s23 + $0x1a8] sm:$0xf0] }
 0x168   : > { %v6087_v34 = vld [vmem:[%s7455_s23 + $0xc88] sm:$0xf]  ;;  %v5832_v45 = vor.u32 %v6870_v33, %v5831_v31  ;;  %3679 = vmatpush.bf16.msrb.mxu0 %v5576_v44  ;;  %v6642_v31 = vld [vmem:[%s7455_s23 + $0x38c] sm:$0xf]  ;;  %v5484_v33 = vor.u32 %v6778_v21, %v5481_v22  ;;  %v4684_v26 = vor.u32 %v6578_v29, %v4681_v30 }
 0x169   : > { %v6934_v36 = vld [vmem:[%s7455_s23 + $0xca4] sm:$0xf0]  ;;  %v5449_v44 = vld [vmem:[%s7455_s23 + $0x7a8] sm:$0xf0] }
 0x16a   : > { %v6343_v37 = vld [vmem:[%s7455_s23 + $0xe88] sm:$0xf]  ;;  %v6088_v46 = vor.u32 %v6934_v36, %v6087_v34  ;;  %3692 = vmatpush.bf16.msrb.mxu1 %v5832_v45  ;;  %v4937_v34 = vld [vmem:[%s7455_s23 + $0x3a8] sm:$0xf0] }
 0x16b   : > { %v6998_v40 = vld [vmem:[%s7455_s23 + $0xea4] sm:$0xf0]  ;;  %v6706_v36 = vld [vmem:[%s7455_s23 + $0x58c] sm:$0xf]  ;;  %v4940_v42 = vor.u32 %v6642_v31, %v4937_v34  ;;  %v3501_v31 = vpop.f32.mrf.mxu2 }
 0x16c   : > { %v5543_v47 = vld [vmem:[%s7455_s23 + $0x848] sm:$0xf]  ;;  %v6344_v50 = vor.u32 %v6998_v40, %v6343_v37  ;;  %3705 = vmatpush.bf16.msrb.mxu2 %v6088_v46  ;;  %v5193_v37 = vld [vmem:[%s7455_s23 + $0x5a8] sm:$0xf0]  ;;  %v3450_v46 = vadd.f32 %v7896_v43, %v3437_v28 }
 0x16d   : > { %v6798_v48 = vld [vmem:[%s7455_s23 + $0x864] sm:$0xf0]  ;;  %v6770_v40 = vld [vmem:[%s7455_s23 + $0x78c] sm:$0xf]  ;;  %v5196_v45 = vor.u32 %v6706_v36, %v5193_v37 }
 0x16e   : > { %v5799_v49 = vld [vmem:[%s7455_s23 + $0xa48] sm:$0xf]  ;;  %v5544_v57 = vor.u32 %v6798_v48, %v5543_v47  ;;  %3718 = vmatpush.bf16.msrb.mxu3 %v6344_v50  ;;  %v6570_v47 = vld [vmem:[%s7455_s23 + $0x14c] sm:$0xf]  ;;  %v5452_v50 = vor.u32 %v6770_v40, %v5449_v44  ;;  %v3514_v40 = vpop.f32.mrf.mxu3 }
 0x16f   : > { %v6862_v51 = vld [vmem:[%s7455_s23 + $0xa64] sm:$0xf0]  ;;  %v4649_v48 = vld [vmem:[%s7455_s23 + $0x168] sm:$0xf0] }
 0x170   : > { %v6055_v52 = vld [vmem:[%s7455_s23 + $0xc48] sm:$0xf]  ;;  %v5800_v61 = vor.u32 %v6862_v51, %v5799_v49  ;;  %3680 = vmatpush.bf16.msrb.mxu0 %v5544_v57  ;;  %v6634_v49 = vld [vmem:[%s7455_s23 + $0x34c] sm:$0xf]  ;;  %v3463_v57 = vadd.f32 %v7906_v56, %v3450_v46 }
 0x171   : > { %v6926_v53 = vld [vmem:[%s7455_s23 + $0xc64] sm:$0xf0]  ;;  %v4905_v51 = vld [vmem:[%s7455_s23 + $0x368] sm:$0xf0] }
 0x172   : > { %v6311_v54 = vld [vmem:[%s7455_s23 + $0xe48] sm:$0xf]  ;;  %v6056_v62 = vor.u32 %v6926_v53, %v6055_v52  ;;  %3693 = vmatpush.bf16.msrb.mxu1 %v5800_v61  ;;  %v6698_v52 = vld [vmem:[%s7455_s23 + $0x54c] sm:$0xf] }
 0x173   : > { %v6990_v55 = vld [vmem:[%s7455_s23 + $0xe64] sm:$0xf0]  ;;  %v5161_v53 = vld [vmem:[%s7455_s23 + $0x568] sm:$0xf0] }
 0x174   : > { %v5511_v58 = vld [vmem:[%s7455_s23 + $0x808] sm:$0xf]  ;;  %v6312_v3 = vor.u32 %v6990_v55, %v6311_v54  ;;  %3706 = vmatpush.bf16.msrb.mxu2 %v6056_v62  ;;  %v6762_v54 = vld [vmem:[%s7455_s23 + $0x74c] sm:$0xf]  ;;  %v4652_v55 = vor.u32 %v6570_v47, %v4649_v48 }
 0x175   : > { %v6790_v59 = vld [vmem:[%s7455_s23 + $0x824] sm:$0xf0]  ;;  %v5417_v43 = vld [vmem:[%s7455_s23 + $0x768] sm:$0xf0] }
 0x176   : > { %v5767_v63 = vld [vmem:[%s7455_s23 + $0xa08] sm:$0xf]  ;;  %v5512_v13 = vor.u32 %v6790_v59, %v5511_v58  ;;  %3719 = vmatpush.bf16.msrb.mxu3 %v6312_v3  ;;  %v4908_v58 = vor.u32 %v6634_v49, %v4905_v51  ;;  %v5164_v59 = vor.u32 %v6698_v52, %v5161_v53  ;;  %v4617_v61 = vld [vmem:[%s7455_s23 + $0x128] sm:$0xf0]  ;;  %v3490_v53 = vpop.f32.mrf.mxu1 }
 0x177   : > { %v6854_v1 = vld [vmem:[%s7455_s23 + $0xa24] sm:$0xf0]  ;;  %v6626_v62 = vld [vmem:[%s7455_s23 + $0x30c] sm:$0xf]  ;;  %v4620_v56 = vor.u32 %v6562_v60, %v4617_v61 }
 0x178   : > { %v6023_v2 = vld [vmem:[%s7455_s23 + $0xc08] sm:$0xf]  ;;  %v5768_v19 = vor.u32 %v6854_v1, %v5767_v63  ;;  %3681 = vmatpush.bf16.msrb.mxu0 %v5512_v13  ;;  %v5420_v63 = vor.u32 %v6762_v54, %v5417_v43  ;;  %v4873_v1 = vld [vmem:[%s7455_s23 + $0x328] sm:$0xf0] }
 0x179   : > { %v6918_v4 = vld [vmem:[%s7455_s23 + $0xc24] sm:$0xf0]  ;;  %v5129_v3 = vld [vmem:[%s7455_s23 + $0x528] sm:$0xf0]  ;;  %v4876_v7 = vor.u32 %v6626_v62, %v4873_v1 }
 0x17a   : > { %v6279_v5 = vld [vmem:[%s7455_s23 + $0xe08] sm:$0xf]  ;;  %v6024_v20 = vor.u32 %v6918_v4, %v6023_v2  ;;  %3694 = vmatpush.bf16.msrb.mxu1 %v5768_v19  ;;  %v6690_v2 = vld [vmem:[%s7455_s23 + $0x50c] sm:$0xf] }
 0x17b   : > { %v6982_v6 = vld [vmem:[%s7455_s23 + $0xe24] sm:$0xf0]  ;;  %3682 = vmatmul.bf16.vlgmr.msrb.gmra.mxu0 %v7648_v38  ;;  %v6754_v4 = vld [vmem:[%s7455_s23 + $0x70c] sm:$0xf]  ;;  %v5132_v8 = vor.u32 %v6690_v2, %v5129_v3 }
 0x17c   : > { %v6280_v23 = vor.u32 %v6982_v6, %v6279_v5  ;;  %3707 = vmatpush.bf16.msrb.mxu2 %v6024_v20  ;;  %3726 = vmatpush.bf16.msra.mxu0 %v4716_v24  ;;  %v5385_v5 = vld [vmem:[%s7455_s23 + $0x728] sm:$0xf0]  ;;  %v3475_v6 = vpop.f32.mrf.mxu0  ;;  %v4588_v24 = vor.u32 %v6554_v9, %v4585_v11  ;;  %v3516_v11 = vpop.f32.mrf.mxu3 }
 0x17d   : > { %3695 = vmatmul.bf16.vlgmr.msrb.gmra.mxu1 %v7652_v41  ;;  %v3476_v13 = vadd.f32 %v3475_v6, %v3463_v57  ;;  %v5388_v15 = vor.u32 %v6754_v4, %v5385_v5  ;;  %v6682_v19 = vld [vmem:[%s7455_s23 + $0x4cc] sm:$0xf] }
 0x17e   : > { %3720 = vmatpush.bf16.msrb.mxu3 %v6280_v23  ;;  %3739 = vmatpush.bf16.msra.mxu1 %v4972_v25  ;;  %v5097_v20 = vld [vmem:[%s7455_s23 + $0x4e8] sm:$0xf0]  ;;  %v4844_v25 = vor.u32 %v6618_v12, %v4841_v16  ;;  %v8028_v11 = vpop.f32.mrf.mxu1 }
 0x17f   : > { %3708 = vmatmul.bf16.vlgmr.msrb.gmra.mxu2 %v7644_v35  ;;  %v6746_v21 = vld [vmem:[%s7455_s23 + $0x6cc] sm:$0xf]  ;;  %v3489_v23 = vadd.f32 %v3488_v14, %v3476_v13 }
 0x180   : > { %3752 = vmatpush.bf16.msra.mxu2 %v5228_v27  ;;  %3727 = vmatpush.bf16.msra.mxu0 %v4684_v26  ;;  %v5353_v22 = vld [vmem:[%s7455_s23 + $0x6e8] sm:$0xf0]  ;;  %v5100_v27 = vor.u32 %v6682_v19, %v5097_v20 }
 0x181   : > { %3721 = vmatmul.bf16.vlgmr.msrb.gmra.mxu3 %v7650_v39  ;;  %v6546_v28 = vld [vmem:[%s7455_s23 + $0x8c] sm:$0xf]  ;;  %v5356_v32 = vor.u32 %v6746_v21, %v5353_v22  ;;  %v3502_v37 = vadd.f32 %v3501_v31, %v3489_v23 }
 0x182   : > { %3765 = vmatpush.bf16.msra.mxu3 %v5484_v33  ;;  %3740 = vmatpush.bf16.msra.mxu1 %v4940_v42  ;;  %v4553_v29 = vld [vmem:[%s7455_s23 + $0xa8] sm:$0xf0]  ;;  %v838_v42 = vld [vmem:[#allocation2 + $0x30] sm:$0xff] }
 0x183   : > { %v6610_v30 = vld [vmem:[%s7455_s23 + $0x28c] sm:$0xf]  ;;  %v3515_v46 = vadd.f32 %v3514_v40, %v3502_v37 }
 0x184   : > { %3753 = vmatpush.bf16.msra.mxu2 %v5196_v45  ;;  %3728 = vmatpush.bf16.msra.mxu0 %v4652_v55  ;;  %v4809_v33 = vld [vmem:[%s7455_s23 + $0x2a8] sm:$0xf0]  ;;  %v4556_v45 = vor.u32 %v6546_v28, %v4553_v29  ;;  %v3477_v47 = vpop.f32.mrf.mxu0 }
 0x185   : > { %v6674_v34 = vld [vmem:[%s7455_s23 + $0x48c] sm:$0xf]  ;;  %v4812_v48 = vor.u32 %v6610_v30, %v4809_v33  ;;  %v4246_v43 = vadd.f32 %v3515_v46, %v838_v42 }
 0x186   : > { %3766 = vmatpush.bf16.msra.mxu3 %v5452_v50  ;;  %3741 = vmatpush.bf16.msra.mxu1 %v4908_v58  ;;  %v5065_v36 = vld [vmem:[%s7455_s23 + $0x4a8] sm:$0xf0] }
 0x187   : > { %v6738_v44 = vld [vmem:[%s7455_s23 + $0x68c] sm:$0xf]  ;;  %v5068_v49 = vor.u32 %v6674_v34, %v5065_v36  ;;  %4254 = vst [vmem:[#allocation2 + $0x30] sm:$0xff] %v4246_v43 }
 0x188   : > { %3754 = vmatpush.bf16.msra.mxu2 %v5164_v59  ;;  %3729 = vmatpush.bf16.msra.mxu0 %v4620_v56  ;;  %v5321_v26 = vld [vmem:[%s7455_s23 + $0x6a8] sm:$0xf0]  ;;  %v3503_v56 = vpop.f32.mrf.mxu2 }
 0x189   : > { %v6538_v50 = vld [vmem:[%s7455_s23 + $0x4c] sm:$0xf]  ;;  %v5324_v54 = vor.u32 %v6738_v44, %v5321_v26 }
 0x18a   : > { %3767 = vmatpush.bf16.msra.mxu3 %v5420_v63  ;;  %3742 = vmatpush.bf16.msra.mxu1 %v4876_v7  ;;  %v4521_v51 = vld [vmem:[%s7455_s23 + $0x68] sm:$0xf0] }
 0x18b   : > { %v6602_v52 = vld [vmem:[%s7455_s23 + $0x24c] sm:$0xf]  ;;  %v4524_v61 = vor.u32 %v6538_v50, %v4521_v51 }
 0x18c   : > { %3755 = vmatpush.bf16.msra.mxu2 %v5132_v8  ;;  %3730 = vmatpush.bf16.msra.mxu0 %v4588_v24  ;;  %v4777_v55 = vld [vmem:[%s7455_s23 + $0x268] sm:$0xf0] }
 0x18d   : > { %v6666_v57 = vld [vmem:[%s7455_s23 + $0x44c] sm:$0xf]  ;;  %v4780_v1 = vor.u32 %v6602_v52, %v4777_v55 }
 0x18e   : > { %3768 = vmatpush.bf16.msra.mxu3 %v5388_v15  ;;  %3743 = vmatpush.bf16.msra.mxu1 %v4844_v25  ;;  %v5033_v58 = vld [vmem:[%s7455_s23 + $0x468] sm:$0xf0] }
 0x18f   : > { %v6730_v59 = vld [vmem:[%s7455_s23 + $0x64c] sm:$0xf]  ;;  %v5036_v2 = vor.u32 %v6666_v57, %v5033_v58 }
 0x190   : > { %3756 = vmatpush.bf16.msra.mxu2 %v5100_v27  ;;  %v5289_v60 = vld [vmem:[%s7455_s23 + $0x668] sm:$0xf0]  ;;  %3731 = vmatpush.bf16.msra.mxu0 %v4556_v45 }
 0x191   : > { %v6530_v62 = vld [vmem:[%s7455_s23 + $0xc] sm:$0xf]  ;;  %v5292_v6 = vor.u32 %v6730_v59, %v5289_v60 }
 0x192   : > { %3769 = vmatpush.bf16.msra.mxu3 %v5356_v32  ;;  %v4489_v63 = vld [vmem:[%s7455_s23 + $0x28] sm:$0xf0]  ;;  %3744 = vmatpush.bf16.msra.mxu1 %v4812_v48 }
 0x193   : > { %v6594_v3 = vld [vmem:[%s7455_s23 + $0x20c] sm:$0xf]  ;;  %v4492_v15 = vor.u32 %v6530_v62, %v4489_v63 }
 0x194   : > { %3757 = vmatpush.bf16.msra.mxu2 %v5068_v49  ;;  %v4745_v4 = vld [vmem:[%s7455_s23 + $0x228] sm:$0xf0]  ;;  %3732 = vmatpush.bf16.msra.mxu0 %v4524_v61 }
 0x195   : > { %v6658_v5 = vld [vmem:[%s7455_s23 + $0x40c] sm:$0xf]  ;;  %v4748_v21 = vor.u32 %v6594_v3, %v4745_v4 }
 0x196   : > { %3770 = vmatpush.bf16.msra.mxu3 %v5324_v54  ;;  %v5001_v7 = vld [vmem:[%s7455_s23 + $0x428] sm:$0xf0]  ;;  %3745 = vmatpush.bf16.msra.mxu1 %v4780_v1 }
 0x197   : > { %v6722_v8 = vld [vmem:[%s7455_s23 + $0x60c] sm:$0xf]  ;;  %v5004_v22 = vor.u32 %v6658_v5, %v5001_v7  ;;  %v8023_v5 = vpop.f32.mrf.mxu0 }
 0x198   : > { %v5257_v9 = vld [vmem:[%s7455_s23 + $0x628] sm:$0xf0]  ;;  %3758 = vmatpush.bf16.msra.mxu2 %v5036_v2  ;;  %3733 = vmatpush.bf16.msra.mxu0 %v4492_v15 }
 0x199   : > { %v6842_v12 = vld [vmem:[%s7455_s23 + $0x9cc] sm:$0xf]  ;;  %v5260_v25 = vor.u32 %v6722_v8, %v5257_v9 }
 0x19a   : > { %v5737_v13 = vld [vmem:[%s7455_s23 + $0x9e8] sm:$0xf0]  ;;  %3771 = vmatpush.bf16.msra.mxu3 %v5292_v6  ;;  %3746 = vmatpush.bf16.msra.mxu1 %v4748_v21 }
 0x19b   : > { %v6906_v14 = vld [vmem:[%s7455_s23 + $0xbcc] sm:$0xf]  ;;  %v5740_v27 = vor.u32 %v6842_v12, %v5737_v13  ;;  %3734 = vmatmul.bf16.vlgmr.msra.gmra.mxu0 %v7578_v10 }
 0x19c   : > { %v5993_v16 = vld [vmem:[%s7455_s23 + $0xbe8] sm:$0xf0]  ;;  %3759 = vmatpush.bf16.msra.mxu2 %v5004_v22 }
 0x19d   : > { %v6970_v19 = vld [vmem:[%s7455_s23 + $0xdcc] sm:$0xf]  ;;  %v5996_v28 = vor.u32 %v6906_v14, %v5993_v16  ;;  %3778 = vmatpush.bf16.msrb.mxu0 %v5740_v27  ;;  %3747 = vmatmul.bf16.vlgmr.msra.gmra.mxu1 %v7587_v18  ;;  %v8038_v27 = vpop.f32.mrf.mxu2 }
 0x19e   : > { %v6249_v20 = vld [vmem:[%s7455_s23 + $0xde8] sm:$0xf0]  ;;  %3772 = vmatpush.bf16.msra.mxu3 %v5260_v25 }
 0x19f   : > { %v7034_v23 = vld [vmem:[%s7455_s23 + $0xfcc] sm:$0xf]  ;;  %v6252_v29 = vor.u32 %v6970_v19, %v6249_v20  ;;  %3791 = vmatpush.bf16.msrb.mxu1 %v5996_v28  ;;  %3760 = vmatmul.bf16.vlgmr.msra.gmra.mxu2 %v7569_v0 }
 0x1a0   : > { %v6505_v24 = vld [vmem:[%s7455_s23 + $0xfe8] sm:$0xf0] }
 0x1a1   : > { %v6834_v30 = vld [vmem:[%s7455_s23 + $0x98c] sm:$0xf]  ;;  %v6508_v33 = vor.u32 %v7034_v23, %v6505_v24  ;;  %3804 = vmatpush.bf16.msrb.mxu2 %v6252_v29  ;;  %3773 = vmatmul.bf16.vlgmr.msra.gmra.mxu3 %v7585_v17 }
 0x1a2   : > { %v5705_v31 = vld [vmem:[%s7455_s23 + $0x9a8] sm:$0xf0] }
 0x1a3   : > { %v6898_v32 = vld [vmem:[%s7455_s23 + $0xb8c] sm:$0xf]  ;;  %v5708_v26 = vor.u32 %v6834_v30, %v5705_v31  ;;  %3817 = vmatpush.bf16.msrb.mxu3 %v6508_v33 }
 0x1a4   : > { %v5961_v34 = vld [vmem:[%s7455_s23 + $0xba8] sm:$0xf0] }
 0x1a5   : > { %v6962_v36 = vld [vmem:[%s7455_s23 + $0xd8c] sm:$0xf]  ;;  %v5964_v42 = vor.u32 %v6898_v32, %v5961_v34  ;;  %3779 = vmatpush.bf16.msrb.mxu0 %v5708_v26  ;;  %v8043_v32 = vpop.f32.mrf.mxu3 }
 0x1a6   : > { %v6217_v37 = vld [vmem:[%s7455_s23 + $0xda8] sm:$0xf0] }
 0x1a7   : > { %v7026_v40 = vld [vmem:[%s7455_s23 + $0xf8c] sm:$0xf]  ;;  %v6220_v45 = vor.u32 %v6962_v36, %v6217_v37  ;;  %3792 = vmatpush.bf16.msrb.mxu1 %v5964_v42  ;;  %v3529_v37 = vpop.f32.mrf.mxu0 }
 0x1a8   : > { %v6473_v44 = vld [vmem:[%s7455_s23 + $0xfa8] sm:$0xf0] }
 0x1a9   : > { %v6826_v46 = vld [vmem:[%s7455_s23 + $0x94c] sm:$0xf]  ;;  %v6476_v49 = vor.u32 %v7026_v40, %v6473_v44  ;;  %3805 = vmatpush.bf16.msrb.mxu2 %v6220_v45 }
 0x1aa   : > { %v5673_v47 = vld [vmem:[%s7455_s23 + $0x968] sm:$0xf0] }
 0x1ab   : > { %v6890_v48 = vld [vmem:[%s7455_s23 + $0xb4c] sm:$0xf]  ;;  %v5676_v43 = vor.u32 %v6826_v46, %v5673_v47  ;;  %3818 = vmatpush.bf16.msrb.mxu3 %v6476_v49  ;;  %v3542_v46 = vpop.f32.mrf.mxu1 }
 0x1ac   : > { %v5929_v50 = vld [vmem:[%s7455_s23 + $0xb68] sm:$0xf0]  ;;  %v6639_v46 = vld [vmem:[%s7455_s23 + $0x36c] sm:$0xf0] }
 0x1ad   : > { %v6954_v51 = vld [vmem:[%s7455_s23 + $0xd4c] sm:$0xf]  ;;  %v5932_v55 = vor.u32 %v6890_v48, %v5929_v50  ;;  %3780 = vmatpush.bf16.msrb.mxu0 %v5676_v43 }
 0x1ae   : > { %v6185_v52 = vld [vmem:[%s7455_s23 + $0xd68] sm:$0xf0] }
 0x1af   : > { %v7018_v53 = vld [vmem:[%s7455_s23 + $0xf4c] sm:$0xf]  ;;  %v6188_v57 = vor.u32 %v6954_v51, %v6185_v52  ;;  %3793 = vmatpush.bf16.msrb.mxu1 %v5932_v55 }
 0x1b0   : > { %v6441_v54 = vld [vmem:[%s7455_s23 + $0xf68] sm:$0xf0] }
 0x1b1   : > { %v6818_v58 = vld [vmem:[%s7455_s23 + $0x90c] sm:$0xf]  ;;  %v6444_v61 = vor.u32 %v7018_v53, %v6441_v54  ;;  %3806 = vmatpush.bf16.msrb.mxu2 %v6188_v57 }
 0x1b2   : > { %v5641_v59 = vld [vmem:[%s7455_s23 + $0x928] sm:$0xf0] }
 0x1b3   : > { %v6882_v60 = vld [vmem:[%s7455_s23 + $0xb0c] sm:$0xf]  ;;  %v5644_v4 = vor.u32 %v6818_v58, %v5641_v59  ;;  %3819 = vmatpush.bf16.msrb.mxu3 %v6444_v61  ;;  %v3555_v61 = vpop.f32.mrf.mxu2 }
 0x1b4   : > { %v5897_v62 = vld [vmem:[%s7455_s23 + $0xb28] sm:$0xf0]  ;;  %v5391_v61 = vld [vmem:[%s7455_s23 + $0x710] sm:$0xf] }
 0x1b5   : > { %v6946_v63 = vld [vmem:[%s7455_s23 + $0xd0c] sm:$0xf]  ;;  %v5900_v56 = vor.u32 %v6882_v60, %v5897_v62  ;;  %3781 = vmatpush.bf16.msrb.mxu0 %v5644_v4  ;;  %v4719_v4 = vld [vmem:[%s7455_s23 + $0x1d0] sm:$0xf] }
 0x1b6   : > { %v6153_v1 = vld [vmem:[%s7455_s23 + $0xd28] sm:$0xf0] }
 0x1b7   : > { %v7010_v2 = vld [vmem:[%s7455_s23 + $0xf0c] sm:$0xf]  ;;  %v6156_v6 = vor.u32 %v6946_v63, %v6153_v1  ;;  %3794 = vmatpush.bf16.msrb.mxu1 %v5900_v56  ;;  %v6591_v56 = vld [vmem:[%s7455_s23 + $0x1ec] sm:$0xf0] }
 0x1b8   : > { %v6409_v3 = vld [vmem:[%s7455_s23 + $0xf28] sm:$0xf0] }
 0x1b9   : > { %v6810_v7 = vld [vmem:[%s7455_s23 + $0x8cc] sm:$0xf]  ;;  %v6412_v12 = vor.u32 %v7010_v2, %v6409_v3  ;;  %3807 = vmatpush.bf16.msrb.mxu2 %v6156_v6  ;;  %v3568_v3 = vpop.f32.mrf.mxu3  ;;  %v4975_v6 = vld [vmem:[%s7455_s23 + $0x3d0] sm:$0xf] }
 0x1ba   : > { %v5609_v8 = vld [vmem:[%s7455_s23 + $0x8e8] sm:$0xf0]  ;;  %v4591_v3 = vld [vmem:[%s7455_s23 + $0xd0] sm:$0xf] }
 0x1bb   : > { %v6874_v9 = vld [vmem:[%s7455_s23 + $0xacc] sm:$0xf]  ;;  %v5612_v20 = vor.u32 %v6810_v7, %v5609_v8  ;;  %3820 = vmatpush.bf16.msrb.mxu3 %v6412_v12  ;;  %v6655_v8 = vld [vmem:[%s7455_s23 + $0x3ec] sm:$0xf0] }
 0x1bc   : > { %v5865_v13 = vld [vmem:[%s7455_s23 + $0xae8] sm:$0xf0]  ;;  %v6719_v12 = vld [vmem:[%s7455_s23 + $0x5ec] sm:$0xf0] }
 0x1bd   : > { %v6938_v14 = vld [vmem:[%s7455_s23 + $0xccc] sm:$0xf]  ;;  %v5868_v21 = vor.u32 %v6874_v9, %v5865_v13  ;;  %3782 = vmatpush.bf16.msrb.mxu0 %v5612_v20  ;;  %v5231_v9 = vld [vmem:[%s7455_s23 + $0x5d0] sm:$0xf]  ;;  %v4720_v20 = vor.u32 %v6591_v56, %v4719_v4 }
 0x1be   : > { %v6121_v15 = vld [vmem:[%s7455_s23 + $0xce8] sm:$0xf0]  ;;  %v6559_v4 = vld [vmem:[%s7455_s23 + $0xec] sm:$0xf0] }
 0x1bf   : > { %v7002_v16 = vld [vmem:[%s7455_s23 + $0xecc] sm:$0xf]  ;;  %v6124_v22 = vor.u32 %v6938_v14, %v6121_v15  ;;  %3795 = vmatpush.bf16.msrb.mxu1 %v5868_v21  ;;  %v5487_v15 = vld [vmem:[%s7455_s23 + $0x7d0] sm:$0xf]  ;;  %v4976_v21 = vor.u32 %v6655_v8, %v4975_v6 }
 0x1c0   : > { %v6377_v19 = vld [vmem:[%s7455_s23 + $0xee8] sm:$0xf0]  ;;  %v4847_v56 = vld [vmem:[%s7455_s23 + $0x2d0] sm:$0xf] }
 0x1c1   : > { %v6802_v23 = vld [vmem:[%s7455_s23 + $0x88c] sm:$0xf]  ;;  %v6380_v28 = vor.u32 %v7002_v16, %v6377_v19  ;;  %3808 = vmatpush.bf16.msrb.mxu2 %v6124_v22  ;;  %v6783_v16 = vld [vmem:[%s7455_s23 + $0x7ec] sm:$0xf0]  ;;  %v5232_v22 = vor.u32 %v6719_v12, %v5231_v9 }
 0x1c2   : > { %v5577_v24 = vld [vmem:[%s7455_s23 + $0x8a8] sm:$0xf0]  ;;  %v6623_v9 = vld [vmem:[%s7455_s23 + $0x2ec] sm:$0xf0] }
 0x1c3   : > { %v6866_v25 = vld [vmem:[%s7455_s23 + $0xa8c] sm:$0xf]  ;;  %v5580_v36 = vor.u32 %v6802_v23, %v5577_v24  ;;  %3821 = vmatpush.bf16.msrb.mxu3 %v6380_v28  ;;  %v3541_v23 = vadd.f32 %v8028_v11, %v8023_v5  ;;  %v4687_v24 = vld [vmem:[%s7455_s23 + $0x190] sm:$0xf] }
 0x1c4   : > { %v5833_v29 = vld [vmem:[%s7455_s23 + $0xaa8] sm:$0xf0]  ;;  %v4943_v28 = vld [vmem:[%s7455_s23 + $0x390] sm:$0xf] }
 0x1c5   : > { %v6930_v30 = vld [vmem:[%s7455_s23 + $0xc8c] sm:$0xf]  ;;  %v5836_v40 = vor.u32 %v6866_v25, %v5833_v29  ;;  %3783 = vmatpush.bf16.msrb.mxu0 %v5580_v36  ;;  %v6583_v25 = vld [vmem:[%s7455_s23 + $0x1ac] sm:$0xf0]  ;;  %v5488_v29 = vor.u32 %v6783_v16, %v5487_v15 }
 0x1c6   : > { %v6089_v31 = vld [vmem:[%s7455_s23 + $0xca8] sm:$0xf0]  ;;  %v6775_v36 = vld [vmem:[%s7455_s23 + $0x7ac] sm:$0xf0]  ;;  %v4688_v5 = vor.u32 %v6583_v25, %v4687_v24  ;;  %v3605_v25 = vpop.f32.mrf.mxu2 }
 0x1c7   : > { %v6994_v33 = vld [vmem:[%s7455_s23 + $0xe8c] sm:$0xf]  ;;  %v6092_v44 = vor.u32 %v6930_v30, %v6089_v31  ;;  %3796 = vmatpush.bf16.msrb.mxu1 %v5836_v40  ;;  %v6647_v30 = vld [vmem:[%s7455_s23 + $0x3ac] sm:$0xf0]  ;;  %v3554_v40 = vadd.f32 %v8038_v27, %v3541_v23 }
 0x1c8   : > { %v6345_v34 = vld [vmem:[%s7455_s23 + $0xea8] sm:$0xf0]  ;;  %v5199_v31 = vld [vmem:[%s7455_s23 + $0x590] sm:$0xf]  ;;  %v4944_v11 = vor.u32 %v6647_v30, %v4943_v28 }
 0x1c9   : > { %v6794_v26 = vld [vmem:[%s7455_s23 + $0x84c] sm:$0xf]  ;;  %v6348_v47 = vor.u32 %v6994_v33, %v6345_v34  ;;  %3809 = vmatpush.bf16.msrb.mxu2 %v6092_v44  ;;  %v6711_v33 = vld [vmem:[%s7455_s23 + $0x5ac] sm:$0xf0] }
 0x1ca   : > { %v5545_v42 = vld [vmem:[%s7455_s23 + $0x868] sm:$0xf0]  ;;  %v5455_v34 = vld [vmem:[%s7455_s23 + $0x790] sm:$0xf]  ;;  %v5200_v37 = vor.u32 %v6711_v33, %v5199_v31 }
 0x1cb   : > { %v6858_v45 = vld [vmem:[%s7455_s23 + $0xa4c] sm:$0xf]  ;;  %v5548_v53 = vor.u32 %v6794_v26, %v5545_v42  ;;  %3822 = vmatpush.bf16.msrb.mxu3 %v6348_v47  ;;  %v4655_v44 = vld [vmem:[%s7455_s23 + $0x150] sm:$0xf] }
 0x1cc   : > { %v5801_v48 = vld [vmem:[%s7455_s23 + $0xa68] sm:$0xf0]  ;;  %v6575_v26 = vld [vmem:[%s7455_s23 + $0x16c] sm:$0xf0] }
 0x1cd   : > { %v6922_v49 = vld [vmem:[%s7455_s23 + $0xc4c] sm:$0xf]  ;;  %v5804_v55 = vor.u32 %v6858_v45, %v5801_v48  ;;  %3784 = vmatpush.bf16.msrb.mxu0 %v5548_v53  ;;  %v4911_v42 = vld [vmem:[%s7455_s23 + $0x350] sm:$0xf]  ;;  %v5456_v45 = vor.u32 %v6775_v36, %v5455_v34  ;;  %v3618_v34 = vpop.f32.mrf.mxu3 }
 0x1ce   : > { %v6057_v50 = vld [vmem:[%s7455_s23 + $0xc68] sm:$0xf0]  ;;  %v5167_v47 = vld [vmem:[%s7455_s23 + $0x550] sm:$0xf] }
 0x1cf   : > { %v6986_v51 = vld [vmem:[%s7455_s23 + $0xe4c] sm:$0xf]  ;;  %v6060_v57 = vor.u32 %v6922_v49, %v6057_v50  ;;  %3797 = vmatpush.bf16.msrb.mxu1 %v5804_v55  ;;  %v6703_v48 = vld [vmem:[%s7455_s23 + $0x56c] sm:$0xf0]  ;;  %v4656_v50 = vor.u32 %v6575_v26, %v4655_v44 }
 0x1d0   : > { %v6313_v52 = vld [vmem:[%s7455_s23 + $0xe68] sm:$0xf0]  ;;  %v5423_v49 = vld [vmem:[%s7455_s23 + $0x750] sm:$0xf]  ;;  %v5168_v53 = vor.u32 %v6703_v48, %v5167_v47 }
 0x1d1   : > { %v6786_v54 = vld [vmem:[%s7455_s23 + $0x80c] sm:$0xf]  ;;  %v6316_v62 = vor.u32 %v6986_v51, %v6313_v52  ;;  %3810 = vmatpush.bf16.msrb.mxu2 %v6060_v57  ;;  %v6767_v27 = vld [vmem:[%s7455_s23 + $0x76c] sm:$0xf0]  ;;  %v3567_v51 = vadd.f32 %v8043_v32, %v3554_v40  ;;  %v4912_v52 = vor.u32 %v6639_v46, %v4911_v42 }
 0x1d2   : > { %v5513_v43 = vld [vmem:[%s7455_s23 + $0x828] sm:$0xf0]  ;;  %v4879_v55 = vld [vmem:[%s7455_s23 + $0x310] sm:$0xf]  ;;  %v5424_v57 = vor.u32 %v6767_v27, %v5423_v49 }
 0x1d3   : > { %v6850_v58 = vld [vmem:[%s7455_s23 + $0xa0c] sm:$0xf]  ;;  %v5516_v7 = vor.u32 %v6786_v54, %v5513_v43  ;;  %3823 = vmatpush.bf16.msrb.mxu3 %v6316_v62  ;;  %v4623_v54 = vld [vmem:[%s7455_s23 + $0x110] sm:$0xf] }
 0x1d4   : > { %v5769_v59 = vld [vmem:[%s7455_s23 + $0xa28] sm:$0xf0]  ;;  %v6567_v43 = vld [vmem:[%s7455_s23 + $0x12c] sm:$0xf0] }
 0x1d5   : > { %v6914_v60 = vld [vmem:[%s7455_s23 + $0xc0c] sm:$0xf]  ;;  %v5772_v13 = vor.u32 %v6850_v58, %v5769_v59  ;;  %3785 = vmatpush.bf16.msrb.mxu0 %v5516_v7  ;;  %v6631_v58 = vld [vmem:[%s7455_s23 + $0x32c] sm:$0xf0]  ;;  %v4624_v32 = vor.u32 %v6567_v43, %v4623_v54  ;;  %v3592_v7 = vpop.f32.mrf.mxu1 }
 0x1d6   : > { %v6025_v63 = vld [vmem:[%s7455_s23 + $0xc28] sm:$0xf0]  ;;  %v5135_v59 = vld [vmem:[%s7455_s23 + $0x510] sm:$0xf] }
 0x1d7   : > { %v6978_v1 = vld [vmem:[%s7455_s23 + $0xe0c] sm:$0xf]  ;;  %v6028_v14 = vor.u32 %v6914_v60, %v6025_v63  ;;  %3798 = vmatpush.bf16.msrb.mxu1 %v5772_v13  ;;  %v6695_v60 = vld [vmem:[%s7455_s23 + $0x52c] sm:$0xf0]  ;;  %v3579_v63 = vpop.f32.mrf.mxu0 }
 0x1d8   : > { %v6281_v2 = vld [vmem:[%s7455_s23 + $0xe28] sm:$0xf0]  ;;  %3786 = vmatmul.bf16.vlgmr.msrb.gmra.mxu0 %v7648_v38  ;;  %v6759_v62 = vld [vmem:[%s7455_s23 + $0x72c] sm:$0xf0]  ;;  %v3580_v6 = vadd.f32 %v3579_v63, %v3567_v51 }
 0x1d9   : > { %v6284_v19 = vor.u32 %v6978_v1, %v6281_v2  ;;  %3811 = vmatpush.bf16.msrb.mxu2 %v6028_v14  ;;  %3830 = vmatpush.bf16.msra.mxu0 %v4720_v20  ;;  %v4880_v1 = vor.u32 %v6631_v58, %v4879_v55  ;;  %v5136_v2 = vor.u32 %v6695_v60, %v5135_v59  ;;  %v5103_v12 = vld [vmem:[%s7455_s23 + $0x4d0] sm:$0xf] }
 0x1da   : > { %3799 = vmatmul.bf16.vlgmr.msrb.gmra.mxu1 %v7652_v41  ;;  %v5392_v8 = vor.u32 %v6759_v62, %v5391_v61  ;;  %v6687_v13 = vld [vmem:[%s7455_s23 + $0x4ec] sm:$0xf0]  ;;  %v3593_v16 = vadd.f32 %v3592_v7, %v3580_v6  ;;  %v4848_v20 = vor.u32 %v6623_v9, %v4847_v56 }
 0x1db   : > { %3824 = vmatpush.bf16.msrb.mxu3 %v6284_v19  ;;  %3843 = vmatpush.bf16.msra.mxu1 %v4976_v21  ;;  %v5359_v14 = vld [vmem:[%s7455_s23 + $0x6d0] sm:$0xf]  ;;  %v4592_v19 = vor.u32 %v6559_v4, %v4591_v3  ;;  %v5104_v21 = vor.u32 %v6687_v13, %v5103_v12  ;;  %v3620_v4 = vpop.f32.mrf.mxu3 }
 0x1dc   : > { %3812 = vmatmul.bf16.vlgmr.msrb.gmra.mxu2 %v7644_v35  ;;  %v6751_v15 = vld [vmem:[%s7455_s23 + $0x6ec] sm:$0xf0]  ;;  %v3606_v33 = vadd.f32 %v3605_v25, %v3593_v16 }
 0x1dd   : > { %3856 = vmatpush.bf16.msra.mxu2 %v5232_v22  ;;  %3831 = vmatpush.bf16.msra.mxu0 %v4688_v5  ;;  %v4559_v22 = vld [vmem:[%s7455_s23 + $0x90] sm:$0xf]  ;;  %v5360_v28 = vor.u32 %v6751_v15, %v5359_v14  ;;  %v3594_v48 = vpop.f32.mrf.mxu1 }
 0x1de   : > { %3825 = vmatmul.bf16.vlgmr.msrb.gmra.mxu3 %v7650_v39  ;;  %v6551_v23 = vld [vmem:[%s7455_s23 + $0xac] sm:$0xf0]  ;;  %v3619_v40 = vadd.f32 %v3618_v34, %v3606_v33 }
 0x1df   : > { %3869 = vmatpush.bf16.msra.mxu3 %v5488_v29  ;;  %3844 = vmatpush.bf16.msra.mxu1 %v4944_v11  ;;  %v4815_v24 = vld [vmem:[%s7455_s23 + $0x290] sm:$0xf]  ;;  %v839_v11 = vld [vmem:[#allocation2] sm:$0xff]  ;;  %v3581_v44 = vpop.f32.mrf.mxu0 }
 0x1e0   : > { %v6615_v29 = vld [vmem:[%s7455_s23 + $0x2ac] sm:$0xf0]  ;;  %v4247_v27 = vadd.f32 %v3619_v40, %v839_v11 }
 0x1e1   : > { %3857 = vmatpush.bf16.msra.mxu2 %v5200_v37  ;;  %3832 = vmatpush.bf16.msra.mxu0 %v4656_v50  ;;  %v5071_v30 = vld [vmem:[%s7455_s23 + $0x490] sm:$0xf]  ;;  %v4560_v37 = vor.u32 %v6551_v23, %v4559_v22  ;;  %v4816_v26 = vor.u32 %v6615_v29, %v4815_v24 }
 0x1e2   : > { %v6679_v31 = vld [vmem:[%s7455_s23 + $0x4ac] sm:$0xf0]  ;;  %4255 = vst [vmem:[#allocation2] sm:$0xff] %v4247_v27 }
 0x1e3   : > { %3870 = vmatpush.bf16.msra.mxu3 %v5456_v45  ;;  %3845 = vmatpush.bf16.msra.mxu1 %v4912_v52  ;;  %v5327_v36 = vld [vmem:[%s7455_s23 + $0x690] sm:$0xf]  ;;  %v5072_v42 = vor.u32 %v6679_v31, %v5071_v30 }
 0x1e4   : > { %v6743_v5 = vld [vmem:[%s7455_s23 + $0x6ac] sm:$0xf0] }
 0x1e5   : > { %3858 = vmatpush.bf16.msra.mxu2 %v5168_v53  ;;  %3833 = vmatpush.bf16.msra.mxu0 %v4624_v32  ;;  %v4527_v45 = vld [vmem:[%s7455_s23 + $0x50] sm:$0xf]  ;;  %v5328_v49 = vor.u32 %v6743_v5, %v5327_v36  ;;  %v3607_v32 = vpop.f32.mrf.mxu2  ;;  %v8176_v4 = vpop.f32.mrf.mxu1 }
 0x1e6   : > { %v6543_v46 = vld [vmem:[%s7455_s23 + $0x6c] sm:$0xf0] }
 0x1e7   : > { %3871 = vmatpush.bf16.msra.mxu3 %v5424_v57  ;;  %3846 = vmatpush.bf16.msra.mxu1 %v4880_v1  ;;  %v4783_v47 = vld [vmem:[%s7455_s23 + $0x250] sm:$0xf]  ;;  %v4528_v43 = vor.u32 %v6543_v46, %v4527_v45 }
 0x1e8   : > { %v6607_v50 = vld [vmem:[%s7455_s23 + $0x26c] sm:$0xf0] }
 0x1e9   : > { %3859 = vmatpush.bf16.msra.mxu2 %v5136_v2  ;;  %3834 = vmatpush.bf16.msra.mxu0 %v4592_v19  ;;  %v5039_v51 = vld [vmem:[%s7455_s23 + $0x450] sm:$0xf]  ;;  %v4784_v58 = vor.u32 %v6607_v50, %v4783_v47 }
 0x1ea   : > { %v6671_v52 = vld [vmem:[%s7455_s23 + $0x46c] sm:$0xf0] }
 0x1eb   : > { %3872 = vmatpush.bf16.msra.mxu3 %v5392_v8  ;;  %3847 = vmatpush.bf16.msra.mxu1 %v4848_v20  ;;  %v5295_v53 = vld [vmem:[%s7455_s23 + $0x650] sm:$0xf]  ;;  %v5040_v59 = vor.u32 %v6671_v52, %v5039_v51 }
 0x1ec   : > { %v6735_v54 = vld [vmem:[%s7455_s23 + $0x66c] sm:$0xf0] }
 0x1ed   : > { %3860 = vmatpush.bf16.msra.mxu2 %v5104_v21  ;;  %3835 = vmatpush.bf16.msra.mxu0 %v4560_v37  ;;  %v4495_v55 = vld [vmem:[%s7455_s23 + $0x10] sm:$0xf]  ;;  %v5296_v63 = vor.u32 %v6735_v54, %v5295_v53 }
 0x1ee   : > { %v6535_v57 = vld [vmem:[%s7455_s23 + $0x2c] sm:$0xf0] }
 0x1ef   : > { %3873 = vmatpush.bf16.msra.mxu3 %v5360_v28  ;;  %3848 = vmatpush.bf16.msra.mxu1 %v4816_v26  ;;  %v4751_v60 = vld [vmem:[%s7455_s23 + $0x210] sm:$0xf]  ;;  %v4496_v8 = vor.u32 %v6535_v57, %v4495_v55 }
 0x1f0   : > { %v6599_v61 = vld [vmem:[%s7455_s23 + $0x22c] sm:$0xf0] }
 0x1f1   : > { %3861 = vmatpush.bf16.msra.mxu2 %v5072_v42  ;;  %v5007_v62 = vld [vmem:[%s7455_s23 + $0x410] sm:$0xf]  ;;  %3836 = vmatpush.bf16.msra.mxu0 %v4528_v43  ;;  %v4752_v14 = vor.u32 %v6599_v61, %v4751_v60 }
 0x1f2   : > { %v6663_v1 = vld [vmem:[%s7455_s23 + $0x42c] sm:$0xf0] }
 0x1f3   : > { %3874 = vmatpush.bf16.msra.mxu3 %v5328_v49  ;;  %v5263_v2 = vld [vmem:[%s7455_s23 + $0x610] sm:$0xf]  ;;  %3849 = vmatpush.bf16.msra.mxu1 %v4784_v58  ;;  %v5008_v15 = vor.u32 %v6663_v1, %v5007_v62  ;;  %v8171_v62 = vpop.f32.mrf.mxu0 }
 0x1f4   : > { %v6727_v3 = vld [vmem:[%s7455_s23 + $0x62c] sm:$0xf0] }
 0x1f5   : > { %v5743_v56 = vld [vmem:[%s7455_s23 + $0x9d0] sm:$0xf]  ;;  %3862 = vmatpush.bf16.msra.mxu2 %v5040_v59  ;;  %v5264_v20 = vor.u32 %v6727_v3, %v5263_v2  ;;  %3837 = vmatpush.bf16.msra.mxu0 %v4496_v8 }
 0x1f6   : > { %v6847_v6 = vld [vmem:[%s7455_s23 + $0x9ec] sm:$0xf0] }
 0x1f7   : > { %v5999_v7 = vld [vmem:[%s7455_s23 + $0xbd0] sm:$0xf]  ;;  %3875 = vmatpush.bf16.msra.mxu3 %v5296_v63  ;;  %v5744_v21 = vor.u32 %v6847_v6, %v5743_v56  ;;  %3850 = vmatpush.bf16.msra.mxu1 %v4752_v14 }
 0x1f8   : > { %v6911_v9 = vld [vmem:[%s7455_s23 + $0xbec] sm:$0xf0]  ;;  %3838 = vmatmul.bf16.vlgmr.msra.gmra.mxu0 %v7578_v10 }
 0x1f9   : > { %v6255_v12 = vld [vmem:[%s7455_s23 + $0xdd0] sm:$0xf]  ;;  %v6000_v22 = vor.u32 %v6911_v9, %v5999_v7  ;;  %3863 = vmatpush.bf16.msra.mxu2 %v5008_v15  ;;  %3882 = vmatpush.bf16.msrb.mxu0 %v5744_v21  ;;  %v8186_v21 = vpop.f32.mrf.mxu2 }
 0x1fa   : > { %v6975_v13 = vld [vmem:[%s7455_s23 + $0xdec] sm:$0xf0]  ;;  %3851 = vmatmul.bf16.vlgmr.msra.gmra.mxu1 %v7587_v18 }
 0x1fb   : > { %v6511_v16 = vld [vmem:[%s7455_s23 + $0xfd0] sm:$0xf]  ;;  %v6256_v23 = vor.u32 %v6975_v13, %v6255_v12  ;;  %3876 = vmatpush.bf16.msra.mxu3 %v5264_v20  ;;  %3895 = vmatpush.bf16.msrb.mxu1 %v6000_v22 }
 0x1fc   : > { %v7039_v19 = vld [vmem:[%s7455_s23 + $0xfec] sm:$0xf0]  ;;  %3864 = vmatmul.bf16.vlgmr.msra.gmra.mxu2 %v7569_v0 }
 0x1fd   : > { %v5711_v24 = vld [vmem:[%s7455_s23 + $0x990] sm:$0xf]  ;;  %v6512_v29 = vor.u32 %v7039_v19, %v6511_v16  ;;  %3908 = vmatpush.bf16.msrb.mxu2 %v6256_v23 }
 0x1fe   : > { %v6839_v25 = vld [vmem:[%s7455_s23 + $0x9ac] sm:$0xf0]  ;;  %3877 = vmatmul.bf16.vlgmr.msra.gmra.mxu3 %v7585_v17 }
 0x1ff   : > { %v5967_v28 = vld [vmem:[%s7455_s23 + $0xb90] sm:$0xf]  ;;  %v5712_v5 = vor.u32 %v6839_v25, %v5711_v24  ;;  %3921 = vmatpush.bf16.msrb.mxu3 %v6512_v29 }
 0x200   : > { %v6903_v30 = vld [vmem:[%s7455_s23 + $0xbac] sm:$0xf0] }
 0x201   : > { %v6223_v31 = vld [vmem:[%s7455_s23 + $0xd90] sm:$0xf]  ;;  %v5968_v11 = vor.u32 %v6903_v30, %v5967_v28  ;;  %3883 = vmatpush.bf16.msrb.mxu0 %v5712_v5  ;;  %v8191_v28 = vpop.f32.mrf.mxu3 }
 0x202   : > { %v6967_v33 = vld [vmem:[%s7455_s23 + $0xdac] sm:$0xf0] }
 0x203   : > { %v6479_v34 = vld [vmem:[%s7455_s23 + $0xf90] sm:$0xf]  ;;  %v6224_v37 = vor.u32 %v6967_v33, %v6223_v31  ;;  %3896 = vmatpush.bf16.msrb.mxu1 %v5968_v11  ;;  %v3633_v33 = vpop.f32.mrf.mxu0 }
 0x204   : > { %v7031_v36 = vld [vmem:[%s7455_s23 + $0xfac] sm:$0xf0] }
 0x205   : > { %v5679_v40 = vld [vmem:[%s7455_s23 + $0x950] sm:$0xf]  ;;  %v6480_v42 = vor.u32 %v7031_v36, %v6479_v34  ;;  %3909 = vmatpush.bf16.msrb.mxu2 %v6224_v37 }
 0x206   : > { %v6831_v44 = vld [vmem:[%s7455_s23 + $0x96c] sm:$0xf0] }
 0x207   : > { %v5935_v26 = vld [vmem:[%s7455_s23 + $0xb50] sm:$0xf]  ;;  %v5680_v27 = vor.u32 %v6831_v44, %v5679_v40  ;;  %3922 = vmatpush.bf16.msrb.mxu3 %v6480_v42  ;;  %v3646_v40 = vpop.f32.mrf.mxu1 }
 0x208   : > { %v6895_v45 = vld [vmem:[%s7455_s23 + $0xb6c] sm:$0xf0]  ;;  %v4913_v40 = vld [vmem:[%s7455_s23 + $0x370] sm:$0xf0] }
 0x209   : > { %v6191_v46 = vld [vmem:[%s7455_s23 + $0xd50] sm:$0xf]  ;;  %v5936_v50 = vor.u32 %v6895_v45, %v5935_v26  ;;  %3884 = vmatpush.bf16.msrb.mxu0 %v5680_v27 }
 0x20a   : > { %v6959_v47 = vld [vmem:[%s7455_s23 + $0xd6c] sm:$0xf0] }
 0x20b   : > { %v6447_v48 = vld [vmem:[%s7455_s23 + $0xf50] sm:$0xf]  ;;  %v6192_v51 = vor.u32 %v6959_v47, %v6191_v46  ;;  %3897 = vmatpush.bf16.msrb.mxu1 %v5936_v50 }
 0x20c   : > { %v7023_v49 = vld [vmem:[%s7455_s23 + $0xf6c] sm:$0xf0] }
 0x20d   : > { %v5647_v52 = vld [vmem:[%s7455_s23 + $0x910] sm:$0xf]  ;;  %v6448_v43 = vor.u32 %v7023_v49, %v6447_v48  ;;  %3910 = vmatpush.bf16.msrb.mxu2 %v6192_v51 }
 0x20e   : > { %v6823_v53 = vld [vmem:[%s7455_s23 + $0x92c] sm:$0xf0] }
 0x20f   : > { %v5903_v54 = vld [vmem:[%s7455_s23 + $0xb10] sm:$0xf]  ;;  %v5648_v61 = vor.u32 %v6823_v53, %v5647_v52  ;;  %3923 = vmatpush.bf16.msrb.mxu3 %v6448_v43  ;;  %v3659_v43 = vpop.f32.mrf.mxu2 }
 0x210   : > { %v6887_v55 = vld [vmem:[%s7455_s23 + $0xb2c] sm:$0xf0]  ;;  %v6755_v43 = vld [vmem:[%s7455_s23 + $0x714] sm:$0xf] }
 0x211   : > { %v6159_v57 = vld [vmem:[%s7455_s23 + $0xd10] sm:$0xf]  ;;  %v5904_v32 = vor.u32 %v6887_v55, %v5903_v54  ;;  %3885 = vmatpush.bf16.msrb.mxu0 %v5648_v61  ;;  %v6587_v61 = vld [vmem:[%s7455_s23 + $0x1d4] sm:$0xf] }
 0x212   : > { %v6951_v58 = vld [vmem:[%s7455_s23 + $0xd2c] sm:$0xf0] }
 0x213   : > { %v6415_v59 = vld [vmem:[%s7455_s23 + $0xf10] sm:$0xf]  ;;  %v6160_v63 = vor.u32 %v6951_v58, %v6159_v57  ;;  %3898 = vmatpush.bf16.msrb.mxu1 %v5904_v32  ;;  %v4721_v32 = vld [vmem:[%s7455_s23 + $0x1f0] sm:$0xf0] }
 0x214   : > { %v7015_v60 = vld [vmem:[%s7455_s23 + $0xf2c] sm:$0xf0] }
 0x215   : > { %v5615_v1 = vld [vmem:[%s7455_s23 + $0x8d0] sm:$0xf]  ;;  %v6416_v56 = vor.u32 %v7015_v60, %v6415_v59  ;;  %3911 = vmatpush.bf16.msrb.mxu2 %v6160_v63  ;;  %v3672_v60 = vpop.f32.mrf.mxu3  ;;  %v6651_v63 = vld [vmem:[%s7455_s23 + $0x3d4] sm:$0xf] }
 0x216   : > { %v6815_v2 = vld [vmem:[%s7455_s23 + $0x8ec] sm:$0xf0]  ;;  %v6555_v60 = vld [vmem:[%s7455_s23 + $0xd4] sm:$0xf] }
 0x217   : > { %v5871_v3 = vld [vmem:[%s7455_s23 + $0xad0] sm:$0xf]  ;;  %v5616_v13 = vor.u32 %v6815_v2, %v5615_v1  ;;  %3924 = vmatpush.bf16.msrb.mxu3 %v6416_v56  ;;  %v4977_v2 = vld [vmem:[%s7455_s23 + $0x3f0] sm:$0xf0] }
 0x218   : > { %v6879_v6 = vld [vmem:[%s7455_s23 + $0xaec] sm:$0xf0]  ;;  %v5233_v56 = vld [vmem:[%s7455_s23 + $0x5f0] sm:$0xf0] }
 0x219   : > { %v6127_v7 = vld [vmem:[%s7455_s23 + $0xcd0] sm:$0xf]  ;;  %v5872_v14 = vor.u32 %v6879_v6, %v5871_v3  ;;  %3886 = vmatpush.bf16.msrb.mxu0 %v5616_v13  ;;  %v6715_v3 = vld [vmem:[%s7455_s23 + $0x5d4] sm:$0xf]  ;;  %v4724_v13 = vor.u32 %v6587_v61, %v4721_v32 }
 0x21a   : > { %v6943_v8 = vld [vmem:[%s7455_s23 + $0xcec] sm:$0xf0]  ;;  %v4593_v61 = vld [vmem:[%s7455_s23 + $0xf0] sm:$0xf0] }
 0x21b   : > { %v6383_v9 = vld [vmem:[%s7455_s23 + $0xed0] sm:$0xf]  ;;  %v6128_v15 = vor.u32 %v6943_v8, %v6127_v7  ;;  %3899 = vmatpush.bf16.msrb.mxu1 %v5872_v14  ;;  %v6779_v8 = vld [vmem:[%s7455_s23 + $0x7d4] sm:$0xf]  ;;  %v4980_v14 = vor.u32 %v6651_v63, %v4977_v2 }
 0x21c   : > { %v7007_v12 = vld [vmem:[%s7455_s23 + $0xeec] sm:$0xf0]  ;;  %v6619_v32 = vld [vmem:[%s7455_s23 + $0x2d4] sm:$0xf] }
 0x21d   : > { %v5583_v16 = vld [vmem:[%s7455_s23 + $0x890] sm:$0xf]  ;;  %v6384_v22 = vor.u32 %v7007_v12, %v6383_v9  ;;  %3912 = vmatpush.bf16.msrb.mxu2 %v6128_v15  ;;  %v5489_v9 = vld [vmem:[%s7455_s23 + $0x7f0] sm:$0xf0]  ;;  %v5236_v15 = vor.u32 %v6715_v3, %v5233_v56 }
 0x21e   : > { %v6807_v19 = vld [vmem:[%s7455_s23 + $0x8ac] sm:$0xf0]  ;;  %v4849_v3 = vld [vmem:[%s7455_s23 + $0x2f0] sm:$0xf0] }
 0x21f   : > { %v5839_v20 = vld [vmem:[%s7455_s23 + $0xa90] sm:$0xf]  ;;  %v5584_v31 = vor.u32 %v6807_v19, %v5583_v16  ;;  %3925 = vmatpush.bf16.msrb.mxu3 %v6384_v22  ;;  %v3645_v16 = vadd.f32 %v8176_v4, %v8171_v62  ;;  %v6579_v19 = vld [vmem:[%s7455_s23 + $0x194] sm:$0xf] }
 0x220   : > { %v6871_v23 = vld [vmem:[%s7455_s23 + $0xaac] sm:$0xf0]  ;;  %v6643_v22 = vld [vmem:[%s7455_s23 + $0x394] sm:$0xf] }
 0x221   : > { %v6095_v24 = vld [vmem:[%s7455_s23 + $0xc90] sm:$0xf]  ;;  %v5840_v34 = vor.u32 %v6871_v23, %v5839_v20  ;;  %3887 = vmatpush.bf16.msrb.mxu0 %v5584_v31  ;;  %v4689_v20 = vld [vmem:[%s7455_s23 + $0x1b0] sm:$0xf0]  ;;  %v5492_v23 = vor.u32 %v6779_v8, %v5489_v9 }
 0x222   : > { %v6935_v25 = vld [vmem:[%s7455_s23 + $0xcac] sm:$0xf0]  ;;  %v5457_v31 = vld [vmem:[%s7455_s23 + $0x7b0] sm:$0xf0]  ;;  %v4692_v62 = vor.u32 %v6579_v19, %v4689_v20  ;;  %v3709_v20 = vpop.f32.mrf.mxu2 }
 0x223   : > { %v6351_v29 = vld [vmem:[%s7455_s23 + $0xe90] sm:$0xf]  ;;  %v6096_v36 = vor.u32 %v6935_v25, %v6095_v24  ;;  %3900 = vmatpush.bf16.msrb.mxu1 %v5840_v34  ;;  %v4945_v24 = vld [vmem:[%s7455_s23 + $0x3b0] sm:$0xf0]  ;;  %v3658_v34 = vadd.f32 %v8186_v21, %v3645_v16 }
 0x224   : > { %v6999_v30 = vld [vmem:[%s7455_s23 + $0xeac] sm:$0xf0]  ;;  %v6707_v25 = vld [vmem:[%s7455_s23 + $0x594] sm:$0xf]  ;;  %v4948_v4 = vor.u32 %v6643_v22, %v4945_v24 }
 0x225   : > { %v5551_v5 = vld [vmem:[%s7455_s23 + $0x850] sm:$0xf]  ;;  %v6352_v44 = vor.u32 %v6999_v30, %v6351_v29  ;;  %3913 = vmatpush.bf16.msrb.mxu2 %v6096_v36  ;;  %v5201_v29 = vld [vmem:[%s7455_s23 + $0x5b0] sm:$0xf0] }
 0x226   : > { %v6799_v11 = vld [vmem:[%s7455_s23 + $0x86c] sm:$0xf0]  ;;  %v6771_v30 = vld [vmem:[%s7455_s23 + $0x794] sm:$0xf]  ;;  %v5204_v33 = vor.u32 %v6707_v25, %v5201_v29 }
 0x227   : > { %v5807_v37 = vld [vmem:[%s7455_s23 + $0xa50] sm:$0xf]  ;;  %v5552_v48 = vor.u32 %v6799_v11, %v5551_v5  ;;  %3926 = vmatpush.bf16.msrb.mxu3 %v6352_v44  ;;  %v6571_v36 = vld [vmem:[%s7455_s23 + $0x154] sm:$0xf] }
 0x228   : > { %v6863_v26 = vld [vmem:[%s7455_s23 + $0xa6c] sm:$0xf0]  ;;  %v4657_v5 = vld [vmem:[%s7455_s23 + $0x170] sm:$0xf0] }
 0x229   : > { %v6063_v42 = vld [vmem:[%s7455_s23 + $0xc50] sm:$0xf]  ;;  %v5808_v50 = vor.u32 %v6863_v26, %v5807_v37  ;;  %3888 = vmatpush.bf16.msrb.mxu0 %v5552_v48  ;;  %v6635_v11 = vld [vmem:[%s7455_s23 + $0x354] sm:$0xf]  ;;  %v5460_v37 = vor.u32 %v6771_v30, %v5457_v31  ;;  %v3722_v30 = vpop.f32.mrf.mxu3 }
 0x22a   : > { %v6927_v45 = vld [vmem:[%s7455_s23 + $0xc6c] sm:$0xf0]  ;;  %v6699_v44 = vld [vmem:[%s7455_s23 + $0x554] sm:$0xf] }
 0x22b   : > { %v6319_v46 = vld [vmem:[%s7455_s23 + $0xe50] sm:$0xf]  ;;  %v6064_v51 = vor.u32 %v6927_v45, %v6063_v42  ;;  %3901 = vmatpush.bf16.msrb.mxu1 %v5808_v50  ;;  %v5169_v26 = vld [vmem:[%s7455_s23 + $0x570] sm:$0xf0]  ;;  %v4660_v45 = vor.u32 %v6571_v36, %v4657_v5 }
 0x22c   : > { %v6991_v47 = vld [vmem:[%s7455_s23 + $0xe6c] sm:$0xf0]  ;;  %v6763_v42 = vld [vmem:[%s7455_s23 + $0x754] sm:$0xf]  ;;  %v5172_v48 = vor.u32 %v6699_v44, %v5169_v26 }
 0x22d   : > { %v5519_v49 = vld [vmem:[%s7455_s23 + $0x810] sm:$0xf]  ;;  %v6320_v55 = vor.u32 %v6991_v47, %v6319_v46  ;;  %3914 = vmatpush.bf16.msrb.mxu2 %v6064_v51  ;;  %v5425_v21 = vld [vmem:[%s7455_s23 + $0x770] sm:$0xf0]  ;;  %v3671_v46 = vadd.f32 %v8191_v28, %v3658_v34  ;;  %v4916_v47 = vor.u32 %v6635_v11, %v4913_v40 }
 0x22e   : > { %v6791_v27 = vld [vmem:[%s7455_s23 + $0x82c] sm:$0xf0]  ;;  %v6627_v50 = vld [vmem:[%s7455_s23 + $0x314] sm:$0xf]  ;;  %v5428_v51 = vor.u32 %v6763_v42, %v5425_v21 }
 0x22f   : > { %v5775_v52 = vld [vmem:[%s7455_s23 + $0xa10] sm:$0xf]  ;;  %v5520_v1 = vor.u32 %v6791_v27, %v5519_v49  ;;  %3927 = vmatpush.bf16.msrb.mxu3 %v6320_v55  ;;  %v6563_v49 = vld [vmem:[%s7455_s23 + $0x114] sm:$0xf] }
 0x230   : > { %v6855_v53 = vld [vmem:[%s7455_s23 + $0xa2c] sm:$0xf0]  ;;  %v4625_v27 = vld [vmem:[%s7455_s23 + $0x130] sm:$0xf0] }
 0x231   : > { %v6031_v54 = vld [vmem:[%s7455_s23 + $0xc10] sm:$0xf]  ;;  %v5776_v6 = vor.u32 %v6855_v53, %v5775_v52  ;;  %3889 = vmatpush.bf16.msrb.mxu0 %v5520_v1  ;;  %v4881_v52 = vld [vmem:[%s7455_s23 + $0x330] sm:$0xf0]  ;;  %v4628_v28 = vor.u32 %v6563_v49, %v4625_v27  ;;  %v3696_v1 = vpop.f32.mrf.mxu1 }
 0x232   : > { %v6919_v57 = vld [vmem:[%s7455_s23 + $0xc2c] sm:$0xf0]  ;;  %v6691_v53 = vld [vmem:[%s7455_s23 + $0x514] sm:$0xf] }
 0x233   : > { %v6287_v58 = vld [vmem:[%s7455_s23 + $0xe10] sm:$0xf]  ;;  %v6032_v7 = vor.u32 %v6919_v57, %v6031_v54  ;;  %3902 = vmatpush.bf16.msrb.mxu1 %v5776_v6  ;;  %v5137_v54 = vld [vmem:[%s7455_s23 + $0x530] sm:$0xf0]  ;;  %v3683_v57 = vpop.f32.mrf.mxu0 }
 0x234   : > { %v6983_v59 = vld [vmem:[%s7455_s23 + $0xe2c] sm:$0xf0]  ;;  %3890 = vmatmul.bf16.vlgmr.msrb.gmra.mxu0 %v7648_v38  ;;  %v5393_v55 = vld [vmem:[%s7455_s23 + $0x730] sm:$0xf0]  ;;  %v3684_v63 = vadd.f32 %v3683_v57, %v3671_v46 }
 0x235   : > { %v6288_v12 = vor.u32 %v6983_v59, %v6287_v58  ;;  %3915 = vmatpush.bf16.msrb.mxu2 %v6032_v7  ;;  %3934 = vmatpush.bf16.msra.mxu0 %v4724_v13  ;;  %v4884_v58 = vor.u32 %v6627_v50, %v4881_v52  ;;  %v5140_v59 = vor.u32 %v6691_v53, %v5137_v54  ;;  %v6683_v56 = vld [vmem:[%s7455_s23 + $0x4d4] sm:$0xf] }
 0x236   : > { %3903 = vmatmul.bf16.vlgmr.msrb.gmra.mxu1 %v7652_v41  ;;  %v5396_v2 = vor.u32 %v6755_v43, %v5393_v55  ;;  %v5105_v6 = vld [vmem:[%s7455_s23 + $0x4f0] sm:$0xf0]  ;;  %v3697_v9 = vadd.f32 %v3696_v1, %v3684_v63  ;;  %v4852_v13 = vor.u32 %v6619_v32, %v4849_v3 }
 0x237   : > { %3928 = vmatpush.bf16.msrb.mxu3 %v6288_v12  ;;  %3947 = vmatpush.bf16.msra.mxu1 %v4980_v14  ;;  %v6747_v7 = vld [vmem:[%s7455_s23 + $0x6d4] sm:$0xf]  ;;  %v4596_v12 = vor.u32 %v6555_v60, %v4593_v61  ;;  %v5108_v14 = vor.u32 %v6683_v56, %v5105_v6  ;;  %v3724_v61 = vpop.f32.mrf.mxu3 }
 0x238   : > { %3916 = vmatmul.bf16.vlgmr.msrb.gmra.mxu2 %v7644_v35  ;;  %v5361_v8 = vld [vmem:[%s7455_s23 + $0x6f0] sm:$0xf0]  ;;  %v3710_v29 = vadd.f32 %v3709_v20, %v3697_v9 }
 0x239   : > { %3960 = vmatpush.bf16.msra.mxu2 %v5236_v15  ;;  %3935 = vmatpush.bf16.msra.mxu0 %v4692_v62  ;;  %v6547_v15 = vld [vmem:[%s7455_s23 + $0x94] sm:$0xf]  ;;  %v5364_v22 = vor.u32 %v6747_v7, %v5361_v8  ;;  %v3698_v26 = vpop.f32.mrf.mxu1 }
 0x23a   : > { %3929 = vmatmul.bf16.vlgmr.msrb.gmra.mxu3 %v7650_v39  ;;  %v4561_v16 = vld [vmem:[%s7455_s23 + $0xb0] sm:$0xf0]  ;;  %v3723_v34 = vadd.f32 %v3722_v30, %v3710_v29 }
 0x23b   : > { %3973 = vmatpush.bf16.msra.mxu3 %v5492_v23  ;;  %3948 = vmatpush.bf16.msra.mxu1 %v4948_v4  ;;  %v6611_v19 = vld [vmem:[%s7455_s23 + $0x294] sm:$0xf]  ;;  %v840_v4 = vld [vmem:[#allocation2 + $0x18] sm:$0xff]  ;;  %v3685_v36 = vpop.f32.mrf.mxu0 }
 0x23c   : > { %v4817_v23 = vld [vmem:[%s7455_s23 + $0x2b0] sm:$0xf0]  ;;  %v4248_v21 = vadd.f32 %v3723_v34, %v840_v4 }
 0x23d   : > { %3961 = vmatpush.bf16.msra.mxu2 %v5204_v33  ;;  %3936 = vmatpush.bf16.msra.mxu0 %v4660_v45  ;;  %v6675_v24 = vld [vmem:[%s7455_s23 + $0x494] sm:$0xf]  ;;  %v4564_v33 = vor.u32 %v6547_v15, %v4561_v16  ;;  %v4820_v5 = vor.u32 %v6611_v19, %v4817_v23 }
 0x23e   : > { %v5073_v25 = vld [vmem:[%s7455_s23 + $0x4b0] sm:$0xf0]  ;;  %4256 = vst [vmem:[#allocation2 + $0x18] sm:$0xff] %v4248_v21 }
 0x23f   : > { %3974 = vmatpush.bf16.msra.mxu3 %v5460_v37  ;;  %3949 = vmatpush.bf16.msra.mxu1 %v4916_v47  ;;  %v6739_v31 = vld [vmem:[%s7455_s23 + $0x694] sm:$0xf]  ;;  %v5076_v11 = vor.u32 %v6675_v24, %v5073_v25 }
 0x240   : > { %v5329_v62 = vld [vmem:[%s7455_s23 + $0x6b0] sm:$0xf0] }
 0x241   : > { %3962 = vmatpush.bf16.msra.mxu2 %v5172_v48  ;;  %3937 = vmatpush.bf16.msra.mxu0 %v4628_v28  ;;  %v6539_v37 = vld [vmem:[%s7455_s23 + $0x54] sm:$0xf]  ;;  %v5332_v42 = vor.u32 %v6739_v31, %v5329_v62  ;;  %v3711_v28 = vpop.f32.mrf.mxu2  ;;  %v8324_v61 = vpop.f32.mrf.mxu1 }
 0x242   : > { %v4529_v40 = vld [vmem:[%s7455_s23 + $0x70] sm:$0xf0] }
 0x243   : > { %3975 = vmatpush.bf16.msra.mxu3 %v5428_v51  ;;  %3950 = vmatpush.bf16.msra.mxu1 %v4884_v58  ;;  %v6603_v44 = vld [vmem:[%s7455_s23 + $0x254] sm:$0xf]  ;;  %v4532_v27 = vor.u32 %v6539_v37, %v4529_v40 }
 0x244   : > { %v4785_v45 = vld [vmem:[%s7455_s23 + $0x270] sm:$0xf0] }
 0x245   : > { %3963 = vmatpush.bf16.msra.mxu2 %v5140_v59  ;;  %3938 = vmatpush.bf16.msra.mxu0 %v4596_v12  ;;  %v6667_v46 = vld [vmem:[%s7455_s23 + $0x454] sm:$0xf]  ;;  %v4788_v52 = vor.u32 %v6603_v44, %v4785_v45 }
 0x246   : > { %v5041_v47 = vld [vmem:[%s7455_s23 + $0x470] sm:$0xf0] }
 0x247   : > { %3976 = vmatpush.bf16.msra.mxu3 %v5396_v2  ;;  %3951 = vmatpush.bf16.msra.mxu1 %v4852_v13  ;;  %v6731_v48 = vld [vmem:[%s7455_s23 + $0x654] sm:$0xf]  ;;  %v5044_v53 = vor.u32 %v6667_v46, %v5041_v47 }
 0x248   : > { %v5297_v49 = vld [vmem:[%s7455_s23 + $0x670] sm:$0xf0] }
 0x249   : > { %3964 = vmatpush.bf16.msra.mxu2 %v5108_v14  ;;  %3939 = vmatpush.bf16.msra.mxu0 %v4564_v33  ;;  %v6531_v50 = vld [vmem:[%s7455_s23 + $0x14] sm:$0xf]  ;;  %v5300_v57 = vor.u32 %v6731_v48, %v5297_v49 }
 0x24a   : > { %v4497_v51 = vld [vmem:[%s7455_s23 + $0x30] sm:$0xf0] }
 0x24b   : > { %3977 = vmatpush.bf16.msra.mxu3 %v5364_v22  ;;  %3952 = vmatpush.bf16.msra.mxu1 %v4820_v5  ;;  %v6595_v54 = vld [vmem:[%s7455_s23 + $0x214] sm:$0xf]  ;;  %v4500_v2 = vor.u32 %v6531_v50, %v4497_v51 }
 0x24c   : > { %v4753_v43 = vld [vmem:[%s7455_s23 + $0x230] sm:$0xf0] }
 0x24d   : > { %3965 = vmatpush.bf16.msra.mxu2 %v5076_v11  ;;  %v6659_v55 = vld [vmem:[%s7455_s23 + $0x414] sm:$0xf]  ;;  %3940 = vmatpush.bf16.msra.mxu0 %v4532_v27  ;;  %v4756_v7 = vor.u32 %v6595_v54, %v4753_v43 }
 0x24e   : > { %v5009_v58 = vld [vmem:[%s7455_s23 + $0x430] sm:$0xf0] }
 0x24f   : > { %3978 = vmatpush.bf16.msra.mxu3 %v5332_v42  ;;  %v6723_v59 = vld [vmem:[%s7455_s23 + $0x614] sm:$0xf]  ;;  %3953 = vmatpush.bf16.msra.mxu1 %v4788_v52  ;;  %v5012_v8 = vor.u32 %v6659_v55, %v5009_v58  ;;  %v8319_v55 = vpop.f32.mrf.mxu0 }
 0x250   : > { %v5265_v60 = vld [vmem:[%s7455_s23 + $0x630] sm:$0xf0] }
 0x251   : > { %v6843_v32 = vld [vmem:[%s7455_s23 + $0x9d4] sm:$0xf]  ;;  %3966 = vmatpush.bf16.msra.mxu2 %v5044_v53  ;;  %v5268_v13 = vor.u32 %v6723_v59, %v5265_v60  ;;  %3941 = vmatpush.bf16.msra.mxu0 %v4500_v2 }
 0x252   : > { %v5745_v63 = vld [vmem:[%s7455_s23 + $0x9f0] sm:$0xf0] }
 0x253   : > { %v6907_v1 = vld [vmem:[%s7455_s23 + $0xbd4] sm:$0xf]  ;;  %3979 = vmatpush.bf16.msra.mxu3 %v5300_v57  ;;  %v5748_v14 = vor.u32 %v6843_v32, %v5745_v63  ;;  %3954 = vmatpush.bf16.msra.mxu1 %v4756_v7 }
 0x254   : > { %v6001_v3 = vld [vmem:[%s7455_s23 + $0xbf0] sm:$0xf0]  ;;  %3942 = vmatmul.bf16.vlgmr.msra.gmra.mxu0 %v7578_v10 }
 0x255   : > { %v6971_v56 = vld [vmem:[%s7455_s23 + $0xdd4] sm:$0xf]  ;;  %v6004_v15 = vor.u32 %v6907_v1, %v6001_v3  ;;  %3967 = vmatpush.bf16.msra.mxu2 %v5012_v8  ;;  %3986 = vmatpush.bf16.msrb.mxu0 %v5748_v14  ;;  %v8334_v14 = vpop.f32.mrf.mxu2 }
 0x256   : > { %v6257_v6 = vld [vmem:[%s7455_s23 + $0xdf0] sm:$0xf0]  ;;  %3955 = vmatmul.bf16.vlgmr.msra.gmra.mxu1 %v7587_v18 }
 0x257   : > { %v7035_v9 = vld [vmem:[%s7455_s23 + $0xfd4] sm:$0xf]  ;;  %v6260_v16 = vor.u32 %v6971_v56, %v6257_v6  ;;  %3980 = vmatpush.bf16.msra.mxu3 %v5268_v13  ;;  %3999 = vmatpush.bf16.msrb.mxu1 %v6004_v15 }
 0x258   : > { %v6513_v12 = vld [vmem:[%s7455_s23 + $0xff0] sm:$0xf0]  ;;  %3968 = vmatmul.bf16.vlgmr.msra.gmra.mxu2 %v7569_v0 }
 0x259   : > { %v6835_v19 = vld [vmem:[%s7455_s23 + $0x994] sm:$0xf]  ;;  %v6516_v23 = vor.u32 %v7035_v9, %v6513_v12  ;;  %4012 = vmatpush.bf16.msrb.mxu2 %v6260_v16 }
 0x25a   : > { %v5713_v20 = vld [vmem:[%s7455_s23 + $0x9b0] sm:$0xf0]  ;;  %3981 = vmatmul.bf16.vlgmr.msra.gmra.mxu3 %v7585_v17 }
 0x25b   : > { %v6899_v22 = vld [vmem:[%s7455_s23 + $0xb94] sm:$0xf]  ;;  %v5716_v62 = vor.u32 %v6835_v19, %v5713_v20  ;;  %4025 = vmatpush.bf16.msrb.mxu3 %v6516_v23 }
 0x25c   : > { %v5969_v24 = vld [vmem:[%s7455_s23 + $0xbb0] sm:$0xf0] }
 0x25d   : > { %v6963_v25 = vld [vmem:[%s7455_s23 + $0xd94] sm:$0xf]  ;;  %v5972_v4 = vor.u32 %v6899_v22, %v5969_v24  ;;  %3987 = vmatpush.bf16.msrb.mxu0 %v5716_v62  ;;  %v8339_v22 = vpop.f32.mrf.mxu3 }
 0x25e   : > { %v6225_v29 = vld [vmem:[%s7455_s23 + $0xdb0] sm:$0xf0] }
 0x25f   : > { %v7027_v30 = vld [vmem:[%s7455_s23 + $0xf94] sm:$0xf]  ;;  %v6228_v33 = vor.u32 %v6963_v25, %v6225_v29  ;;  %4000 = vmatpush.bf16.msrb.mxu1 %v5972_v4  ;;  %v3737_v29 = vpop.f32.mrf.mxu0 }
 0x260   : > { %v6481_v31 = vld [vmem:[%s7455_s23 + $0xfb0] sm:$0xf0] }
 0x261   : > { %v6827_v34 = vld [vmem:[%s7455_s23 + $0x954] sm:$0xf]  ;;  %v6484_v11 = vor.u32 %v7027_v30, %v6481_v31  ;;  %4013 = vmatpush.bf16.msrb.mxu2 %v6228_v33 }
 0x262   : > { %v5681_v36 = vld [vmem:[%s7455_s23 + $0x970] sm:$0xf0] }
 0x263   : > { %v6891_v5 = vld [vmem:[%s7455_s23 + $0xb54] sm:$0xf]  ;;  %v5684_v21 = vor.u32 %v6827_v34, %v5681_v36  ;;  %4026 = vmatpush.bf16.msrb.mxu3 %v6484_v11  ;;  %v3750_v34 = vpop.f32.mrf.mxu1 }
 0x264   : > { %v5937_v37 = vld [vmem:[%s7455_s23 + $0xb70] sm:$0xf0]  ;;  %v6640_v34 = vld [vmem:[%s7455_s23 + $0x374] sm:$0xf0] }
 0x265   : > { %v6955_v40 = vld [vmem:[%s7455_s23 + $0xd54] sm:$0xf]  ;;  %v5940_v45 = vor.u32 %v6891_v5, %v5937_v37  ;;  %3988 = vmatpush.bf16.msrb.mxu0 %v5684_v21 }
 0x266   : > { %v6193_v44 = vld [vmem:[%s7455_s23 + $0xd70] sm:$0xf0] }
 0x267   : > { %v7019_v26 = vld [vmem:[%s7455_s23 + $0xf54] sm:$0xf]  ;;  %v6196_v46 = vor.u32 %v6955_v40, %v6193_v44  ;;  %4001 = vmatpush.bf16.msrb.mxu1 %v5940_v45 }
 0x268   : > { %v6449_v42 = vld [vmem:[%s7455_s23 + $0xf70] sm:$0xf0] }
 0x269   : > { %v6819_v47 = vld [vmem:[%s7455_s23 + $0x914] sm:$0xf]  ;;  %v6452_v27 = vor.u32 %v7019_v26, %v6449_v42  ;;  %4014 = vmatpush.bf16.msrb.mxu2 %v6196_v46 }
 0x26a   : > { %v5649_v48 = vld [vmem:[%s7455_s23 + $0x930] sm:$0xf0] }
 0x26b   : > { %v6883_v49 = vld [vmem:[%s7455_s23 + $0xb14] sm:$0xf]  ;;  %v5652_v43 = vor.u32 %v6819_v47, %v5649_v48  ;;  %4027 = vmatpush.bf16.msrb.mxu3 %v6452_v27  ;;  %v3763_v27 = vpop.f32.mrf.mxu2 }
 0x26c   : > { %v5905_v50 = vld [vmem:[%s7455_s23 + $0xb30] sm:$0xf0]  ;;  %v5399_v27 = vld [vmem:[%s7455_s23 + $0x718] sm:$0xf] }
 0x26d   : > { %v6947_v51 = vld [vmem:[%s7455_s23 + $0xd14] sm:$0xf]  ;;  %v5908_v28 = vor.u32 %v6883_v49, %v5905_v50  ;;  %3989 = vmatpush.bf16.msrb.mxu0 %v5652_v43  ;;  %v4727_v43 = vld [vmem:[%s7455_s23 + $0x1d8] sm:$0xf] }
 0x26e   : > { %v6161_v52 = vld [vmem:[%s7455_s23 + $0xd30] sm:$0xf0] }
 0x26f   : > { %v7011_v53 = vld [vmem:[%s7455_s23 + $0xf14] sm:$0xf]  ;;  %v6164_v57 = vor.u32 %v6947_v51, %v6161_v52  ;;  %4002 = vmatpush.bf16.msrb.mxu1 %v5908_v28  ;;  %v6592_v28 = vld [vmem:[%s7455_s23 + $0x1f4] sm:$0xf0] }
 0x270   : > { %v6417_v54 = vld [vmem:[%s7455_s23 + $0xf30] sm:$0xf0] }
 0x271   : > { %v6811_v58 = vld [vmem:[%s7455_s23 + $0x8d4] sm:$0xf]  ;;  %v6420_v32 = vor.u32 %v7011_v53, %v6417_v54  ;;  %4015 = vmatpush.bf16.msrb.mxu2 %v6164_v57  ;;  %v3776_v54 = vpop.f32.mrf.mxu3  ;;  %v4983_v57 = vld [vmem:[%s7455_s23 + $0x3d8] sm:$0xf] }
 0x272   : > { %v5617_v59 = vld [vmem:[%s7455_s23 + $0x8f0] sm:$0xf0]  ;;  %v4599_v54 = vld [vmem:[%s7455_s23 + $0xd8] sm:$0xf] }
 0x273   : > { %v6875_v60 = vld [vmem:[%s7455_s23 + $0xad4] sm:$0xf]  ;;  %v5620_v6 = vor.u32 %v6811_v58, %v5617_v59  ;;  %4028 = vmatpush.bf16.msrb.mxu3 %v6420_v32  ;;  %v6656_v59 = vld [vmem:[%s7455_s23 + $0x3f4] sm:$0xf0] }
 0x274   : > { %v5873_v63 = vld [vmem:[%s7455_s23 + $0xaf0] sm:$0xf0]  ;;  %v6720_v32 = vld [vmem:[%s7455_s23 + $0x5f4] sm:$0xf0] }
 0x275   : > { %v6939_v1 = vld [vmem:[%s7455_s23 + $0xcd4] sm:$0xf]  ;;  %v5876_v7 = vor.u32 %v6875_v60, %v5873_v63  ;;  %3990 = vmatpush.bf16.msrb.mxu0 %v5620_v6  ;;  %v5239_v60 = vld [vmem:[%s7455_s23 + $0x5d8] sm:$0xf]  ;;  %v4728_v6 = vor.u32 %v6592_v28, %v4727_v43 }
 0x276   : > { %v6129_v2 = vld [vmem:[%s7455_s23 + $0xcf0] sm:$0xf0]  ;;  %v6560_v43 = vld [vmem:[%s7455_s23 + $0xf4] sm:$0xf0] }
 0x277   : > { %v7003_v3 = vld [vmem:[%s7455_s23 + $0xed4] sm:$0xf]  ;;  %v6132_v8 = vor.u32 %v6939_v1, %v6129_v2  ;;  %4003 = vmatpush.bf16.msrb.mxu1 %v5876_v7  ;;  %v5495_v2 = vld [vmem:[%s7455_s23 + $0x7d8] sm:$0xf]  ;;  %v4984_v7 = vor.u32 %v6656_v59, %v4983_v57 }
 0x278   : > { %v6385_v56 = vld [vmem:[%s7455_s23 + $0xef0] sm:$0xf0]  ;;  %v4855_v28 = vld [vmem:[%s7455_s23 + $0x2d8] sm:$0xf] }
 0x279   : > { %v6803_v9 = vld [vmem:[%s7455_s23 + $0x894] sm:$0xf]  ;;  %v6388_v15 = vor.u32 %v7003_v3, %v6385_v56  ;;  %4016 = vmatpush.bf16.msrb.mxu2 %v6132_v8  ;;  %v6784_v3 = vld [vmem:[%s7455_s23 + $0x7f4] sm:$0xf0]  ;;  %v5240_v8 = vor.u32 %v6720_v32, %v5239_v60 }
 0x27a   : > { %v5585_v12 = vld [vmem:[%s7455_s23 + $0x8b0] sm:$0xf0]  ;;  %v6624_v60 = vld [vmem:[%s7455_s23 + $0x2f4] sm:$0xf0] }
 0x27b   : > { %v6867_v13 = vld [vmem:[%s7455_s23 + $0xa94] sm:$0xf]  ;;  %v5588_v25 = vor.u32 %v6803_v9, %v5585_v12  ;;  %4029 = vmatpush.bf16.msrb.mxu3 %v6388_v15  ;;  %v3749_v9 = vadd.f32 %v8324_v61, %v8319_v55  ;;  %v4695_v12 = vld [vmem:[%s7455_s23 + $0x198] sm:$0xf] }
 0x27c   : > { %v5841_v16 = vld [vmem:[%s7455_s23 + $0xab0] sm:$0xf0]  ;;  %v4951_v15 = vld [vmem:[%s7455_s23 + $0x398] sm:$0xf] }
 0x27d   : > { %v6931_v19 = vld [vmem:[%s7455_s23 + $0xc94] sm:$0xf]  ;;  %v5844_v30 = vor.u32 %v6867_v13, %v5841_v16  ;;  %3991 = vmatpush.bf16.msrb.mxu0 %v5588_v25  ;;  %v6584_v13 = vld [vmem:[%s7455_s23 + $0x1b4] sm:$0xf0]  ;;  %v5496_v16 = vor.u32 %v6784_v3, %v5495_v2 }
 0x27e   : > { %v6097_v20 = vld [vmem:[%s7455_s23 + $0xcb0] sm:$0xf0]  ;;  %v6776_v25 = vld [vmem:[%s7455_s23 + $0x7b4] sm:$0xf0]  ;;  %v4696_v55 = vor.u32 %v6584_v13, %v4695_v12  ;;  %v3813_v13 = vpop.f32.mrf.mxu2 }
 0x27f   : > { %v6995_v23 = vld [vmem:[%s7455_s23 + $0xe94] sm:$0xf]  ;;  %v6100_v31 = vor.u32 %v6931_v19, %v6097_v20  ;;  %4004 = vmatpush.bf16.msrb.mxu1 %v5844_v30  ;;  %v6648_v19 = vld [vmem:[%s7455_s23 + $0x3b4] sm:$0xf0]  ;;  %v3762_v30 = vadd.f32 %v8334_v14, %v3749_v9 }
 0x280   : > { %v6353_v24 = vld [vmem:[%s7455_s23 + $0xeb0] sm:$0xf0]  ;;  %v5207_v20 = vld [vmem:[%s7455_s23 + $0x598] sm:$0xf]  ;;  %v4952_v61 = vor.u32 %v6648_v19, %v4951_v15 }
 0x281   : > { %v6795_v62 = vld [vmem:[%s7455_s23 + $0x854] sm:$0xf]  ;;  %v6356_v36 = vor.u32 %v6995_v23, %v6353_v24  ;;  %4017 = vmatpush.bf16.msrb.mxu2 %v6100_v31  ;;  %v6712_v23 = vld [vmem:[%s7455_s23 + $0x5b4] sm:$0xf0] }
 0x282   : > { %v5553_v4 = vld [vmem:[%s7455_s23 + $0x870] sm:$0xf0]  ;;  %v5463_v24 = vld [vmem:[%s7455_s23 + $0x798] sm:$0xf]  ;;  %v5208_v29 = vor.u32 %v6712_v23, %v5207_v20 }
 0x283   : > { %v6859_v33 = vld [vmem:[%s7455_s23 + $0xa54] sm:$0xf]  ;;  %v5556_v26 = vor.u32 %v6795_v62, %v5553_v4  ;;  %4030 = vmatpush.bf16.msrb.mxu3 %v6356_v36  ;;  %v4663_v31 = vld [vmem:[%s7455_s23 + $0x158] sm:$0xf] }
 0x284   : > { %v5809_v5 = vld [vmem:[%s7455_s23 + $0xa70] sm:$0xf0]  ;;  %v6576_v62 = vld [vmem:[%s7455_s23 + $0x174] sm:$0xf0] }
 0x285   : > { %v6923_v11 = vld [vmem:[%s7455_s23 + $0xc54] sm:$0xf]  ;;  %v5812_v45 = vor.u32 %v6859_v33, %v5809_v5  ;;  %3992 = vmatpush.bf16.msrb.mxu0 %v5556_v26  ;;  %v4919_v4 = vld [vmem:[%s7455_s23 + $0x358] sm:$0xf]  ;;  %v5464_v33 = vor.u32 %v6776_v25, %v5463_v24  ;;  %v3826_v24 = vpop.f32.mrf.mxu3 }
 0x286   : > { %v6065_v37 = vld [vmem:[%s7455_s23 + $0xc70] sm:$0xf0]  ;;  %v5175_v36 = vld [vmem:[%s7455_s23 + $0x558] sm:$0xf] }
 0x287   : > { %v6987_v40 = vld [vmem:[%s7455_s23 + $0xe54] sm:$0xf]  ;;  %v6068_v46 = vor.u32 %v6923_v11, %v6065_v37  ;;  %4005 = vmatpush.bf16.msrb.mxu1 %v5812_v45  ;;  %v6704_v5 = vld [vmem:[%s7455_s23 + $0x574] sm:$0xf0]  ;;  %v4664_v37 = vor.u32 %v6576_v62, %v4663_v31 }
 0x288   : > { %v6321_v44 = vld [vmem:[%s7455_s23 + $0xe70] sm:$0xf0]  ;;  %v5431_v11 = vld [vmem:[%s7455_s23 + $0x758] sm:$0xf]  ;;  %v5176_v26 = vor.u32 %v6704_v5, %v5175_v36 }
 0x289   : > { %v6787_v42 = vld [vmem:[%s7455_s23 + $0x814] sm:$0xf]  ;;  %v6324_v50 = vor.u32 %v6987_v40, %v6321_v44  ;;  %4018 = vmatpush.bf16.msrb.mxu2 %v6068_v46  ;;  %v6768_v14 = vld [vmem:[%s7455_s23 + $0x774] sm:$0xf0]  ;;  %v3775_v40 = vadd.f32 %v8339_v22, %v3762_v30  ;;  %v4920_v44 = vor.u32 %v6640_v34, %v4919_v4 }
 0x28a   : > { %v5521_v21 = vld [vmem:[%s7455_s23 + $0x830] sm:$0xf0]  ;;  %v4887_v45 = vld [vmem:[%s7455_s23 + $0x318] sm:$0xf]  ;;  %v5432_v46 = vor.u32 %v6768_v14, %v5431_v11 }
 0x28b   : > { %v6851_v47 = vld [vmem:[%s7455_s23 + $0xa14] sm:$0xf]  ;;  %v5524_v58 = vor.u32 %v6787_v42, %v5521_v21  ;;  %4031 = vmatpush.bf16.msrb.mxu3 %v6324_v50  ;;  %v4631_v42 = vld [vmem:[%s7455_s23 + $0x118] sm:$0xf] }
 0x28c   : > { %v5777_v48 = vld [vmem:[%s7455_s23 + $0xa30] sm:$0xf0]  ;;  %v6568_v21 = vld [vmem:[%s7455_s23 + $0x134] sm:$0xf0] }
 0x28d   : > { %v6915_v49 = vld [vmem:[%s7455_s23 + $0xc14] sm:$0xf]  ;;  %v5780_v63 = vor.u32 %v6851_v47, %v5777_v48  ;;  %3993 = vmatpush.bf16.msrb.mxu0 %v5524_v58  ;;  %v6632_v47 = vld [vmem:[%s7455_s23 + $0x334] sm:$0xf0]  ;;  %v4632_v22 = vor.u32 %v6568_v21, %v4631_v42  ;;  %v3800_v58 = vpop.f32.mrf.mxu1 }
 0x28e   : > { %v6033_v51 = vld [vmem:[%s7455_s23 + $0xc30] sm:$0xf0]  ;;  %v5143_v48 = vld [vmem:[%s7455_s23 + $0x518] sm:$0xf] }
 0x28f   : > { %v6979_v52 = vld [vmem:[%s7455_s23 + $0xe14] sm:$0xf]  ;;  %v6036_v1 = vor.u32 %v6915_v49, %v6033_v51  ;;  %4006 = vmatpush.bf16.msrb.mxu1 %v5780_v63  ;;  %v6696_v49 = vld [vmem:[%s7455_s23 + $0x534] sm:$0xf0]  ;;  %v3787_v51 = vpop.f32.mrf.mxu0 }
 0x290   : > { %v6289_v53 = vld [vmem:[%s7455_s23 + $0xe30] sm:$0xf0]  ;;  %3994 = vmatmul.bf16.vlgmr.msrb.gmra.mxu0 %v7648_v38  ;;  %v6760_v50 = vld [vmem:[%s7455_s23 + $0x734] sm:$0xf0]  ;;  %v3788_v57 = vadd.f32 %v3787_v51, %v3775_v40 }
 0x291   : > { %v6292_v56 = vor.u32 %v6979_v52, %v6289_v53  ;;  %4019 = vmatpush.bf16.msrb.mxu2 %v6036_v1  ;;  %4038 = vmatpush.bf16.msra.mxu0 %v4728_v6  ;;  %v4888_v52 = vor.u32 %v6632_v47, %v4887_v45  ;;  %v5144_v53 = vor.u32 %v6696_v49, %v5143_v48  ;;  %v5111_v32 = vld [vmem:[%s7455_s23 + $0x4d8] sm:$0xf] }
 0x292   : > { %4007 = vmatmul.bf16.vlgmr.msrb.gmra.mxu1 %v7652_v41  ;;  %v5400_v59 = vor.u32 %v6760_v50, %v5399_v27  ;;  %v6688_v63 = vld [vmem:[%s7455_s23 + $0x4f4] sm:$0xf0]  ;;  %v3801_v3 = vadd.f32 %v3800_v58, %v3788_v57  ;;  %v4856_v6 = vor.u32 %v6624_v60, %v4855_v28 }
 0x293   : > { %4032 = vmatpush.bf16.msrb.mxu3 %v6292_v56  ;;  %4051 = vmatpush.bf16.msra.mxu1 %v4984_v7  ;;  %v5367_v1 = vld [vmem:[%s7455_s23 + $0x6d8] sm:$0xf]  ;;  %v4600_v56 = vor.u32 %v6560_v43, %v4599_v54  ;;  %v5112_v7 = vor.u32 %v6688_v63, %v5111_v32  ;;  %v3828_v43 = vpop.f32.mrf.mxu3 }
 0x294   : > { %4020 = vmatmul.bf16.vlgmr.msrb.gmra.mxu2 %v7644_v35  ;;  %v6752_v2 = vld [vmem:[%s7455_s23 + $0x6f4] sm:$0xf0]  ;;  %v3814_v23 = vadd.f32 %v3813_v13, %v3801_v3 }
 0x295   : > { %4064 = vmatpush.bf16.msra.mxu2 %v5240_v8  ;;  %4039 = vmatpush.bf16.msra.mxu0 %v4696_v55  ;;  %v4567_v8 = vld [vmem:[%s7455_s23 + $0x98] sm:$0xf]  ;;  %v5368_v15 = vor.u32 %v6752_v2, %v5367_v1  ;;  %v3802_v5 = vpop.f32.mrf.mxu1 }
 0x296   : > { %4033 = vmatmul.bf16.vlgmr.msrb.gmra.mxu3 %v7650_v39  ;;  %v6552_v9 = vld [vmem:[%s7455_s23 + $0xb4] sm:$0xf0]  ;;  %v3827_v30 = vadd.f32 %v3826_v24, %v3814_v23 }
 0x297   : > { %4077 = vmatpush.bf16.msra.mxu3 %v5496_v16  ;;  %4052 = vmatpush.bf16.msra.mxu1 %v4952_v61  ;;  %v4823_v12 = vld [vmem:[%s7455_s23 + $0x298] sm:$0xf]  ;;  %v841_v61 = vld [vmem:[#allocation2 + $0x10] sm:$0xff]  ;;  %v3789_v31 = vpop.f32.mrf.mxu0 }
 0x298   : > { %v6616_v16 = vld [vmem:[%s7455_s23 + $0x2b4] sm:$0xf0]  ;;  %v4249_v14 = vadd.f32 %v3827_v30, %v841_v61 }
 0x299   : > { %4065 = vmatpush.bf16.msra.mxu2 %v5208_v29  ;;  %4040 = vmatpush.bf16.msra.mxu0 %v4664_v37  ;;  %v5079_v19 = vld [vmem:[%s7455_s23 + $0x498] sm:$0xf]  ;;  %v4568_v29 = vor.u32 %v6552_v9, %v4567_v8  ;;  %v4824_v62 = vor.u32 %v6616_v16, %v4823_v12 }
 0x29a   : > { %v6680_v20 = vld [vmem:[%s7455_s23 + $0x4b4] sm:$0xf0]  ;;  %4257 = vst [vmem:[#allocation2 + $0x10] sm:$0xff] %v4249_v14 }
 0x29b   : > { %4078 = vmatpush.bf16.msra.mxu3 %v5464_v33  ;;  %4053 = vmatpush.bf16.msra.mxu1 %v4920_v44  ;;  %v5335_v25 = vld [vmem:[%s7455_s23 + $0x698] sm:$0xf]  ;;  %v5080_v4 = vor.u32 %v6680_v20, %v5079_v19 }
 0x29c   : > { %v6744_v55 = vld [vmem:[%s7455_s23 + $0x6b4] sm:$0xf0] }
 0x29d   : > { %4066 = vmatpush.bf16.msra.mxu2 %v5176_v26  ;;  %4041 = vmatpush.bf16.msra.mxu0 %v4632_v22  ;;  %v4535_v33 = vld [vmem:[%s7455_s23 + $0x58] sm:$0xf]  ;;  %v5336_v11 = vor.u32 %v6744_v55, %v5335_v25  ;;  %v3815_v22 = vpop.f32.mrf.mxu2  ;;  %v8472_v43 = vpop.f32.mrf.mxu1 }
 0x29e   : > { %v6544_v34 = vld [vmem:[%s7455_s23 + $0x74] sm:$0xf0] }
 0x29f   : > { %4079 = vmatpush.bf16.msra.mxu3 %v5432_v46  ;;  %4054 = vmatpush.bf16.msra.mxu1 %v4888_v52  ;;  %v4791_v36 = vld [vmem:[%s7455_s23 + $0x258] sm:$0xf]  ;;  %v4536_v21 = vor.u32 %v6544_v34, %v4535_v33 }
 0x2a0   : > { %v6608_v37 = vld [vmem:[%s7455_s23 + $0x274] sm:$0xf0] }
 0x2a1   : > { %4067 = vmatpush.bf16.msra.mxu2 %v5144_v53  ;;  %4042 = vmatpush.bf16.msra.mxu0 %v4600_v56  ;;  %v5047_v40 = vld [vmem:[%s7455_s23 + $0x458] sm:$0xf]  ;;  %v4792_v47 = vor.u32 %v6608_v37, %v4791_v36 }
 0x2a2   : > { %v6672_v44 = vld [vmem:[%s7455_s23 + $0x474] sm:$0xf0] }
 0x2a3   : > { %4080 = vmatpush.bf16.msra.mxu3 %v5400_v59  ;;  %4055 = vmatpush.bf16.msra.mxu1 %v4856_v6  ;;  %v5303_v26 = vld [vmem:[%s7455_s23 + $0x658] sm:$0xf]  ;;  %v5048_v48 = vor.u32 %v6672_v44, %v5047_v40 }
 0x2a4   : > { %v6736_v42 = vld [vmem:[%s7455_s23 + $0x674] sm:$0xf0] }
 0x2a5   : > { %4068 = vmatpush.bf16.msra.mxu2 %v5112_v7  ;;  %4043 = vmatpush.bf16.msra.mxu0 %v4568_v29  ;;  %v4503_v45 = vld [vmem:[%s7455_s23 + $0x18] sm:$0xf]  ;;  %v5304_v51 = vor.u32 %v6736_v42, %v5303_v26 }
 0x2a6   : > { %v6536_v46 = vld [vmem:[%s7455_s23 + $0x34] sm:$0xf0] }
 0x2a7   : > { %4081 = vmatpush.bf16.msra.mxu3 %v5368_v15  ;;  %4056 = vmatpush.bf16.msra.mxu1 %v4824_v62  ;;  %v4759_v49 = vld [vmem:[%s7455_s23 + $0x218] sm:$0xf]  ;;  %v4504_v59 = vor.u32 %v6536_v46, %v4503_v45 }
 0x2a8   : > { %v6600_v27 = vld [vmem:[%s7455_s23 + $0x234] sm:$0xf0] }
 0x2a9   : > { %4069 = vmatpush.bf16.msra.mxu2 %v5080_v4  ;;  %v5015_v50 = vld [vmem:[%s7455_s23 + $0x418] sm:$0xf]  ;;  %4044 = vmatpush.bf16.msra.mxu0 %v4536_v21  ;;  %v4760_v1 = vor.u32 %v6600_v27, %v4759_v49 }
 0x2aa   : > { %v6664_v52 = vld [vmem:[%s7455_s23 + $0x434] sm:$0xf0] }
 0x2ab   : > { %4082 = vmatpush.bf16.msra.mxu3 %v5336_v11  ;;  %v5271_v53 = vld [vmem:[%s7455_s23 + $0x618] sm:$0xf]  ;;  %4057 = vmatpush.bf16.msra.mxu1 %v4792_v47  ;;  %v5016_v2 = vor.u32 %v6664_v52, %v5015_v50  ;;  %v8467_v50 = vpop.f32.mrf.mxu0 }
 0x2ac   : > { %v6728_v54 = vld [vmem:[%s7455_s23 + $0x634] sm:$0xf0] }
 0x2ad   : > { %v5751_v28 = vld [vmem:[%s7455_s23 + $0x9d8] sm:$0xf]  ;;  %4070 = vmatpush.bf16.msra.mxu2 %v5048_v48  ;;  %v5272_v6 = vor.u32 %v6728_v54, %v5271_v53  ;;  %4045 = vmatpush.bf16.msra.mxu0 %v4504_v59 }
 0x2ae   : > { %v6848_v57 = vld [vmem:[%s7455_s23 + $0x9f4] sm:$0xf0] }
 0x2af   : > { %v6007_v58 = vld [vmem:[%s7455_s23 + $0xbd8] sm:$0xf]  ;;  %4083 = vmatpush.bf16.msra.mxu3 %v5304_v51  ;;  %v5752_v7 = vor.u32 %v6848_v57, %v5751_v28  ;;  %4058 = vmatpush.bf16.msra.mxu1 %v4760_v1 }
 0x2b0   : > { %v6912_v60 = vld [vmem:[%s7455_s23 + $0xbf4] sm:$0xf0]  ;;  %4046 = vmatmul.bf16.vlgmr.msra.gmra.mxu0 %v7578_v10 }
 0x2b1   : > { %v6263_v32 = vld [vmem:[%s7455_s23 + $0xdd8] sm:$0xf]  ;;  %v6008_v8 = vor.u32 %v6912_v60, %v6007_v58  ;;  %4071 = vmatpush.bf16.msra.mxu2 %v5016_v2  ;;  %4090 = vmatpush.bf16.msrb.mxu0 %v5752_v7  ;;  %v8482_v7 = vpop.f32.mrf.mxu2 }
 0x2b2   : > { %v6976_v63 = vld [vmem:[%s7455_s23 + $0xdf4] sm:$0xf0]  ;;  %4059 = vmatmul.bf16.vlgmr.msra.gmra.mxu1 %v7587_v18 }
 0x2b3   : > { %v6519_v3 = vld [vmem:[%s7455_s23 + $0xfd8] sm:$0xf]  ;;  %v6264_v9 = vor.u32 %v6976_v63, %v6263_v32  ;;  %4084 = vmatpush.bf16.msra.mxu3 %v5272_v6  ;;  %4103 = vmatpush.bf16.msrb.mxu1 %v6008_v8 }
 0x2b4   : > { %v7040_v56 = vld [vmem:[%s7455_s23 + $0xff4] sm:$0xf0]  ;;  %4072 = vmatmul.bf16.vlgmr.msra.gmra.mxu2 %v7569_v0 }
 0x2b5   : > { %v5719_v12 = vld [vmem:[%s7455_s23 + $0x998] sm:$0xf]  ;;  %v6520_v16 = vor.u32 %v7040_v56, %v6519_v3  ;;  %4116 = vmatpush.bf16.msrb.mxu2 %v6264_v9 }
 0x2b6   : > { %v6840_v13 = vld [vmem:[%s7455_s23 + $0x9b4] sm:$0xf0]  ;;  %4085 = vmatmul.bf16.vlgmr.msra.gmra.mxu3 %v7585_v17 }
 0x2b7   : > { %v5975_v15 = vld [vmem:[%s7455_s23 + $0xb98] sm:$0xf]  ;;  %v5720_v55 = vor.u32 %v6840_v13, %v5719_v12  ;;  %4129 = vmatpush.bf16.msrb.mxu3 %v6520_v16 }
 0x2b8   : > { %v6904_v19 = vld [vmem:[%s7455_s23 + $0xbb4] sm:$0xf0] }
 0x2b9   : > { %v6231_v20 = vld [vmem:[%s7455_s23 + $0xd98] sm:$0xf]  ;;  %v5976_v61 = vor.u32 %v6904_v19, %v5975_v15  ;;  %4091 = vmatpush.bf16.msrb.mxu0 %v5720_v55  ;;  %v8487_v15 = vpop.f32.mrf.mxu3 }
 0x2ba   : > { %v6968_v23 = vld [vmem:[%s7455_s23 + $0xdb4] sm:$0xf0] }
 0x2bb   : > { %v6487_v24 = vld [vmem:[%s7455_s23 + $0xf98] sm:$0xf]  ;;  %v6232_v29 = vor.u32 %v6968_v23, %v6231_v20  ;;  %4104 = vmatpush.bf16.msrb.mxu1 %v5976_v61  ;;  %v3841_v23 = vpop.f32.mrf.mxu0 }
 0x2bc   : > { %v7032_v25 = vld [vmem:[%s7455_s23 + $0xfb4] sm:$0xf0] }
 0x2bd   : > { %v5687_v30 = vld [vmem:[%s7455_s23 + $0x958] sm:$0xf]  ;;  %v6488_v4 = vor.u32 %v7032_v25, %v6487_v24  ;;  %4117 = vmatpush.bf16.msrb.mxu2 %v6232_v29 }
 0x2be   : > { %v6832_v31 = vld [vmem:[%s7455_s23 + $0x974] sm:$0xf0] }
 0x2bf   : > { %v5943_v62 = vld [vmem:[%s7455_s23 + $0xb58] sm:$0xf]  ;;  %v5688_v14 = vor.u32 %v6832_v31, %v5687_v30  ;;  %4130 = vmatpush.bf16.msrb.mxu3 %v6488_v4  ;;  %v3854_v30 = vpop.f32.mrf.mxu1 }
 0x2c0   : > { %v6896_v33 = vld [vmem:[%s7455_s23 + $0xb74] sm:$0xf0]  ;;  %v4921_v30 = vld [vmem:[%s7455_s23 + $0x378] sm:$0xf0] }
 0x2c1   : > { %v6199_v34 = vld [vmem:[%s7455_s23 + $0xd58] sm:$0xf]  ;;  %v5944_v37 = vor.u32 %v6896_v33, %v5943_v62  ;;  %4092 = vmatpush.bf16.msrb.mxu0 %v5688_v14 }
 0x2c2   : > { %v6960_v36 = vld [vmem:[%s7455_s23 + $0xd74] sm:$0xf0] }
 0x2c3   : > { %v6455_v5 = vld [vmem:[%s7455_s23 + $0xf58] sm:$0xf]  ;;  %v6200_v40 = vor.u32 %v6960_v36, %v6199_v34  ;;  %4105 = vmatpush.bf16.msrb.mxu1 %v5944_v37 }
 0x2c4   : > { %v7024_v11 = vld [vmem:[%s7455_s23 + $0xf74] sm:$0xf0] }
 0x2c5   : > { %v5655_v44 = vld [vmem:[%s7455_s23 + $0x918] sm:$0xf]  ;;  %v6456_v21 = vor.u32 %v7024_v11, %v6455_v5  ;;  %4118 = vmatpush.bf16.msrb.mxu2 %v6200_v40 }
 0x2c6   : > { %v6824_v26 = vld [vmem:[%s7455_s23 + $0x934] sm:$0xf0] }
 0x2c7   : > { %v5911_v42 = vld [vmem:[%s7455_s23 + $0xb18] sm:$0xf]  ;;  %v5656_v27 = vor.u32 %v6824_v26, %v5655_v44  ;;  %4131 = vmatpush.bf16.msrb.mxu3 %v6456_v21  ;;  %v3867_v21 = vpop.f32.mrf.mxu2 }
 0x2c8   : > { %v6888_v45 = vld [vmem:[%s7455_s23 + $0xb34] sm:$0xf0]  ;;  %v6756_v21 = vld [vmem:[%s7455_s23 + $0x71c] sm:$0xf] }
 0x2c9   : > { %v6167_v46 = vld [vmem:[%s7455_s23 + $0xd18] sm:$0xf]  ;;  %v5912_v22 = vor.u32 %v6888_v45, %v5911_v42  ;;  %4093 = vmatpush.bf16.msrb.mxu0 %v5656_v27  ;;  %v6588_v27 = vld [vmem:[%s7455_s23 + $0x1dc] sm:$0xf] }
 0x2ca   : > { %v6952_v47 = vld [vmem:[%s7455_s23 + $0xd34] sm:$0xf0] }
 0x2cb   : > { %v6423_v48 = vld [vmem:[%s7455_s23 + $0xf18] sm:$0xf]  ;;  %v6168_v51 = vor.u32 %v6952_v47, %v6167_v46  ;;  %4106 = vmatpush.bf16.msrb.mxu1 %v5912_v22  ;;  %v4729_v22 = vld [vmem:[%s7455_s23 + $0x1f8] sm:$0xf0] }
 0x2cc   : > { %v7016_v49 = vld [vmem:[%s7455_s23 + $0xf34] sm:$0xf0] }
 0x2cd   : > { %v5623_v52 = vld [vmem:[%s7455_s23 + $0x8d8] sm:$0xf]  ;;  %v6424_v28 = vor.u32 %v7016_v49, %v6423_v48  ;;  %4119 = vmatpush.bf16.msrb.mxu2 %v6168_v51  ;;  %v3880_v49 = vpop.f32.mrf.mxu3  ;;  %v6652_v51 = vld [vmem:[%s7455_s23 + $0x3dc] sm:$0xf] }
 0x2ce   : > { %v6816_v53 = vld [vmem:[%s7455_s23 + $0x8f4] sm:$0xf0]  ;;  %v6556_v49 = vld [vmem:[%s7455_s23 + $0xdc] sm:$0xf] }
 0x2cf   : > { %v5879_v54 = vld [vmem:[%s7455_s23 + $0xad8] sm:$0xf]  ;;  %v5624_v63 = vor.u32 %v6816_v53, %v5623_v52  ;;  %4132 = vmatpush.bf16.msrb.mxu3 %v6424_v28  ;;  %v4985_v53 = vld [vmem:[%s7455_s23 + $0x3f8] sm:$0xf0] }
 0x2d0   : > { %v6880_v57 = vld [vmem:[%s7455_s23 + $0xaf4] sm:$0xf0]  ;;  %v5241_v28 = vld [vmem:[%s7455_s23 + $0x5f8] sm:$0xf0] }
 0x2d1   : > { %v6135_v58 = vld [vmem:[%s7455_s23 + $0xcd8] sm:$0xf]  ;;  %v5880_v1 = vor.u32 %v6880_v57, %v5879_v54  ;;  %4094 = vmatpush.bf16.msrb.mxu0 %v5624_v63  ;;  %v6716_v54 = vld [vmem:[%s7455_s23 + $0x5dc] sm:$0xf]  ;;  %v4732_v63 = vor.u32 %v6588_v27, %v4729_v22 }
 0x2d2   : > { %v6944_v59 = vld [vmem:[%s7455_s23 + $0xcf4] sm:$0xf0]  ;;  %v4601_v27 = vld [vmem:[%s7455_s23 + $0xf8] sm:$0xf0] }
 0x2d3   : > { %v6391_v60 = vld [vmem:[%s7455_s23 + $0xed8] sm:$0xf]  ;;  %v6136_v2 = vor.u32 %v6944_v59, %v6135_v58  ;;  %4107 = vmatpush.bf16.msrb.mxu1 %v5880_v1  ;;  %v6780_v59 = vld [vmem:[%s7455_s23 + $0x7dc] sm:$0xf]  ;;  %v4988_v1 = vor.u32 %v6652_v51, %v4985_v53 }
 0x2d4   : > { %v7008_v32 = vld [vmem:[%s7455_s23 + $0xef4] sm:$0xf0]  ;;  %v6620_v22 = vld [vmem:[%s7455_s23 + $0x2dc] sm:$0xf] }
 0x2d5   : > { %v5591_v3 = vld [vmem:[%s7455_s23 + $0x898] sm:$0xf]  ;;  %v6392_v8 = vor.u32 %v7008_v32, %v6391_v60  ;;  %4120 = vmatpush.bf16.msrb.mxu2 %v6136_v2  ;;  %v5497_v60 = vld [vmem:[%s7455_s23 + $0x7f8] sm:$0xf0]  ;;  %v5244_v2 = vor.u32 %v6716_v54, %v5241_v28 }
 0x2d6   : > { %v6808_v56 = vld [vmem:[%s7455_s23 + $0x8b4] sm:$0xf0]  ;;  %v4857_v54 = vld [vmem:[%s7455_s23 + $0x2f8] sm:$0xf0] }
 0x2d7   : > { %v5847_v6 = vld [vmem:[%s7455_s23 + $0xa98] sm:$0xf]  ;;  %v5592_v20 = vor.u32 %v6808_v56, %v5591_v3  ;;  %4133 = vmatpush.bf16.msrb.mxu3 %v6392_v8  ;;  %v3853_v3 = vadd.f32 %v8472_v43, %v8467_v50  ;;  %v6580_v56 = vld [vmem:[%s7455_s23 + $0x19c] sm:$0xf] }
 0x2d8   : > { %v6872_v9 = vld [vmem:[%s7455_s23 + $0xab4] sm:$0xf0]  ;;  %v6644_v8 = vld [vmem:[%s7455_s23 + $0x39c] sm:$0xf] }
 0x2d9   : > { %v6103_v12 = vld [vmem:[%s7455_s23 + $0xc98] sm:$0xf]  ;;  %v5848_v24 = vor.u32 %v6872_v9, %v5847_v6  ;;  %4095 = vmatpush.bf16.msrb.mxu0 %v5592_v20  ;;  %v4697_v6 = vld [vmem:[%s7455_s23 + $0x1b8] sm:$0xf0]  ;;  %v5500_v9 = vor.u32 %v6780_v59, %v5497_v60 }
 0x2da   : > { %v6936_v13 = vld [vmem:[%s7455_s23 + $0xcb4] sm:$0xf0]  ;;  %v5465_v20 = vld [vmem:[%s7455_s23 + $0x7b8] sm:$0xf0]  ;;  %v4700_v50 = vor.u32 %v6580_v56, %v4697_v6  ;;  %v3917_v6 = vpop.f32.mrf.mxu2 }
 0x2db   : > { %v6359_v16 = vld [vmem:[%s7455_s23 + $0xe98] sm:$0xf]  ;;  %v6104_v25 = vor.u32 %v6936_v13, %v6103_v12  ;;  %4108 = vmatpush.bf16.msrb.mxu1 %v5848_v24  ;;  %v4953_v12 = vld [vmem:[%s7455_s23 + $0x3b8] sm:$0xf0]  ;;  %v3866_v24 = vadd.f32 %v8482_v7, %v3853_v3 }
 0x2dc   : > { %v7000_v19 = vld [vmem:[%s7455_s23 + $0xeb4] sm:$0xf0]  ;;  %v6708_v13 = vld [vmem:[%s7455_s23 + $0x59c] sm:$0xf]  ;;  %v4956_v43 = vor.u32 %v6644_v8, %v4953_v12 }
 0x2dd   : > { %v5559_v55 = vld [vmem:[%s7455_s23 + $0x858] sm:$0xf]  ;;  %v6360_v31 = vor.u32 %v7000_v19, %v6359_v16  ;;  %4121 = vmatpush.bf16.msrb.mxu2 %v6104_v25  ;;  %v5209_v16 = vld [vmem:[%s7455_s23 + $0x5b8] sm:$0xf0] }
 0x2de   : > { %v6800_v61 = vld [vmem:[%s7455_s23 + $0x874] sm:$0xf0]  ;;  %v6772_v19 = vld [vmem:[%s7455_s23 + $0x79c] sm:$0xf]  ;;  %v5212_v23 = vor.u32 %v6708_v13, %v5209_v16 }
 0x2df   : > { %v5815_v29 = vld [vmem:[%s7455_s23 + $0xa58] sm:$0xf]  ;;  %v5560_v5 = vor.u32 %v6800_v61, %v5559_v55  ;;  %4134 = vmatpush.bf16.msrb.mxu3 %v6360_v31  ;;  %v6572_v25 = vld [vmem:[%s7455_s23 + $0x15c] sm:$0xf] }
 0x2e0   : > { %v6864_v62 = vld [vmem:[%s7455_s23 + $0xa74] sm:$0xf0]  ;;  %v4665_v55 = vld [vmem:[%s7455_s23 + $0x178] sm:$0xf0] }
 0x2e1   : > { %v6071_v4 = vld [vmem:[%s7455_s23 + $0xc58] sm:$0xf]  ;;  %v5816_v37 = vor.u32 %v6864_v62, %v5815_v29  ;;  %4096 = vmatpush.bf16.msrb.mxu0 %v5560_v5  ;;  %v6636_v61 = vld [vmem:[%s7455_s23 + $0x35c] sm:$0xf]  ;;  %v5468_v29 = vor.u32 %v6772_v19, %v5465_v20  ;;  %v3930_v19 = vpop.f32.mrf.mxu3 }
 0x2e2   : > { %v6928_v33 = vld [vmem:[%s7455_s23 + $0xc74] sm:$0xf0]  ;;  %v6700_v31 = vld [vmem:[%s7455_s23 + $0x55c] sm:$0xf] }
 0x2e3   : > { %v6327_v34 = vld [vmem:[%s7455_s23 + $0xe58] sm:$0xf]  ;;  %v6072_v40 = vor.u32 %v6928_v33, %v6071_v4  ;;  %4109 = vmatpush.bf16.msrb.mxu1 %v5816_v37  ;;  %v5177_v62 = vld [vmem:[%s7455_s23 + $0x578] sm:$0xf0]  ;;  %v4668_v33 = vor.u32 %v6572_v25, %v4665_v55 }
 0x2e4   : > { %v6992_v36 = vld [vmem:[%s7455_s23 + $0xe74] sm:$0xf0]  ;;  %v6764_v4 = vld [vmem:[%s7455_s23 + $0x75c] sm:$0xf]  ;;  %v5180_v5 = vor.u32 %v6700_v31, %v5177_v62 }
 0x2e5   : > { %v5527_v11 = vld [vmem:[%s7455_s23 + $0x818] sm:$0xf]  ;;  %v6328_v45 = vor.u32 %v6992_v36, %v6327_v34  ;;  %4122 = vmatpush.bf16.msrb.mxu2 %v6072_v40  ;;  %v5433_v7 = vld [vmem:[%s7455_s23 + $0x778] sm:$0xf0]  ;;  %v3879_v34 = vadd.f32 %v8487_v15, %v3866_v24  ;;  %v4924_v36 = vor.u32 %v6636_v61, %v4921_v30 }
 0x2e6   : > { %v6792_v14 = vld [vmem:[%s7455_s23 + $0x834] sm:$0xf0]  ;;  %v6628_v37 = vld [vmem:[%s7455_s23 + $0x31c] sm:$0xf]  ;;  %v5436_v40 = vor.u32 %v6764_v4, %v5433_v7 }
 0x2e7   : > { %v5783_v44 = vld [vmem:[%s7455_s23 + $0xa18] sm:$0xf]  ;;  %v5528_v52 = vor.u32 %v6792_v14, %v5527_v11  ;;  %4135 = vmatpush.bf16.msrb.mxu3 %v6328_v45  ;;  %v6564_v11 = vld [vmem:[%s7455_s23 + $0x11c] sm:$0xf] }
 0x2e8   : > { %v6856_v26 = vld [vmem:[%s7455_s23 + $0xa34] sm:$0xf0]  ;;  %v4633_v14 = vld [vmem:[%s7455_s23 + $0x138] sm:$0xf0] }
 0x2e9   : > { %v6039_v42 = vld [vmem:[%s7455_s23 + $0xc18] sm:$0xf]  ;;  %v5784_v57 = vor.u32 %v6856_v26, %v5783_v44  ;;  %4097 = vmatpush.bf16.msrb.mxu0 %v5528_v52  ;;  %v4889_v44 = vld [vmem:[%s7455_s23 + $0x338] sm:$0xf0]  ;;  %v4636_v15 = vor.u32 %v6564_v11, %v4633_v14  ;;  %v3904_v52 = vpop.f32.mrf.mxu1 }
 0x2ea   : > { %v6920_v46 = vld [vmem:[%s7455_s23 + $0xc34] sm:$0xf0]  ;;  %v6692_v26 = vld [vmem:[%s7455_s23 + $0x51c] sm:$0xf] }
 0x2eb   : > { %v6295_v47 = vld [vmem:[%s7455_s23 + $0xe18] sm:$0xf]  ;;  %v6040_v58 = vor.u32 %v6920_v46, %v6039_v42  ;;  %4110 = vmatpush.bf16.msrb.mxu1 %v5784_v57  ;;  %v5145_v42 = vld [vmem:[%s7455_s23 + $0x538] sm:$0xf0]  ;;  %v3891_v46 = vpop.f32.mrf.mxu0 }
 0x2ec   : > { %v6984_v48 = vld [vmem:[%s7455_s23 + $0xe34] sm:$0xf0]  ;;  %4098 = vmatmul.bf16.vlgmr.msrb.gmra.mxu0 %v7648_v38  ;;  %v5401_v45 = vld [vmem:[%s7455_s23 + $0x738] sm:$0xf0]  ;;  %v3892_v51 = vadd.f32 %v3891_v46, %v3879_v34 }
 0x2ed   : > { %v6296_v32 = vor.u32 %v6984_v48, %v6295_v47  ;;  %4123 = vmatpush.bf16.msrb.mxu2 %v6040_v58  ;;  %4142 = vmatpush.bf16.msra.mxu0 %v4732_v63  ;;  %v4892_v47 = vor.u32 %v6628_v37, %v4889_v44  ;;  %v5148_v48 = vor.u32 %v6692_v26, %v5145_v42  ;;  %v6684_v28 = vld [vmem:[%s7455_s23 + $0x4dc] sm:$0xf] }
 0x2ee   : > { %4111 = vmatmul.bf16.vlgmr.msrb.gmra.mxu1 %v7652_v41  ;;  %v5404_v53 = vor.u32 %v6756_v21, %v5401_v45  ;;  %v5113_v57 = vld [vmem:[%s7455_s23 + $0x4f8] sm:$0xf0]  ;;  %v3905_v60 = vadd.f32 %v3904_v52, %v3892_v51  ;;  %v4860_v63 = vor.u32 %v6620_v22, %v4857_v54 }
 0x2ef   : > { %4136 = vmatpush.bf16.msrb.mxu3 %v6296_v32  ;;  %4155 = vmatpush.bf16.msra.mxu1 %v4988_v1  ;;  %v6748_v58 = vld [vmem:[%s7455_s23 + $0x6dc] sm:$0xf]  ;;  %v4604_v32 = vor.u32 %v6556_v49, %v4601_v27  ;;  %v5116_v1 = vor.u32 %v6684_v28, %v5113_v57  ;;  %v3932_v27 = vpop.f32.mrf.mxu3 }
 0x2f0   : > { %4124 = vmatmul.bf16.vlgmr.msrb.gmra.mxu2 %v7644_v35  ;;  %v5369_v59 = vld [vmem:[%s7455_s23 + $0x6f8] sm:$0xf0]  ;;  %v3918_v16 = vadd.f32 %v3917_v6, %v3905_v60 }
 0x2f1   : > { %4168 = vmatpush.bf16.msra.mxu2 %v5244_v2  ;;  %4143 = vmatpush.bf16.msra.mxu0 %v4700_v50  ;;  %v6548_v2 = vld [vmem:[%s7455_s23 + $0x9c] sm:$0xf]  ;;  %v5372_v8 = vor.u32 %v6748_v58, %v5369_v59  ;;  %v3906_v62 = vpop.f32.mrf.mxu1 }
 0x2f2   : > { %4137 = vmatmul.bf16.vlgmr.msrb.gmra.mxu3 %v7650_v39  ;;  %v4569_v3 = vld [vmem:[%s7455_s23 + $0xb8] sm:$0xf0]  ;;  %v3931_v24 = vadd.f32 %v3930_v19, %v3918_v16 }
 0x2f3   : > { %4181 = vmatpush.bf16.msra.mxu3 %v5500_v9  ;;  %4156 = vmatpush.bf16.msra.mxu1 %v4956_v43  ;;  %v6612_v56 = vld [vmem:[%s7455_s23 + $0x29c] sm:$0xf]  ;;  %v842_v43 = vld [vmem:[#allocation2 + $0x8] sm:$0xff]  ;;  %v3893_v25 = vpop.f32.mrf.mxu0 }
 0x2f4   : > { %v4825_v9 = vld [vmem:[%s7455_s23 + $0x2b8] sm:$0xf0]  ;;  %v4250_v7 = vadd.f32 %v3931_v24, %v842_v43 }
 0x2f5   : > { %4169 = vmatpush.bf16.msra.mxu2 %v5212_v23  ;;  %4144 = vmatpush.bf16.msra.mxu0 %v4668_v33  ;;  %v6676_v12 = vld [vmem:[%s7455_s23 + $0x49c] sm:$0xf]  ;;  %v4572_v23 = vor.u32 %v6548_v2, %v4569_v3  ;;  %v4828_v55 = vor.u32 %v6612_v56, %v4825_v9 }
 0x2f6   : > { %v5081_v13 = vld [vmem:[%s7455_s23 + $0x4b8] sm:$0xf0]  ;;  %4258 = vst [vmem:[#allocation2 + $0x8] sm:$0xff] %v4250_v7 }
 0x2f7   : > { %4182 = vmatpush.bf16.msra.mxu3 %v5468_v29  ;;  %4157 = vmatpush.bf16.msra.mxu1 %v4924_v36  ;;  %v6740_v20 = vld [vmem:[%s7455_s23 + $0x69c] sm:$0xf]  ;;  %v5084_v61 = vor.u32 %v6676_v12, %v5081_v13 }
 0x2f8   : > { %v5337_v50 = vld [vmem:[%s7455_s23 + $0x6b8] sm:$0xf0] }
 0x2f9   : > { %4170 = vmatpush.bf16.msra.mxu2 %v5180_v5  ;;  %4145 = vmatpush.bf16.msra.mxu0 %v4636_v15  ;;  %v6540_v29 = vld [vmem:[%s7455_s23 + $0x5c] sm:$0xf]  ;;  %v5340_v4 = vor.u32 %v6740_v20, %v5337_v50  ;;  %v3919_v15 = vpop.f32.mrf.mxu2 }
 0x2fa   : > { %v4537_v30 = vld [vmem:[%s7455_s23 + $0x78] sm:$0xf0] }
 0x2fb   : > { %4183 = vmatpush.bf16.msra.mxu3 %v5436_v40  ;;  %4158 = vmatpush.bf16.msra.mxu1 %v4892_v47  ;;  %v6604_v31 = vld [vmem:[%s7455_s23 + $0x25c] sm:$0xf]  ;;  %v4540_v14 = vor.u32 %v6540_v29, %v4537_v30 }
 0x2fc   : > { %v4793_v33 = vld [vmem:[%s7455_s23 + $0x278] sm:$0xf0] }
 0x2fd   : > { %4171 = vmatpush.bf16.msra.mxu2 %v5148_v48  ;;  %4146 = vmatpush.bf16.msra.mxu0 %v4604_v32  ;;  %v6668_v34 = vld [vmem:[%s7455_s23 + $0x45c] sm:$0xf]  ;;  %v4796_v44 = vor.u32 %v6604_v31, %v4793_v33 }
 0x2fe   : > { %v5049_v36 = vld [vmem:[%s7455_s23 + $0x478] sm:$0xf0] }
 0x2ff   : > { %4184 = vmatpush.bf16.msra.mxu3 %v5404_v53  ;;  %4159 = vmatpush.bf16.msra.mxu1 %v4860_v63  ;;  %v6732_v5 = vld [vmem:[%s7455_s23 + $0x65c] sm:$0xf]  ;;  %v5052_v26 = vor.u32 %v6668_v34, %v5049_v36 }
 0x300   : > { %v5305_v11 = vld [vmem:[%s7455_s23 + $0x678] sm:$0xf0] }
 0x301   : > { %4172 = vmatpush.bf16.msra.mxu2 %v5116_v1  ;;  %4147 = vmatpush.bf16.msra.mxu0 %v4572_v23  ;;  %v6532_v37 = vld [vmem:[%s7455_s23 + $0x1c] sm:$0xf]  ;;  %v5308_v46 = vor.u32 %v6732_v5, %v5305_v11 }
 0x302   : > { %v4505_v40 = vld [vmem:[%s7455_s23 + $0x38] sm:$0xf0] }
 0x303   : > { %4185 = vmatpush.bf16.msra.mxu3 %v5372_v8  ;;  %4160 = vmatpush.bf16.msra.mxu1 %v4828_v55  ;;  %v6596_v42 = vld [vmem:[%s7455_s23 + $0x21c] sm:$0xf]  ;;  %v4508_v53 = vor.u32 %v6532_v37, %v4505_v40 }
 0x304   : > { %v4761_v21 = vld [vmem:[%s7455_s23 + $0x238] sm:$0xf0] }
 0x305   : > { %4173 = vmatpush.bf16.msra.mxu2 %v5084_v61  ;;  %v6660_v45 = vld [vmem:[%s7455_s23 + $0x41c] sm:$0xf]  ;;  %4148 = vmatpush.bf16.msra.mxu0 %v4540_v14  ;;  %v4764_v58 = vor.u32 %v6596_v42, %v4761_v21 }
 0x306   : > { %v5017_v47 = vld [vmem:[%s7455_s23 + $0x438] sm:$0xf0] }
 0x307   : > { %4186 = vmatpush.bf16.msra.mxu3 %v5340_v4  ;;  %v6724_v48 = vld [vmem:[%s7455_s23 + $0x61c] sm:$0xf]  ;;  %4161 = vmatpush.bf16.msra.mxu1 %v4796_v44  ;;  %v5020_v59 = vor.u32 %v6660_v45, %v5017_v47  ;;  %v8615_v44 = vpop.f32.mrf.mxu0 }
 0x308   : > { %v5273_v49 = vld [vmem:[%s7455_s23 + $0x638] sm:$0xf0] }
 0x309   : > { %v6844_v22 = vld [vmem:[%s7455_s23 + $0x9dc] sm:$0xf]  ;;  %4174 = vmatpush.bf16.msra.mxu2 %v5052_v26  ;;  %v5276_v63 = vor.u32 %v6724_v48, %v5273_v49  ;;  %4149 = vmatpush.bf16.msra.mxu0 %v4508_v53 }
 0x30a   : > { %v5753_v51 = vld [vmem:[%s7455_s23 + $0x9f8] sm:$0xf0] }
 0x30b   : > { %v6908_v52 = vld [vmem:[%s7455_s23 + $0xbdc] sm:$0xf]  ;;  %4187 = vmatpush.bf16.msra.mxu3 %v5308_v46  ;;  %v5756_v1 = vor.u32 %v6844_v22, %v5753_v51  ;;  %4162 = vmatpush.bf16.msra.mxu1 %v4764_v58  ;;  %v8620_v46 = vpop.f32.mrf.mxu1 }
 0x30c   : > { %v6009_v54 = vld [vmem:[%s7455_s23 + $0xbf8] sm:$0xf0]  ;;  %4150 = vmatmul.bf16.vlgmr.msra.gmra.mxu0 %v7578_v10 }
 0x30d   : > { %v6972_v28 = vld [vmem:[%s7455_s23 + $0xddc] sm:$0xf]  ;;  %v6012_v2 = vor.u32 %v6908_v52, %v6009_v54  ;;  %4175 = vmatpush.bf16.msra.mxu2 %v5020_v59  ;;  %4194 = vmatpush.bf16.msrb.mxu0 %v5756_v1  ;;  %v3969_v59 = vpop.f32.mrf.mxu2 }
 0x30e   : > { %v6265_v57 = vld [vmem:[%s7455_s23 + $0xdf8] sm:$0xf0]  ;;  %4163 = vmatmul.bf16.vlgmr.msra.gmra.mxu1 %v7587_v18 }
 0x30f   : > { %v7036_v60 = vld [vmem:[%s7455_s23 + $0xfdc] sm:$0xf]  ;;  %v6268_v3 = vor.u32 %v6972_v28, %v6265_v57  ;;  %4188 = vmatpush.bf16.msra.mxu3 %v5276_v63  ;;  %4207 = vmatpush.bf16.msrb.mxu1 %v6012_v2  ;;  %v3982_v2 = vpop.f32.mrf.mxu3 }
 0x310   : > { %v6521_v32 = vld [vmem:[%s7455_s23 + $0xff8] sm:$0xf0]  ;;  %4176 = vmatmul.bf16.vlgmr.msra.gmra.mxu2 %v7569_v0 }
 0x311   : > { %v6836_v56 = vld [vmem:[%s7455_s23 + $0x99c] sm:$0xf]  ;;  %v6524_v9 = vor.u32 %v7036_v60, %v6521_v32  ;;  %4220 = vmatpush.bf16.msrb.mxu2 %v6268_v3 }
 0x312   : > { %v5721_v6 = vld [vmem:[%s7455_s23 + $0x9b8] sm:$0xf0]  ;;  %4189 = vmatmul.bf16.vlgmr.msra.gmra.mxu3 %v7585_v17 }
 0x313   : > { %v6900_v8 = vld [vmem:[%s7455_s23 + $0xb9c] sm:$0xf]  ;;  %v5724_v50 = vor.u32 %v6836_v56, %v5721_v6  ;;  %4233 = vmatpush.bf16.msrb.mxu3 %v6524_v9 }
 0x314   : > { %v5977_v12 = vld [vmem:[%s7455_s23 + $0xbb8] sm:$0xf0] }
 0x315   : > { %v6964_v13 = vld [vmem:[%s7455_s23 + $0xd9c] sm:$0xf]  ;;  %v5980_v43 = vor.u32 %v6900_v8, %v5977_v12  ;;  %4195 = vmatpush.bf16.msrb.mxu0 %v5724_v50  ;;  %v3945_v8 = vpop.f32.mrf.mxu0 }
 0x316   : > { %v6233_v16 = vld [vmem:[%s7455_s23 + $0xdb8] sm:$0xf0] }
 0x317   : > { %v7028_v19 = vld [vmem:[%s7455_s23 + $0xf9c] sm:$0xf]  ;;  %v6236_v23 = vor.u32 %v6964_v13, %v6233_v16  ;;  %4208 = vmatpush.bf16.msrb.mxu1 %v5980_v43 }
 0x318   : > { %v6489_v20 = vld [vmem:[%s7455_s23 + $0xfb8] sm:$0xf0] }
 0x319   : > { %v6828_v24 = vld [vmem:[%s7455_s23 + $0x95c] sm:$0xf]  ;;  %v6492_v61 = vor.u32 %v7028_v19, %v6489_v20  ;;  %4221 = vmatpush.bf16.msrb.mxu2 %v6236_v23  ;;  %v3958_v20 = vpop.f32.mrf.mxu1 }
 0x31a   : > { %v5689_v25 = vld [vmem:[%s7455_s23 + $0x978] sm:$0xf0] }
 0x31b   : > { %v6892_v55 = vld [vmem:[%s7455_s23 + $0xb5c] sm:$0xf]  ;;  %v5692_v7 = vor.u32 %v6828_v24, %v5689_v25  ;;  %4234 = vmatpush.bf16.msrb.mxu3 %v6492_v61 }
 0x31c   : > { %v5945_v29 = vld [vmem:[%s7455_s23 + $0xb78] sm:$0xf0] }
 0x31d   : > { %v6956_v30 = vld [vmem:[%s7455_s23 + $0xd5c] sm:$0xf]  ;;  %v5948_v0 = vor.u32 %v6892_v55, %v5945_v29  ;;  %4196 = vmatpush.bf16.msrb.mxu0 %v5692_v7  ;;  %v3971_v7 = vpop.f32.mrf.mxu2 }
 0x31e   : > { %v6201_v31 = vld [vmem:[%s7455_s23 + $0xd78] sm:$0xf0] }
 0x31f   : > { %v7020_v62 = vld [vmem:[%s7455_s23 + $0xf5c] sm:$0xf]  ;;  %v6204_v33 = vor.u32 %v6956_v30, %v6201_v31  ;;  %4209 = vmatpush.bf16.msrb.mxu1 %v5948_v0 }
 0x320   : > { %v6457_v4 = vld [vmem:[%s7455_s23 + $0xf78] sm:$0xf0] }
 0x321   : > { %v6820_v34 = vld [vmem:[%s7455_s23 + $0x91c] sm:$0xf]  ;;  %v6460_v5 = vor.u32 %v7020_v62, %v6457_v4  ;;  %4222 = vmatpush.bf16.msrb.mxu2 %v6204_v33 }
 0x322   : > { %v5657_v36 = vld [vmem:[%s7455_s23 + $0x938] sm:$0xf0] }
 0x323   : > { %v6884_v17 = vld [vmem:[%s7455_s23 + $0xb1c] sm:$0xf]  ;;  %v5660_v18 = vor.u32 %v6820_v34, %v5657_v36  ;;  %4235 = vmatpush.bf16.msrb.mxu3 %v6460_v5 }
 0x324   : > { %v5913_v11 = vld [vmem:[%s7455_s23 + $0xb38] sm:$0xf0] }
 0x325   : > { %v6948_v10 = vld [vmem:[%s7455_s23 + $0xd1c] sm:$0xf]  ;;  %v5916_v26 = vor.u32 %v6884_v17, %v5913_v11  ;;  %4197 = vmatpush.bf16.msrb.mxu0 %v5660_v18  ;;  %v3984_v17 = vpop.f32.mrf.mxu3  ;;  %v3957_v18 = vadd.f32 %v8620_v46, %v8615_v44 }
 0x326   : > { %v6169_v14 = vld [vmem:[%s7455_s23 + $0xd38] sm:$0xf0] }
 0x327   : > { %v7012_v37 = vld [vmem:[%s7455_s23 + $0xf1c] sm:$0xf]  ;;  %v6172_v42 = vor.u32 %v6948_v10, %v6169_v14  ;;  %4210 = vmatpush.bf16.msrb.mxu1 %v5916_v26  ;;  %v3970_v26 = vadd.f32 %v3969_v59, %v3957_v18 }
 0x328   : > { %v6425_v40 = vld [vmem:[%s7455_s23 + $0xf38] sm:$0xf0] }
 0x329   : > { %v6812_v21 = vld [vmem:[%s7455_s23 + $0x8dc] sm:$0xf]  ;;  %v6428_v47 = vor.u32 %v7012_v37, %v6425_v40  ;;  %4223 = vmatpush.bf16.msrb.mxu2 %v6172_v42  ;;  %v3983_v42 = vadd.f32 %v3982_v2, %v3970_v26 }
 0x32a   : > { %v5625_v45 = vld [vmem:[%s7455_s23 + $0x8f8] sm:$0xf0] }
 0x32b   : > { %v6876_v15 = vld [vmem:[%s7455_s23 + $0xadc] sm:$0xf]  ;;  %v5628_v52 = vor.u32 %v6812_v21, %v5625_v45  ;;  %4236 = vmatpush.bf16.msrb.mxu3 %v6428_v47  ;;  %v3995_v21 = vpop.f32.mrf.mxu0 }
 0x32c   : > { %v5881_v48 = vld [vmem:[%s7455_s23 + $0xaf8] sm:$0xf0]  ;;  %v3996_v45 = vadd.f32 %v3995_v21, %v3983_v42 }
 0x32d   : > { %v6940_v49 = vld [vmem:[%s7455_s23 + $0xcdc] sm:$0xf]  ;;  %v5884_v53 = vor.u32 %v6876_v15, %v5881_v48  ;;  %4198 = vmatpush.bf16.msrb.mxu0 %v5628_v52  ;;  %v4008_v15 = vpop.f32.mrf.mxu1  ;;  %v4021_v48 = vpop.f32.mrf.mxu2 }
 0x32e   : > { %v6137_v27 = vld [vmem:[%s7455_s23 + $0xcf8] sm:$0xf0]  ;;  %v4009_v47 = vadd.f32 %v4008_v15, %v3996_v45  ;;  %v4034_v46 = vpop.f32.mrf.mxu3 }
 0x32f   : > { %v7004_v22 = vld [vmem:[%s7455_s23 + $0xedc] sm:$0xf]  ;;  %v6140_v54 = vor.u32 %v6940_v49, %v6137_v27  ;;  %4211 = vmatpush.bf16.msrb.mxu1 %v5884_v53  ;;  %v843_v49 = vld [vmem:[#allocation2 + $0x20] sm:$0xff] }
 0x330   : > { %v6393_v51 = vld [vmem:[%s7455_s23 + $0xef8] sm:$0xf0]  ;;  %v4022_v44 = vadd.f32 %v4021_v48, %v4009_v47 }
 0x331   : > { %v6804_v28 = vld [vmem:[%s7455_s23 + $0x89c] sm:$0xf]  ;;  %v6396_v60 = vor.u32 %v7004_v22, %v6393_v51  ;;  %4224 = vmatpush.bf16.msrb.mxu2 %v6140_v54 }
 0x332   : > { %v5593_v57 = vld [vmem:[%s7455_s23 + $0x8b8] sm:$0xf0]  ;;  %v4035_v27 = vadd.f32 %v4034_v46, %v4022_v44 }
 0x333   : > { %v6868_v58 = vld [vmem:[%s7455_s23 + $0xa9c] sm:$0xf]  ;;  %v5596_v6 = vor.u32 %v6804_v28, %v5593_v57  ;;  %4237 = vmatpush.bf16.msrb.mxu3 %v6396_v60  ;;  %v3997_v22 = vpop.f32.mrf.mxu0 }
 0x334   : > { %v5849_v32 = vld [vmem:[%s7455_s23 + $0xab8] sm:$0xf0] }
 0x335   : > { %v6932_v63 = vld [vmem:[%s7455_s23 + $0xc9c] sm:$0xf]  ;;  %v5852_v9 = vor.u32 %v6868_v58, %v5849_v32  ;;  %4199 = vmatpush.bf16.msrb.mxu0 %v5596_v6  ;;  %v4010_v51 = vpop.f32.mrf.mxu1  ;;  %v4023_v52 = vpop.f32.mrf.mxu2 }
 0x336   : > { %v6105_v1 = vld [vmem:[%s7455_s23 + $0xcb8] sm:$0xf0] }
 0x337   : > { %v6996_v3 = vld [vmem:[%s7455_s23 + $0xe9c] sm:$0xf]  ;;  %v6108_v12 = vor.u32 %v6932_v63, %v6105_v1  ;;  %4212 = vmatpush.bf16.msrb.mxu1 %v5852_v9 }
 0x338   : > { %v6361_v56 = vld [vmem:[%s7455_s23 + $0xeb8] sm:$0xf0] }
 0x339   : > { %v6796_v13 = vld [vmem:[%s7455_s23 + $0x85c] sm:$0xf]  ;;  %v6364_v50 = vor.u32 %v6996_v3, %v6361_v56  ;;  %4225 = vmatpush.bf16.msrb.mxu2 %v6108_v12  ;;  %v844_v12 = vld [vmem:[#allocation2 + $0x28] sm:$0xff] }
 0x33a   : > { %v5561_v16 = vld [vmem:[%s7455_s23 + $0x878] sm:$0xf0] }
 0x33b   : > { %v6860_v19 = vld [vmem:[%s7455_s23 + $0xa5c] sm:$0xf]  ;;  %v5564_v61 = vor.u32 %v6796_v13, %v5561_v16  ;;  %4238 = vmatpush.bf16.msrb.mxu3 %v6364_v50  ;;  %v4047_v53 = vpop.f32.mrf.mxu0 }
 0x33c   : > { %v5817_v43 = vld [vmem:[%s7455_s23 + $0xa78] sm:$0xf0] }
 0x33d   : > { %v6924_v23 = vld [vmem:[%s7455_s23 + $0xc5c] sm:$0xf]  ;;  %v5820_v29 = vor.u32 %v6860_v19, %v5817_v43  ;;  %4200 = vmatpush.bf16.msrb.mxu0 %v5564_v61  ;;  %v4073_v54 = vpop.f32.mrf.mxu2 }
 0x33e   : > { %v6073_v24 = vld [vmem:[%s7455_s23 + $0xc78] sm:$0xf0] }
 0x33f   : > { %v6988_v25 = vld [vmem:[%s7455_s23 + $0xe5c] sm:$0xf]  ;;  %v6076_v30 = vor.u32 %v6924_v23, %v6073_v24  ;;  %4213 = vmatpush.bf16.msrb.mxu1 %v5820_v29 }
 0x340   : > { %v6329_v55 = vld [vmem:[%s7455_s23 + $0xe78] sm:$0xf0] }
 0x341   : > { %v6788_v31 = vld [vmem:[%s7455_s23 + $0x81c] sm:$0xf]  ;;  %v6332_v0 = vor.u32 %v6988_v25, %v6329_v55  ;;  %4226 = vmatpush.bf16.msrb.mxu2 %v6076_v30 }
 0x342   : > { %v5529_v62 = vld [vmem:[%s7455_s23 + $0x838] sm:$0xf0] }
 0x343   : > { %v6852_v4 = vld [vmem:[%s7455_s23 + $0xa1c] sm:$0xf]  ;;  %v5532_v10 = vor.u32 %v6788_v31, %v5529_v62  ;;  %4239 = vmatpush.bf16.msrb.mxu3 %v6332_v0  ;;  %v4049_v28 = vpop.f32.mrf.mxu0 }
 0x344   : > { %v5785_v33 = vld [vmem:[%s7455_s23 + $0xa38] sm:$0xf0] }
 0x345   : > { %v6916_v34 = vld [vmem:[%s7455_s23 + $0xc1c] sm:$0xf]  ;;  %v5788_v14 = vor.u32 %v6852_v4, %v5785_v33  ;;  %4201 = vmatpush.bf16.msrb.mxu0 %v5532_v10  ;;  %v4075_v58 = vpop.f32.mrf.mxu2 }
 0x346   : > { %v6041_v36 = vld [vmem:[%s7455_s23 + $0xc38] sm:$0xf0] }
 0x347   : > { %v6980_v5 = vld [vmem:[%s7455_s23 + $0xe1c] sm:$0xf]  ;;  %v6044_v37 = vor.u32 %v6916_v34, %v6041_v36  ;;  %4214 = vmatpush.bf16.msrb.mxu1 %v5788_v14 }
 0x348   : > { %v6297_v11 = vld [vmem:[%s7455_s23 + $0xe38] sm:$0xf0]  ;;  %4202 = vmatmul.bf16.vlgmr.msrb.gmra.mxu0 %v7648_v38  ;;  %v4251_v38 = vadd.f32 %v4035_v27, %v843_v49 }
 0x349   : > { %v6300_v40 = vor.u32 %v6980_v5, %v6297_v11  ;;  %4227 = vmatpush.bf16.msrb.mxu2 %v6044_v37  ;;  %v845_v14 = vld [vmem:[#allocation2 + $0x38] sm:$0xff] }
 0x34a   : > { %4215 = vmatmul.bf16.vlgmr.msrb.gmra.mxu1 %v7652_v41  ;;  %4259 = vst [vmem:[#allocation2 + $0x20] sm:$0xff] %v4251_v38  ;;  %v4036_v41 = vpop.f32.mrf.mxu3 }
 0x34b   : > { %4240 = vmatpush.bf16.msrb.mxu3 %v6300_v40 }
 0x34c   : > { %4228 = vmatmul.bf16.vlgmr.msrb.gmra.mxu2 %v7644_v35  ;;  %v4060_v35 = vpop.f32.mrf.mxu1 }
 0x34d   : > { %v4061_v60 = vadd.f32 %v4060_v35, %v4047_v53 }
 0x34e   : > { %4241 = vmatmul.bf16.vlgmr.msrb.gmra.mxu3 %v7650_v39 }
 0x34f   : > { %v4074_v32 = vadd.f32 %v4073_v54, %v4061_v60 }
 0x352   : > { %v4086_v39 = vpop.f32.mrf.mxu3 }
 0x353   : > { %v4087_v63 = vadd.f32 %v4086_v39, %v4074_v32 }
 0x354   : > { %v4062_v57 = vpop.f32.mrf.mxu1 }
 0x35a   : > { %v4088_v59 = vpop.f32.mrf.mxu3 }
 0x369   : > { %v4099_v1 = vpop.f32.mrf.mxu0 }
 0x36a   : > { %v4100_v2 = vadd.f32 %v4099_v1, %v4087_v63 }
 0x36b   : > { %v4112_v3 = vpop.f32.mrf.mxu1 }
 0x36c   : > { %v4113_v56 = vadd.f32 %v4112_v3, %v4100_v2 }
 0x371   : > { %v4101_v16 = vpop.f32.mrf.mxu0 }
 0x373   : > { %v4125_v6 = vpop.f32.mrf.mxu2  ;;  %v4114_v19 = vpop.f32.mrf.mxu1 }
 0x374   : > { %v4126_v8 = vadd.f32 %v4125_v6, %v4113_v56 }
 0x375   : > { %v4138_v9 = vpop.f32.mrf.mxu3 }
 0x376   : > { %v4139_v13 = vadd.f32 %v4138_v9, %v4126_v8 }
 0x378   : > { %v4252_v20 = vadd.f32 %v4139_v13, %v844_v12 }
 0x37a   : > { %4260 = vst [vmem:[#allocation2 + $0x28] sm:$0xff] %v4252_v20 }
 0x37b   : > { %v4127_v50 = vpop.f32.mrf.mxu2 }
 0x37d   : > { %v4140_v43 = vpop.f32.mrf.mxu3 }
 0x389   : > { %v4151_v23 = vpop.f32.mrf.mxu0 }
 0x38b   : > { %v4164_v24 = vpop.f32.mrf.mxu1 }
 0x38c   : > { %v4165_v62 = vadd.f32 %v4164_v24, %v4151_v23 }
 0x391   : > { %v4153_v61 = vpop.f32.mrf.mxu0 }
 0x393   : > { %v4177_v25 = vpop.f32.mrf.mxu2  ;;  %v4166_v29 = vpop.f32.mrf.mxu1 }
 0x394   : > { %v4178_v4 = vadd.f32 %v4177_v25, %v4165_v62 }
 0x395   : > { %v4190_v55 = vpop.f32.mrf.mxu3 }
 0x396   : > { %v4191_v7 = vadd.f32 %v4190_v55, %v4178_v4 }
 0x39b   : > { %v4179_v30 = vpop.f32.mrf.mxu2 }
 0x39d   : > { %v4192_v31 = vpop.f32.mrf.mxu3 }
 0x3c5   : > { %v4203_v0 = vpop.f32.mrf.mxu0 }
 0x3c6   : > { %v4204_v34 = vadd.f32 %v4203_v0, %v4191_v7 }
 0x3c7   : > { %v4216_v33 = vpop.f32.mrf.mxu1 }
 0x3c8   : > { %v4217_v36 = vadd.f32 %v4216_v33, %v4204_v34 }
 0x3cd   : > { %v4205_v10 = vpop.f32.mrf.mxu0 }
 0x3cf   : > { %v4229_v17 = vpop.f32.mrf.mxu2  ;;  %v4218_v37 = vpop.f32.mrf.mxu1 }
 0x3d0   : > { %v4230_v5 = vadd.f32 %v4229_v17, %v4217_v36 }
 0x3d1   : > { %v4242_v11 = vpop.f32.mrf.mxu3 }
 0x3d2   : > { %v4243_v40 = vadd.f32 %v4242_v11, %v4230_v5 }
 0x3d4   : > { %v4253_v18 = vadd.f32 %v4243_v40, %v845_v14 }
 0x3d5   : > { %4265 = sbr.rel (%p6525_p9) target bundleno = 1001 (0x3e9), region = 48 }
 0x3d6   : > { %4261 = vst [vmem:[#allocation2 + $0x38] sm:$0xff] %v4253_v18 }
 0x3d7   : > { %v4231_v26 = vpop.f32.mrf.mxu2 }
 0x3d9   : > { %v4244_v42 = vpop.f32.mrf.mxu3 }
 0x3da   : > { %v4266_v21 = vld [vmem:[#allocation2 + $0x30] sm:$0xff]  ;;  %v4274_v45 = vld [vmem:[%s241_s29] sm:$0xff]  ;;  %v4268_v44 = vld [vmem:[#allocation2 + $0x18] sm:$0xff] }
 0x3db   : > { %v4267_v15 = vld [vmem:[#allocation2] sm:$0xff]  ;;  %v4276_v47 = vperm.slane %v4274_v45, 0  ;;  %v4277_v48 = vperm.slane %v4274_v45, 1  ;;  %v4278_v46 = vperm.slane %v4274_v45, 2  ;;  %v4269_v49 = vld [vmem:[#allocation2 + $0x10] sm:$0xff]  ;;  %v4279_v27 = vperm.slane %v4274_v45, 3 }
 0x3dc   : > { %v4270_v22 = vld [vmem:[#allocation2 + $0x8] sm:$0xff]  ;;  %v4280_v51 = vperm.slane %v4274_v45, 4  ;;  %v4271_v38 = vld [vmem:[#allocation2 + $0x20] sm:$0xff]  ;;  %v4281_v52 = vperm.slane %v4274_v45, 5  ;;  %v4282_v53 = vperm.slane %v4274_v45, 6  ;;  %v4283_v60 = vperm.slane %v4274_v45, 7 }
 0x3dd   : > { %v4272_v41 = vld [vmem:[#allocation2 + $0x28] sm:$0xff]  ;;  %v4292_v35 = vadd.f32 %v4276_v47, %v4266_v21  ;;  %v4293_v54 = vadd.f32 %v4277_v48, %v4267_v15  ;;  %v4294_v39 = vadd.f32 %v4278_v46, %v4268_v44  ;;  %v4295_v28 = vadd.f32 %v4279_v27, %v4269_v49  ;;  %v4273_v57 = vld [vmem:[#allocation2 + $0x38] sm:$0xff] }
 0x3de   : > { %v4296_v58 = vadd.f32 %v4280_v51, %v4270_v22  ;;  %v4297_v59 = vadd.f32 %v4281_v52, %v4271_v38  ;;  %v4298_v2 = vadd.f32 %v4282_v53, %v4272_v41  ;;  %v4299_v56 = vadd.f32 %v4283_v60, %v4273_v57 }
 0x3df   : > { %v4300_v32 = vmax.f32 %v4292_v35, 0.0  ;;  %v4301_v63 = vmax.f32 %v4293_v54, 0.0  ;;  %v4302_v1 = vmax.f32 %v4294_v39, 0.0  ;;  %v4303_v3 = vmax.f32 %v4295_v28, 0.0 }
 0x3e0   : > { %v4304_v6 = vmax.f32 %v4296_v58, 0.0  ;;  %v4305_v8 = vmax.f32 %v4297_v59, 0.0  ;;  %v4306_v9 = vmax.f32 %v4298_v2, 0.0  ;;  %v4307_v12 = vmax.f32 %v4299_v56, 0.0 }
 0x3e1   : > { %4308 = vst [vmem:[%s7479_s11] sm:$0xff] %v4300_v32 }
 0x3e2   : > { %4309 = vst [vmem:[%s7479_s11 + $0x8] sm:$0xff] %v4301_v63 }
 0x3e3   : > { %4310 = vst [vmem:[%s7479_s11 + $0x10] sm:$0xff] %v4302_v1 }
 0x3e4   : > { %4311 = vst [vmem:[%s7479_s11 + $0x18] sm:$0xff] %v4303_v3 }
 0x3e5   : > { %4312 = vst [vmem:[%s7479_s11 + $0x20] sm:$0xff] %v4304_v6 }
 0x3e6   : > { %4313 = vst [vmem:[%s7479_s11 + $0x28] sm:$0xff] %v4305_v8 }
 0x3e7   : > { %4314 = vst [vmem:[%s7479_s11 + $0x30] sm:$0xff] %v4306_v9 }
 0x3e8   : > { %4315 = vst [vmem:[%s7479_s11 + $0x38] sm:$0xff] %v4307_v12 }
 0x3e9 PF: > { %s19_s22 = sadd.s32 1, %s7299_s22   ;;  %s8714_s18 = smov %s7436_s15 }
 0x3ea   : > { %p16_p10 = scmp.ge.s32.totalorder %s19_s22, 6   ;;  %s8715_s23 = sld [smem:[#allocation9_spill]] }
 0x3eb   : > { %s8716_s25 = sld [smem:[#allocation10_spill]]  ;;  %s8717_s12 = smov %s7263_s13 }
 0x3ec   : > { %s8718_s13 = smov %s7267_s14  ;;  %s8719_s14 = smov %s7431_s10 }
 0x3ed   : > { %s8720_s15 = smov %s7275_s16  ;;  %s8721_s16 = smov %s7279_s17 }
 0x3ee   : > { %s8722_s17 = smov %s8714_s18  ;;  %s8723_s18 = smov %s7291_s20 }
 0x3ef   : > { %s8724_s19 = smov %s7295_s21  ;;  %18 = sbr.rel (!%p16_p10) target bundleno = 11 (0xb), region = 96 }
 0x3f0   : > { %s8725_s20 = smov %s8715_s23 }
 0x3f1   : > { %s8726_s21 = smov %s8716_s25 }
 0x3f4   :  { %4346 = vsyncpa [#allocation4], 1 }
 0x3f5   :  { %4348 = vsyncpa [#allocation4 + $0x1], 1 }
 0x3f6   :  { %4349 = vsyncpa [#allocation6], 1 }
 0x3f7   :  { %4351 = vsyncpa [#allocation6 + $0x1], 1 }

// kernel: ae_watermark_forward.6
= control target key start
LH: loop header
LB: loop body
LE: loop exit
PB: predicated region body
PF: predicated region fallthrough
CT: control target
= control target key end

     0   :  { %8 = vsyncpa [#allocation4], 0  ;;  %s8583_s0 = inlined_call_operand.vmem [shape: f32[8,1024], index: 0, kind: input, shape index: {}]   ;;  %s8584_s1 = inlined_call_operand.hbm [shape: bf16[1024,2048], index: 1, kind: input, shape index: {}]   ;;  %s8585_s2 = inlined_call_operand.hbm [shape: f32[1,2048], index: 2, kind: input, shape index: {}]   ;;  %s8586_s3 = inlined_call_operand.vmem [shape: f32[8,2048], index: 3, kind: output, shape index: {}]  }
   0x1   :  { %10 = vsyncpa [#allocation4 + $0x1], 0 }
   0x2   :  { %11 = vsyncpa [#allocation6], 0 }
   0x3   :  { %13 = vsyncpa [#allocation6 + $0x1], 0  ;;  %s7239_s12 = smov 0   ;;  %s7241_s13 = smov 0  }
   0x4   :  { %s7243_s14 = smov 0   ;;  %s7245_s15 = smov 0  }
   0x5   :  { %s7247_s16 = smov 0   ;;  %s7249_s17 = smov 0  }
   0x6 LB: > { %s4457_s18 = sadd.s32 4294967295, %s7214_s17   ;;  %s34_s19 = sadd.s32 1, %s7210_s16  ;;  %s7214_s17 = sphi %s7249_s17, %s19_s17   ;;  %s7210_s16 = sphi %s7247_s16, %s8595_s16   ;;  %s7206_s15 = sphi %s7245_s15, %s8594_s15   ;;  %s7202_s14 = sphi %s7243_s14, %s8593_s14   ;;  %s7198_s13 = sphi %s7241_s13, %s8592_s13   ;;  %s7194_s12 = sphi %s7239_s12, %s8591_s12  }
   0x7   : > { %p36_p0 = scmp.ge.s32.totalorder %s34_s19, 2  ;;  %s75_s20 = sadd.s32 1, %s7202_s14 }
   0x8   : > { %p82_p1 = scmp.ne.s32.totalorder %s7202_s14, %s7198_s13  ;;  %p83_p2 = scmp.eq.s32.totalorder %s7214_s17, 0 }
   0x9   : > { %s8597_s19 = smov (%p36_p0, %s34_s19), 0  ;;  %p88_p4 = scmp.ne.s32.totalorder %s7198_s13, %s7194_s12 }
   0xa   : > { %p7275_p3 = por %p83_p2, %p82_p1  ;;  %s71_s22 = ssub.s32 %s7210_s16, %s8597_s19 }
   0xb   : > { %p89_p5 = scmp.eq.s32.totalorder %s4457_s18, 0  ;;  %p73_p6 = scmp.eq.s32.totalorder %s71_s22, 0 }
   0xc   : > { %p7046_p8 = scmp.lt.s32.totalorder %s7214_s17, 2  ;;  %s7291_s25 = sand.u32 1, %s7202_s14  }
   0xd   : > { %p7282_p7 = por %p89_p5, %p88_p4  ;;  %s6522_s26 = sshll.u32 %s7210_s16, 5 }
   0xe   : > { %s7288_s24 = scalar_select %p73_p6, %s7202_s14, %s75_s20  }
   0xf   : > { %s4462_s27 = sshll.u32 %s7291_s25, 12  ;;  %s191_s30 = scalar_lea.hbm %s8584_s1, %s6522_s26 }
  0x10   : > { %s192_s4 = sshll.u32 %s191_s30, 4  ;;  %s183_s5 = scalar_lea.vmem [#allocation3], %s4462_s27  ;;  %s193_s4 = int_to_ptr.hbm [resolvable:$true] %s192_s4 }
  0x11   : > { %s194_s6 = sshll.u32 %s183_s5, 4  ;;  %p7300_p9 = pnand %p7046_p8, %p7275_p3  ;;  %s195_s6 = int_to_ptr.vmem [resolvable:$true] %s194_s6 }
  0x12   : > { %p4467_p10 = scmp.ge.s32.totalorder %s7214_s17, 1  ;;  %s180_s8 = scalar_lea.sflag [#allocation4], %s7291_s25 }
  0x13   : > { %s7216_s9 = smov 1024   ;;  %s7217_s10 = smov 512  }
  0x14   : > { %s7218_s11 = smov 32   ;;  %p221_p11 = scmp.lt.s32.totalorder %s7214_s17, 3 }
  0x15   : > { %7042 = dma.hbm_to_vmem [thread:$0]  (!%p7300_p9), %s193_s4, 65536, %s195_s6, %s180_s8, %s7216_s9, %s7217_s10, %s7218_s11  }
  0x16   : > { %s4465_s12 = sshll.u32 %s7291_s25, 3  ;;  %s4466_s18 = sshll.u32 %s7210_s16, 3 }
  0x17   : > { %p222_p12 = pnand %p4467_p10, %p221_p11  ;;  %s212_s22 = scalar_lea.hbm %s8585_s2, %s4466_s18 }
  0x18   : > { %s208_s26 = scalar_lea.vmem [#allocation5], %s4465_s12  ;;  %s214_s28 = sshll.u32 %s212_s22, 4  ;;  %s215_s28 = int_to_ptr.hbm [resolvable:$true] %s214_s28 }
  0x19   : > { %s216_s27 = sshll.u32 %s208_s26, 4  ;;  %s205_s29 = scalar_lea.sflag [#allocation6], %s7291_s25  ;;  %s217_s27 = int_to_ptr.vmem [resolvable:$true] %s216_s27 }
  0x1a   : > { %7045 = dma.hbm_to_vmem [thread:$0]  (!%p7300_p9), %s215_s28, 128, %s217_s27, %s205_s29  }
  0x1b   : > { %225 = sbr.rel (%p222_p12) target bundleno = 956 (0x3bc), region = 32  ;;  %s227_s30 = sand.u32 (!%p222_p12), 1, %s7198_s13  }
  0x1c   : > { %s4468_s4 = sshll.u32 (!%p222_p12), %s227_s30, 12  ;;  %s228_s5 = scalar_lea.sflag (!%p222_p12), [#allocation4], %s227_s30 }
  0x1d   : > { %s7318_s6 = scalar_lea.vmem (!%p222_p12), [#allocation3], %s4468_s4 }
  0x20   : > { %7185 = dma.done.wait (%p7282_p7), %s228_s5, 65536  }
  0x21   : > { %7187 = vsyncadd (%p7282_p7), %s228_s5, 4294901760  ;;  %s4469_s8 = sshll.u32 %s227_s30, 3  ;;  %s238_s9 = scalar_lea.sflag [#allocation6], %s227_s30 }
  0x22   : > { %s7324_s10 = scalar_lea.vmem [#allocation5], %s4469_s8 }
  0x23   : > { %7189 = dma.done.wait (%p7282_p7), %s238_s9, 128  }
  0x24   : > { %7191 = vsyncadd (%p7282_p7), %s238_s9, 4294967168  ;;  %v4698_v0 = vld [vmem:[%s7318_s6 + $0x1c0] sm:$0xf]  ;;  %s4470_s8 = sshll.u32 %s7206_s15, 3 }
  0x25   : > { %v6583_v1 = vld [vmem:[%s7318_s6 + $0x1dc] sm:$0xf0]  ;;  %p7822_p13 = scmp.lt.s32.totalorder %s4470_s8, 15 }
  0x26   : > { %v4954_v2 = vld [vmem:[%s7318_s6 + $0x3c0] sm:$0xf]  ;;  %v4699_v3 = vor.u32 %v6583_v1, %v4698_v0 }
  0x27   : > { %v6647_v4 = vld [vmem:[%s7318_s6 + $0x3dc] sm:$0xf0]  ;;  %s8599_s8 = smov (!%p7822_p13, %s4470_s8), 15 }
  0x28   : > { %v5210_v5 = vld [vmem:[%s7318_s6 + $0x5c0] sm:$0xf]  ;;  %v4955_v7 = vor.u32 %v6647_v4, %v4954_v2  ;;  %3414 = vmatpush.bf16.msra.mxu0 %v4699_v3  ;;  %s4471_s15 = sshll.u32 %s8599_s8, 3 }
  0x29   : > { %v6711_v6 = vld [vmem:[%s7318_s6 + $0x5dc] sm:$0xf0]  ;;  %s7862_s7 = scalar_lea.vmem %s8586_s3, %s4471_s15 }
  0x2a   : > { %v5211_v8 = vor.u32 %v6711_v6, %v5210_v5  ;;  %v5466_v9 = vld [vmem:[%s7318_s6 + $0x7c0] sm:$0xf]  ;;  %3427 = vmatpush.bf16.msra.mxu1 %v4955_v7 }
  0x2b   : > { %v6775_v10 = vld [vmem:[%s7318_s6 + $0x7dc] sm:$0xf0] }
  0x2c   : > { %v4666_v11 = vld [vmem:[%s7318_s6 + $0x180] sm:$0xf]  ;;  %v5467_v12 = vor.u32 %v6775_v10, %v5466_v9  ;;  %3440 = vmatpush.bf16.msra.mxu2 %v5211_v8 }
  0x2d   : > { %v6575_v13 = vld [vmem:[%s7318_s6 + $0x19c] sm:$0xf0] }
  0x2e   : > { %v4922_v14 = vld [vmem:[%s7318_s6 + $0x380] sm:$0xf]  ;;  %v4667_v16 = vor.u32 %v6575_v13, %v4666_v11  ;;  %3453 = vmatpush.bf16.msra.mxu3 %v5467_v12 }
  0x2f   : > { %v6639_v15 = vld [vmem:[%s7318_s6 + $0x39c] sm:$0xf0] }
  0x30   : > { %v4923_v17 = vor.u32 %v6639_v15, %v4922_v14  ;;  %v5178_v18 = vld [vmem:[%s7318_s6 + $0x580] sm:$0xf]  ;;  %3415 = vmatpush.bf16.msra.mxu0 %v4667_v16 }
  0x31   : > { %v6703_v19 = vld [vmem:[%s7318_s6 + $0x59c] sm:$0xf0] }
  0x32   : > { %v5434_v20 = vld [vmem:[%s7318_s6 + $0x780] sm:$0xf]  ;;  %v5179_v21 = vor.u32 %v6703_v19, %v5178_v18  ;;  %3428 = vmatpush.bf16.msra.mxu1 %v4923_v17 }
  0x33   : > { %v6767_v22 = vld [vmem:[%s7318_s6 + $0x79c] sm:$0xf0] }
  0x34   : > { %v4634_v23 = vld [vmem:[%s7318_s6 + $0x140] sm:$0xf]  ;;  %v5435_v25 = vor.u32 %v6767_v22, %v5434_v20  ;;  %3441 = vmatpush.bf16.msra.mxu2 %v5179_v21 }
  0x35   : > { %v6567_v24 = vld [vmem:[%s7318_s6 + $0x15c] sm:$0xf0] }
  0x36   : > { %v4890_v26 = vld [vmem:[%s7318_s6 + $0x340] sm:$0xf]  ;;  %v4635_v29 = vor.u32 %v6567_v24, %v4634_v23  ;;  %3454 = vmatpush.bf16.msra.mxu3 %v5435_v25 }
  0x37   : > { %v6631_v27 = vld [vmem:[%s7318_s6 + $0x35c] sm:$0xf0] }
  0x38   : > { %v5146_v28 = vld [vmem:[%s7318_s6 + $0x540] sm:$0xf]  ;;  %v4891_v33 = vor.u32 %v6631_v27, %v4890_v26  ;;  %3416 = vmatpush.bf16.msra.mxu0 %v4635_v29 }
  0x39   : > { %v6695_v30 = vld [vmem:[%s7318_s6 + $0x55c] sm:$0xf0] }
  0x3a   : > { %v5402_v31 = vld [vmem:[%s7318_s6 + $0x740] sm:$0xf]  ;;  %v5147_v34 = vor.u32 %v6695_v30, %v5146_v28  ;;  %3429 = vmatpush.bf16.msra.mxu1 %v4891_v33 }
  0x3b   : > { %v6759_v32 = vld [vmem:[%s7318_s6 + $0x75c] sm:$0xf0] }
  0x3c   : > { %v4602_v35 = vld [vmem:[%s7318_s6 + $0x100] sm:$0xf]  ;;  %v5403_v38 = vor.u32 %v6759_v32, %v5402_v31  ;;  %3442 = vmatpush.bf16.msra.mxu2 %v5147_v34 }
  0x3d   : > { %v6559_v36 = vld [vmem:[%s7318_s6 + $0x11c] sm:$0xf0] }
  0x3e   : > { %v4858_v37 = vld [vmem:[%s7318_s6 + $0x300] sm:$0xf]  ;;  %v4603_v44 = vor.u32 %v6559_v36, %v4602_v35  ;;  %3455 = vmatpush.bf16.msra.mxu3 %v5403_v38 }
  0x3f   : > { %v6623_v39 = vld [vmem:[%s7318_s6 + $0x31c] sm:$0xf0] }
  0x40   : > { %v5114_v40 = vld [vmem:[%s7318_s6 + $0x500] sm:$0xf]  ;;  %v4859_v45 = vor.u32 %v6623_v39, %v4858_v37  ;;  %3417 = vmatpush.bf16.msra.mxu0 %v4603_v44 }
  0x41   : > { %v6687_v41 = vld [vmem:[%s7318_s6 + $0x51c] sm:$0xf0] }
  0x42   : > { %v5370_v42 = vld [vmem:[%s7318_s6 + $0x700] sm:$0xf]  ;;  %v5115_v46 = vor.u32 %v6687_v41, %v5114_v40  ;;  %3430 = vmatpush.bf16.msra.mxu1 %v4859_v45 }
  0x43   : > { %v6751_v43 = vld [vmem:[%s7318_s6 + $0x71c] sm:$0xf0] }
  0x44   : > { %v4570_v47 = vld [vmem:[%s7318_s6 + $0xc0] sm:$0xf]  ;;  %v5371_v50 = vor.u32 %v6751_v43, %v5370_v42  ;;  %3443 = vmatpush.bf16.msra.mxu2 %v5115_v46 }
  0x45   : > { %v6551_v48 = vld [vmem:[%s7318_s6 + $0xdc] sm:$0xf0] }
  0x46   : > { %v4826_v49 = vld [vmem:[%s7318_s6 + $0x2c0] sm:$0xf]  ;;  %v4571_v56 = vor.u32 %v6551_v48, %v4570_v47  ;;  %3456 = vmatpush.bf16.msra.mxu3 %v5371_v50 }
  0x47   : > { %v6615_v51 = vld [vmem:[%s7318_s6 + $0x2dc] sm:$0xf0] }
  0x48   : > { %v5082_v52 = vld [vmem:[%s7318_s6 + $0x4c0] sm:$0xf]  ;;  %v4827_v57 = vor.u32 %v6615_v51, %v4826_v49  ;;  %3418 = vmatpush.bf16.msra.mxu0 %v4571_v56 }
  0x49   : > { %v6679_v53 = vld [vmem:[%s7318_s6 + $0x4dc] sm:$0xf0] }
  0x4a   : > { %v5338_v54 = vld [vmem:[%s7318_s6 + $0x6c0] sm:$0xf]  ;;  %v5083_v58 = vor.u32 %v6679_v53, %v5082_v52  ;;  %3431 = vmatpush.bf16.msra.mxu1 %v4827_v57 }
  0x4b   : > { %v6743_v55 = vld [vmem:[%s7318_s6 + $0x6dc] sm:$0xf0] }
  0x4c   : > { %v4538_v59 = vld [vmem:[%s7318_s6 + $0x80] sm:$0xf]  ;;  %v5339_v62 = vor.u32 %v6743_v55, %v5338_v54  ;;  %3444 = vmatpush.bf16.msra.mxu2 %v5083_v58  ;;  %v320_v58 = vld [vmem:[%s8583_s0 + $0x10] sm:$0xff] }
  0x4d   : > { %v6543_v60 = vld [vmem:[%s7318_s6 + $0x9c] sm:$0xf0] }
  0x4e   : > { %v4794_v61 = vld [vmem:[%s7318_s6 + $0x280] sm:$0xf]  ;;  %v4539_v4 = vor.u32 %v6543_v60, %v4538_v59  ;;  %3457 = vmatpush.bf16.msra.mxu3 %v5339_v62 }
  0x4f   : > { %v6607_v63 = vld [vmem:[%s7318_s6 + $0x29c] sm:$0xf0] }
  0x50   : > { %v5050_v0 = vld [vmem:[%s7318_s6 + $0x480] sm:$0xf]  ;;  %v4795_v5 = vor.u32 %v6607_v63, %v4794_v61  ;;  %3419 = vmatpush.bf16.msra.mxu0 %v4539_v4  ;;  %v7419_v63 = vpack.c.bf16 %v320_v58, %v320_v58 }
  0x51   : > { %v6671_v1 = vld [vmem:[%s7318_s6 + $0x49c] sm:$0xf0] }
  0x52   : > { %v5306_v2 = vld [vmem:[%s7318_s6 + $0x680] sm:$0xf]  ;;  %v5051_v6 = vor.u32 %v6671_v1, %v5050_v0  ;;  %3432 = vmatpush.bf16.msra.mxu1 %v4795_v5 }
  0x53   : > { %v6735_v3 = vld [vmem:[%s7318_s6 + $0x69c] sm:$0xf0] }
  0x54   : > { %v4506_v7 = vld [vmem:[%s7318_s6 + $0x40] sm:$0xf]  ;;  %v5307_v10 = vor.u32 %v6735_v3, %v5306_v2  ;;  %3445 = vmatpush.bf16.msra.mxu2 %v5051_v6 }
  0x55   : > { %v6535_v8 = vld [vmem:[%s7318_s6 + $0x5c] sm:$0xf0] }
  0x56   : > { %v4762_v9 = vld [vmem:[%s7318_s6 + $0x240] sm:$0xf]  ;;  %v4507_v16 = vor.u32 %v6535_v8, %v4506_v7  ;;  %3458 = vmatpush.bf16.msra.mxu3 %v5307_v10  ;;  %v321_v10 = vld [vmem:[%s8583_s0 + $0x18] sm:$0xff] }
  0x57   : > { %v6599_v11 = vld [vmem:[%s7318_s6 + $0x25c] sm:$0xf0] }
  0x58   : > { %v5018_v12 = vld [vmem:[%s7318_s6 + $0x440] sm:$0xf]  ;;  %v4763_v19 = vor.u32 %v6599_v11, %v4762_v9  ;;  %3420 = vmatpush.bf16.msra.mxu0 %v4507_v16  ;;  %v319_v11 = vld [vmem:[%s8583_s0 + $0x8] sm:$0xff]  ;;  %v7441_v16 = vpack.c.bf16 %v321_v10, %v321_v10  ;;  %v4956_v10 = vld [vmem:[%s7318_s6 + $0x3e0] sm:$0xf0] }
  0x59   : > { %v6663_v13 = vld [vmem:[%s7318_s6 + $0x45c] sm:$0xf0] }
  0x5a   : > { %v5274_v14 = vld [vmem:[%s7318_s6 + $0x640] sm:$0xf]  ;;  %v5019_v20 = vor.u32 %v6663_v13, %v5018_v12  ;;  %3433 = vmatpush.bf16.msra.mxu1 %v4763_v19 }
  0x5b   : > { %v6727_v15 = vld [vmem:[%s7318_s6 + $0x65c] sm:$0xf0] }
  0x5c   : > { %v4474_v17 = vld [vmem:[%s7318_s6] sm:$0xf]  ;;  %v5275_v24 = vor.u32 %v6727_v15, %v5274_v14  ;;  %3446 = vmatpush.bf16.msra.mxu2 %v5019_v20 }
  0x5d   : > { %v6527_v18 = vld [vmem:[%s7318_s6 + $0x1c] sm:$0xf0] }
  0x5e   : > { %v4730_v21 = vld [vmem:[%s7318_s6 + $0x200] sm:$0xf]  ;;  %v4475_v31 = vor.u32 %v6527_v18, %v4474_v17  ;;  %3459 = vmatpush.bf16.msra.mxu3 %v5275_v24  ;;  %v7443_v17 = vpack.c.bf16 %v319_v11, %v319_v11  ;;  %v6707_v11 = vld [vmem:[%s7318_s6 + $0x5c4] sm:$0xf] }
  0x5f   : > { %v6591_v22 = vld [vmem:[%s7318_s6 + $0x21c] sm:$0xf0] }
  0x60   : > { %v4986_v23 = vld [vmem:[%s7318_s6 + $0x400] sm:$0xf]  ;;  %v4731_v35 = vor.u32 %v6591_v22, %v4730_v21  ;;  %3421 = vmatpush.bf16.msra.mxu0 %v4475_v31 }
  0x61   : > { %v6655_v25 = vld [vmem:[%s7318_s6 + $0x41c] sm:$0xf0] }
  0x62   : > { %v5242_v26 = vld [vmem:[%s7318_s6 + $0x600] sm:$0xf]  ;;  %v4987_v36 = vor.u32 %v6655_v25, %v4986_v23  ;;  %3434 = vmatpush.bf16.msra.mxu1 %v4731_v35 }
  0x63   : > { %v6719_v27 = vld [vmem:[%s7318_s6 + $0x61c] sm:$0xf0] }
  0x64   : > { %v5722_v28 = vld [vmem:[%s7318_s6 + $0x9c0] sm:$0xf]  ;;  %v5243_v39 = vor.u32 %v6719_v27, %v5242_v26  ;;  %3447 = vmatpush.bf16.msra.mxu2 %v4987_v36 }
  0x65   : > { %v6839_v29 = vld [vmem:[%s7318_s6 + $0x9dc] sm:$0xf0]  ;;  %3435 = vmatmul.bf16.vlgmr.msra.gmra.mxu1 %v7443_v17 }
  0x66   : > { %v5978_v30 = vld [vmem:[%s7318_s6 + $0xbc0] sm:$0xf]  ;;  %v5723_v40 = vor.u32 %v6839_v29, %v5722_v28  ;;  %3460 = vmatpush.bf16.msra.mxu3 %v5243_v39 }
  0x67   : > { %v6903_v32 = vld [vmem:[%s7318_s6 + $0xbdc] sm:$0xf0]  ;;  %3448 = vmatmul.bf16.vlgmr.msra.gmra.mxu2 %v7419_v63 }
  0x68   : > { %v6234_v33 = vld [vmem:[%s7318_s6 + $0xdc0] sm:$0xf]  ;;  %v5979_v41 = vor.u32 %v6903_v32, %v5978_v30  ;;  %3466 = vmatpush.bf16.msrb.mxu0 %v5723_v40 }
  0x69   : > { %v6967_v34 = vld [vmem:[%s7318_s6 + $0xddc] sm:$0xf0]  ;;  %3461 = vmatmul.bf16.vlgmr.msra.gmra.mxu3 %v7441_v16 }
  0x6a   : > { %v6490_v37 = vld [vmem:[%s7318_s6 + $0xfc0] sm:$0xf]  ;;  %v6235_v42 = vor.u32 %v6967_v34, %v6234_v33  ;;  %3479 = vmatpush.bf16.msrb.mxu1 %v5979_v41 }
  0x6b   : > { %v7031_v38 = vld [vmem:[%s7318_s6 + $0xfdc] sm:$0xf0] }
  0x6c   : > { %v5690_v43 = vld [vmem:[%s7318_s6 + $0x980] sm:$0xf]  ;;  %v6491_v46 = vor.u32 %v7031_v38, %v6490_v37  ;;  %3492 = vmatpush.bf16.msrb.mxu2 %v6235_v42 }
  0x6d   : > { %v6831_v44 = vld [vmem:[%s7318_s6 + $0x99c] sm:$0xf0] }
  0x6e   : > { %v5946_v45 = vld [vmem:[%s7318_s6 + $0xb80] sm:$0xf]  ;;  %v5691_v52 = vor.u32 %v6831_v44, %v5690_v43  ;;  %3505 = vmatpush.bf16.msrb.mxu3 %v6491_v46 }
  0x6f   : > { %v6895_v47 = vld [vmem:[%s7318_s6 + $0xb9c] sm:$0xf0] }
  0x70   : > { %v6202_v48 = vld [vmem:[%s7318_s6 + $0xd80] sm:$0xf]  ;;  %v5947_v54 = vor.u32 %v6895_v47, %v5946_v45  ;;  %3467 = vmatpush.bf16.msrb.mxu0 %v5691_v52 }
  0x71   : > { %v6959_v49 = vld [vmem:[%s7318_s6 + $0xd9c] sm:$0xf0] }
  0x72   : > { %v6458_v50 = vld [vmem:[%s7318_s6 + $0xf80] sm:$0xf]  ;;  %v6203_v55 = vor.u32 %v6959_v49, %v6202_v48  ;;  %3480 = vmatpush.bf16.msrb.mxu1 %v5947_v54 }
  0x73   : > { %v7023_v51 = vld [vmem:[%s7318_s6 + $0xf9c] sm:$0xf0] }
  0x74   : > { %v5658_v53 = vld [vmem:[%s7318_s6 + $0x940] sm:$0xf]  ;;  %v6459_v59 = vor.u32 %v7023_v51, %v6458_v50  ;;  %3493 = vmatpush.bf16.msrb.mxu2 %v6203_v55 }
  0x75   : > { %v6823_v56 = vld [vmem:[%s7318_s6 + $0x95c] sm:$0xf0] }
  0x76   : > { %v5914_v57 = vld [vmem:[%s7318_s6 + $0xb40] sm:$0xf]  ;;  %v5659_v2 = vor.u32 %v6823_v56, %v5658_v53  ;;  %3506 = vmatpush.bf16.msrb.mxu3 %v6459_v59 }
  0x77   : > { %v6887_v60 = vld [vmem:[%s7318_s6 + $0xb5c] sm:$0xf0] }
  0x78   : > { %v6170_v61 = vld [vmem:[%s7318_s6 + $0xd40] sm:$0xf]  ;;  %v5915_v6 = vor.u32 %v6887_v60, %v5914_v57  ;;  %3468 = vmatpush.bf16.msrb.mxu0 %v5659_v2 }
  0x79   : > { %v6951_v62 = vld [vmem:[%s7318_s6 + $0xd5c] sm:$0xf0] }
  0x7a   : > { %v6426_v0 = vld [vmem:[%s7318_s6 + $0xf40] sm:$0xf]  ;;  %v6171_v7 = vor.u32 %v6951_v62, %v6170_v61  ;;  %3481 = vmatpush.bf16.msrb.mxu1 %v5915_v6  ;;  %v4700_v6 = vld [vmem:[%s7318_s6 + $0x1e0] sm:$0xf0] }
  0x7b   : > { %v7015_v1 = vld [vmem:[%s7318_s6 + $0xf5c] sm:$0xf0] }
  0x7c   : > { %v5626_v3 = vld [vmem:[%s7318_s6 + $0x900] sm:$0xf]  ;;  %v6427_v12 = vor.u32 %v7015_v1, %v6426_v0  ;;  %3494 = vmatpush.bf16.msrb.mxu2 %v6171_v7  ;;  %v6643_v7 = vld [vmem:[%s7318_s6 + $0x3c4] sm:$0xf] }
  0x7d   : > { %v6815_v4 = vld [vmem:[%s7318_s6 + $0x91c] sm:$0xf0] }
  0x7e   : > { %v318_v5 = vld [vmem:[%s8583_s0] sm:$0xff]  ;;  %v5627_v20 = vor.u32 %v6815_v4, %v5626_v3  ;;  %3507 = vmatpush.bf16.msrb.mxu3 %v6427_v12 }
  0x7f   : > { %v5882_v8 = vld [vmem:[%s7318_s6 + $0xb00] sm:$0xf]  ;;  %v7430_v9 = vpack.c.bf16 %v318_v5, %v318_v5  ;;  %v6579_v5 = vld [vmem:[%s7318_s6 + $0x1c4] sm:$0xf] }
  0x80   : > { %v6879_v13 = vld [vmem:[%s7318_s6 + $0xb1c] sm:$0xf0]  ;;  %3469 = vmatpush.bf16.msrb.mxu0 %v5627_v20  ;;  %v5212_v12 = vld [vmem:[%s7318_s6 + $0x5e0] sm:$0xf0] }
  0x81   : > { %v6138_v14 = vld [vmem:[%s7318_s6 + $0xd00] sm:$0xf]  ;;  %3422 = vmatmul.bf16.vlgmr.msra.gmra.mxu0 %v7430_v9  ;;  %v5883_v21 = vor.u32 %v6879_v13, %v5882_v8 }
  0x82   : > { %v6943_v15 = vld [vmem:[%s7318_s6 + $0xd1c] sm:$0xf0] }
  0x83   : > { %v6394_v18 = vld [vmem:[%s7318_s6 + $0xf00] sm:$0xf]  ;;  %v6139_v22 = vor.u32 %v6943_v15, %v6138_v14  ;;  %3482 = vmatpush.bf16.msrb.mxu1 %v5883_v21  ;;  %v6771_v15 = vld [vmem:[%s7318_s6 + $0x7c4] sm:$0xf]  ;;  %v4703_v21 = vor.u32 %v6579_v5, %v4700_v6 }
  0x84   : > { %v7007_v19 = vld [vmem:[%s7318_s6 + $0xf1c] sm:$0xf0]  ;;  %v4572_v5 = vld [vmem:[%s7318_s6 + $0xe0] sm:$0xf0] }
  0x85   : > { %v5594_v23 = vld [vmem:[%s7318_s6 + $0x8c0] sm:$0xf]  ;;  %v6395_v26 = vor.u32 %v7007_v19, %v6394_v18  ;;  %3495 = vmatpush.bf16.msrb.mxu2 %v6139_v22  ;;  %v5468_v18 = vld [vmem:[%s7318_s6 + $0x7e0] sm:$0xf0]  ;;  %v324_v19 = vld [vmem:[%s8583_s0 + $0x30] sm:$0xff] }
  0x86   : > { %v6807_v24 = vld [vmem:[%s7318_s6 + $0x8dc] sm:$0xf0]  ;;  %v6571_v22 = vld [vmem:[%s7318_s6 + $0x184] sm:$0xf] }
  0x87   : > { %v5850_v25 = vld [vmem:[%s7318_s6 + $0xac0] sm:$0xf]  ;;  %v5595_v32 = vor.u32 %v6807_v24, %v5594_v23  ;;  %3508 = vmatpush.bf16.msrb.mxu3 %v6395_v26  ;;  %v325_v24 = vld [vmem:[%s8583_s0 + $0x38] sm:$0xff]  ;;  %v5215_v26 = vor.u32 %v6707_v11, %v5212_v12  ;;  %v6611_v6 = vld [vmem:[%s7318_s6 + $0x2c4] sm:$0xf] }
  0x88   : > { %v6871_v27 = vld [vmem:[%s7318_s6 + $0xadc] sm:$0xf0]  ;;  %v5084_v11 = vld [vmem:[%s7318_s6 + $0x4e0] sm:$0xf0] }
  0x89   : > { %v6106_v28 = vld [vmem:[%s7318_s6 + $0xcc0] sm:$0xf]  ;;  %v5851_v33 = vor.u32 %v6871_v27, %v5850_v25  ;;  %3470 = vmatpush.bf16.msrb.mxu0 %v5595_v32  ;;  %v4959_v25 = vor.u32 %v6643_v7, %v4956_v10  ;;  %v4668_v27 = vld [vmem:[%s7318_s6 + $0x1a0] sm:$0xf0] }
  0x8a   : > { %v6935_v29 = vld [vmem:[%s7318_s6 + $0xcdc] sm:$0xf0]  ;;  %v6699_v32 = vld [vmem:[%s7318_s6 + $0x584] sm:$0xf] }
  0x8b   : > { %v6362_v30 = vld [vmem:[%s7318_s6 + $0xec0] sm:$0xf]  ;;  %v6107_v34 = vor.u32 %v6935_v29, %v6106_v28  ;;  %3483 = vmatpush.bf16.msrb.mxu1 %v5851_v33  ;;  %v6635_v28 = vld [vmem:[%s7318_s6 + $0x384] sm:$0xf]  ;;  %v323_v29 = vld [vmem:[%s8583_s0 + $0x28] sm:$0xff] }
  0x8c   : > { %v6999_v31 = vld [vmem:[%s7318_s6 + $0xedc] sm:$0xf0]  ;;  %v5180_v33 = vld [vmem:[%s7318_s6 + $0x5a0] sm:$0xf0] }
  0x8d   : > { %v5562_v35 = vld [vmem:[%s7318_s6 + $0x880] sm:$0xf]  ;;  %v6363_v38 = vor.u32 %v6999_v31, %v6362_v30  ;;  %3496 = vmatpush.bf16.msrb.mxu2 %v6107_v34  ;;  %v5471_v30 = vor.u32 %v6771_v15, %v5468_v18  ;;  %v4924_v31 = vld [vmem:[%s7318_s6 + $0x3a0] sm:$0xf0]  ;;  %v7508_v34 = vpack.c.bf16 %v324_v19, %v324_v19 }
  0x8e   : > { %v6799_v36 = vld [vmem:[%s7318_s6 + $0x89c] sm:$0xf0]  ;;  %v6675_v10 = vld [vmem:[%s7318_s6 + $0x4c4] sm:$0xf] }
  0x8f   : > { %v5818_v37 = vld [vmem:[%s7318_s6 + $0xa80] sm:$0xf]  ;;  %v5563_v44 = vor.u32 %v6799_v36, %v5562_v35  ;;  %3509 = vmatpush.bf16.msrb.mxu3 %v6363_v38  ;;  %v6763_v35 = vld [vmem:[%s7318_s6 + $0x784] sm:$0xf]  ;;  %v7514_v38 = vpack.c.bf16 %v325_v24, %v325_v24  ;;  %v5087_v18 = vor.u32 %v6675_v10, %v5084_v11 }
  0x90   : > { %v6863_v39 = vld [vmem:[%s7318_s6 + $0xa9c] sm:$0xf0]  ;;  %v5436_v36 = vld [vmem:[%s7318_s6 + $0x7a0] sm:$0xf0] }
  0x91   : > { %v6074_v40 = vld [vmem:[%s7318_s6 + $0xc80] sm:$0xf]  ;;  %v5819_v45 = vor.u32 %v6863_v39, %v5818_v37  ;;  %3471 = vmatpush.bf16.msrb.mxu0 %v5563_v44  ;;  %v4671_v39 = vor.u32 %v6571_v22, %v4668_v27  ;;  %v4636_v44 = vld [vmem:[%s7318_s6 + $0x160] sm:$0xf0] }
  0x92   : > { %v6927_v41 = vld [vmem:[%s7318_s6 + $0xc9c] sm:$0xf0]  ;;  %v6739_v12 = vld [vmem:[%s7318_s6 + $0x6c4] sm:$0xf] }
  0x93   : > { %v6330_v42 = vld [vmem:[%s7318_s6 + $0xe80] sm:$0xf]  ;;  %v6075_v46 = vor.u32 %v6927_v41, %v6074_v40  ;;  %3484 = vmatpush.bf16.msrb.mxu1 %v5819_v45  ;;  %v7516_v40 = vpack.c.bf16 %v323_v29, %v323_v29  ;;  %v4927_v41 = vor.u32 %v6635_v28, %v4924_v31  ;;  %v6627_v45 = vld [vmem:[%s7318_s6 + $0x344] sm:$0xf] }
  0x94   : > { %v6991_v43 = vld [vmem:[%s7318_s6 + $0xe9c] sm:$0xf0]  ;;  %v6539_v19 = vld [vmem:[%s7318_s6 + $0x84] sm:$0xf] }
  0x95   : > { %v5530_v47 = vld [vmem:[%s7318_s6 + $0x840] sm:$0xf]  ;;  %v6331_v50 = vor.u32 %v6991_v43, %v6330_v42  ;;  %3497 = vmatpush.bf16.msrb.mxu2 %v6075_v46  ;;  %v5183_v42 = vor.u32 %v6699_v32, %v5180_v33  ;;  %v6563_v43 = vld [vmem:[%s7318_s6 + $0x144] sm:$0xf]  ;;  %v5439_v46 = vor.u32 %v6763_v35, %v5436_v36 }
  0x96   : > { %v6791_v48 = vld [vmem:[%s7318_s6 + $0x85c] sm:$0xf0]  ;;  %v6667_v24 = vld [vmem:[%s7318_s6 + $0x484] sm:$0xf] }
  0x97   : > { %v5786_v49 = vld [vmem:[%s7318_s6 + $0xa40] sm:$0xf]  ;;  %v5531_v56 = vor.u32 %v6791_v48, %v5530_v47  ;;  %3510 = vmatpush.bf16.msrb.mxu3 %v6331_v50  ;;  %v4892_v47 = vld [vmem:[%s7318_s6 + $0x360] sm:$0xf0] }
  0x98   : > { %v6855_v51 = vld [vmem:[%s7318_s6 + $0xa5c] sm:$0xf0]  ;;  %v6691_v48 = vld [vmem:[%s7318_s6 + $0x544] sm:$0xf] }
  0x99   : > { %v6042_v52 = vld [vmem:[%s7318_s6 + $0xc40] sm:$0xf]  ;;  %v5787_v59 = vor.u32 %v6855_v51, %v5786_v49  ;;  %3472 = vmatpush.bf16.msrb.mxu0 %v5531_v56  ;;  %v5148_v49 = vld [vmem:[%s7318_s6 + $0x560] sm:$0xf0] }
  0x9a   : > { %v6919_v53 = vld [vmem:[%s7318_s6 + $0xc5c] sm:$0xf0]  ;;  %v6755_v50 = vld [vmem:[%s7318_s6 + $0x744] sm:$0xf] }
  0x9b   : > { %v6298_v54 = vld [vmem:[%s7318_s6 + $0xe40] sm:$0xf]  ;;  %v6043_v60 = vor.u32 %v6919_v53, %v6042_v52  ;;  %3485 = vmatpush.bf16.msrb.mxu1 %v5787_v59  ;;  %v5404_v51 = vld [vmem:[%s7318_s6 + $0x760] sm:$0xf0]  ;;  %v4639_v52 = vor.u32 %v6563_v43, %v4636_v44  ;;  %v4895_v53 = vor.u32 %v6627_v45, %v4892_v47 }
  0x9c   : > { %v6983_v55 = vld [vmem:[%s7318_s6 + $0xe5c] sm:$0xf0]  ;;  %v4604_v56 = vld [vmem:[%s7318_s6 + $0x120] sm:$0xf0] }
  0x9d   : > { %v5498_v57 = vld [vmem:[%s7318_s6 + $0x800] sm:$0xf]  ;;  %v6299_v1 = vor.u32 %v6983_v55, %v6298_v54  ;;  %3498 = vmatpush.bf16.msrb.mxu2 %v6043_v60  ;;  %v5151_v54 = vor.u32 %v6691_v48, %v5148_v49  ;;  %v6555_v55 = vld [vmem:[%s7318_s6 + $0x104] sm:$0xf] }
  0x9e   : > { %v6783_v58 = vld [vmem:[%s7318_s6 + $0x81c] sm:$0xf0]  ;;  %v4860_v59 = vld [vmem:[%s7318_s6 + $0x320] sm:$0xf0] }
  0x9f   : > { %v5754_v61 = vld [vmem:[%s7318_s6 + $0xa00] sm:$0xf]  ;;  %v5499_v8 = vor.u32 %v6783_v58, %v5498_v57  ;;  %3511 = vmatpush.bf16.msrb.mxu3 %v6299_v1  ;;  %v6619_v57 = vld [vmem:[%s7318_s6 + $0x304] sm:$0xf]  ;;  %v5407_v58 = vor.u32 %v6755_v50, %v5404_v51  ;;  %v4607_v1 = vor.u32 %v6555_v55, %v4604_v56 }
  0xa0   : > { %v6847_v62 = vld [vmem:[%s7318_s6 + $0xa1c] sm:$0xf0]  ;;  %v6683_v60 = vld [vmem:[%s7318_s6 + $0x504] sm:$0xf] }
  0xa1   : > { %v6010_v0 = vld [vmem:[%s7318_s6 + $0xc00] sm:$0xf]  ;;  %v5755_v13 = vor.u32 %v6847_v62, %v5754_v61  ;;  %3473 = vmatpush.bf16.msrb.mxu0 %v5499_v8  ;;  %v5116_v61 = vld [vmem:[%s7318_s6 + $0x520] sm:$0xf0] }
  0xa2   : > { %v6911_v2 = vld [vmem:[%s7318_s6 + $0xc1c] sm:$0xf0]  ;;  %v6747_v62 = vld [vmem:[%s7318_s6 + $0x704] sm:$0xf] }
  0xa3   : > { %v6266_v3 = vld [vmem:[%s7318_s6 + $0xe00] sm:$0xf]  ;;  %v6011_v14 = vor.u32 %v6911_v2, %v6010_v0  ;;  %3486 = vmatpush.bf16.msrb.mxu1 %v5755_v13  ;;  %v5372_v0 = vld [vmem:[%s7318_s6 + $0x720] sm:$0xf0]  ;;  %v4863_v2 = vor.u32 %v6619_v57, %v4860_v59 }
  0xa4   : > { %v6975_v4 = vld [vmem:[%s7318_s6 + $0xe1c] sm:$0xf0]  ;;  %v5375_v7 = vor.u32 %v6747_v62, %v5372_v0  ;;  %v4828_v8 = vld [vmem:[%s7318_s6 + $0x2e0] sm:$0xf0] }
  0xa5   : > { %v6267_v20 = vor.u32 %v6975_v4, %v6266_v3  ;;  %v322_v23 = vld [vmem:[%s8583_s0 + $0x20] sm:$0xff]  ;;  %3499 = vmatpush.bf16.msrb.mxu2 %v6011_v14  ;;  %3518 = vmatpush.bf16.msra.mxu0 %v4703_v21  ;;  %v5119_v3 = vor.u32 %v6683_v60, %v5116_v61  ;;  %v4831_v15 = vor.u32 %v6611_v6, %v4828_v8 }
  0xa6   : > { %v7512_v37 = vpack.c.bf16 %v322_v23, %v322_v23  ;;  %3487 = vmatmul.bf16.vlgmr.msrb.gmra.mxu1 %v7516_v40  ;;  %v6547_v4 = vld [vmem:[%s7318_s6 + $0xc4] sm:$0xf] }
  0xa7   : > { %3512 = vmatpush.bf16.msrb.mxu3 %v6267_v20  ;;  %3531 = vmatpush.bf16.msra.mxu1 %v4959_v25  ;;  %v5340_v13 = vld [vmem:[%s7318_s6 + $0x6e0] sm:$0xf0]  ;;  %v4575_v14 = vor.u32 %v6547_v4, %v4572_v5 }
  0xa8   : > { %3500 = vmatmul.bf16.vlgmr.msrb.gmra.mxu2 %v7508_v34  ;;  %3474 = vmatmul.bf16.vlgmr.msrb.gmra.mxu0 %v7512_v37  ;;  %v4540_v20 = vld [vmem:[%s7318_s6 + $0xa0] sm:$0xf0]  ;;  %v5343_v22 = vor.u32 %v6739_v12, %v5340_v13 }
  0xa9   : > { %3544 = vmatpush.bf16.msra.mxu2 %v5215_v26  ;;  %3519 = vmatpush.bf16.msra.mxu0 %v4671_v39  ;;  %v6603_v21 = vld [vmem:[%s7318_s6 + $0x284] sm:$0xf]  ;;  %v4543_v28 = vor.u32 %v6539_v19, %v4540_v20 }
  0xaa   : > { %3513 = vmatmul.bf16.vlgmr.msrb.gmra.mxu3 %v7514_v38  ;;  %v4796_v23 = vld [vmem:[%s7318_s6 + $0x2a0] sm:$0xf0] }
  0xab   : > { %3557 = vmatpush.bf16.msra.mxu3 %v5471_v30  ;;  %3532 = vmatpush.bf16.msra.mxu1 %v4927_v41  ;;  %v5052_v25 = vld [vmem:[%s7318_s6 + $0x4a0] sm:$0xf0]  ;;  %v4799_v29 = vor.u32 %v6603_v21, %v4796_v23 }
  0xac   : > { %v6731_v26 = vld [vmem:[%s7318_s6 + $0x684] sm:$0xf]  ;;  %v5055_v30 = vor.u32 %v6667_v24, %v5052_v25 }
  0xad   : > { %3545 = vmatpush.bf16.msra.mxu2 %v5183_v42  ;;  %3520 = vmatpush.bf16.msra.mxu0 %v4639_v52  ;;  %v5308_v27 = vld [vmem:[%s7318_s6 + $0x6a0] sm:$0xf0] }
  0xae   : > { %v6531_v31 = vld [vmem:[%s7318_s6 + $0x44] sm:$0xf]  ;;  %v5311_v35 = vor.u32 %v6731_v26, %v5308_v27 }
  0xaf   : > { %3558 = vmatpush.bf16.msra.mxu3 %v5439_v46  ;;  %3533 = vmatpush.bf16.msra.mxu1 %v4895_v53  ;;  %v4508_v32 = vld [vmem:[%s7318_s6 + $0x60] sm:$0xf0] }
  0xb0   : > { %v6595_v33 = vld [vmem:[%s7318_s6 + $0x244] sm:$0xf]  ;;  %v4511_v44 = vor.u32 %v6531_v31, %v4508_v32 }
  0xb1   : > { %3546 = vmatpush.bf16.msra.mxu2 %v5151_v54  ;;  %3521 = vmatpush.bf16.msra.mxu0 %v4607_v1  ;;  %v4764_v36 = vld [vmem:[%s7318_s6 + $0x260] sm:$0xf0] }
  0xb2   : > { %v6659_v39 = vld [vmem:[%s7318_s6 + $0x444] sm:$0xf]  ;;  %v4767_v47 = vor.u32 %v6595_v33, %v4764_v36 }
  0xb3   : > { %3559 = vmatpush.bf16.msra.mxu3 %v5407_v58  ;;  %3534 = vmatpush.bf16.msra.mxu1 %v4863_v2  ;;  %v5020_v41 = vld [vmem:[%s7318_s6 + $0x460] sm:$0xf0] }
  0xb4   : > { %v6723_v42 = vld [vmem:[%s7318_s6 + $0x644] sm:$0xf]  ;;  %v5023_v48 = vor.u32 %v6659_v39, %v5020_v41 }
  0xb5   : > { %3547 = vmatpush.bf16.msra.mxu2 %v5119_v3  ;;  %3522 = vmatpush.bf16.msra.mxu0 %v4575_v14  ;;  %v5276_v43 = vld [vmem:[%s7318_s6 + $0x660] sm:$0xf0] }
  0xb6   : > { %v6523_v45 = vld [vmem:[%s7318_s6 + $0x4] sm:$0xf]  ;;  %v5279_v52 = vor.u32 %v6723_v42, %v5276_v43 }
  0xb7   : > { %3560 = vmatpush.bf16.msra.mxu3 %v5375_v7  ;;  %3535 = vmatpush.bf16.msra.mxu1 %v4831_v15  ;;  %v4476_v46 = vld [vmem:[%s7318_s6 + $0x20] sm:$0xf0] }
  0xb8   : > { %v6587_v49 = vld [vmem:[%s7318_s6 + $0x204] sm:$0xf]  ;;  %v4479_v59 = vor.u32 %v6523_v45, %v4476_v46 }
  0xb9   : > { %3548 = vmatpush.bf16.msra.mxu2 %v5087_v18  ;;  %3523 = vmatpush.bf16.msra.mxu0 %v4543_v28  ;;  %v4732_v50 = vld [vmem:[%s7318_s6 + $0x220] sm:$0xf0] }
  0xba   : > { %v6651_v51 = vld [vmem:[%s7318_s6 + $0x404] sm:$0xf]  ;;  %v4735_v0 = vor.u32 %v6587_v49, %v4732_v50 }
  0xbb   : > { %3561 = vmatpush.bf16.msra.mxu3 %v5343_v22  ;;  %3536 = vmatpush.bf16.msra.mxu1 %v4799_v29  ;;  %v4988_v53 = vld [vmem:[%s7318_s6 + $0x420] sm:$0xf0] }
  0xbc   : > { %v6715_v54 = vld [vmem:[%s7318_s6 + $0x604] sm:$0xf]  ;;  %v4991_v1 = vor.u32 %v6651_v51, %v4988_v53 }
  0xbd   : > { %3549 = vmatpush.bf16.msra.mxu2 %v5055_v30  ;;  %v5244_v55 = vld [vmem:[%s7318_s6 + $0x620] sm:$0xf0]  ;;  %3524 = vmatpush.bf16.msra.mxu0 %v4511_v44 }
  0xbe   : > { %v6835_v56 = vld [vmem:[%s7318_s6 + $0x9c4] sm:$0xf]  ;;  %v5247_v4 = vor.u32 %v6715_v54, %v5244_v55 }
  0xbf   : > { %3562 = vmatpush.bf16.msra.mxu3 %v5311_v35  ;;  %v5724_v57 = vld [vmem:[%s7318_s6 + $0x9e0] sm:$0xf0]  ;;  %3537 = vmatpush.bf16.msra.mxu1 %v4767_v47 }
  0xc0   : > { %v6899_v58 = vld [vmem:[%s7318_s6 + $0xbc4] sm:$0xf]  ;;  %v5727_v5 = vor.u32 %v6835_v56, %v5724_v57 }
  0xc1   : > { %v5980_v60 = vld [vmem:[%s7318_s6 + $0xbe0] sm:$0xf0]  ;;  %3550 = vmatpush.bf16.msra.mxu2 %v5023_v48  ;;  %3525 = vmatpush.bf16.msra.mxu0 %v4479_v59 }
  0xc2   : > { %v6963_v61 = vld [vmem:[%s7318_s6 + $0xdc4] sm:$0xf]  ;;  %v5983_v6 = vor.u32 %v6899_v58, %v5980_v60 }
  0xc3   : > { %v6236_v62 = vld [vmem:[%s7318_s6 + $0xde0] sm:$0xf0]  ;;  %3563 = vmatpush.bf16.msra.mxu3 %v5279_v52  ;;  %3538 = vmatpush.bf16.msra.mxu1 %v4735_v0 }
  0xc4   : > { %v7027_v2 = vld [vmem:[%s7318_s6 + $0xfc4] sm:$0xf]  ;;  %v6239_v7 = vor.u32 %v6963_v61, %v6236_v62  ;;  %3526 = vmatmul.bf16.vlgmr.msra.gmra.mxu0 %v7430_v9 }
  0xc5   : > { %v6492_v3 = vld [vmem:[%s7318_s6 + $0xfe0] sm:$0xf0]  ;;  %3551 = vmatpush.bf16.msra.mxu2 %v4991_v1  ;;  %3570 = vmatpush.bf16.msrb.mxu0 %v5727_v5 }
  0xc6   : > { %v6827_v8 = vld [vmem:[%s7318_s6 + $0x984] sm:$0xf]  ;;  %v6495_v12 = vor.u32 %v7027_v2, %v6492_v3  ;;  %3539 = vmatmul.bf16.vlgmr.msra.gmra.mxu1 %v7443_v17 }
  0xc7   : > { %v5692_v10 = vld [vmem:[%s7318_s6 + $0x9a0] sm:$0xf0]  ;;  %3564 = vmatpush.bf16.msra.mxu3 %v5247_v4  ;;  %3583 = vmatpush.bf16.msrb.mxu1 %v5983_v6 }
  0xc8   : > { %v6891_v11 = vld [vmem:[%s7318_s6 + $0xb84] sm:$0xf]  ;;  %v5695_v20 = vor.u32 %v6827_v8, %v5692_v10  ;;  %3552 = vmatmul.bf16.vlgmr.msra.gmra.mxu2 %v7419_v63 }
  0xc9   : > { %v5948_v13 = vld [vmem:[%s7318_s6 + $0xba0] sm:$0xf0]  ;;  %3596 = vmatpush.bf16.msrb.mxu2 %v6239_v7 }
  0xca   : > { %v6955_v14 = vld [vmem:[%s7318_s6 + $0xd84] sm:$0xf]  ;;  %v5951_v21 = vor.u32 %v6891_v11, %v5948_v13  ;;  %3565 = vmatmul.bf16.vlgmr.msra.gmra.mxu3 %v7441_v16  ;;  %3571 = vmatpush.bf16.msrb.mxu0 %v5695_v20 }
  0xcb   : > { %v6204_v15 = vld [vmem:[%s7318_s6 + $0xda0] sm:$0xf0]  ;;  %3609 = vmatpush.bf16.msrb.mxu3 %v6495_v12 }
  0xcc   : > { %v7019_v18 = vld [vmem:[%s7318_s6 + $0xf84] sm:$0xf]  ;;  %v6207_v22 = vor.u32 %v6955_v14, %v6204_v15  ;;  %3584 = vmatpush.bf16.msrb.mxu1 %v5951_v21 }
  0xcd   : > { %v6460_v19 = vld [vmem:[%s7318_s6 + $0xfa0] sm:$0xf0] }
  0xce   : > { %v6819_v23 = vld [vmem:[%s7318_s6 + $0x944] sm:$0xf]  ;;  %v6463_v26 = vor.u32 %v7019_v18, %v6460_v19  ;;  %3597 = vmatpush.bf16.msrb.mxu2 %v6207_v22 }
  0xcf   : > { %v5660_v24 = vld [vmem:[%s7318_s6 + $0x960] sm:$0xf0] }
  0xd0   : > { %v6883_v25 = vld [vmem:[%s7318_s6 + $0xb44] sm:$0xf]  ;;  %v5663_v32 = vor.u32 %v6819_v23, %v5660_v24  ;;  %3610 = vmatpush.bf16.msrb.mxu3 %v6463_v26 }
  0xd1   : > { %v5916_v27 = vld [vmem:[%s7318_s6 + $0xb60] sm:$0xf0] }
  0xd2   : > { %v6947_v28 = vld [vmem:[%s7318_s6 + $0xd44] sm:$0xf]  ;;  %v5919_v33 = vor.u32 %v6883_v25, %v5916_v27  ;;  %3572 = vmatpush.bf16.msrb.mxu0 %v5663_v32 }
  0xd3   : > { %v6172_v29 = vld [vmem:[%s7318_s6 + $0xd60] sm:$0xf0] }
  0xd4   : > { %v7011_v30 = vld [vmem:[%s7318_s6 + $0xf44] sm:$0xf]  ;;  %v6175_v35 = vor.u32 %v6947_v28, %v6172_v29  ;;  %3585 = vmatpush.bf16.msrb.mxu1 %v5919_v33 }
  0xd5   : > { %v6428_v31 = vld [vmem:[%s7318_s6 + $0xf60] sm:$0xf0] }
  0xd6   : > { %v6811_v36 = vld [vmem:[%s7318_s6 + $0x904] sm:$0xf]  ;;  %v6431_v42 = vor.u32 %v7011_v30, %v6428_v31  ;;  %3598 = vmatpush.bf16.msrb.mxu2 %v6175_v35 }
  0xd7   : > { %v5628_v39 = vld [vmem:[%s7318_s6 + $0x920] sm:$0xf0] }
  0xd8   : > { %v6875_v41 = vld [vmem:[%s7318_s6 + $0xb04] sm:$0xf]  ;;  %v5631_v48 = vor.u32 %v6811_v36, %v5628_v39  ;;  %3611 = vmatpush.bf16.msrb.mxu3 %v6431_v42  ;;  %v4706_v39 = vld [vmem:[%s7318_s6 + $0x1c8] sm:$0xf] }
  0xd9   : > { %v5884_v43 = vld [vmem:[%s7318_s6 + $0xb20] sm:$0xf0]  ;;  %v4962_v42 = vld [vmem:[%s7318_s6 + $0x3c8] sm:$0xf] }
  0xda   : > { %v6939_v44 = vld [vmem:[%s7318_s6 + $0xd04] sm:$0xf]  ;;  %v5887_v49 = vor.u32 %v6875_v41, %v5884_v43  ;;  %3573 = vmatpush.bf16.msrb.mxu0 %v5631_v48  ;;  %v6584_v41 = vld [vmem:[%s7318_s6 + $0x1e4] sm:$0xf0] }
  0xdb   : > { %v6140_v45 = vld [vmem:[%s7318_s6 + $0xd20] sm:$0xf0] }
  0xdc   : > { %v7003_v46 = vld [vmem:[%s7318_s6 + $0xf04] sm:$0xf]  ;;  %v6143_v50 = vor.u32 %v6939_v44, %v6140_v45  ;;  %3586 = vmatpush.bf16.msrb.mxu1 %v5887_v49  ;;  %v6648_v44 = vld [vmem:[%s7318_s6 + $0x3e4] sm:$0xf0] }
  0xdd   : > { %v6396_v47 = vld [vmem:[%s7318_s6 + $0xf20] sm:$0xf0]  ;;  %v5218_v45 = vld [vmem:[%s7318_s6 + $0x5c8] sm:$0xf] }
  0xde   : > { %v6803_v51 = vld [vmem:[%s7318_s6 + $0x8c4] sm:$0xf]  ;;  %v6399_v54 = vor.u32 %v7003_v46, %v6396_v47  ;;  %3599 = vmatpush.bf16.msrb.mxu2 %v6143_v50  ;;  %v6712_v46 = vld [vmem:[%s7318_s6 + $0x5e4] sm:$0xf0] }
  0xdf   : > { %v5596_v52 = vld [vmem:[%s7318_s6 + $0x8e0] sm:$0xf0]  ;;  %v5474_v49 = vld [vmem:[%s7318_s6 + $0x7c8] sm:$0xf] }
  0xe0   : > { %v6867_v53 = vld [vmem:[%s7318_s6 + $0xac4] sm:$0xf]  ;;  %v5599_v60 = vor.u32 %v6803_v51, %v5596_v52  ;;  %3612 = vmatpush.bf16.msrb.mxu3 %v6399_v54  ;;  %v6776_v50 = vld [vmem:[%s7318_s6 + $0x7e4] sm:$0xf0]  ;;  %v4707_v52 = vor.u32 %v6584_v41, %v4706_v39  ;;  %v5219_v54 = vor.u32 %v6712_v46, %v5218_v45 }
  0xe1   : > { %v5852_v55 = vld [vmem:[%s7318_s6 + $0xae0] sm:$0xf0]  ;;  %v5090_v39 = vld [vmem:[%s7318_s6 + $0x4c8] sm:$0xf] }
  0xe2   : > { %v6931_v56 = vld [vmem:[%s7318_s6 + $0xcc4] sm:$0xf]  ;;  %v5855_v61 = vor.u32 %v6867_v53, %v5852_v55  ;;  %3574 = vmatpush.bf16.msrb.mxu0 %v5599_v60  ;;  %v4963_v53 = vor.u32 %v6648_v44, %v4962_v42  ;;  %v4674_v55 = vld [vmem:[%s7318_s6 + $0x188] sm:$0xf] }
  0xe3   : > { %v6108_v57 = vld [vmem:[%s7318_s6 + $0xce0] sm:$0xf0]  ;;  %v5186_v60 = vld [vmem:[%s7318_s6 + $0x588] sm:$0xf] }
  0xe4   : > { %v6995_v58 = vld [vmem:[%s7318_s6 + $0xec4] sm:$0xf]  ;;  %v6111_v62 = vor.u32 %v6931_v56, %v6108_v57  ;;  %3587 = vmatpush.bf16.msrb.mxu1 %v5855_v61  ;;  %v6576_v56 = vld [vmem:[%s7318_s6 + $0x1a4] sm:$0xf0] }
  0xe5   : > { %v6364_v59 = vld [vmem:[%s7318_s6 + $0xee0] sm:$0xf0]  ;;  %v4930_v57 = vld [vmem:[%s7318_s6 + $0x388] sm:$0xf] }
  0xe6   : > { %v6795_v0 = vld [vmem:[%s7318_s6 + $0x884] sm:$0xf]  ;;  %v6367_v3 = vor.u32 %v6995_v58, %v6364_v59  ;;  %3600 = vmatpush.bf16.msrb.mxu2 %v6111_v62  ;;  %v5475_v58 = vor.u32 %v6776_v50, %v5474_v49  ;;  %v6640_v59 = vld [vmem:[%s7318_s6 + $0x3a4] sm:$0xf0] }
  0xe7   : > { %v5564_v1 = vld [vmem:[%s7318_s6 + $0x8a0] sm:$0xf0]  ;;  %v6704_v61 = vld [vmem:[%s7318_s6 + $0x5a4] sm:$0xf0] }
  0xe8   : > { %v6859_v2 = vld [vmem:[%s7318_s6 + $0xa84] sm:$0xf]  ;;  %v5567_v10 = vor.u32 %v6795_v0, %v5564_v1  ;;  %3613 = vmatpush.bf16.msrb.mxu3 %v6367_v3  ;;  %v5442_v62 = vld [vmem:[%s7318_s6 + $0x788] sm:$0xf]  ;;  %v4675_v1 = vor.u32 %v6576_v56, %v4674_v55  ;;  %v5187_v3 = vor.u32 %v6704_v61, %v5186_v60 }
  0xe9   : > { %v5820_v4 = vld [vmem:[%s7318_s6 + $0xaa0] sm:$0xf0]  ;;  %v6768_v0 = vld [vmem:[%s7318_s6 + $0x7a4] sm:$0xf0] }
  0xea   : > { %v6923_v5 = vld [vmem:[%s7318_s6 + $0xc84] sm:$0xf]  ;;  %v5823_v11 = vor.u32 %v6859_v2, %v5820_v4  ;;  %3575 = vmatpush.bf16.msrb.mxu0 %v5567_v10  ;;  %v4931_v2 = vor.u32 %v6640_v59, %v4930_v57  ;;  %v4642_v4 = vld [vmem:[%s7318_s6 + $0x148] sm:$0xf] }
  0xeb   : > { %v6076_v6 = vld [vmem:[%s7318_s6 + $0xca0] sm:$0xf0]  ;;  %v5154_v10 = vld [vmem:[%s7318_s6 + $0x548] sm:$0xf] }
  0xec   : > { %v6987_v7 = vld [vmem:[%s7318_s6 + $0xe84] sm:$0xf]  ;;  %v6079_v12 = vor.u32 %v6923_v5, %v6076_v6  ;;  %3588 = vmatpush.bf16.msrb.mxu1 %v5823_v11  ;;  %v6568_v5 = vld [vmem:[%s7318_s6 + $0x164] sm:$0xf0] }
  0xed   : > { %v6332_v8 = vld [vmem:[%s7318_s6 + $0xea0] sm:$0xf0]  ;;  %v4898_v6 = vld [vmem:[%s7318_s6 + $0x348] sm:$0xf] }
  0xee   : > { %v6787_v13 = vld [vmem:[%s7318_s6 + $0x844] sm:$0xf]  ;;  %v6335_v18 = vor.u32 %v6987_v7, %v6332_v8  ;;  %3601 = vmatpush.bf16.msrb.mxu2 %v6079_v12  ;;  %v5443_v7 = vor.u32 %v6768_v0, %v5442_v62  ;;  %v6632_v8 = vld [vmem:[%s7318_s6 + $0x364] sm:$0xf0] }
  0xef   : > { %v5532_v14 = vld [vmem:[%s7318_s6 + $0x860] sm:$0xf0]  ;;  %v6696_v11 = vld [vmem:[%s7318_s6 + $0x564] sm:$0xf0] }
  0xf0   : > { %v6851_v15 = vld [vmem:[%s7318_s6 + $0xa44] sm:$0xf]  ;;  %v5535_v24 = vor.u32 %v6787_v13, %v5532_v14  ;;  %3614 = vmatpush.bf16.msrb.mxu3 %v6335_v18  ;;  %v5410_v12 = vld [vmem:[%s7318_s6 + $0x748] sm:$0xf]  ;;  %v4643_v14 = vor.u32 %v6568_v5, %v4642_v4  ;;  %v5155_v18 = vor.u32 %v6696_v11, %v5154_v10 }
  0xf1   : > { %v5788_v19 = vld [vmem:[%s7318_s6 + $0xa60] sm:$0xf0]  ;;  %v6760_v13 = vld [vmem:[%s7318_s6 + $0x764] sm:$0xf0] }
  0xf2   : > { %v6915_v20 = vld [vmem:[%s7318_s6 + $0xc44] sm:$0xf]  ;;  %v5791_v27 = vor.u32 %v6851_v15, %v5788_v19  ;;  %3576 = vmatpush.bf16.msrb.mxu0 %v5535_v24  ;;  %v4899_v15 = vor.u32 %v6632_v8, %v4898_v6  ;;  %v4610_v19 = vld [vmem:[%s7318_s6 + $0x108] sm:$0xf] }
  0xf3   : > { %v6044_v21 = vld [vmem:[%s7318_s6 + $0xc60] sm:$0xf0]  ;;  %v5122_v24 = vld [vmem:[%s7318_s6 + $0x508] sm:$0xf] }
  0xf4   : > { %v6979_v22 = vld [vmem:[%s7318_s6 + $0xe44] sm:$0xf]  ;;  %v6047_v28 = vor.u32 %v6915_v20, %v6044_v21  ;;  %3589 = vmatpush.bf16.msrb.mxu1 %v5791_v27  ;;  %v6560_v20 = vld [vmem:[%s7318_s6 + $0x124] sm:$0xf0] }
  0xf5   : > { %v6300_v23 = vld [vmem:[%s7318_s6 + $0xe60] sm:$0xf0]  ;;  %v4866_v21 = vld [vmem:[%s7318_s6 + $0x308] sm:$0xf] }
  0xf6   : > { %v6779_v25 = vld [vmem:[%s7318_s6 + $0x804] sm:$0xf]  ;;  %v6303_v32 = vor.u32 %v6979_v22, %v6300_v23  ;;  %3602 = vmatpush.bf16.msrb.mxu2 %v6047_v28  ;;  %v5411_v22 = vor.u32 %v6760_v13, %v5410_v12  ;;  %v6624_v23 = vld [vmem:[%s7318_s6 + $0x324] sm:$0xf0]  ;;  %v4611_v28 = vor.u32 %v6560_v20, %v4610_v19 }
  0xf7   : > { %v5500_v26 = vld [vmem:[%s7318_s6 + $0x820] sm:$0xf0]  ;;  %v6752_v27 = vld [vmem:[%s7318_s6 + $0x724] sm:$0xf0] }
  0xf8   : > { %v6843_v29 = vld [vmem:[%s7318_s6 + $0xa04] sm:$0xf]  ;;  %v5503_v43 = vor.u32 %v6779_v25, %v5500_v26  ;;  %3615 = vmatpush.bf16.msrb.mxu3 %v6303_v32  ;;  %v6688_v25 = vld [vmem:[%s7318_s6 + $0x524] sm:$0xf0] }
  0xf9   : > { %v5756_v30 = vld [vmem:[%s7318_s6 + $0xa20] sm:$0xf0]  ;;  %v5378_v26 = vld [vmem:[%s7318_s6 + $0x708] sm:$0xf] }
  0xfa   : > { %v6907_v31 = vld [vmem:[%s7318_s6 + $0xc04] sm:$0xf]  ;;  %v5759_v47 = vor.u32 %v6843_v29, %v5756_v30  ;;  %3577 = vmatpush.bf16.msrb.mxu0 %v5503_v43  ;;  %v4867_v29 = vor.u32 %v6624_v23, %v4866_v21  ;;  %v5123_v30 = vor.u32 %v6688_v25, %v5122_v24  ;;  %v6552_v32 = vld [vmem:[%s7318_s6 + $0xe4] sm:$0xf0] }
  0xfb   : > { %v6012_v33 = vld [vmem:[%s7318_s6 + $0xc20] sm:$0xf0]  ;;  %v6680_v41 = vld [vmem:[%s7318_s6 + $0x4e4] sm:$0xf0] }
  0xfc   : > { %v6971_v35 = vld [vmem:[%s7318_s6 + $0xe04] sm:$0xf]  ;;  %v6015_v48 = vor.u32 %v6907_v31, %v6012_v33  ;;  %3590 = vmatpush.bf16.msrb.mxu1 %v5759_v47  ;;  %v4578_v31 = vld [vmem:[%s7318_s6 + $0xc8] sm:$0xf]  ;;  %v5091_v46 = vor.u32 %v6680_v41, %v5090_v39 }
  0xfd   : > { %v6268_v36 = vld [vmem:[%s7318_s6 + $0xe20] sm:$0xf0]  ;;  %3578 = vmatmul.bf16.vlgmr.msrb.gmra.mxu0 %v7512_v37  ;;  %v4834_v33 = vld [vmem:[%s7318_s6 + $0x2c8] sm:$0xf]  ;;  %v4579_v44 = vor.u32 %v6552_v32, %v4578_v31 }
  0xfe   : > { %v6271_v51 = vor.u32 %v6971_v35, %v6268_v36  ;;  %3603 = vmatpush.bf16.msrb.mxu2 %v6015_v48  ;;  %3622 = vmatpush.bf16.msra.mxu0 %v4707_v52  ;;  %v5379_v35 = vor.u32 %v6752_v27, %v5378_v26  ;;  %v6616_v36 = vld [vmem:[%s7318_s6 + $0x2e4] sm:$0xf0] }
  0xff   : > { %3591 = vmatmul.bf16.vlgmr.msrb.gmra.mxu1 %v7516_v40  ;;  %v5346_v42 = vld [vmem:[%s7318_s6 + $0x6c8] sm:$0xf]  ;;  %v4835_v45 = vor.u32 %v6616_v36, %v4834_v33 }
 0x100   : > { %3616 = vmatpush.bf16.msrb.mxu3 %v6271_v51  ;;  %3635 = vmatpush.bf16.msra.mxu1 %v4963_v53  ;;  %v6744_v43 = vld [vmem:[%s7318_s6 + $0x6e4] sm:$0xf0] }
 0x101   : > { %3604 = vmatmul.bf16.vlgmr.msrb.gmra.mxu2 %v7508_v34  ;;  %v4546_v47 = vld [vmem:[%s7318_s6 + $0x88] sm:$0xf]  ;;  %v5347_v50 = vor.u32 %v6744_v43, %v5346_v42 }
 0x102   : > { %3648 = vmatpush.bf16.msra.mxu2 %v5219_v54  ;;  %3623 = vmatpush.bf16.msra.mxu0 %v4675_v1  ;;  %v6544_v48 = vld [vmem:[%s7318_s6 + $0xa4] sm:$0xf0] }
 0x103   : > { %3617 = vmatmul.bf16.vlgmr.msrb.gmra.mxu3 %v7514_v38  ;;  %v4802_v49 = vld [vmem:[%s7318_s6 + $0x288] sm:$0xf]  ;;  %v4547_v56 = vor.u32 %v6544_v48, %v4546_v47 }
 0x104   : > { %3661 = vmatpush.bf16.msra.mxu3 %v5475_v58  ;;  %3636 = vmatpush.bf16.msra.mxu1 %v4931_v2  ;;  %v6608_v51 = vld [vmem:[%s7318_s6 + $0x2a4] sm:$0xf0] }
 0x105   : > { %v5058_v52 = vld [vmem:[%s7318_s6 + $0x488] sm:$0xf]  ;;  %v4803_v57 = vor.u32 %v6608_v51, %v4802_v49 }
 0x106   : > { %3649 = vmatpush.bf16.msra.mxu2 %v5187_v3  ;;  %3624 = vmatpush.bf16.msra.mxu0 %v4643_v14  ;;  %v6672_v53 = vld [vmem:[%s7318_s6 + $0x4a4] sm:$0xf0] }
 0x107   : > { %v5314_v54 = vld [vmem:[%s7318_s6 + $0x688] sm:$0xf]  ;;  %v5059_v58 = vor.u32 %v6672_v53, %v5058_v52 }
 0x108   : > { %3662 = vmatpush.bf16.msra.mxu3 %v5443_v7  ;;  %3637 = vmatpush.bf16.msra.mxu1 %v4899_v15  ;;  %v6736_v55 = vld [vmem:[%s7318_s6 + $0x6a4] sm:$0xf0] }
 0x109   : > { %v4514_v59 = vld [vmem:[%s7318_s6 + $0x48] sm:$0xf]  ;;  %v5315_v62 = vor.u32 %v6736_v55, %v5314_v54 }
 0x10a   : > { %3650 = vmatpush.bf16.msra.mxu2 %v5155_v18  ;;  %3625 = vmatpush.bf16.msra.mxu0 %v4611_v28  ;;  %v6536_v60 = vld [vmem:[%s7318_s6 + $0x64] sm:$0xf0] }
 0x10b   : > { %v4770_v61 = vld [vmem:[%s7318_s6 + $0x248] sm:$0xf]  ;;  %v4515_v5 = vor.u32 %v6536_v60, %v4514_v59 }
 0x10c   : > { %3663 = vmatpush.bf16.msra.mxu3 %v5411_v22  ;;  %3638 = vmatpush.bf16.msra.mxu1 %v4867_v29  ;;  %v6600_v0 = vld [vmem:[%s7318_s6 + $0x264] sm:$0xf0] }
 0x10d   : > { %v5026_v1 = vld [vmem:[%s7318_s6 + $0x448] sm:$0xf]  ;;  %v4771_v8 = vor.u32 %v6600_v0, %v4770_v61 }
 0x10e   : > { %3651 = vmatpush.bf16.msra.mxu2 %v5123_v30  ;;  %3626 = vmatpush.bf16.msra.mxu0 %v4579_v44  ;;  %v6664_v2 = vld [vmem:[%s7318_s6 + $0x464] sm:$0xf0] }
 0x10f   : > { %v5282_v3 = vld [vmem:[%s7318_s6 + $0x648] sm:$0xf]  ;;  %v5027_v10 = vor.u32 %v6664_v2, %v5026_v1 }
 0x110   : > { %3664 = vmatpush.bf16.msra.mxu3 %v5379_v35  ;;  %3639 = vmatpush.bf16.msra.mxu1 %v4835_v45  ;;  %v6728_v4 = vld [vmem:[%s7318_s6 + $0x664] sm:$0xf0] }
 0x111   : > { %v4482_v6 = vld [vmem:[%s7318_s6 + $0x8] sm:$0xf]  ;;  %v5283_v14 = vor.u32 %v6728_v4, %v5282_v3 }
 0x112   : > { %3652 = vmatpush.bf16.msra.mxu2 %v5091_v46  ;;  %3627 = vmatpush.bf16.msra.mxu0 %v4547_v56  ;;  %v6528_v7 = vld [vmem:[%s7318_s6 + $0x24] sm:$0xf0] }
 0x113   : > { %v4738_v11 = vld [vmem:[%s7318_s6 + $0x208] sm:$0xf]  ;;  %v4483_v23 = vor.u32 %v6528_v7, %v4482_v6 }
 0x114   : > { %3665 = vmatpush.bf16.msra.mxu3 %v5347_v50  ;;  %3640 = vmatpush.bf16.msra.mxu1 %v4803_v57  ;;  %v6592_v12 = vld [vmem:[%s7318_s6 + $0x224] sm:$0xf0] }
 0x115   : > { %v4994_v13 = vld [vmem:[%s7318_s6 + $0x408] sm:$0xf]  ;;  %v4739_v27 = vor.u32 %v6592_v12, %v4738_v11 }
 0x116   : > { %3653 = vmatpush.bf16.msra.mxu2 %v5059_v58  ;;  %v6656_v15 = vld [vmem:[%s7318_s6 + $0x424] sm:$0xf0]  ;;  %3628 = vmatpush.bf16.msra.mxu0 %v4515_v5 }
 0x117   : > { %v5250_v18 = vld [vmem:[%s7318_s6 + $0x608] sm:$0xf]  ;;  %v4995_v28 = vor.u32 %v6656_v15, %v4994_v13 }
 0x118   : > { %3666 = vmatpush.bf16.msra.mxu3 %v5315_v62  ;;  %v6720_v19 = vld [vmem:[%s7318_s6 + $0x624] sm:$0xf0]  ;;  %3641 = vmatpush.bf16.msra.mxu1 %v4771_v8 }
 0x119   : > { %v5730_v20 = vld [vmem:[%s7318_s6 + $0x9c8] sm:$0xf]  ;;  %v5251_v31 = vor.u32 %v6720_v19, %v5250_v18 }
 0x11a   : > { %v6840_v21 = vld [vmem:[%s7318_s6 + $0x9e4] sm:$0xf0]  ;;  %3654 = vmatpush.bf16.msra.mxu2 %v5027_v10  ;;  %3629 = vmatpush.bf16.msra.mxu0 %v4483_v23 }
 0x11b   : > { %v5986_v22 = vld [vmem:[%s7318_s6 + $0xbc8] sm:$0xf]  ;;  %v5731_v32 = vor.u32 %v6840_v21, %v5730_v20 }
 0x11c   : > { %v6904_v24 = vld [vmem:[%s7318_s6 + $0xbe4] sm:$0xf0]  ;;  %3667 = vmatpush.bf16.msra.mxu3 %v5283_v14  ;;  %3642 = vmatpush.bf16.msra.mxu1 %v4739_v27 }
 0x11d   : > { %v6242_v25 = vld [vmem:[%s7318_s6 + $0xdc8] sm:$0xf]  ;;  %v5987_v33 = vor.u32 %v6904_v24, %v5986_v22  ;;  %3630 = vmatmul.bf16.vlgmr.msra.gmra.mxu0 %v7430_v9 }
 0x11e   : > { %v6968_v26 = vld [vmem:[%s7318_s6 + $0xde4] sm:$0xf0]  ;;  %3655 = vmatpush.bf16.msra.mxu2 %v4995_v28  ;;  %3674 = vmatpush.bf16.msrb.mxu0 %v5731_v32 }
 0x11f   : > { %v6498_v29 = vld [vmem:[%s7318_s6 + $0xfc8] sm:$0xf]  ;;  %v6243_v35 = vor.u32 %v6968_v26, %v6242_v25  ;;  %3643 = vmatmul.bf16.vlgmr.msra.gmra.mxu1 %v7443_v17  ;;  %v7750_v25 = vpop.f32.mrf.mxu0 }
 0x120   : > { %v7032_v30 = vld [vmem:[%s7318_s6 + $0xfe4] sm:$0xf0]  ;;  %3668 = vmatpush.bf16.msra.mxu3 %v5251_v31  ;;  %3687 = vmatpush.bf16.msrb.mxu1 %v5987_v33 }
 0x121   : > { %v5698_v36 = vld [vmem:[%s7318_s6 + $0x988] sm:$0xf]  ;;  %v6499_v42 = vor.u32 %v7032_v30, %v6498_v29  ;;  %3656 = vmatmul.bf16.vlgmr.msra.gmra.mxu2 %v7419_v63 }
 0x122   : > { %v6832_v39 = vld [vmem:[%s7318_s6 + $0x9a4] sm:$0xf0]  ;;  %3700 = vmatpush.bf16.msrb.mxu2 %v6243_v35 }
 0x123   : > { %v5954_v41 = vld [vmem:[%s7318_s6 + $0xb88] sm:$0xf]  ;;  %v5699_v48 = vor.u32 %v6832_v39, %v5698_v36  ;;  %3669 = vmatmul.bf16.vlgmr.msra.gmra.mxu3 %v7441_v16 }
 0x124   : > { %v6896_v43 = vld [vmem:[%s7318_s6 + $0xba4] sm:$0xf0]  ;;  %3713 = vmatpush.bf16.msrb.mxu3 %v6499_v42  ;;  %v7760_v42 = vpop.f32.mrf.mxu2 }
 0x125   : > { %v6210_v44 = vld [vmem:[%s7318_s6 + $0xd88] sm:$0xf]  ;;  %v5955_v49 = vor.u32 %v6896_v43, %v5954_v41  ;;  %3675 = vmatpush.bf16.msrb.mxu0 %v5699_v48  ;;  %v3436_v41 = vpop.f32.mrf.mxu1 }
 0x126   : > { %v6960_v45 = vld [vmem:[%s7318_s6 + $0xda4] sm:$0xf0] }
 0x127   : > { %v6466_v46 = vld [vmem:[%s7318_s6 + $0xf88] sm:$0xf]  ;;  %v6211_v50 = vor.u32 %v6960_v45, %v6210_v44  ;;  %3688 = vmatpush.bf16.msrb.mxu1 %v5955_v49 }
 0x128   : > { %v7024_v47 = vld [vmem:[%s7318_s6 + $0xfa4] sm:$0xf0] }
 0x129   : > { %v5666_v51 = vld [vmem:[%s7318_s6 + $0x948] sm:$0xf]  ;;  %v6467_v54 = vor.u32 %v7024_v47, %v6466_v46  ;;  %3701 = vmatpush.bf16.msrb.mxu2 %v6211_v50 }
 0x12a   : > { %v6824_v52 = vld [vmem:[%s7318_s6 + $0x964] sm:$0xf0] }
 0x12b   : > { %v5922_v53 = vld [vmem:[%s7318_s6 + $0xb48] sm:$0xf]  ;;  %v5667_v60 = vor.u32 %v6824_v52, %v5666_v51  ;;  %3714 = vmatpush.bf16.msrb.mxu3 %v6467_v54 }
 0x12c   : > { %v6888_v55 = vld [vmem:[%s7318_s6 + $0xb64] sm:$0xf0] }
 0x12d   : > { %v6178_v56 = vld [vmem:[%s7318_s6 + $0xd48] sm:$0xf]  ;;  %v5923_v61 = vor.u32 %v6888_v55, %v5922_v53  ;;  %3676 = vmatpush.bf16.msrb.mxu0 %v5667_v60  ;;  %v7770_v55 = vpop.f32.mrf.mxu3 }
 0x12e   : > { %v6952_v57 = vld [vmem:[%s7318_s6 + $0xd64] sm:$0xf0] }
 0x12f   : > { %v6434_v58 = vld [vmem:[%s7318_s6 + $0xf48] sm:$0xf]  ;;  %v6179_v62 = vor.u32 %v6952_v57, %v6178_v56  ;;  %3689 = vmatpush.bf16.msrb.mxu1 %v5923_v61 }
 0x130   : > { %v7016_v59 = vld [vmem:[%s7318_s6 + $0xf64] sm:$0xf0] }
 0x131   : > { %v5634_v0 = vld [vmem:[%s7318_s6 + $0x908] sm:$0xf]  ;;  %v6435_v3 = vor.u32 %v7016_v59, %v6434_v58  ;;  %3702 = vmatpush.bf16.msrb.mxu2 %v6179_v62  ;;  %v3425_v59 = vpop.f32.mrf.mxu0 }
 0x132   : > { %v6816_v1 = vld [vmem:[%s7318_s6 + $0x924] sm:$0xf0]  ;;  %v6556_v59 = vld [vmem:[%s7318_s6 + $0x10c] sm:$0xf] }
 0x133   : > { %v5890_v2 = vld [vmem:[%s7318_s6 + $0xb08] sm:$0xf]  ;;  %v5635_v10 = vor.u32 %v6816_v1, %v5634_v0  ;;  %3715 = vmatpush.bf16.msrb.mxu3 %v6435_v3 }
 0x134   : > { %v6880_v4 = vld [vmem:[%s7318_s6 + $0xb24] sm:$0xf0] }
 0x135   : > { %v6146_v5 = vld [vmem:[%s7318_s6 + $0xd08] sm:$0xf]  ;;  %v5891_v11 = vor.u32 %v6880_v4, %v5890_v2  ;;  %3677 = vmatpush.bf16.msrb.mxu0 %v5635_v10  ;;  %v3438_v10 = vpop.f32.mrf.mxu1 }
 0x136   : > { %v6944_v6 = vld [vmem:[%s7318_s6 + $0xd24] sm:$0xf0]  ;;  %v4580_v10 = vld [vmem:[%s7318_s6 + $0xe8] sm:$0xf0] }
 0x137   : > { %v6402_v7 = vld [vmem:[%s7318_s6 + $0xf08] sm:$0xf]  ;;  %v6147_v12 = vor.u32 %v6944_v6, %v6146_v5  ;;  %3690 = vmatpush.bf16.msrb.mxu1 %v5891_v11  ;;  %v6580_v6 = vld [vmem:[%s7318_s6 + $0x1cc] sm:$0xf]  ;;  %v3451_v11 = vpop.f32.mrf.mxu2 }
 0x138   : > { %v7008_v8 = vld [vmem:[%s7318_s6 + $0xf24] sm:$0xf0]  ;;  %v6612_v11 = vld [vmem:[%s7318_s6 + $0x2cc] sm:$0xf] }
 0x139   : > { %v5602_v13 = vld [vmem:[%s7318_s6 + $0x8c8] sm:$0xf]  ;;  %v6403_v18 = vor.u32 %v7008_v8, %v6402_v7  ;;  %3703 = vmatpush.bf16.msrb.mxu2 %v6147_v12  ;;  %v4708_v7 = vld [vmem:[%s7318_s6 + $0x1e8] sm:$0xf0] }
 0x13a   : > { %v6808_v14 = vld [vmem:[%s7318_s6 + $0x8e4] sm:$0xf0]  ;;  %v6644_v8 = vld [vmem:[%s7318_s6 + $0x3cc] sm:$0xf] }
 0x13b   : > { %v5858_v15 = vld [vmem:[%s7318_s6 + $0xac8] sm:$0xf]  ;;  %v5603_v24 = vor.u32 %v6808_v14, %v5602_v13  ;;  %3716 = vmatpush.bf16.msrb.mxu3 %v6403_v18  ;;  %v4964_v13 = vld [vmem:[%s7318_s6 + $0x3e8] sm:$0xf0] }
 0x13c   : > { %v6872_v19 = vld [vmem:[%s7318_s6 + $0xae4] sm:$0xf0]  ;;  %v6708_v14 = vld [vmem:[%s7318_s6 + $0x5cc] sm:$0xf] }
 0x13d   : > { %v6114_v20 = vld [vmem:[%s7318_s6 + $0xcc8] sm:$0xf]  ;;  %v5859_v26 = vor.u32 %v6872_v19, %v5858_v15  ;;  %3678 = vmatpush.bf16.msrb.mxu0 %v5603_v24  ;;  %v5220_v15 = vld [vmem:[%s7318_s6 + $0x5e8] sm:$0xf0]  ;;  %v4967_v24 = vor.u32 %v6644_v8, %v4964_v13  ;;  %v3488_v13 = vpop.f32.mrf.mxu1 }
 0x13e   : > { %v6936_v21 = vld [vmem:[%s7318_s6 + $0xce4] sm:$0xf0]  ;;  %v6548_v8 = vld [vmem:[%s7318_s6 + $0xcc] sm:$0xf] }
 0x13f   : > { %v6370_v22 = vld [vmem:[%s7318_s6 + $0xec8] sm:$0xf]  ;;  %v6115_v27 = vor.u32 %v6936_v21, %v6114_v20  ;;  %3691 = vmatpush.bf16.msrb.mxu1 %v5859_v26  ;;  %v6772_v20 = vld [vmem:[%s7318_s6 + $0x7cc] sm:$0xf]  ;;  %v5223_v26 = vor.u32 %v6708_v14, %v5220_v15 }
 0x140   : > { %v7000_v23 = vld [vmem:[%s7318_s6 + $0xee4] sm:$0xf0]  ;;  %v5476_v21 = vld [vmem:[%s7318_s6 + $0x7e8] sm:$0xf0] }
 0x141   : > { %v5570_v28 = vld [vmem:[%s7318_s6 + $0x888] sm:$0xf]  ;;  %v6371_v31 = vor.u32 %v7000_v23, %v6370_v22  ;;  %3704 = vmatpush.bf16.msrb.mxu2 %v6115_v27  ;;  %v4711_v23 = vor.u32 %v6580_v6, %v4708_v7  ;;  %v3437_v27 = vadd.f32 %v3436_v41, %v7750_v25  ;;  %v4836_v15 = vld [vmem:[%s7318_s6 + $0x2e8] sm:$0xf0] }
 0x142   : > { %v6800_v29 = vld [vmem:[%s7318_s6 + $0x8a4] sm:$0xf0] }
 0x143   : > { %v5826_v30 = vld [vmem:[%s7318_s6 + $0xa88] sm:$0xf]  ;;  %v5571_v43 = vor.u32 %v6800_v29, %v5570_v28  ;;  %3717 = vmatpush.bf16.msrb.mxu3 %v6371_v31  ;;  %v6572_v28 = vld [vmem:[%s7318_s6 + $0x18c] sm:$0xf]  ;;  %v3464_v31 = vpop.f32.mrf.mxu3 }
 0x144   : > { %v6864_v32 = vld [vmem:[%s7318_s6 + $0xaa4] sm:$0xf0]  ;;  %v4676_v29 = vld [vmem:[%s7318_s6 + $0x1a8] sm:$0xf0] }
 0x145   : > { %v6082_v33 = vld [vmem:[%s7318_s6 + $0xc88] sm:$0xf]  ;;  %v5827_v44 = vor.u32 %v6864_v32, %v5826_v30  ;;  %3679 = vmatpush.bf16.msrb.mxu0 %v5571_v43  ;;  %v6636_v30 = vld [vmem:[%s7318_s6 + $0x38c] sm:$0xf]  ;;  %v5479_v32 = vor.u32 %v6772_v20, %v5476_v21  ;;  %v4679_v25 = vor.u32 %v6572_v28, %v4676_v29 }
 0x146   : > { %v6928_v35 = vld [vmem:[%s7318_s6 + $0xca4] sm:$0xf0]  ;;  %v5444_v43 = vld [vmem:[%s7318_s6 + $0x7a8] sm:$0xf0] }
 0x147   : > { %v6338_v36 = vld [vmem:[%s7318_s6 + $0xe88] sm:$0xf]  ;;  %v6083_v45 = vor.u32 %v6928_v35, %v6082_v33  ;;  %3692 = vmatpush.bf16.msrb.mxu1 %v5827_v44  ;;  %v4932_v33 = vld [vmem:[%s7318_s6 + $0x3a8] sm:$0xf0] }
 0x148   : > { %v6992_v39 = vld [vmem:[%s7318_s6 + $0xea4] sm:$0xf0]  ;;  %v6700_v35 = vld [vmem:[%s7318_s6 + $0x58c] sm:$0xf]  ;;  %v4935_v41 = vor.u32 %v6636_v30, %v4932_v33 }
 0x149   : > { %v5538_v46 = vld [vmem:[%s7318_s6 + $0x848] sm:$0xf]  ;;  %v6339_v49 = vor.u32 %v6992_v39, %v6338_v36  ;;  %3705 = vmatpush.bf16.msrb.mxu2 %v6083_v45  ;;  %v5188_v36 = vld [vmem:[%s7318_s6 + $0x5a8] sm:$0xf0]  ;;  %v3450_v45 = vadd.f32 %v7760_v42, %v3437_v27  ;;  %v4839_v27 = vor.u32 %v6612_v11, %v4836_v15 }
 0x14a   : > { %v6792_v47 = vld [vmem:[%s7318_s6 + $0x864] sm:$0xf0]  ;;  %v6764_v39 = vld [vmem:[%s7318_s6 + $0x78c] sm:$0xf]  ;;  %v5191_v44 = vor.u32 %v6700_v35, %v5188_v36 }
 0x14b   : > { %v5794_v48 = vld [vmem:[%s7318_s6 + $0xa48] sm:$0xf]  ;;  %v5539_v56 = vor.u32 %v6792_v47, %v5538_v46  ;;  %3718 = vmatpush.bf16.msrb.mxu3 %v6339_v49  ;;  %v6564_v46 = vld [vmem:[%s7318_s6 + $0x14c] sm:$0xf]  ;;  %v5447_v49 = vor.u32 %v6764_v39, %v5444_v43  ;;  %v3514_v43 = vpop.f32.mrf.mxu3 }
 0x14c   : > { %v6856_v50 = vld [vmem:[%s7318_s6 + $0xa64] sm:$0xf0]  ;;  %v4644_v47 = vld [vmem:[%s7318_s6 + $0x168] sm:$0xf0] }
 0x14d   : > { %v6050_v51 = vld [vmem:[%s7318_s6 + $0xc48] sm:$0xf]  ;;  %v5795_v60 = vor.u32 %v6856_v50, %v5794_v48  ;;  %3680 = vmatpush.bf16.msrb.mxu0 %v5539_v56  ;;  %v6628_v48 = vld [vmem:[%s7318_s6 + $0x34c] sm:$0xf]  ;;  %v3463_v56 = vadd.f32 %v7770_v55, %v3450_v45 }
 0x14e   : > { %v6920_v52 = vld [vmem:[%s7318_s6 + $0xc64] sm:$0xf0]  ;;  %v4900_v50 = vld [vmem:[%s7318_s6 + $0x368] sm:$0xf0] }
 0x14f   : > { %v6306_v53 = vld [vmem:[%s7318_s6 + $0xe48] sm:$0xf]  ;;  %v6051_v61 = vor.u32 %v6920_v52, %v6050_v51  ;;  %3693 = vmatpush.bf16.msrb.mxu1 %v5795_v60  ;;  %v6692_v51 = vld [vmem:[%s7318_s6 + $0x54c] sm:$0xf] }
 0x150   : > { %v6984_v54 = vld [vmem:[%s7318_s6 + $0xe64] sm:$0xf0]  ;;  %v5156_v52 = vld [vmem:[%s7318_s6 + $0x568] sm:$0xf0] }
 0x151   : > { %v5506_v57 = vld [vmem:[%s7318_s6 + $0x808] sm:$0xf]  ;;  %v6307_v2 = vor.u32 %v6984_v54, %v6306_v53  ;;  %3706 = vmatpush.bf16.msrb.mxu2 %v6051_v61  ;;  %v6756_v53 = vld [vmem:[%s7318_s6 + $0x74c] sm:$0xf]  ;;  %v4647_v54 = vor.u32 %v6564_v46, %v4644_v47 }
 0x152   : > { %v6784_v58 = vld [vmem:[%s7318_s6 + $0x824] sm:$0xf0]  ;;  %v5412_v42 = vld [vmem:[%s7318_s6 + $0x768] sm:$0xf0] }
 0x153   : > { %v5762_v62 = vld [vmem:[%s7318_s6 + $0xa08] sm:$0xf]  ;;  %v5507_v12 = vor.u32 %v6784_v58, %v5506_v57  ;;  %3719 = vmatpush.bf16.msrb.mxu3 %v6307_v2  ;;  %v4903_v57 = vor.u32 %v6628_v48, %v4900_v50  ;;  %v5159_v58 = vor.u32 %v6692_v51, %v5156_v52  ;;  %v4612_v60 = vld [vmem:[%s7318_s6 + $0x128] sm:$0xf0] }
 0x154   : > { %v6848_v0 = vld [vmem:[%s7318_s6 + $0xa24] sm:$0xf0]  ;;  %v6620_v61 = vld [vmem:[%s7318_s6 + $0x30c] sm:$0xf]  ;;  %v4615_v55 = vor.u32 %v6556_v59, %v4612_v60 }
 0x155   : > { %v6018_v1 = vld [vmem:[%s7318_s6 + $0xc08] sm:$0xf]  ;;  %v5763_v18 = vor.u32 %v6848_v0, %v5762_v62  ;;  %3681 = vmatpush.bf16.msrb.mxu0 %v5507_v12  ;;  %v5415_v62 = vor.u32 %v6756_v53, %v5412_v42  ;;  %v4868_v0 = vld [vmem:[%s7318_s6 + $0x328] sm:$0xf0]  ;;  %v3490_v53 = vpop.f32.mrf.mxu1 }
 0x156   : > { %v6912_v3 = vld [vmem:[%s7318_s6 + $0xc24] sm:$0xf0]  ;;  %v5124_v2 = vld [vmem:[%s7318_s6 + $0x528] sm:$0xf0]  ;;  %v4871_v6 = vor.u32 %v6620_v61, %v4868_v0 }
 0x157   : > { %v6274_v4 = vld [vmem:[%s7318_s6 + $0xe08] sm:$0xf]  ;;  %v6019_v19 = vor.u32 %v6912_v3, %v6018_v1  ;;  %3694 = vmatpush.bf16.msrb.mxu1 %v5763_v18  ;;  %v6684_v1 = vld [vmem:[%s7318_s6 + $0x50c] sm:$0xf] }
 0x158   : > { %v6976_v5 = vld [vmem:[%s7318_s6 + $0xe24] sm:$0xf0]  ;;  %3682 = vmatmul.bf16.vlgmr.msrb.gmra.mxu0 %v7512_v37  ;;  %v6748_v3 = vld [vmem:[%s7318_s6 + $0x70c] sm:$0xf]  ;;  %v5127_v7 = vor.u32 %v6684_v1, %v5124_v2 }
 0x159   : > { %v6275_v22 = vor.u32 %v6976_v5, %v6274_v4  ;;  %3707 = vmatpush.bf16.msrb.mxu2 %v6019_v19  ;;  %3726 = vmatpush.bf16.msra.mxu0 %v4711_v23  ;;  %v5380_v4 = vld [vmem:[%s7318_s6 + $0x728] sm:$0xf0]  ;;  %v3475_v5 = vpop.f32.mrf.mxu0 }
 0x15a   : > { %3695 = vmatmul.bf16.vlgmr.msrb.gmra.mxu1 %v7516_v40  ;;  %v3476_v12 = vadd.f32 %v3475_v5, %v3463_v56  ;;  %v5383_v14 = vor.u32 %v6748_v3, %v5380_v4  ;;  %v6676_v18 = vld [vmem:[%s7318_s6 + $0x4cc] sm:$0xf] }
 0x15b   : > { %3720 = vmatpush.bf16.msrb.mxu3 %v6275_v22  ;;  %3739 = vmatpush.bf16.msra.mxu1 %v4967_v24  ;;  %v5092_v19 = vld [vmem:[%s7318_s6 + $0x4e8] sm:$0xf0]  ;;  %v4583_v24 = vor.u32 %v6548_v8, %v4580_v10 }
 0x15c   : > { %3708 = vmatmul.bf16.vlgmr.msrb.gmra.mxu2 %v7508_v34  ;;  %v6740_v20 = vld [vmem:[%s7318_s6 + $0x6cc] sm:$0xf]  ;;  %v3489_v22 = vadd.f32 %v3488_v13, %v3476_v12  ;;  %v5095_v28 = vor.u32 %v6676_v18, %v5092_v19  ;;  %v3516_v12 = vpop.f32.mrf.mxu3 }
 0x15d   : > { %3752 = vmatpush.bf16.msra.mxu2 %v5223_v26  ;;  %3727 = vmatpush.bf16.msra.mxu0 %v4679_v25  ;;  %v5348_v21 = vld [vmem:[%s7318_s6 + $0x6e8] sm:$0xf0] }
 0x15e   : > { %3721 = vmatmul.bf16.vlgmr.msrb.gmra.mxu3 %v7514_v38  ;;  %v7835_v23 = vld [vmem:[%s7324_s10] sm:$0xff]  ;;  %v5351_v33 = vor.u32 %v6740_v20, %v5348_v21 }
 0x15f   : > { %3765 = vmatpush.bf16.msra.mxu3 %v5479_v32  ;;  %3740 = vmatpush.bf16.msra.mxu1 %v4935_v41  ;;  %v6540_v26 = vld [vmem:[%s7318_s6 + $0x8c] sm:$0xf]  ;;  %v3501_v32 = vpop.f32.mrf.mxu2  ;;  %v4275_v25 = vperm.slane %v7835_v23, 0 }
 0x160   : > { %v4548_v29 = vld [vmem:[%s7318_s6 + $0xa8] sm:$0xf0]  ;;  %v3502_v39 = vadd.f32 %v3501_v32, %v3489_v22 }
 0x161   : > { %3753 = vmatpush.bf16.msra.mxu2 %v5191_v44  ;;  %3728 = vmatpush.bf16.msra.mxu0 %v4647_v54  ;;  %v6604_v30 = vld [vmem:[%s7318_s6 + $0x28c] sm:$0xf]  ;;  %v4551_v45 = vor.u32 %v6540_v26, %v4548_v29  ;;  %v3477_v47 = vpop.f32.mrf.mxu0 }
 0x162   : > { %v4804_v31 = vld [vmem:[%s7318_s6 + $0x2a8] sm:$0xf0]  ;;  %v3515_v46 = vadd.f32 %v3514_v43, %v3502_v39 }
 0x163   : > { %3766 = vmatpush.bf16.msra.mxu3 %v5447_v49  ;;  %3741 = vmatpush.bf16.msra.mxu1 %v4903_v57  ;;  %v6668_v35 = vld [vmem:[%s7318_s6 + $0x48c] sm:$0xf]  ;;  %v4807_v48 = vor.u32 %v6604_v30, %v4804_v31 }
 0x164   : > { %v5060_v36 = vld [vmem:[%s7318_s6 + $0x4a8] sm:$0xf0]  ;;  %v4291_v54 = vadd.f32 %v4275_v25, %v3515_v46 }
 0x165   : > { %3754 = vmatpush.bf16.msra.mxu2 %v5159_v58  ;;  %3729 = vmatpush.bf16.msra.mxu0 %v4615_v55  ;;  %v6732_v41 = vld [vmem:[%s7318_s6 + $0x68c] sm:$0xf]  ;;  %v5063_v49 = vor.u32 %v6668_v35, %v5060_v36 }
 0x166   : > { %v5316_v44 = vld [vmem:[%s7318_s6 + $0x6a8] sm:$0xf0]  ;;  %v4299_v61 = vmax.f32 %v4291_v54, 0.0 }
 0x167   : > { %3767 = vmatpush.bf16.msra.mxu3 %v5415_v62  ;;  %3742 = vmatpush.bf16.msra.mxu1 %v4871_v6  ;;  %v6532_v50 = vld [vmem:[%s7318_s6 + $0x4c] sm:$0xf]  ;;  %v5319_v42 = vor.u32 %v6732_v41, %v5316_v44  ;;  %v3503_v6 = vpop.f32.mrf.mxu2 }
 0x168   : > { %v4516_v51 = vld [vmem:[%s7318_s6 + $0x68] sm:$0xf0]  ;;  %4307 = vst [vmem:[%s7862_s7] sm:$0xff] %v4299_v61 }
 0x169   : > { %3755 = vmatpush.bf16.msra.mxu2 %v5127_v7  ;;  %3730 = vmatpush.bf16.msra.mxu0 %v4583_v24  ;;  %v6596_v52 = vld [vmem:[%s7318_s6 + $0x24c] sm:$0xf]  ;;  %v4519_v62 = vor.u32 %v6532_v50, %v4516_v51  ;;  %v7911_v6 = vpop.f32.mrf.mxu0 }
 0x16a   : > { %v4772_v56 = vld [vmem:[%s7318_s6 + $0x268] sm:$0xf0] }
 0x16b   : > { %3768 = vmatpush.bf16.msra.mxu3 %v5383_v14  ;;  %3743 = vmatpush.bf16.msra.mxu1 %v4839_v27  ;;  %v6660_v57 = vld [vmem:[%s7318_s6 + $0x44c] sm:$0xf]  ;;  %v4775_v2 = vor.u32 %v6596_v52, %v4772_v56 }
 0x16c   : > { %v5028_v58 = vld [vmem:[%s7318_s6 + $0x468] sm:$0xf0] }
 0x16d   : > { %3756 = vmatpush.bf16.msra.mxu2 %v5095_v28  ;;  %v6724_v59 = vld [vmem:[%s7318_s6 + $0x64c] sm:$0xf]  ;;  %3731 = vmatpush.bf16.msra.mxu0 %v4551_v45  ;;  %v5031_v3 = vor.u32 %v6660_v57, %v5028_v58 }
 0x16e   : > { %v5284_v60 = vld [vmem:[%s7318_s6 + $0x668] sm:$0xf0] }
 0x16f   : > { %3769 = vmatpush.bf16.msra.mxu3 %v5351_v33  ;;  %v6524_v0 = vld [vmem:[%s7318_s6 + $0xc] sm:$0xf]  ;;  %3744 = vmatpush.bf16.msra.mxu1 %v4807_v48  ;;  %v5287_v7 = vor.u32 %v6724_v59, %v5284_v60 }
 0x170   : > { %v4484_v1 = vld [vmem:[%s7318_s6 + $0x28] sm:$0xf0] }
 0x171   : > { %3757 = vmatpush.bf16.msra.mxu2 %v5063_v49  ;;  %v6588_v4 = vld [vmem:[%s7318_s6 + $0x20c] sm:$0xf]  ;;  %3732 = vmatpush.bf16.msra.mxu0 %v4519_v62  ;;  %v4487_v18 = vor.u32 %v6524_v0, %v4484_v1 }
 0x172   : > { %v4740_v55 = vld [vmem:[%s7318_s6 + $0x228] sm:$0xf0] }
 0x173   : > { %v6652_v5 = vld [vmem:[%s7318_s6 + $0x40c] sm:$0xf]  ;;  %3770 = vmatpush.bf16.msra.mxu3 %v5319_v42  ;;  %3745 = vmatpush.bf16.msra.mxu1 %v4775_v2  ;;  %v4743_v22 = vor.u32 %v6588_v4, %v4740_v55 }
 0x174   : > { %v4996_v8 = vld [vmem:[%s7318_s6 + $0x428] sm:$0xf0] }
 0x175   : > { %v6716_v10 = vld [vmem:[%s7318_s6 + $0x60c] sm:$0xf]  ;;  %3758 = vmatpush.bf16.msra.mxu2 %v5031_v3  ;;  %v4999_v24 = vor.u32 %v6652_v5, %v4996_v8  ;;  %3733 = vmatpush.bf16.msra.mxu0 %v4487_v18 }
 0x176   : > { %v5252_v11 = vld [vmem:[%s7318_s6 + $0x628] sm:$0xf0] }
 0x177   : > { %v6836_v13 = vld [vmem:[%s7318_s6 + $0x9cc] sm:$0xf]  ;;  %3771 = vmatpush.bf16.msra.mxu3 %v5287_v7  ;;  %v5255_v28 = vor.u32 %v6716_v10, %v5252_v11  ;;  %3746 = vmatpush.bf16.msra.mxu1 %v4743_v22 }
 0x178   : > { %v5732_v14 = vld [vmem:[%s7318_s6 + $0x9e8] sm:$0xf0]  ;;  %3734 = vmatmul.bf16.vlgmr.msra.gmra.mxu0 %v7430_v9 }
 0x179   : > { %v6900_v15 = vld [vmem:[%s7318_s6 + $0xbcc] sm:$0xf]  ;;  %v5735_v29 = vor.u32 %v6836_v13, %v5732_v14  ;;  %3759 = vmatpush.bf16.msra.mxu2 %v4999_v24  ;;  %v7916_v13 = vpop.f32.mrf.mxu1 }
 0x17a   : > { %v5988_v19 = vld [vmem:[%s7318_s6 + $0xbe8] sm:$0xf0]  ;;  %3747 = vmatmul.bf16.vlgmr.msra.gmra.mxu1 %v7443_v17 }
 0x17b   : > { %v6964_v20 = vld [vmem:[%s7318_s6 + $0xdcc] sm:$0xf]  ;;  %v5991_v30 = vor.u32 %v6900_v15, %v5988_v19  ;;  %3772 = vmatpush.bf16.msra.mxu3 %v5255_v28  ;;  %3778 = vmatpush.bf16.msrb.mxu0 %v5735_v29 }
 0x17c   : > { %v6244_v21 = vld [vmem:[%s7318_s6 + $0xde8] sm:$0xf0]  ;;  %3760 = vmatmul.bf16.vlgmr.msra.gmra.mxu2 %v7419_v63 }
 0x17d   : > { %v7028_v26 = vld [vmem:[%s7318_s6 + $0xfcc] sm:$0xf]  ;;  %v6247_v31 = vor.u32 %v6964_v20, %v6244_v21  ;;  %3791 = vmatpush.bf16.msrb.mxu1 %v5991_v30  ;;  %v7926_v30 = vpop.f32.mrf.mxu2 }
 0x17e   : > { %v6500_v27 = vld [vmem:[%s7318_s6 + $0xfe8] sm:$0xf0]  ;;  %3773 = vmatmul.bf16.vlgmr.msra.gmra.mxu3 %v7441_v16 }
 0x17f   : > { %v6828_v32 = vld [vmem:[%s7318_s6 + $0x98c] sm:$0xf]  ;;  %v6503_v36 = vor.u32 %v7028_v26, %v6500_v27  ;;  %3804 = vmatpush.bf16.msrb.mxu2 %v6247_v31 }
 0x180   : > { %v5700_v33 = vld [vmem:[%s7318_s6 + $0x9a8] sm:$0xf0] }
 0x181   : > { %v6892_v35 = vld [vmem:[%s7318_s6 + $0xb8c] sm:$0xf]  ;;  %v5703_v45 = vor.u32 %v6828_v32, %v5700_v33  ;;  %3817 = vmatpush.bf16.msrb.mxu3 %v6503_v36  ;;  %v7931_v36 = vpop.f32.mrf.mxu3 }
 0x182   : > { %v5956_v39 = vld [vmem:[%s7318_s6 + $0xba8] sm:$0xf0] }
 0x183   : > { %v6956_v43 = vld [vmem:[%s7318_s6 + $0xd8c] sm:$0xf]  ;;  %v5959_v46 = vor.u32 %v6892_v35, %v5956_v39  ;;  %3779 = vmatpush.bf16.msrb.mxu0 %v5703_v45 }
 0x184   : > { %v6212_v25 = vld [vmem:[%s7318_s6 + $0xda8] sm:$0xf0] }
 0x185   : > { %v7020_v41 = vld [vmem:[%s7318_s6 + $0xf8c] sm:$0xf]  ;;  %v6215_v47 = vor.u32 %v6956_v43, %v6212_v25  ;;  %3792 = vmatpush.bf16.msrb.mxu1 %v5959_v46 }
 0x186   : > { %v6468_v44 = vld [vmem:[%s7318_s6 + $0xfa8] sm:$0xf0] }
 0x187   : > { %v6820_v48 = vld [vmem:[%s7318_s6 + $0x94c] sm:$0xf]  ;;  %v6471_v51 = vor.u32 %v7020_v41, %v6468_v44  ;;  %3805 = vmatpush.bf16.msrb.mxu2 %v6215_v47  ;;  %v3529_v41 = vpop.f32.mrf.mxu0 }
 0x188   : > { %v5668_v49 = vld [vmem:[%s7318_s6 + $0x968] sm:$0xf0]  ;;  %v6769_v41 = vld [vmem:[%s7318_s6 + $0x7ac] sm:$0xf0] }
 0x189   : > { %v6884_v50 = vld [vmem:[%s7318_s6 + $0xb4c] sm:$0xf]  ;;  %v5671_v57 = vor.u32 %v6820_v48, %v5668_v49  ;;  %3818 = vmatpush.bf16.msrb.mxu3 %v6471_v51  ;;  %v3542_v49 = vpop.f32.mrf.mxu1 }
 0x18a   : > { %v5924_v52 = vld [vmem:[%s7318_s6 + $0xb68] sm:$0xf0] }
 0x18b   : > { %v6948_v53 = vld [vmem:[%s7318_s6 + $0xd4c] sm:$0xf]  ;;  %v5927_v58 = vor.u32 %v6884_v50, %v5924_v52  ;;  %3780 = vmatpush.bf16.msrb.mxu0 %v5671_v57 }
 0x18c   : > { %v6180_v42 = vld [vmem:[%s7318_s6 + $0xd68] sm:$0xf0] }
 0x18d   : > { %v7012_v54 = vld [vmem:[%s7318_s6 + $0xf4c] sm:$0xf]  ;;  %v6183_v59 = vor.u32 %v6948_v53, %v6180_v42  ;;  %3793 = vmatpush.bf16.msrb.mxu1 %v5927_v58 }
 0x18e   : > { %v6436_v56 = vld [vmem:[%s7318_s6 + $0xf68] sm:$0xf0] }
 0x18f   : > { %v6812_v60 = vld [vmem:[%s7318_s6 + $0x90c] sm:$0xf]  ;;  %v6439_v0 = vor.u32 %v7012_v54, %v6436_v56  ;;  %3806 = vmatpush.bf16.msrb.mxu2 %v6183_v59 }
 0x190   : > { %v5636_v61 = vld [vmem:[%s7318_s6 + $0x928] sm:$0xf0] }
 0x191   : > { %v6876_v62 = vld [vmem:[%s7318_s6 + $0xb0c] sm:$0xf]  ;;  %v5639_v5 = vor.u32 %v6812_v60, %v5636_v61  ;;  %3819 = vmatpush.bf16.msrb.mxu3 %v6439_v0 }
 0x192   : > { %v5892_v1 = vld [vmem:[%s7318_s6 + $0xb28] sm:$0xf0] }
 0x193   : > { %v6940_v2 = vld [vmem:[%s7318_s6 + $0xd0c] sm:$0xf]  ;;  %v5895_v7 = vor.u32 %v6876_v62, %v5892_v1  ;;  %3781 = vmatpush.bf16.msrb.mxu0 %v5639_v5  ;;  %v3555_v1 = vpop.f32.mrf.mxu2  ;;  %v3568_v5 = vpop.f32.mrf.mxu3 }
 0x194   : > { %v6148_v3 = vld [vmem:[%s7318_s6 + $0xd28] sm:$0xf0]  ;;  %v6689_v1 = vld [vmem:[%s7318_s6 + $0x52c] sm:$0xf0] }
 0x195   : > { %v7004_v4 = vld [vmem:[%s7318_s6 + $0xf0c] sm:$0xf]  ;;  %v6151_v8 = vor.u32 %v6940_v2, %v6148_v3  ;;  %3794 = vmatpush.bf16.msrb.mxu1 %v5895_v7  ;;  %v4714_v7 = vld [vmem:[%s7318_s6 + $0x1d0] sm:$0xf] }
 0x196   : > { %v6404_v55 = vld [vmem:[%s7318_s6 + $0xf28] sm:$0xf0] }
 0x197   : > { %v6804_v10 = vld [vmem:[%s7318_s6 + $0x8cc] sm:$0xf]  ;;  %v6407_v14 = vor.u32 %v7004_v4, %v6404_v55  ;;  %3807 = vmatpush.bf16.msrb.mxu2 %v6151_v8  ;;  %v6585_v8 = vld [vmem:[%s7318_s6 + $0x1ec] sm:$0xf0] }
 0x198   : > { %v5604_v11 = vld [vmem:[%s7318_s6 + $0x8e8] sm:$0xf0] }
 0x199   : > { %v6868_v12 = vld [vmem:[%s7318_s6 + $0xacc] sm:$0xf]  ;;  %v5607_v22 = vor.u32 %v6804_v10, %v5604_v11  ;;  %3820 = vmatpush.bf16.msrb.mxu3 %v6407_v14  ;;  %v4970_v10 = vld [vmem:[%s7318_s6 + $0x3d0] sm:$0xf] }
 0x19a   : > { %v5860_v15 = vld [vmem:[%s7318_s6 + $0xae8] sm:$0xf0]  ;;  %v5226_v14 = vld [vmem:[%s7318_s6 + $0x5d0] sm:$0xf] }
 0x19b   : > { %v6932_v18 = vld [vmem:[%s7318_s6 + $0xccc] sm:$0xf]  ;;  %v5863_v24 = vor.u32 %v6868_v12, %v5860_v15  ;;  %3782 = vmatpush.bf16.msrb.mxu0 %v5607_v22  ;;  %v6649_v12 = vld [vmem:[%s7318_s6 + $0x3ec] sm:$0xf0] }
 0x19c   : > { %v6116_v19 = vld [vmem:[%s7318_s6 + $0xce8] sm:$0xf0]  ;;  %v6713_v15 = vld [vmem:[%s7318_s6 + $0x5ec] sm:$0xf0] }
 0x19d   : > { %v6996_v20 = vld [vmem:[%s7318_s6 + $0xecc] sm:$0xf]  ;;  %v6119_v26 = vor.u32 %v6932_v18, %v6116_v19  ;;  %3795 = vmatpush.bf16.msrb.mxu1 %v5863_v24  ;;  %v4715_v24 = vor.u32 %v6585_v8, %v4714_v7  ;;  %v4586_v7 = vld [vmem:[%s7318_s6 + $0xd0] sm:$0xf] }
 0x19e   : > { %v6372_v21 = vld [vmem:[%s7318_s6 + $0xee8] sm:$0xf0]  ;;  %v6553_v8 = vld [vmem:[%s7318_s6 + $0xec] sm:$0xf0] }
 0x19f   : > { %v6796_v27 = vld [vmem:[%s7318_s6 + $0x88c] sm:$0xf]  ;;  %v6375_v31 = vor.u32 %v6996_v20, %v6372_v21  ;;  %3808 = vmatpush.bf16.msrb.mxu2 %v6119_v26  ;;  %v5482_v20 = vld [vmem:[%s7318_s6 + $0x7d0] sm:$0xf]  ;;  %v4971_v26 = vor.u32 %v6649_v12, %v4970_v10  ;;  %v3592_v12 = vpop.f32.mrf.mxu1 }
 0x1a0   : > { %v5572_v28 = vld [vmem:[%s7318_s6 + $0x8a8] sm:$0xf0]  ;;  %v6777_v21 = vld [vmem:[%s7318_s6 + $0x7ec] sm:$0xf0] }
 0x1a1   : > { %v6860_v29 = vld [vmem:[%s7318_s6 + $0xa8c] sm:$0xf]  ;;  %v5575_v25 = vor.u32 %v6796_v27, %v5572_v28  ;;  %3821 = vmatpush.bf16.msrb.mxu3 %v6375_v31  ;;  %v5227_v27 = vor.u32 %v6713_v15, %v5226_v14  ;;  %v3541_v28 = vadd.f32 %v7916_v13, %v7911_v6  ;;  %v6577_v31 = vld [vmem:[%s7318_s6 + $0x1ac] sm:$0xf0] }
 0x1a2   : > { %v5828_v32 = vld [vmem:[%s7318_s6 + $0xaa8] sm:$0xf0]  ;;  %v4842_v10 = vld [vmem:[%s7318_s6 + $0x2d0] sm:$0xf] }
 0x1a3   : > { %v6924_v33 = vld [vmem:[%s7318_s6 + $0xc8c] sm:$0xf]  ;;  %v5831_v44 = vor.u32 %v6860_v29, %v5828_v32  ;;  %3783 = vmatpush.bf16.msrb.mxu0 %v5575_v25  ;;  %v4682_v29 = vld [vmem:[%s7318_s6 + $0x190] sm:$0xf] }
 0x1a4   : > { %v6084_v35 = vld [vmem:[%s7318_s6 + $0xca8] sm:$0xf0]  ;;  %v4938_v32 = vld [vmem:[%s7318_s6 + $0x390] sm:$0xf]  ;;  %v4683_v6 = vor.u32 %v6577_v31, %v4682_v29 }
 0x1a5   : > { %v6988_v39 = vld [vmem:[%s7318_s6 + $0xe8c] sm:$0xf]  ;;  %v6087_v45 = vor.u32 %v6924_v33, %v6084_v35  ;;  %3796 = vmatpush.bf16.msrb.mxu1 %v5831_v44  ;;  %v5483_v33 = vor.u32 %v6777_v21, %v5482_v20  ;;  %v6641_v35 = vld [vmem:[%s7318_s6 + $0x3ac] sm:$0xf0] }
 0x1a6   : > { %v6340_v43 = vld [vmem:[%s7318_s6 + $0xea8] sm:$0xf0]  ;;  %v5450_v25 = vld [vmem:[%s7318_s6 + $0x790] sm:$0xf]  ;;  %v4939_v13 = vor.u32 %v6641_v35, %v4938_v32 }
 0x1a7   : > { %v6788_v46 = vld [vmem:[%s7318_s6 + $0x84c] sm:$0xf]  ;;  %v6343_v50 = vor.u32 %v6988_v39, %v6340_v43  ;;  %3809 = vmatpush.bf16.msrb.mxu2 %v6087_v45  ;;  %v5194_v39 = vld [vmem:[%s7318_s6 + $0x590] sm:$0xf]  ;;  %v3554_v45 = vadd.f32 %v7926_v30, %v3541_v28  ;;  %v5451_v49 = vor.u32 %v6769_v41, %v5450_v25  ;;  %v3618_v41 = vpop.f32.mrf.mxu3 }
 0x1a8   : > { %v5540_v47 = vld [vmem:[%s7318_s6 + $0x868] sm:$0xf0]  ;;  %v6705_v43 = vld [vmem:[%s7318_s6 + $0x5ac] sm:$0xf0] }
 0x1a9   : > { %v6852_v48 = vld [vmem:[%s7318_s6 + $0xa4c] sm:$0xf]  ;;  %v5543_v56 = vor.u32 %v6788_v46, %v5540_v47  ;;  %3822 = vmatpush.bf16.msrb.mxu3 %v6343_v50  ;;  %v5195_v44 = vor.u32 %v6705_v43, %v5194_v39  ;;  %v4650_v46 = vld [vmem:[%s7318_s6 + $0x150] sm:$0xf] }
 0x1aa   : > { %v5796_v51 = vld [vmem:[%s7318_s6 + $0xa68] sm:$0xf0]  ;;  %v6569_v47 = vld [vmem:[%s7318_s6 + $0x16c] sm:$0xf0] }
 0x1ab   : > { %v6916_v52 = vld [vmem:[%s7318_s6 + $0xc4c] sm:$0xf]  ;;  %v5799_v59 = vor.u32 %v6852_v48, %v5796_v51  ;;  %3784 = vmatpush.bf16.msrb.mxu0 %v5543_v56  ;;  %v4906_v48 = vld [vmem:[%s7318_s6 + $0x350] sm:$0xf] }
 0x1ac   : > { %v6052_v53 = vld [vmem:[%s7318_s6 + $0xc68] sm:$0xf0]  ;;  %v6633_v50 = vld [vmem:[%s7318_s6 + $0x36c] sm:$0xf0] }
 0x1ad   : > { %v6980_v42 = vld [vmem:[%s7318_s6 + $0xe4c] sm:$0xf]  ;;  %v6055_v60 = vor.u32 %v6916_v52, %v6052_v53  ;;  %3797 = vmatpush.bf16.msrb.mxu1 %v5799_v59  ;;  %v5162_v51 = vld [vmem:[%s7318_s6 + $0x550] sm:$0xf]  ;;  %v4907_v56 = vor.u32 %v6633_v50, %v4906_v48 }
 0x1ae   : > { %v6308_v54 = vld [vmem:[%s7318_s6 + $0xe68] sm:$0xf0]  ;;  %v6697_v52 = vld [vmem:[%s7318_s6 + $0x56c] sm:$0xf0] }
 0x1af   : > { %v6780_v57 = vld [vmem:[%s7318_s6 + $0x80c] sm:$0xf]  ;;  %v6311_v2 = vor.u32 %v6980_v42, %v6308_v54  ;;  %3810 = vmatpush.bf16.msrb.mxu2 %v6055_v60  ;;  %v5418_v53 = vld [vmem:[%s7318_s6 + $0x750] sm:$0xf]  ;;  %v4651_v42 = vor.u32 %v6569_v47, %v4650_v46  ;;  %v3567_v54 = vadd.f32 %v7931_v36, %v3554_v45 }
 0x1b0   : > { %v5508_v58 = vld [vmem:[%s7318_s6 + $0x828] sm:$0xf0]  ;;  %v6761_v30 = vld [vmem:[%s7318_s6 + $0x76c] sm:$0xf0] }
 0x1b1   : > { %v6844_v61 = vld [vmem:[%s7318_s6 + $0xa0c] sm:$0xf]  ;;  %v5511_v11 = vor.u32 %v6780_v57, %v5508_v58  ;;  %3823 = vmatpush.bf16.msrb.mxu3 %v6311_v2  ;;  %v5163_v57 = vor.u32 %v6697_v52, %v5162_v51  ;;  %v4618_v58 = vld [vmem:[%s7318_s6 + $0x110] sm:$0xf]  ;;  %v3594_v52 = vpop.f32.mrf.mxu1 }
 0x1b2   : > { %v5764_v62 = vld [vmem:[%s7318_s6 + $0xa28] sm:$0xf0]  ;;  %v6561_v59 = vld [vmem:[%s7318_s6 + $0x12c] sm:$0xf0] }
 0x1b3   : > { %v6908_v0 = vld [vmem:[%s7318_s6 + $0xc0c] sm:$0xf]  ;;  %v5767_v18 = vor.u32 %v6844_v61, %v5764_v62  ;;  %3785 = vmatpush.bf16.msrb.mxu0 %v5511_v11  ;;  %v4874_v60 = vld [vmem:[%s7318_s6 + $0x310] sm:$0xf]  ;;  %v5419_v61 = vor.u32 %v6761_v30, %v5418_v53  ;;  %v4619_v36 = vor.u32 %v6561_v59, %v4618_v58 }
 0x1b4   : > { %v6020_v3 = vld [vmem:[%s7318_s6 + $0xc28] sm:$0xf0]  ;;  %v6625_v62 = vld [vmem:[%s7318_s6 + $0x32c] sm:$0xf0] }
 0x1b5   : > { %v6972_v4 = vld [vmem:[%s7318_s6 + $0xe0c] sm:$0xf]  ;;  %v6023_v19 = vor.u32 %v6908_v0, %v6020_v3  ;;  %3798 = vmatpush.bf16.msrb.mxu1 %v5767_v18  ;;  %v5130_v0 = vld [vmem:[%s7318_s6 + $0x510] sm:$0xf] }
 0x1b6   : > { %v6276_v55 = vld [vmem:[%s7318_s6 + $0xe28] sm:$0xf0]  ;;  %3786 = vmatmul.bf16.vlgmr.msrb.gmra.mxu0 %v7512_v37  ;;  %v5386_v2 = vld [vmem:[%s7318_s6 + $0x710] sm:$0xf]  ;;  %v5131_v5 = vor.u32 %v6689_v1, %v5130_v0 }
 0x1b7   : > { %v6279_v22 = vor.u32 %v6972_v4, %v6276_v55  ;;  %3811 = vmatpush.bf16.msrb.mxu2 %v6023_v19  ;;  %3830 = vmatpush.bf16.msra.mxu0 %v4715_v24  ;;  %v6753_v3 = vld [vmem:[%s7318_s6 + $0x72c] sm:$0xf0]  ;;  %v3579_v4 = vpop.f32.mrf.mxu0  ;;  %v4875_v55 = vor.u32 %v6625_v62, %v4874_v60  ;;  %v4587_v24 = vor.u32 %v6553_v8, %v4586_v7 }
 0x1b8   : > { %3799 = vmatmul.bf16.vlgmr.msrb.gmra.mxu1 %v7516_v40  ;;  %v3580_v11 = vadd.f32 %v3579_v4, %v3567_v54  ;;  %v5387_v14 = vor.u32 %v6753_v3, %v5386_v2  ;;  %v6617_v15 = vld [vmem:[%s7318_s6 + $0x2ec] sm:$0xf0] }
 0x1b9   : > { %3824 = vmatpush.bf16.msrb.mxu3 %v6279_v22  ;;  %3843 = vmatpush.bf16.msra.mxu1 %v4971_v26  ;;  %v5098_v18 = vld [vmem:[%s7318_s6 + $0x4d0] sm:$0xf] }
 0x1ba   : > { %3812 = vmatmul.bf16.vlgmr.msrb.gmra.mxu2 %v7508_v34  ;;  %v6681_v19 = vld [vmem:[%s7318_s6 + $0x4ec] sm:$0xf0]  ;;  %v3593_v22 = vadd.f32 %v3592_v12, %v3580_v11 }
 0x1bb   : > { %3856 = vmatpush.bf16.msra.mxu2 %v5227_v27  ;;  %3831 = vmatpush.bf16.msra.mxu0 %v4683_v6  ;;  %v5354_v20 = vld [vmem:[%s7318_s6 + $0x6d0] sm:$0xf]  ;;  %v4843_v27 = vor.u32 %v6617_v15, %v4842_v10  ;;  %v5099_v28 = vor.u32 %v6681_v19, %v5098_v18  ;;  %v4276_v6 = vperm.slane %v7835_v23, 1  ;;  %v3620_v10 = vpop.f32.mrf.mxu3 }
 0x1bc   : > { %3825 = vmatmul.bf16.vlgmr.msrb.gmra.mxu3 %v7514_v38  ;;  %v6745_v21 = vld [vmem:[%s7318_s6 + $0x6ec] sm:$0xf0]  ;;  %v8066_v10 = vpop.f32.mrf.mxu1 }
 0x1bd   : > { %3869 = vmatpush.bf16.msra.mxu3 %v5483_v33  ;;  %3844 = vmatpush.bf16.msra.mxu1 %v4939_v13  ;;  %v4554_v26 = vld [vmem:[%s7318_s6 + $0x90] sm:$0xf]  ;;  %v3605_v33 = vpop.f32.mrf.mxu2  ;;  %v5355_v35 = vor.u32 %v6745_v21, %v5354_v20 }
 0x1be   : > { %v6545_v29 = vld [vmem:[%s7318_s6 + $0xac] sm:$0xf0]  ;;  %v3606_v25 = vadd.f32 %v3605_v33, %v3593_v22 }
 0x1bf   : > { %3857 = vmatpush.bf16.msra.mxu2 %v5195_v44  ;;  %3832 = vmatpush.bf16.msra.mxu0 %v4651_v42  ;;  %v4810_v31 = vld [vmem:[%s7318_s6 + $0x290] sm:$0xf]  ;;  %v4555_v45 = vor.u32 %v6545_v29, %v4554_v26  ;;  %v3581_v47 = vpop.f32.mrf.mxu0 }
 0x1c0   : > { %v6609_v32 = vld [vmem:[%s7318_s6 + $0x2ac] sm:$0xf0]  ;;  %v3619_v46 = vadd.f32 %v3618_v41, %v3606_v25 }
 0x1c1   : > { %3870 = vmatpush.bf16.msra.mxu3 %v5451_v49  ;;  %3845 = vmatpush.bf16.msra.mxu1 %v4907_v56  ;;  %v5066_v39 = vld [vmem:[%s7318_s6 + $0x490] sm:$0xf]  ;;  %v4811_v48 = vor.u32 %v6609_v32, %v4810_v31 }
 0x1c2   : > { %v6673_v43 = vld [vmem:[%s7318_s6 + $0x4ac] sm:$0xf0]  ;;  %v4292_v30 = vadd.f32 %v4276_v6, %v3619_v46 }
 0x1c3   : > { %3858 = vmatpush.bf16.msra.mxu2 %v5163_v57  ;;  %3833 = vmatpush.bf16.msra.mxu0 %v4619_v36  ;;  %v5322_v13 = vld [vmem:[%s7318_s6 + $0x690] sm:$0xf]  ;;  %v5067_v49 = vor.u32 %v6673_v43, %v5066_v39 }
 0x1c4   : > { %v6737_v44 = vld [vmem:[%s7318_s6 + $0x6ac] sm:$0xf0]  ;;  %v4300_v60 = vmax.f32 %v4292_v30, 0.0 }
 0x1c5   : > { %3871 = vmatpush.bf16.msra.mxu3 %v5419_v61  ;;  %3846 = vmatpush.bf16.msra.mxu1 %v4875_v55  ;;  %v4522_v50 = vld [vmem:[%s7318_s6 + $0x50] sm:$0xf]  ;;  %v5323_v53 = vor.u32 %v6737_v44, %v5322_v13  ;;  %v3607_v55 = vpop.f32.mrf.mxu2 }
 0x1c6   : > { %v6537_v51 = vld [vmem:[%s7318_s6 + $0x6c] sm:$0xf0]  ;;  %4308 = vst [vmem:[%s7862_s7 + $0x8] sm:$0xff] %v4300_v60 }
 0x1c7   : > { %3859 = vmatpush.bf16.msra.mxu2 %v5131_v5  ;;  %3834 = vmatpush.bf16.msra.mxu0 %v4587_v24  ;;  %v4778_v23 = vld [vmem:[%s7318_s6 + $0x250] sm:$0xf]  ;;  %v4523_v61 = vor.u32 %v6537_v51, %v4522_v50 }
 0x1c8   : > { %v6601_v42 = vld [vmem:[%s7318_s6 + $0x26c] sm:$0xf0] }
 0x1c9   : > { %3872 = vmatpush.bf16.msra.mxu3 %v5387_v14  ;;  %3847 = vmatpush.bf16.msra.mxu1 %v4843_v27  ;;  %v5034_v54 = vld [vmem:[%s7318_s6 + $0x450] sm:$0xf]  ;;  %v4779_v1 = vor.u32 %v6601_v42, %v4778_v23 }
 0x1ca   : > { %v6665_v56 = vld [vmem:[%s7318_s6 + $0x46c] sm:$0xf0] }
 0x1cb   : > { %3860 = vmatpush.bf16.msra.mxu2 %v5099_v28  ;;  %v5290_v57 = vld [vmem:[%s7318_s6 + $0x650] sm:$0xf]  ;;  %3835 = vmatpush.bf16.msra.mxu0 %v4555_v45  ;;  %v5035_v2 = vor.u32 %v6665_v56, %v5034_v54 }
 0x1cc   : > { %v6729_v58 = vld [vmem:[%s7318_s6 + $0x66c] sm:$0xf0] }
 0x1cd   : > { %3873 = vmatpush.bf16.msra.mxu3 %v5355_v35  ;;  %v4490_v59 = vld [vmem:[%s7318_s6 + $0x10] sm:$0xf]  ;;  %3848 = vmatpush.bf16.msra.mxu1 %v4811_v48  ;;  %v5291_v5 = vor.u32 %v6729_v58, %v5290_v57 }
 0x1ce   : > { %v6529_v62 = vld [vmem:[%s7318_s6 + $0x2c] sm:$0xf0] }
 0x1cf   : > { %v4746_v0 = vld [vmem:[%s7318_s6 + $0x210] sm:$0xf]  ;;  %3861 = vmatpush.bf16.msra.mxu2 %v5067_v49  ;;  %3836 = vmatpush.bf16.msra.mxu0 %v4523_v61  ;;  %v4491_v15 = vor.u32 %v6529_v62, %v4490_v59 }
 0x1d0   : > { %v6593_v3 = vld [vmem:[%s7318_s6 + $0x22c] sm:$0xf0] }
 0x1d1   : > { %v5002_v36 = vld [vmem:[%s7318_s6 + $0x410] sm:$0xf]  ;;  %3874 = vmatpush.bf16.msra.mxu3 %v5323_v53  ;;  %3849 = vmatpush.bf16.msra.mxu1 %v4779_v1  ;;  %v4747_v21 = vor.u32 %v6593_v3, %v4746_v0 }
 0x1d2   : > { %v6657_v4 = vld [vmem:[%s7318_s6 + $0x42c] sm:$0xf0] }
 0x1d3   : > { %v5258_v7 = vld [vmem:[%s7318_s6 + $0x610] sm:$0xf]  ;;  %3862 = vmatpush.bf16.msra.mxu2 %v5035_v2  ;;  %v5003_v22 = vor.u32 %v6657_v4, %v5002_v36  ;;  %3837 = vmatpush.bf16.msra.mxu0 %v4491_v15  ;;  %v8061_v36 = vpop.f32.mrf.mxu0 }
 0x1d4   : > { %v6721_v8 = vld [vmem:[%s7318_s6 + $0x62c] sm:$0xf0] }
 0x1d5   : > { %v5738_v11 = vld [vmem:[%s7318_s6 + $0x9d0] sm:$0xf]  ;;  %3875 = vmatpush.bf16.msra.mxu3 %v5291_v5  ;;  %v5259_v27 = vor.u32 %v6721_v8, %v5258_v7  ;;  %3850 = vmatpush.bf16.msra.mxu1 %v4747_v21 }
 0x1d6   : > { %v6841_v12 = vld [vmem:[%s7318_s6 + $0x9ec] sm:$0xf0]  ;;  %3838 = vmatmul.bf16.vlgmr.msra.gmra.mxu0 %v7430_v9 }
 0x1d7   : > { %v5994_v14 = vld [vmem:[%s7318_s6 + $0xbd0] sm:$0xf]  ;;  %v5739_v28 = vor.u32 %v6841_v12, %v5738_v11  ;;  %3863 = vmatpush.bf16.msra.mxu2 %v5003_v22 }
 0x1d8   : > { %v6905_v18 = vld [vmem:[%s7318_s6 + $0xbec] sm:$0xf0]  ;;  %3851 = vmatmul.bf16.vlgmr.msra.gmra.mxu1 %v7443_v17 }
 0x1d9   : > { %v6250_v19 = vld [vmem:[%s7318_s6 + $0xdd0] sm:$0xf]  ;;  %v5995_v29 = vor.u32 %v6905_v18, %v5994_v14  ;;  %3876 = vmatpush.bf16.msra.mxu3 %v5259_v27  ;;  %3882 = vmatpush.bf16.msrb.mxu0 %v5739_v28  ;;  %v8076_v28 = vpop.f32.mrf.mxu2 }
 0x1da   : > { %v6969_v20 = vld [vmem:[%s7318_s6 + $0xdec] sm:$0xf0]  ;;  %3864 = vmatmul.bf16.vlgmr.msra.gmra.mxu2 %v7419_v63 }
 0x1db   : > { %v6506_v24 = vld [vmem:[%s7318_s6 + $0xfd0] sm:$0xf]  ;;  %v6251_v31 = vor.u32 %v6969_v20, %v6250_v19  ;;  %3895 = vmatpush.bf16.msrb.mxu1 %v5995_v29 }
 0x1dc   : > { %v7033_v26 = vld [vmem:[%s7318_s6 + $0xfec] sm:$0xf0]  ;;  %3877 = vmatmul.bf16.vlgmr.msra.gmra.mxu3 %v7441_v16 }
 0x1dd   : > { %v5706_v32 = vld [vmem:[%s7318_s6 + $0x990] sm:$0xf]  ;;  %v6507_v39 = vor.u32 %v7033_v26, %v6506_v24  ;;  %3908 = vmatpush.bf16.msrb.mxu2 %v6251_v31 }
 0x1de   : > { %v6833_v33 = vld [vmem:[%s7318_s6 + $0x9ac] sm:$0xf0] }
 0x1df   : > { %v5962_v35 = vld [vmem:[%s7318_s6 + $0xb90] sm:$0xf]  ;;  %v5707_v44 = vor.u32 %v6833_v33, %v5706_v32  ;;  %3921 = vmatpush.bf16.msrb.mxu3 %v6507_v39 }
 0x1e0   : > { %v6897_v43 = vld [vmem:[%s7318_s6 + $0xbac] sm:$0xf0] }
 0x1e1   : > { %v6218_v25 = vld [vmem:[%s7318_s6 + $0xd90] sm:$0xf]  ;;  %v5963_v45 = vor.u32 %v6897_v43, %v5962_v35  ;;  %3883 = vmatpush.bf16.msrb.mxu0 %v5707_v44  ;;  %v8081_v35 = vpop.f32.mrf.mxu3 }
 0x1e2   : > { %v6961_v41 = vld [vmem:[%s7318_s6 + $0xdac] sm:$0xf0] }
 0x1e3   : > { %v6474_v6 = vld [vmem:[%s7318_s6 + $0xf90] sm:$0xf]  ;;  %v6219_v46 = vor.u32 %v6961_v41, %v6218_v25  ;;  %3896 = vmatpush.bf16.msrb.mxu1 %v5963_v45  ;;  %v3633_v41 = vpop.f32.mrf.mxu0 }
 0x1e4   : > { %v7025_v13 = vld [vmem:[%s7318_s6 + $0xfac] sm:$0xf0] }
 0x1e5   : > { %v5674_v47 = vld [vmem:[%s7318_s6 + $0x950] sm:$0xf]  ;;  %v6475_v50 = vor.u32 %v7025_v13, %v6474_v6  ;;  %3909 = vmatpush.bf16.msrb.mxu2 %v6219_v46 }
 0x1e6   : > { %v6825_v48 = vld [vmem:[%s7318_s6 + $0x96c] sm:$0xf0] }
 0x1e7   : > { %v5930_v49 = vld [vmem:[%s7318_s6 + $0xb50] sm:$0xf]  ;;  %v5675_v42 = vor.u32 %v6825_v48, %v5674_v47  ;;  %3922 = vmatpush.bf16.msrb.mxu3 %v6475_v50  ;;  %v3646_v47 = vpop.f32.mrf.mxu1 }
 0x1e8   : > { %v6889_v51 = vld [vmem:[%s7318_s6 + $0xb6c] sm:$0xf0]  ;;  %v4908_v47 = vld [vmem:[%s7318_s6 + $0x370] sm:$0xf0] }
 0x1e9   : > { %v6186_v23 = vld [vmem:[%s7318_s6 + $0xd50] sm:$0xf]  ;;  %v5931_v54 = vor.u32 %v6889_v51, %v5930_v49  ;;  %3884 = vmatpush.bf16.msrb.mxu0 %v5675_v42 }
 0x1ea   : > { %v6953_v52 = vld [vmem:[%s7318_s6 + $0xd6c] sm:$0xf0] }
 0x1eb   : > { %v6442_v53 = vld [vmem:[%s7318_s6 + $0xf50] sm:$0xf]  ;;  %v6187_v56 = vor.u32 %v6953_v52, %v6186_v23  ;;  %3897 = vmatpush.bf16.msrb.mxu1 %v5931_v54 }
 0x1ec   : > { %v7017_v30 = vld [vmem:[%s7318_s6 + $0xf6c] sm:$0xf0] }
 0x1ed   : > { %v5642_v57 = vld [vmem:[%s7318_s6 + $0x910] sm:$0xf]  ;;  %v6443_v60 = vor.u32 %v7017_v30, %v6442_v53  ;;  %3910 = vmatpush.bf16.msrb.mxu2 %v6187_v56 }
 0x1ee   : > { %v6817_v58 = vld [vmem:[%s7318_s6 + $0x92c] sm:$0xf0] }
 0x1ef   : > { %v5898_v59 = vld [vmem:[%s7318_s6 + $0xb10] sm:$0xf]  ;;  %v5643_v3 = vor.u32 %v6817_v58, %v5642_v57  ;;  %3923 = vmatpush.bf16.msrb.mxu3 %v6443_v60  ;;  %v3659_v60 = vpop.f32.mrf.mxu2 }
 0x1f0   : > { %v6881_v61 = vld [vmem:[%s7318_s6 + $0xb2c] sm:$0xf0]  ;;  %v6749_v60 = vld [vmem:[%s7318_s6 + $0x714] sm:$0xf] }
 0x1f1   : > { %v6154_v62 = vld [vmem:[%s7318_s6 + $0xd10] sm:$0xf]  ;;  %v5899_v4 = vor.u32 %v6881_v61, %v5898_v59  ;;  %3885 = vmatpush.bf16.msrb.mxu0 %v5643_v3  ;;  %v6581_v3 = vld [vmem:[%s7318_s6 + $0x1d4] sm:$0xf] }
 0x1f2   : > { %v6945_v0 = vld [vmem:[%s7318_s6 + $0xd2c] sm:$0xf0] }
 0x1f3   : > { %v6410_v1 = vld [vmem:[%s7318_s6 + $0xf10] sm:$0xf]  ;;  %v6155_v55 = vor.u32 %v6945_v0, %v6154_v62  ;;  %3898 = vmatpush.bf16.msrb.mxu1 %v5899_v4  ;;  %v4716_v4 = vld [vmem:[%s7318_s6 + $0x1f0] sm:$0xf0] }
 0x1f4   : > { %v7009_v2 = vld [vmem:[%s7318_s6 + $0xf2c] sm:$0xf0] }
 0x1f5   : > { %v5610_v5 = vld [vmem:[%s7318_s6 + $0x8d0] sm:$0xf]  ;;  %v6411_v11 = vor.u32 %v7009_v2, %v6410_v1  ;;  %3911 = vmatpush.bf16.msrb.mxu2 %v6155_v55  ;;  %v3672_v2 = vpop.f32.mrf.mxu3  ;;  %v6645_v55 = vld [vmem:[%s7318_s6 + $0x3d4] sm:$0xf] }
 0x1f6   : > { %v6809_v7 = vld [vmem:[%s7318_s6 + $0x8ec] sm:$0xf0]  ;;  %v6549_v2 = vld [vmem:[%s7318_s6 + $0xd4] sm:$0xf] }
 0x1f7   : > { %v5866_v8 = vld [vmem:[%s7318_s6 + $0xad0] sm:$0xf]  ;;  %v5611_v20 = vor.u32 %v6809_v7, %v5610_v5  ;;  %3924 = vmatpush.bf16.msrb.mxu3 %v6411_v11  ;;  %v4972_v7 = vld [vmem:[%s7318_s6 + $0x3f0] sm:$0xf0] }
 0x1f8   : > { %v6873_v12 = vld [vmem:[%s7318_s6 + $0xaec] sm:$0xf0]  ;;  %v5228_v11 = vld [vmem:[%s7318_s6 + $0x5f0] sm:$0xf0] }
 0x1f9   : > { %v6122_v14 = vld [vmem:[%s7318_s6 + $0xcd0] sm:$0xf]  ;;  %v5867_v21 = vor.u32 %v6873_v12, %v5866_v8  ;;  %3886 = vmatpush.bf16.msrb.mxu0 %v5611_v20  ;;  %v6709_v8 = vld [vmem:[%s7318_s6 + $0x5d4] sm:$0xf]  ;;  %v4719_v20 = vor.u32 %v6581_v3, %v4716_v4 }
 0x1fa   : > { %v6937_v15 = vld [vmem:[%s7318_s6 + $0xcec] sm:$0xf0]  ;;  %v4588_v3 = vld [vmem:[%s7318_s6 + $0xf0] sm:$0xf0] }
 0x1fb   : > { %v6378_v18 = vld [vmem:[%s7318_s6 + $0xed0] sm:$0xf]  ;;  %v6123_v22 = vor.u32 %v6937_v15, %v6122_v14  ;;  %3899 = vmatpush.bf16.msrb.mxu1 %v5867_v21  ;;  %v6773_v15 = vld [vmem:[%s7318_s6 + $0x7d4] sm:$0xf]  ;;  %v4975_v21 = vor.u32 %v6645_v55, %v4972_v7 }
 0x1fc   : > { %v7001_v19 = vld [vmem:[%s7318_s6 + $0xeec] sm:$0xf0]  ;;  %v6613_v4 = vld [vmem:[%s7318_s6 + $0x2d4] sm:$0xf] }
 0x1fd   : > { %v5578_v24 = vld [vmem:[%s7318_s6 + $0x890] sm:$0xf]  ;;  %v6379_v29 = vor.u32 %v7001_v19, %v6378_v18  ;;  %3912 = vmatpush.bf16.msrb.mxu2 %v6123_v22  ;;  %v5484_v18 = vld [vmem:[%s7318_s6 + $0x7f0] sm:$0xf0]  ;;  %v5231_v22 = vor.u32 %v6709_v8, %v5228_v11 }
 0x1fe   : > { %v6801_v26 = vld [vmem:[%s7318_s6 + $0x8ac] sm:$0xf0]  ;;  %v4844_v8 = vld [vmem:[%s7318_s6 + $0x2f0] sm:$0xf0] }
 0x1ff   : > { %v5834_v27 = vld [vmem:[%s7318_s6 + $0xa90] sm:$0xf]  ;;  %v5579_v25 = vor.u32 %v6801_v26, %v5578_v24  ;;  %3925 = vmatpush.bf16.msrb.mxu3 %v6379_v29  ;;  %v3645_v24 = vadd.f32 %v8066_v10, %v8061_v36  ;;  %v6573_v26 = vld [vmem:[%s7318_s6 + $0x194] sm:$0xf] }
 0x200   : > { %v6865_v31 = vld [vmem:[%s7318_s6 + $0xaac] sm:$0xf0]  ;;  %v6637_v29 = vld [vmem:[%s7318_s6 + $0x394] sm:$0xf] }
 0x201   : > { %v6090_v32 = vld [vmem:[%s7318_s6 + $0xc90] sm:$0xf]  ;;  %v5835_v6 = vor.u32 %v6865_v31, %v5834_v27  ;;  %3887 = vmatpush.bf16.msrb.mxu0 %v5579_v25  ;;  %v4684_v27 = vld [vmem:[%s7318_s6 + $0x1b0] sm:$0xf0]  ;;  %v5487_v31 = vor.u32 %v6773_v15, %v5484_v18 }
 0x202   : > { %v6929_v33 = vld [vmem:[%s7318_s6 + $0xcac] sm:$0xf0]  ;;  %v5452_v25 = vld [vmem:[%s7318_s6 + $0x7b0] sm:$0xf0]  ;;  %v4687_v36 = vor.u32 %v6573_v26, %v4684_v27 }
 0x203   : > { %v6346_v39 = vld [vmem:[%s7318_s6 + $0xe90] sm:$0xf]  ;;  %v6091_v13 = vor.u32 %v6929_v33, %v6090_v32  ;;  %3900 = vmatpush.bf16.msrb.mxu1 %v5835_v6  ;;  %v4940_v32 = vld [vmem:[%s7318_s6 + $0x3b0] sm:$0xf0]  ;;  %v3658_v6 = vadd.f32 %v8076_v28, %v3645_v24 }
 0x204   : > { %v6993_v43 = vld [vmem:[%s7318_s6 + $0xeac] sm:$0xf0]  ;;  %v6701_v33 = vld [vmem:[%s7318_s6 + $0x594] sm:$0xf]  ;;  %v4943_v10 = vor.u32 %v6637_v29, %v4940_v32  ;;  %v3709_v29 = vpop.f32.mrf.mxu2 }
 0x205   : > { %v5546_v44 = vld [vmem:[%s7318_s6 + $0x850] sm:$0xf]  ;;  %v6347_v48 = vor.u32 %v6993_v43, %v6346_v39  ;;  %3913 = vmatpush.bf16.msrb.mxu2 %v6091_v13  ;;  %v5196_v39 = vld [vmem:[%s7318_s6 + $0x5b0] sm:$0xf0] }
 0x206   : > { %v6793_v45 = vld [vmem:[%s7318_s6 + $0x86c] sm:$0xf0]  ;;  %v6765_v43 = vld [vmem:[%s7318_s6 + $0x794] sm:$0xf]  ;;  %v5199_v41 = vor.u32 %v6701_v33, %v5196_v39 }
 0x207   : > { %v5802_v46 = vld [vmem:[%s7318_s6 + $0xa50] sm:$0xf]  ;;  %v5547_v53 = vor.u32 %v6793_v45, %v5546_v44  ;;  %3926 = vmatpush.bf16.msrb.mxu3 %v6347_v48  ;;  %v6565_v13 = vld [vmem:[%s7318_s6 + $0x154] sm:$0xf] }
 0x208   : > { %v6857_v49 = vld [vmem:[%s7318_s6 + $0xa6c] sm:$0xf0]  ;;  %v4652_v44 = vld [vmem:[%s7318_s6 + $0x170] sm:$0xf0] }
 0x209   : > { %v6058_v50 = vld [vmem:[%s7318_s6 + $0xc50] sm:$0xf]  ;;  %v5803_v54 = vor.u32 %v6857_v49, %v5802_v46  ;;  %3888 = vmatpush.bf16.msrb.mxu0 %v5547_v53  ;;  %v6629_v45 = vld [vmem:[%s7318_s6 + $0x354] sm:$0xf]  ;;  %v5455_v46 = vor.u32 %v6765_v43, %v5452_v25  ;;  %v3722_v43 = vpop.f32.mrf.mxu3  ;;  %v8156_v25 = vld [vmem:[%s7324_s10] sm:$0xff] }
 0x20a   : > { %v6921_v51 = vld [vmem:[%s7318_s6 + $0xc6c] sm:$0xf0]  ;;  %v6693_v48 = vld [vmem:[%s7318_s6 + $0x554] sm:$0xf] }
 0x20b   : > { %v6314_v23 = vld [vmem:[%s7318_s6 + $0xe50] sm:$0xf]  ;;  %v6059_v56 = vor.u32 %v6921_v51, %v6058_v50  ;;  %3901 = vmatpush.bf16.msrb.mxu1 %v5803_v54  ;;  %v5164_v49 = vld [vmem:[%s7318_s6 + $0x570] sm:$0xf0]  ;;  %v4655_v51 = vor.u32 %v6565_v13, %v4652_v44 }
 0x20c   : > { %v6985_v52 = vld [vmem:[%s7318_s6 + $0xe6c] sm:$0xf0]  ;;  %v6757_v50 = vld [vmem:[%s7318_s6 + $0x754] sm:$0xf]  ;;  %v5167_v53 = vor.u32 %v6693_v48, %v5164_v49 }
 0x20d   : > { %v5514_v30 = vld [vmem:[%s7318_s6 + $0x810] sm:$0xf]  ;;  %v6315_v61 = vor.u32 %v6985_v52, %v6314_v23  ;;  %3914 = vmatpush.bf16.msrb.mxu2 %v6059_v56  ;;  %v5420_v28 = vld [vmem:[%s7318_s6 + $0x770] sm:$0xf0]  ;;  %v3671_v23 = vadd.f32 %v8081_v35, %v3658_v6  ;;  %v4911_v52 = vor.u32 %v6629_v45, %v4908_v47 }
 0x20e   : > { %v6785_v42 = vld [vmem:[%s7318_s6 + $0x82c] sm:$0xf0]  ;;  %v6621_v54 = vld [vmem:[%s7318_s6 + $0x314] sm:$0xf]  ;;  %v5423_v56 = vor.u32 %v6757_v50, %v5420_v28 }
 0x20f   : > { %v5770_v57 = vld [vmem:[%s7318_s6 + $0xa10] sm:$0xf]  ;;  %v5515_v5 = vor.u32 %v6785_v42, %v5514_v30  ;;  %3927 = vmatpush.bf16.msrb.mxu3 %v6315_v61  ;;  %v6557_v30 = vld [vmem:[%s7318_s6 + $0x114] sm:$0xf] }
 0x210   : > { %v6849_v58 = vld [vmem:[%s7318_s6 + $0xa2c] sm:$0xf0]  ;;  %v4620_v42 = vld [vmem:[%s7318_s6 + $0x130] sm:$0xf0] }
 0x211   : > { %v6026_v59 = vld [vmem:[%s7318_s6 + $0xc10] sm:$0xf]  ;;  %v5771_v12 = vor.u32 %v6849_v58, %v5770_v57  ;;  %3889 = vmatpush.bf16.msrb.mxu0 %v5515_v5  ;;  %v4876_v57 = vld [vmem:[%s7318_s6 + $0x330] sm:$0xf0]  ;;  %v4623_v35 = vor.u32 %v6557_v30, %v4620_v42  ;;  %v3696_v5 = vpop.f32.mrf.mxu1 }
 0x212   : > { %v6913_v62 = vld [vmem:[%s7318_s6 + $0xc2c] sm:$0xf0]  ;;  %v6685_v58 = vld [vmem:[%s7318_s6 + $0x514] sm:$0xf] }
 0x213   : > { %v6282_v0 = vld [vmem:[%s7318_s6 + $0xe10] sm:$0xf]  ;;  %v6027_v14 = vor.u32 %v6913_v62, %v6026_v59  ;;  %3902 = vmatpush.bf16.msrb.mxu1 %v5771_v12  ;;  %v5132_v59 = vld [vmem:[%s7318_s6 + $0x530] sm:$0xf0]  ;;  %v3683_v62 = vpop.f32.mrf.mxu0 }
 0x214   : > { %v6977_v1 = vld [vmem:[%s7318_s6 + $0xe2c] sm:$0xf0]  ;;  %3890 = vmatmul.bf16.vlgmr.msrb.gmra.mxu0 %v7512_v37  ;;  %v5388_v61 = vld [vmem:[%s7318_s6 + $0x730] sm:$0xf0]  ;;  %v3684_v55 = vadd.f32 %v3683_v62, %v3671_v23 }
 0x215   : > { %v6283_v19 = vor.u32 %v6977_v1, %v6282_v0  ;;  %3915 = vmatpush.bf16.msrb.mxu2 %v6027_v14  ;;  %3934 = vmatpush.bf16.msra.mxu0 %v4719_v20  ;;  %v4879_v0 = vor.u32 %v6621_v54, %v4876_v57  ;;  %v5135_v1 = vor.u32 %v6685_v58, %v5132_v59  ;;  %v6677_v11 = vld [vmem:[%s7318_s6 + $0x4d4] sm:$0xf] }
 0x216   : > { %3903 = vmatmul.bf16.vlgmr.msrb.gmra.mxu1 %v7516_v40  ;;  %v5391_v7 = vor.u32 %v6749_v60, %v5388_v61  ;;  %v5100_v12 = vld [vmem:[%s7318_s6 + $0x4f0] sm:$0xf0]  ;;  %v3697_v18 = vadd.f32 %v3696_v5, %v3684_v55  ;;  %v3724_v55 = vpop.f32.mrf.mxu3 }
 0x217   : > { %3928 = vmatpush.bf16.msrb.mxu3 %v6283_v19  ;;  %3947 = vmatpush.bf16.msra.mxu1 %v4975_v21  ;;  %v6741_v14 = vld [vmem:[%s7318_s6 + $0x6d4] sm:$0xf]  ;;  %v4591_v19 = vor.u32 %v6549_v2, %v4588_v3  ;;  %v4847_v21 = vor.u32 %v6613_v4, %v4844_v8 }
 0x218   : > { %3916 = vmatmul.bf16.vlgmr.msrb.gmra.mxu2 %v7508_v34  ;;  %v5356_v15 = vld [vmem:[%s7318_s6 + $0x6f0] sm:$0xf0]  ;;  %v3710_v39 = vadd.f32 %v3709_v29, %v3697_v18 }
 0x219   : > { %3960 = vmatpush.bf16.msra.mxu2 %v5231_v22  ;;  %3935 = vmatpush.bf16.msra.mxu0 %v4687_v36  ;;  %v6541_v20 = vld [vmem:[%s7318_s6 + $0x94] sm:$0xf]  ;;  %v5103_v22 = vor.u32 %v6677_v11, %v5100_v12  ;;  %v4277_v36 = vperm.slane %v8156_v25, 2  ;;  %v3698_v50 = vpop.f32.mrf.mxu1 }
 0x21a   : > { %3929 = vmatmul.bf16.vlgmr.msrb.gmra.mxu3 %v7514_v38  ;;  %v4556_v24 = vld [vmem:[%s7318_s6 + $0xb0] sm:$0xf0]  ;;  %v3723_v13 = vadd.f32 %v3722_v43, %v3710_v39 }
 0x21b   : > { %3973 = vmatpush.bf16.msra.mxu3 %v5487_v31  ;;  %3948 = vmatpush.bf16.msra.mxu1 %v4943_v10  ;;  %v6605_v26 = vld [vmem:[%s7318_s6 + $0x294] sm:$0xf]  ;;  %v5359_v31 = vor.u32 %v6741_v14, %v5356_v15  ;;  %v4559_v6 = vor.u32 %v6541_v20, %v4556_v24  ;;  %v3685_v44 = vpop.f32.mrf.mxu0 }
 0x21c   : > { %v4812_v27 = vld [vmem:[%s7318_s6 + $0x2b0] sm:$0xf0] }
 0x21d   : > { %3961 = vmatpush.bf16.msra.mxu2 %v5199_v41  ;;  %3936 = vmatpush.bf16.msra.mxu0 %v4655_v51  ;;  %v6669_v32 = vld [vmem:[%s7318_s6 + $0x494] sm:$0xf]  ;;  %v4815_v45 = vor.u32 %v6605_v26, %v4812_v27  ;;  %v4293_v51 = vadd.f32 %v4277_v36, %v3723_v13 }
 0x21e   : > { %v5068_v33 = vld [vmem:[%s7318_s6 + $0x4b0] sm:$0xf0] }
 0x21f   : > { %3974 = vmatpush.bf16.msra.mxu3 %v5455_v46  ;;  %3949 = vmatpush.bf16.msra.mxu1 %v4911_v52  ;;  %v6733_v10 = vld [vmem:[%s7318_s6 + $0x694] sm:$0xf]  ;;  %v5071_v46 = vor.u32 %v6669_v32, %v5068_v33 }
 0x220   : > { %v5324_v41 = vld [vmem:[%s7318_s6 + $0x6b0] sm:$0xf0] }
 0x221   : > { %3962 = vmatpush.bf16.msra.mxu2 %v5167_v53  ;;  %3937 = vmatpush.bf16.msra.mxu0 %v4623_v35  ;;  %v6533_v47 = vld [vmem:[%s7318_s6 + $0x54] sm:$0xf]  ;;  %v5327_v28 = vor.u32 %v6733_v10, %v5324_v41 }
 0x222   : > { %v4524_v48 = vld [vmem:[%s7318_s6 + $0x70] sm:$0xf0] }
 0x223   : > { %3975 = vmatpush.bf16.msra.mxu3 %v5423_v56  ;;  %3950 = vmatpush.bf16.msra.mxu1 %v4879_v0  ;;  %v6597_v49 = vld [vmem:[%s7318_s6 + $0x254] sm:$0xf]  ;;  %v4301_v56 = vmax.f32 %v4293_v51, 0.0  ;;  %v4527_v57 = vor.u32 %v6533_v47, %v4524_v48 }
 0x224   : > { %v4780_v23 = vld [vmem:[%s7318_s6 + $0x270] sm:$0xf0] }
 0x225   : > { %3963 = vmatpush.bf16.msra.mxu2 %v5135_v1  ;;  %3938 = vmatpush.bf16.msra.mxu0 %v4591_v19  ;;  %v6661_v52 = vld [vmem:[%s7318_s6 + $0x454] sm:$0xf]  ;;  %v4783_v60 = vor.u32 %v6597_v49, %v4780_v23  ;;  %v3711_v1 = vpop.f32.mrf.mxu2  ;;  %4309 = vst [vmem:[%s7862_s7 + $0x10] sm:$0xff] %v4301_v56 }
 0x226   : > { %v5036_v53 = vld [vmem:[%s7318_s6 + $0x470] sm:$0xf0] }
 0x227   : > { %3976 = vmatpush.bf16.msra.mxu3 %v5391_v7  ;;  %3951 = vmatpush.bf16.msra.mxu1 %v4847_v21  ;;  %v6725_v30 = vld [vmem:[%s7318_s6 + $0x654] sm:$0xf]  ;;  %v5039_v61 = vor.u32 %v6661_v52, %v5036_v53 }
 0x228   : > { %v5292_v42 = vld [vmem:[%s7318_s6 + $0x670] sm:$0xf0] }
 0x229   : > { %3964 = vmatpush.bf16.msra.mxu2 %v5103_v22  ;;  %v6525_v54 = vld [vmem:[%s7318_s6 + $0x14] sm:$0xf]  ;;  %3939 = vmatpush.bf16.msra.mxu0 %v4559_v6  ;;  %v5295_v2 = vor.u32 %v6725_v30, %v5292_v42 }
 0x22a   : > { %v4492_v58 = vld [vmem:[%s7318_s6 + $0x30] sm:$0xf0] }
 0x22b   : > { %3977 = vmatpush.bf16.msra.mxu3 %v5359_v31  ;;  %v6589_v59 = vld [vmem:[%s7318_s6 + $0x214] sm:$0xf]  ;;  %3952 = vmatpush.bf16.msra.mxu1 %v4815_v45  ;;  %v4495_v11 = vor.u32 %v6525_v54, %v4492_v58 }
 0x22c   : > { %v4748_v35 = vld [vmem:[%s7318_s6 + $0x230] sm:$0xf0] }
 0x22d   : > { %3965 = vmatpush.bf16.msra.mxu2 %v5071_v46  ;;  %v6653_v62 = vld [vmem:[%s7318_s6 + $0x414] sm:$0xf]  ;;  %3940 = vmatpush.bf16.msra.mxu0 %v4527_v57  ;;  %v4751_v18 = vor.u32 %v6589_v59, %v4748_v35 }
 0x22e   : > { %v5004_v0 = vld [vmem:[%s7318_s6 + $0x430] sm:$0xf0] }
 0x22f   : > { %3978 = vmatpush.bf16.msra.mxu3 %v5327_v28  ;;  %v6717_v3 = vld [vmem:[%s7318_s6 + $0x614] sm:$0xf]  ;;  %3953 = vmatpush.bf16.msra.mxu1 %v4783_v60  ;;  %v5007_v19 = vor.u32 %v6653_v62, %v5004_v0  ;;  %v8214_v0 = vpop.f32.mrf.mxu0 }
 0x230   : > { %v5260_v4 = vld [vmem:[%s7318_s6 + $0x630] sm:$0xf0] }
 0x231   : > { %v6837_v5 = vld [vmem:[%s7318_s6 + $0x9d4] sm:$0xf]  ;;  %3966 = vmatpush.bf16.msra.mxu2 %v5039_v61  ;;  %v5263_v22 = vor.u32 %v6717_v3, %v5260_v4  ;;  %3941 = vmatpush.bf16.msra.mxu0 %v4495_v11 }
 0x232   : > { %v5740_v7 = vld [vmem:[%s7318_s6 + $0x9f0] sm:$0xf0] }
 0x233   : > { %v6901_v8 = vld [vmem:[%s7318_s6 + $0xbd4] sm:$0xf]  ;;  %3979 = vmatpush.bf16.msra.mxu3 %v5295_v2  ;;  %v5743_v24 = vor.u32 %v6837_v5, %v5740_v7  ;;  %3954 = vmatpush.bf16.msra.mxu1 %v4751_v18  ;;  %v8219_v5 = vpop.f32.mrf.mxu1 }
 0x234   : > { %v5996_v12 = vld [vmem:[%s7318_s6 + $0xbf0] sm:$0xf0]  ;;  %3942 = vmatmul.bf16.vlgmr.msra.gmra.mxu0 %v7430_v9 }
 0x235   : > { %v6965_v14 = vld [vmem:[%s7318_s6 + $0xdd4] sm:$0xf]  ;;  %v5999_v26 = vor.u32 %v6901_v8, %v5996_v12  ;;  %3967 = vmatpush.bf16.msra.mxu2 %v5007_v19  ;;  %3986 = vmatpush.bf16.msrb.mxu0 %v5743_v24 }
 0x236   : > { %v6252_v15 = vld [vmem:[%s7318_s6 + $0xdf0] sm:$0xf0]  ;;  %3955 = vmatmul.bf16.vlgmr.msra.gmra.mxu1 %v7443_v17 }
 0x237   : > { %v7029_v20 = vld [vmem:[%s7318_s6 + $0xfd4] sm:$0xf]  ;;  %v6255_v27 = vor.u32 %v6965_v14, %v6252_v15  ;;  %3980 = vmatpush.bf16.msra.mxu3 %v5263_v22  ;;  %3999 = vmatpush.bf16.msrb.mxu1 %v5999_v26  ;;  %v8229_v26 = vpop.f32.mrf.mxu2 }
 0x238   : > { %v6508_v21 = vld [vmem:[%s7318_s6 + $0xff0] sm:$0xf0]  ;;  %3968 = vmatmul.bf16.vlgmr.msra.gmra.mxu2 %v7419_v63 }
 0x239   : > { %v6829_v29 = vld [vmem:[%s7318_s6 + $0x994] sm:$0xf]  ;;  %v6511_v33 = vor.u32 %v7029_v20, %v6508_v21  ;;  %4012 = vmatpush.bf16.msrb.mxu2 %v6255_v27 }
 0x23a   : > { %v5708_v31 = vld [vmem:[%s7318_s6 + $0x9b0] sm:$0xf0]  ;;  %3981 = vmatmul.bf16.vlgmr.msra.gmra.mxu3 %v7441_v16 }
 0x23b   : > { %v6893_v32 = vld [vmem:[%s7318_s6 + $0xb94] sm:$0xf]  ;;  %v5711_v6 = vor.u32 %v6829_v29, %v5708_v31  ;;  %4025 = vmatpush.bf16.msrb.mxu3 %v6511_v33  ;;  %v8234_v33 = vpop.f32.mrf.mxu3 }
 0x23c   : > { %v5964_v39 = vld [vmem:[%s7318_s6 + $0xbb0] sm:$0xf0] }
 0x23d   : > { %v6957_v43 = vld [vmem:[%s7318_s6 + $0xd94] sm:$0xf]  ;;  %v5967_v13 = vor.u32 %v6893_v32, %v5964_v39  ;;  %3987 = vmatpush.bf16.msrb.mxu0 %v5711_v6 }
 0x23e   : > { %v6220_v36 = vld [vmem:[%s7318_s6 + $0xdb0] sm:$0xf0] }
 0x23f   : > { %v7021_v10 = vld [vmem:[%s7318_s6 + $0xf94] sm:$0xf]  ;;  %v6223_v44 = vor.u32 %v6957_v43, %v6220_v36  ;;  %4000 = vmatpush.bf16.msrb.mxu1 %v5967_v13 }
 0x240   : > { %v6476_v41 = vld [vmem:[%s7318_s6 + $0xfb0] sm:$0xf0] }
 0x241   : > { %v6821_v45 = vld [vmem:[%s7318_s6 + $0x954] sm:$0xf]  ;;  %v6479_v48 = vor.u32 %v7021_v10, %v6476_v41  ;;  %4013 = vmatpush.bf16.msrb.mxu2 %v6223_v44  ;;  %v3737_v10 = vpop.f32.mrf.mxu0 }
 0x242   : > { %v5676_v46 = vld [vmem:[%s7318_s6 + $0x970] sm:$0xf0]  ;;  %v6770_v10 = vld [vmem:[%s7318_s6 + $0x7b4] sm:$0xf0] }
 0x243   : > { %v6885_v47 = vld [vmem:[%s7318_s6 + $0xb54] sm:$0xf]  ;;  %v5679_v52 = vor.u32 %v6821_v45, %v5676_v46  ;;  %4026 = vmatpush.bf16.msrb.mxu3 %v6479_v48  ;;  %v3750_v46 = vpop.f32.mrf.mxu1 }
 0x244   : > { %v5932_v49 = vld [vmem:[%s7318_s6 + $0xb70] sm:$0xf0] }
 0x245   : > { %v6949_v50 = vld [vmem:[%s7318_s6 + $0xd54] sm:$0xf]  ;;  %v5935_v53 = vor.u32 %v6885_v47, %v5932_v49  ;;  %3988 = vmatpush.bf16.msrb.mxu0 %v5679_v52 }
 0x246   : > { %v6188_v28 = vld [vmem:[%s7318_s6 + $0xd70] sm:$0xf0] }
 0x247   : > { %v7013_v51 = vld [vmem:[%s7318_s6 + $0xf54] sm:$0xf]  ;;  %v6191_v30 = vor.u32 %v6949_v50, %v6188_v28  ;;  %4001 = vmatpush.bf16.msrb.mxu1 %v5935_v53 }
 0x248   : > { %v6444_v23 = vld [vmem:[%s7318_s6 + $0xf70] sm:$0xf0] }
 0x249   : > { %v6813_v42 = vld [vmem:[%s7318_s6 + $0x914] sm:$0xf]  ;;  %v6447_v57 = vor.u32 %v7013_v51, %v6444_v23  ;;  %4014 = vmatpush.bf16.msrb.mxu2 %v6191_v30 }
 0x24a   : > { %v5644_v54 = vld [vmem:[%s7318_s6 + $0x930] sm:$0xf0] }
 0x24b   : > { %v6877_v56 = vld [vmem:[%s7318_s6 + $0xb14] sm:$0xf]  ;;  %v5647_v62 = vor.u32 %v6813_v42, %v5644_v54  ;;  %4027 = vmatpush.bf16.msrb.mxu3 %v6447_v57 }
 0x24c   : > { %v5900_v58 = vld [vmem:[%s7318_s6 + $0xb30] sm:$0xf0] }
 0x24d   : > { %v6941_v59 = vld [vmem:[%s7318_s6 + $0xd14] sm:$0xf]  ;;  %v5903_v1 = vor.u32 %v6877_v56, %v5900_v58  ;;  %3989 = vmatpush.bf16.msrb.mxu0 %v5647_v62  ;;  %v3763_v58 = vpop.f32.mrf.mxu2  ;;  %v3776_v62 = vpop.f32.mrf.mxu3 }
 0x24e   : > { %v6156_v60 = vld [vmem:[%s7318_s6 + $0xd30] sm:$0xf0]  ;;  %v6690_v58 = vld [vmem:[%s7318_s6 + $0x534] sm:$0xf0] }
 0x24f   : > { %v7005_v61 = vld [vmem:[%s7318_s6 + $0xf14] sm:$0xf]  ;;  %v6159_v2 = vor.u32 %v6941_v59, %v6156_v60  ;;  %4002 = vmatpush.bf16.msrb.mxu1 %v5903_v1  ;;  %v4722_v1 = vld [vmem:[%s7318_s6 + $0x1d8] sm:$0xf] }
 0x250   : > { %v6412_v35 = vld [vmem:[%s7318_s6 + $0xf30] sm:$0xf0] }
 0x251   : > { %v6805_v3 = vld [vmem:[%s7318_s6 + $0x8d4] sm:$0xf]  ;;  %v6415_v7 = vor.u32 %v7005_v61, %v6412_v35  ;;  %4015 = vmatpush.bf16.msrb.mxu2 %v6159_v2  ;;  %v6586_v2 = vld [vmem:[%s7318_s6 + $0x1f4] sm:$0xf0] }
 0x252   : > { %v5612_v4 = vld [vmem:[%s7318_s6 + $0x8f0] sm:$0xf0] }
 0x253   : > { %v6869_v55 = vld [vmem:[%s7318_s6 + $0xad4] sm:$0xf]  ;;  %v5615_v18 = vor.u32 %v6805_v3, %v5612_v4  ;;  %4028 = vmatpush.bf16.msrb.mxu3 %v6415_v7  ;;  %v4978_v3 = vld [vmem:[%s7318_s6 + $0x3d8] sm:$0xf] }
 0x254   : > { %v5868_v8 = vld [vmem:[%s7318_s6 + $0xaf0] sm:$0xf0]  ;;  %v5234_v7 = vld [vmem:[%s7318_s6 + $0x5d8] sm:$0xf] }
 0x255   : > { %v6933_v11 = vld [vmem:[%s7318_s6 + $0xcd4] sm:$0xf]  ;;  %v5871_v19 = vor.u32 %v6869_v55, %v5868_v8  ;;  %3990 = vmatpush.bf16.msrb.mxu0 %v5615_v18  ;;  %v6650_v55 = vld [vmem:[%s7318_s6 + $0x3f4] sm:$0xf0] }
 0x256   : > { %v6124_v12 = vld [vmem:[%s7318_s6 + $0xcf0] sm:$0xf0]  ;;  %v6714_v8 = vld [vmem:[%s7318_s6 + $0x5f4] sm:$0xf0] }
 0x257   : > { %v6997_v14 = vld [vmem:[%s7318_s6 + $0xed4] sm:$0xf]  ;;  %v6127_v20 = vor.u32 %v6933_v11, %v6124_v12  ;;  %4003 = vmatpush.bf16.msrb.mxu1 %v5871_v19  ;;  %v4723_v19 = vor.u32 %v6586_v2, %v4722_v1  ;;  %v4594_v1 = vld [vmem:[%s7318_s6 + $0xd8] sm:$0xf] }
 0x258   : > { %v6380_v15 = vld [vmem:[%s7318_s6 + $0xef0] sm:$0xf0]  ;;  %v6554_v2 = vld [vmem:[%s7318_s6 + $0xf4] sm:$0xf0] }
 0x259   : > { %v6797_v21 = vld [vmem:[%s7318_s6 + $0x894] sm:$0xf]  ;;  %v6383_v27 = vor.u32 %v6997_v14, %v6380_v15  ;;  %4016 = vmatpush.bf16.msrb.mxu2 %v6127_v20  ;;  %v5490_v14 = vld [vmem:[%s7318_s6 + $0x7d8] sm:$0xf]  ;;  %v4979_v20 = vor.u32 %v6650_v55, %v4978_v3  ;;  %v3800_v55 = vpop.f32.mrf.mxu1 }
 0x25a   : > { %v5580_v22 = vld [vmem:[%s7318_s6 + $0x8b0] sm:$0xf0]  ;;  %v6778_v15 = vld [vmem:[%s7318_s6 + $0x7f4] sm:$0xf0] }
 0x25b   : > { %v6861_v24 = vld [vmem:[%s7318_s6 + $0xa94] sm:$0xf]  ;;  %v5583_v36 = vor.u32 %v6797_v21, %v5580_v22  ;;  %4029 = vmatpush.bf16.msrb.mxu3 %v6383_v27  ;;  %v5235_v21 = vor.u32 %v6714_v8, %v5234_v7  ;;  %v3749_v22 = vadd.f32 %v8219_v5, %v8214_v0  ;;  %v6578_v27 = vld [vmem:[%s7318_s6 + $0x1b4] sm:$0xf0] }
 0x25c   : > { %v5836_v29 = vld [vmem:[%s7318_s6 + $0xab0] sm:$0xf0]  ;;  %v4850_v3 = vld [vmem:[%s7318_s6 + $0x2d8] sm:$0xf] }
 0x25d   : > { %v6925_v31 = vld [vmem:[%s7318_s6 + $0xc94] sm:$0xf]  ;;  %v5839_v41 = vor.u32 %v6861_v24, %v5836_v29  ;;  %3991 = vmatpush.bf16.msrb.mxu0 %v5583_v36  ;;  %v4690_v24 = vld [vmem:[%s7318_s6 + $0x198] sm:$0xf] }
 0x25e   : > { %v6092_v32 = vld [vmem:[%s7318_s6 + $0xcb0] sm:$0xf0]  ;;  %v4946_v29 = vld [vmem:[%s7318_s6 + $0x398] sm:$0xf]  ;;  %v4691_v0 = vor.u32 %v6578_v27, %v4690_v24 }
 0x25f   : > { %v6989_v39 = vld [vmem:[%s7318_s6 + $0xe94] sm:$0xf]  ;;  %v6095_v6 = vor.u32 %v6925_v31, %v6092_v32  ;;  %4004 = vmatpush.bf16.msrb.mxu1 %v5839_v41  ;;  %v5491_v31 = vor.u32 %v6778_v15, %v5490_v14  ;;  %v6642_v32 = vld [vmem:[%s7318_s6 + $0x3b4] sm:$0xf0] }
 0x260   : > { %v6348_v43 = vld [vmem:[%s7318_s6 + $0xeb0] sm:$0xf0]  ;;  %v5458_v36 = vld [vmem:[%s7318_s6 + $0x798] sm:$0xf]  ;;  %v4947_v5 = vor.u32 %v6642_v32, %v4946_v29 }
 0x261   : > { %v6789_v13 = vld [vmem:[%s7318_s6 + $0x854] sm:$0xf]  ;;  %v6351_v47 = vor.u32 %v6989_v39, %v6348_v43  ;;  %4017 = vmatpush.bf16.msrb.mxu2 %v6095_v6  ;;  %v5202_v39 = vld [vmem:[%s7318_s6 + $0x598] sm:$0xf]  ;;  %v3762_v6 = vadd.f32 %v8229_v26, %v3749_v22  ;;  %v5459_v46 = vor.u32 %v6770_v10, %v5458_v36  ;;  %v3826_v10 = vpop.f32.mrf.mxu3 }
 0x262   : > { %v5548_v44 = vld [vmem:[%s7318_s6 + $0x870] sm:$0xf0]  ;;  %v6706_v43 = vld [vmem:[%s7318_s6 + $0x5b4] sm:$0xf0] }
 0x263   : > { %v6853_v45 = vld [vmem:[%s7318_s6 + $0xa54] sm:$0xf]  ;;  %v5551_v23 = vor.u32 %v6789_v13, %v5548_v44  ;;  %4030 = vmatpush.bf16.msrb.mxu3 %v6351_v47  ;;  %v5203_v41 = vor.u32 %v6706_v43, %v5202_v39  ;;  %v4658_v13 = vld [vmem:[%s7318_s6 + $0x158] sm:$0xf] }
 0x264   : > { %v5804_v48 = vld [vmem:[%s7318_s6 + $0xa70] sm:$0xf0]  ;;  %v6570_v44 = vld [vmem:[%s7318_s6 + $0x174] sm:$0xf0] }
 0x265   : > { %v6917_v49 = vld [vmem:[%s7318_s6 + $0xc54] sm:$0xf]  ;;  %v5807_v30 = vor.u32 %v6853_v45, %v5804_v48  ;;  %3992 = vmatpush.bf16.msrb.mxu0 %v5551_v23  ;;  %v4914_v45 = vld [vmem:[%s7318_s6 + $0x358] sm:$0xf] }
 0x266   : > { %v6060_v50 = vld [vmem:[%s7318_s6 + $0xc70] sm:$0xf0]  ;;  %v6634_v47 = vld [vmem:[%s7318_s6 + $0x374] sm:$0xf0] }
 0x267   : > { %v6981_v28 = vld [vmem:[%s7318_s6 + $0xe54] sm:$0xf]  ;;  %v6063_v42 = vor.u32 %v6917_v49, %v6060_v50  ;;  %4005 = vmatpush.bf16.msrb.mxu1 %v5807_v30  ;;  %v5170_v48 = vld [vmem:[%s7318_s6 + $0x558] sm:$0xf]  ;;  %v4915_v23 = vor.u32 %v6634_v47, %v4914_v45 }
 0x268   : > { %v6316_v51 = vld [vmem:[%s7318_s6 + $0xe70] sm:$0xf0]  ;;  %v6698_v49 = vld [vmem:[%s7318_s6 + $0x574] sm:$0xf0] }
 0x269   : > { %v6781_v52 = vld [vmem:[%s7318_s6 + $0x814] sm:$0xf]  ;;  %v6319_v59 = vor.u32 %v6981_v28, %v6316_v51  ;;  %4018 = vmatpush.bf16.msrb.mxu2 %v6063_v42  ;;  %v5426_v50 = vld [vmem:[%s7318_s6 + $0x758] sm:$0xf]  ;;  %v4659_v28 = vor.u32 %v6570_v44, %v4658_v13  ;;  %v3775_v51 = vadd.f32 %v8234_v33, %v3762_v6 }
 0x26a   : > { %v5516_v53 = vld [vmem:[%s7318_s6 + $0x830] sm:$0xf0]  ;;  %v6762_v26 = vld [vmem:[%s7318_s6 + $0x774] sm:$0xf0] }
 0x26b   : > { %v6845_v54 = vld [vmem:[%s7318_s6 + $0xa14] sm:$0xf]  ;;  %v5519_v4 = vor.u32 %v6781_v52, %v5516_v53  ;;  %4031 = vmatpush.bf16.msrb.mxu3 %v6319_v59  ;;  %v5171_v52 = vor.u32 %v6698_v49, %v5170_v48  ;;  %v4626_v53 = vld [vmem:[%s7318_s6 + $0x118] sm:$0xf]  ;;  %v3802_v49 = vpop.f32.mrf.mxu1 }
 0x26c   : > { %v5772_v56 = vld [vmem:[%s7318_s6 + $0xa30] sm:$0xf0]  ;;  %v6562_v30 = vld [vmem:[%s7318_s6 + $0x134] sm:$0xf0] }
 0x26d   : > { %v6909_v57 = vld [vmem:[%s7318_s6 + $0xc14] sm:$0xf]  ;;  %v5775_v11 = vor.u32 %v6845_v54, %v5772_v56  ;;  %3993 = vmatpush.bf16.msrb.mxu0 %v5519_v4  ;;  %v4882_v42 = vld [vmem:[%s7318_s6 + $0x318] sm:$0xf]  ;;  %v5427_v54 = vor.u32 %v6762_v26, %v5426_v50  ;;  %v4627_v33 = vor.u32 %v6562_v30, %v4626_v53 }
 0x26e   : > { %v6028_v60 = vld [vmem:[%s7318_s6 + $0xc30] sm:$0xf0]  ;;  %v6626_v56 = vld [vmem:[%s7318_s6 + $0x334] sm:$0xf0] }
 0x26f   : > { %v6973_v61 = vld [vmem:[%s7318_s6 + $0xe14] sm:$0xf]  ;;  %v6031_v12 = vor.u32 %v6909_v57, %v6028_v60  ;;  %4006 = vmatpush.bf16.msrb.mxu1 %v5775_v11  ;;  %v5138_v57 = vld [vmem:[%s7318_s6 + $0x518] sm:$0xf] }
 0x270   : > { %v6284_v35 = vld [vmem:[%s7318_s6 + $0xe30] sm:$0xf0]  ;;  %3994 = vmatmul.bf16.vlgmr.msrb.gmra.mxu0 %v7512_v37  ;;  %v5394_v59 = vld [vmem:[%s7318_s6 + $0x718] sm:$0xf]  ;;  %v5139_v62 = vor.u32 %v6690_v58, %v5138_v57 }
 0x271   : > { %v6287_v18 = vor.u32 %v6973_v61, %v6284_v35  ;;  %4019 = vmatpush.bf16.msrb.mxu2 %v6031_v12  ;;  %4038 = vmatpush.bf16.msra.mxu0 %v4723_v19  ;;  %v6754_v60 = vld [vmem:[%s7318_s6 + $0x734] sm:$0xf0]  ;;  %v3787_v61 = vpop.f32.mrf.mxu0  ;;  %v4883_v35 = vor.u32 %v6626_v56, %v4882_v42  ;;  %v4595_v19 = vor.u32 %v6554_v2, %v4594_v1 }
 0x272   : > { %4007 = vmatmul.bf16.vlgmr.msrb.gmra.mxu1 %v7516_v40  ;;  %v3788_v4 = vadd.f32 %v3787_v61, %v3775_v51  ;;  %v5395_v7 = vor.u32 %v6754_v60, %v5394_v59  ;;  %v6618_v8 = vld [vmem:[%s7318_s6 + $0x2f4] sm:$0xf0] }
 0x273   : > { %4032 = vmatpush.bf16.msrb.mxu3 %v6287_v18  ;;  %4051 = vmatpush.bf16.msra.mxu1 %v4979_v20  ;;  %v5106_v11 = vld [vmem:[%s7318_s6 + $0x4d8] sm:$0xf] }
 0x274   : > { %4020 = vmatmul.bf16.vlgmr.msrb.gmra.mxu2 %v7508_v34  ;;  %v6682_v12 = vld [vmem:[%s7318_s6 + $0x4f4] sm:$0xf0]  ;;  %v3801_v18 = vadd.f32 %v3800_v55, %v3788_v4 }
 0x275   : > { %4064 = vmatpush.bf16.msra.mxu2 %v5235_v21  ;;  %4039 = vmatpush.bf16.msra.mxu0 %v4691_v0  ;;  %v5362_v14 = vld [vmem:[%s7318_s6 + $0x6d8] sm:$0xf]  ;;  %v4851_v21 = vor.u32 %v6618_v8, %v4850_v3  ;;  %v5107_v22 = vor.u32 %v6682_v12, %v5106_v11  ;;  %v4278_v0 = vperm.slane %v8156_v25, 3  ;;  %v3828_v3 = vpop.f32.mrf.mxu3 }
 0x276   : > { %4033 = vmatmul.bf16.vlgmr.msrb.gmra.mxu3 %v7514_v38  ;;  %v6746_v15 = vld [vmem:[%s7318_s6 + $0x6f4] sm:$0xf0]  ;;  %v8369_v3 = vpop.f32.mrf.mxu1 }
 0x277   : > { %4077 = vmatpush.bf16.msra.mxu3 %v5491_v31  ;;  %4052 = vmatpush.bf16.msra.mxu1 %v4947_v5  ;;  %v4562_v20 = vld [vmem:[%s7318_s6 + $0x98] sm:$0xf]  ;;  %v3813_v31 = vpop.f32.mrf.mxu2  ;;  %v5363_v32 = vor.u32 %v6746_v15, %v5362_v14 }
 0x278   : > { %v6546_v24 = vld [vmem:[%s7318_s6 + $0xb4] sm:$0xf0]  ;;  %v3814_v36 = vadd.f32 %v3813_v31, %v3801_v18 }
 0x279   : > { %4065 = vmatpush.bf16.msra.mxu2 %v5203_v41  ;;  %4040 = vmatpush.bf16.msra.mxu0 %v4659_v28  ;;  %v4818_v27 = vld [vmem:[%s7318_s6 + $0x298] sm:$0xf]  ;;  %v4563_v6 = vor.u32 %v6546_v24, %v4562_v20  ;;  %v3789_v44 = vpop.f32.mrf.mxu0 }
 0x27a   : > { %v6610_v29 = vld [vmem:[%s7318_s6 + $0x2b4] sm:$0xf0]  ;;  %v3827_v13 = vadd.f32 %v3826_v10, %v3814_v36 }
 0x27b   : > { %4078 = vmatpush.bf16.msra.mxu3 %v5459_v46  ;;  %4053 = vmatpush.bf16.msra.mxu1 %v4915_v23  ;;  %v5074_v39 = vld [vmem:[%s7318_s6 + $0x498] sm:$0xf]  ;;  %v4819_v45 = vor.u32 %v6610_v29, %v4818_v27 }
 0x27c   : > { %v6674_v43 = vld [vmem:[%s7318_s6 + $0x4b4] sm:$0xf0]  ;;  %v4294_v26 = vadd.f32 %v4278_v0, %v3827_v13 }
 0x27d   : > { %4066 = vmatpush.bf16.msra.mxu2 %v5171_v52  ;;  %4041 = vmatpush.bf16.msra.mxu0 %v4627_v33  ;;  %v5330_v5 = vld [vmem:[%s7318_s6 + $0x698] sm:$0xf]  ;;  %v5075_v46 = vor.u32 %v6674_v43, %v5074_v39 }
 0x27e   : > { %v6738_v41 = vld [vmem:[%s7318_s6 + $0x6b4] sm:$0xf0]  ;;  %v4302_v42 = vmax.f32 %v4294_v26, 0.0 }
 0x27f   : > { %4079 = vmatpush.bf16.msra.mxu3 %v5427_v54  ;;  %4054 = vmatpush.bf16.msra.mxu1 %v4883_v35  ;;  %v4530_v47 = vld [vmem:[%s7318_s6 + $0x58] sm:$0xf]  ;;  %v5331_v50 = vor.u32 %v6738_v41, %v5330_v5  ;;  %v3815_v35 = vpop.f32.mrf.mxu2 }
 0x280   : > { %v6538_v48 = vld [vmem:[%s7318_s6 + $0x74] sm:$0xf0]  ;;  %4310 = vst [vmem:[%s7862_s7 + $0x18] sm:$0xff] %v4302_v42 }
 0x281   : > { %4067 = vmatpush.bf16.msra.mxu2 %v5139_v62  ;;  %4042 = vmatpush.bf16.msra.mxu0 %v4595_v19  ;;  %v4786_v25 = vld [vmem:[%s7318_s6 + $0x258] sm:$0xf]  ;;  %v4531_v54 = vor.u32 %v6538_v48, %v4530_v47 }
 0x282   : > { %v6602_v28 = vld [vmem:[%s7318_s6 + $0x274] sm:$0xf0] }
 0x283   : > { %4080 = vmatpush.bf16.msra.mxu3 %v5395_v7  ;;  %4055 = vmatpush.bf16.msra.mxu1 %v4851_v21  ;;  %v5042_v51 = vld [vmem:[%s7318_s6 + $0x458] sm:$0xf]  ;;  %v4787_v58 = vor.u32 %v6602_v28, %v4786_v25 }
 0x284   : > { %v6666_v23 = vld [vmem:[%s7318_s6 + $0x474] sm:$0xf0] }
 0x285   : > { %4068 = vmatpush.bf16.msra.mxu2 %v5107_v22  ;;  %v5298_v52 = vld [vmem:[%s7318_s6 + $0x658] sm:$0xf]  ;;  %4043 = vmatpush.bf16.msra.mxu0 %v4563_v6  ;;  %v5043_v59 = vor.u32 %v6666_v23, %v5042_v51 }
 0x286   : > { %v6730_v53 = vld [vmem:[%s7318_s6 + $0x674] sm:$0xf0] }
 0x287   : > { %4081 = vmatpush.bf16.msra.mxu3 %v5363_v32  ;;  %v4498_v30 = vld [vmem:[%s7318_s6 + $0x18] sm:$0xf]  ;;  %4056 = vmatpush.bf16.msra.mxu1 %v4819_v45  ;;  %v5299_v62 = vor.u32 %v6730_v53, %v5298_v52 }
 0x288   : > { %v6530_v56 = vld [vmem:[%s7318_s6 + $0x34] sm:$0xf0] }
 0x289   : > { %v4754_v57 = vld [vmem:[%s7318_s6 + $0x218] sm:$0xf]  ;;  %4069 = vmatpush.bf16.msra.mxu2 %v5075_v46  ;;  %4044 = vmatpush.bf16.msra.mxu0 %v4531_v54  ;;  %v4499_v8 = vor.u32 %v6530_v56, %v4498_v30 }
 0x28a   : > { %v6594_v60 = vld [vmem:[%s7318_s6 + $0x234] sm:$0xf0] }
 0x28b   : > { %v5010_v33 = vld [vmem:[%s7318_s6 + $0x418] sm:$0xf]  ;;  %4082 = vmatpush.bf16.msra.mxu3 %v5331_v50  ;;  %4057 = vmatpush.bf16.msra.mxu1 %v4787_v58  ;;  %v4755_v15 = vor.u32 %v6594_v60, %v4754_v57 }
 0x28c   : > { %v6658_v61 = vld [vmem:[%s7318_s6 + $0x434] sm:$0xf0] }
 0x28d   : > { %v5266_v1 = vld [vmem:[%s7318_s6 + $0x618] sm:$0xf]  ;;  %4070 = vmatpush.bf16.msra.mxu2 %v5043_v59  ;;  %v5011_v18 = vor.u32 %v6658_v61, %v5010_v33  ;;  %4045 = vmatpush.bf16.msra.mxu0 %v4499_v8  ;;  %v8364_v33 = vpop.f32.mrf.mxu0 }
 0x28e   : > { %v6722_v2 = vld [vmem:[%s7318_s6 + $0x634] sm:$0xf0] }
 0x28f   : > { %v5746_v4 = vld [vmem:[%s7318_s6 + $0x9d8] sm:$0xf]  ;;  %4083 = vmatpush.bf16.msra.mxu3 %v5299_v62  ;;  %v5267_v21 = vor.u32 %v6722_v2, %v5266_v1  ;;  %4058 = vmatpush.bf16.msra.mxu1 %v4755_v15 }
 0x290   : > { %v6842_v55 = vld [vmem:[%s7318_s6 + $0x9f4] sm:$0xf0]  ;;  %4046 = vmatmul.bf16.vlgmr.msra.gmra.mxu0 %v7430_v9 }
 0x291   : > { %v6002_v7 = vld [vmem:[%s7318_s6 + $0xbd8] sm:$0xf]  ;;  %v5747_v22 = vor.u32 %v6842_v55, %v5746_v4  ;;  %4071 = vmatpush.bf16.msra.mxu2 %v5011_v18 }
 0x292   : > { %v6906_v11 = vld [vmem:[%s7318_s6 + $0xbf4] sm:$0xf0]  ;;  %4059 = vmatmul.bf16.vlgmr.msra.gmra.mxu1 %v7443_v17 }
 0x293   : > { %v6258_v12 = vld [vmem:[%s7318_s6 + $0xdd8] sm:$0xf]  ;;  %v6003_v24 = vor.u32 %v6906_v11, %v6002_v7  ;;  %4084 = vmatpush.bf16.msra.mxu3 %v5267_v21  ;;  %4090 = vmatpush.bf16.msrb.mxu0 %v5747_v22  ;;  %v8379_v22 = vpop.f32.mrf.mxu2 }
 0x294   : > { %v6970_v14 = vld [vmem:[%s7318_s6 + $0xdf4] sm:$0xf0]  ;;  %4072 = vmatmul.bf16.vlgmr.msra.gmra.mxu2 %v7419_v63 }
 0x295   : > { %v6514_v19 = vld [vmem:[%s7318_s6 + $0xfd8] sm:$0xf]  ;;  %v6259_v27 = vor.u32 %v6970_v14, %v6258_v12  ;;  %4103 = vmatpush.bf16.msrb.mxu1 %v6003_v24 }
 0x296   : > { %v7034_v20 = vld [vmem:[%s7318_s6 + $0xff4] sm:$0xf0]  ;;  %4085 = vmatmul.bf16.vlgmr.msra.gmra.mxu3 %v7441_v16 }
 0x297   : > { %v5714_v29 = vld [vmem:[%s7318_s6 + $0x998] sm:$0xf]  ;;  %v6515_v39 = vor.u32 %v7034_v20, %v6514_v19  ;;  %4116 = vmatpush.bf16.msrb.mxu2 %v6259_v27 }
 0x298   : > { %v6834_v31 = vld [vmem:[%s7318_s6 + $0x9b4] sm:$0xf0] }
 0x299   : > { %v5970_v32 = vld [vmem:[%s7318_s6 + $0xb98] sm:$0xf]  ;;  %v5715_v41 = vor.u32 %v6834_v31, %v5714_v29  ;;  %4129 = vmatpush.bf16.msrb.mxu3 %v6515_v39 }
 0x29a   : > { %v6898_v43 = vld [vmem:[%s7318_s6 + $0xbb4] sm:$0xf0] }
 0x29b   : > { %v6226_v36 = vld [vmem:[%s7318_s6 + $0xd98] sm:$0xf]  ;;  %v5971_v6 = vor.u32 %v6898_v43, %v5970_v32  ;;  %4091 = vmatpush.bf16.msrb.mxu0 %v5715_v41  ;;  %v8384_v32 = vpop.f32.mrf.mxu3 }
 0x29c   : > { %v6962_v10 = vld [vmem:[%s7318_s6 + $0xdb4] sm:$0xf0] }
 0x29d   : > { %v6482_v0 = vld [vmem:[%s7318_s6 + $0xf98] sm:$0xf]  ;;  %v6227_v13 = vor.u32 %v6962_v10, %v6226_v36  ;;  %4104 = vmatpush.bf16.msrb.mxu1 %v5971_v6  ;;  %v3841_v10 = vpop.f32.mrf.mxu0 }
 0x29e   : > { %v7026_v5 = vld [vmem:[%s7318_s6 + $0xfb4] sm:$0xf0] }
 0x29f   : > { %v5682_v44 = vld [vmem:[%s7318_s6 + $0x958] sm:$0xf]  ;;  %v6483_v47 = vor.u32 %v7026_v5, %v6482_v0  ;;  %4117 = vmatpush.bf16.msrb.mxu2 %v6227_v13 }
 0x2a0   : > { %v6826_v45 = vld [vmem:[%s7318_s6 + $0x974] sm:$0xf0] }
 0x2a1   : > { %v5938_v46 = vld [vmem:[%s7318_s6 + $0xb58] sm:$0xf]  ;;  %v5683_v28 = vor.u32 %v6826_v45, %v5682_v44  ;;  %4130 = vmatpush.bf16.msrb.mxu3 %v6483_v47  ;;  %v3854_v44 = vpop.f32.mrf.mxu1 }
 0x2a2   : > { %v6890_v48 = vld [vmem:[%s7318_s6 + $0xb74] sm:$0xf0]  ;;  %v4916_v44 = vld [vmem:[%s7318_s6 + $0x378] sm:$0xf0] }
 0x2a3   : > { %v6194_v25 = vld [vmem:[%s7318_s6 + $0xd58] sm:$0xf]  ;;  %v5939_v51 = vor.u32 %v6890_v48, %v5938_v46  ;;  %4092 = vmatpush.bf16.msrb.mxu0 %v5683_v28 }
 0x2a4   : > { %v6954_v49 = vld [vmem:[%s7318_s6 + $0xd74] sm:$0xf0] }
 0x2a5   : > { %v6450_v50 = vld [vmem:[%s7318_s6 + $0xf58] sm:$0xf]  ;;  %v6195_v23 = vor.u32 %v6954_v49, %v6194_v25  ;;  %4105 = vmatpush.bf16.msrb.mxu1 %v5939_v51 }
 0x2a6   : > { %v7018_v26 = vld [vmem:[%s7318_s6 + $0xf74] sm:$0xf0] }
 0x2a7   : > { %v5650_v52 = vld [vmem:[%s7318_s6 + $0x918] sm:$0xf]  ;;  %v6451_v42 = vor.u32 %v7018_v26, %v6450_v50  ;;  %4118 = vmatpush.bf16.msrb.mxu2 %v6195_v23 }
 0x2a8   : > { %v6818_v53 = vld [vmem:[%s7318_s6 + $0x934] sm:$0xf0] }
 0x2a9   : > { %v5906_v30 = vld [vmem:[%s7318_s6 + $0xb18] sm:$0xf]  ;;  %v5651_v60 = vor.u32 %v6818_v53, %v5650_v52  ;;  %4131 = vmatpush.bf16.msrb.mxu3 %v6451_v42  ;;  %v3867_v42 = vpop.f32.mrf.mxu2 }
 0x2aa   : > { %v6882_v54 = vld [vmem:[%s7318_s6 + $0xb34] sm:$0xf0]  ;;  %v6750_v42 = vld [vmem:[%s7318_s6 + $0x71c] sm:$0xf] }
 0x2ab   : > { %v6162_v56 = vld [vmem:[%s7318_s6 + $0xd18] sm:$0xf]  ;;  %v5907_v61 = vor.u32 %v6882_v54, %v5906_v30  ;;  %4093 = vmatpush.bf16.msrb.mxu0 %v5651_v60  ;;  %v6582_v60 = vld [vmem:[%s7318_s6 + $0x1dc] sm:$0xf] }
 0x2ac   : > { %v6946_v57 = vld [vmem:[%s7318_s6 + $0xd34] sm:$0xf0] }
 0x2ad   : > { %v6418_v58 = vld [vmem:[%s7318_s6 + $0xf18] sm:$0xf]  ;;  %v6163_v35 = vor.u32 %v6946_v57, %v6162_v56  ;;  %4106 = vmatpush.bf16.msrb.mxu1 %v5907_v61  ;;  %v4724_v61 = vld [vmem:[%s7318_s6 + $0x1f8] sm:$0xf0] }
 0x2ae   : > { %v7010_v59 = vld [vmem:[%s7318_s6 + $0xf34] sm:$0xf0] }
 0x2af   : > { %v5618_v62 = vld [vmem:[%s7318_s6 + $0x8d8] sm:$0xf]  ;;  %v6419_v4 = vor.u32 %v7010_v59, %v6418_v58  ;;  %4119 = vmatpush.bf16.msrb.mxu2 %v6163_v35  ;;  %v3880_v59 = vpop.f32.mrf.mxu3  ;;  %v6646_v35 = vld [vmem:[%s7318_s6 + $0x3dc] sm:$0xf] }
 0x2b0   : > { %v6810_v1 = vld [vmem:[%s7318_s6 + $0x8f4] sm:$0xf0]  ;;  %v6550_v59 = vld [vmem:[%s7318_s6 + $0xdc] sm:$0xf] }
 0x2b1   : > { %v5874_v2 = vld [vmem:[%s7318_s6 + $0xad8] sm:$0xf]  ;;  %v5619_v14 = vor.u32 %v6810_v1, %v5618_v62  ;;  %4132 = vmatpush.bf16.msrb.mxu3 %v6419_v4  ;;  %v4980_v1 = vld [vmem:[%s7318_s6 + $0x3f8] sm:$0xf0] }
 0x2b2   : > { %v6874_v55 = vld [vmem:[%s7318_s6 + $0xaf4] sm:$0xf0]  ;;  %v5236_v4 = vld [vmem:[%s7318_s6 + $0x5f8] sm:$0xf0] }
 0x2b3   : > { %v6130_v7 = vld [vmem:[%s7318_s6 + $0xcd8] sm:$0xf]  ;;  %v5875_v15 = vor.u32 %v6874_v55, %v5874_v2  ;;  %4094 = vmatpush.bf16.msrb.mxu0 %v5619_v14  ;;  %v6710_v2 = vld [vmem:[%s7318_s6 + $0x5dc] sm:$0xf]  ;;  %v4727_v14 = vor.u32 %v6582_v60, %v4724_v61 }
 0x2b4   : > { %v6938_v8 = vld [vmem:[%s7318_s6 + $0xcf4] sm:$0xf0]  ;;  %v4596_v60 = vld [vmem:[%s7318_s6 + $0xf8] sm:$0xf0] }
 0x2b5   : > { %v6386_v11 = vld [vmem:[%s7318_s6 + $0xed8] sm:$0xf]  ;;  %v6131_v18 = vor.u32 %v6938_v8, %v6130_v7  ;;  %4107 = vmatpush.bf16.msrb.mxu1 %v5875_v15  ;;  %v6774_v8 = vld [vmem:[%s7318_s6 + $0x7dc] sm:$0xf]  ;;  %v4983_v15 = vor.u32 %v6646_v35, %v4980_v1 }
 0x2b6   : > { %v7002_v12 = vld [vmem:[%s7318_s6 + $0xef4] sm:$0xf0]  ;;  %v6614_v61 = vld [vmem:[%s7318_s6 + $0x2dc] sm:$0xf] }
 0x2b7   : > { %v5586_v19 = vld [vmem:[%s7318_s6 + $0x898] sm:$0xf]  ;;  %v6387_v24 = vor.u32 %v7002_v12, %v6386_v11  ;;  %4120 = vmatpush.bf16.msrb.mxu2 %v6131_v18  ;;  %v5492_v11 = vld [vmem:[%s7318_s6 + $0x7f8] sm:$0xf0]  ;;  %v5239_v18 = vor.u32 %v6710_v2, %v5236_v4 }
 0x2b8   : > { %v6802_v20 = vld [vmem:[%s7318_s6 + $0x8b4] sm:$0xf0]  ;;  %v4852_v2 = vld [vmem:[%s7318_s6 + $0x2f8] sm:$0xf0] }
 0x2b9   : > { %v5842_v21 = vld [vmem:[%s7318_s6 + $0xa98] sm:$0xf]  ;;  %v5587_v36 = vor.u32 %v6802_v20, %v5586_v19  ;;  %4133 = vmatpush.bf16.msrb.mxu3 %v6387_v24  ;;  %v3853_v19 = vadd.f32 %v8369_v3, %v8364_v33  ;;  %v6574_v20 = vld [vmem:[%s7318_s6 + $0x19c] sm:$0xf] }
 0x2ba   : > { %v6866_v27 = vld [vmem:[%s7318_s6 + $0xab4] sm:$0xf0]  ;;  %v6638_v24 = vld [vmem:[%s7318_s6 + $0x39c] sm:$0xf] }
 0x2bb   : > { %v6098_v29 = vld [vmem:[%s7318_s6 + $0xc98] sm:$0xf]  ;;  %v5843_v0 = vor.u32 %v6866_v27, %v5842_v21  ;;  %4095 = vmatpush.bf16.msrb.mxu0 %v5587_v36  ;;  %v4692_v21 = vld [vmem:[%s7318_s6 + $0x1b8] sm:$0xf0]  ;;  %v5495_v27 = vor.u32 %v6774_v8, %v5492_v11 }
 0x2bc   : > { %v6930_v31 = vld [vmem:[%s7318_s6 + $0xcb4] sm:$0xf0]  ;;  %v5460_v36 = vld [vmem:[%s7318_s6 + $0x7b8] sm:$0xf0]  ;;  %v4695_v33 = vor.u32 %v6574_v20, %v4692_v21 }
 0x2bd   : > { %v6354_v39 = vld [vmem:[%s7318_s6 + $0xe98] sm:$0xf]  ;;  %v6099_v5 = vor.u32 %v6930_v31, %v6098_v29  ;;  %4108 = vmatpush.bf16.msrb.mxu1 %v5843_v0  ;;  %v4948_v29 = vld [vmem:[%s7318_s6 + $0x3b8] sm:$0xf0]  ;;  %v3866_v0 = vadd.f32 %v8379_v22, %v3853_v19 }
 0x2be   : > { %v6994_v43 = vld [vmem:[%s7318_s6 + $0xeb4] sm:$0xf0]  ;;  %v6702_v31 = vld [vmem:[%s7318_s6 + $0x59c] sm:$0xf]  ;;  %v4951_v3 = vor.u32 %v6638_v24, %v4948_v29  ;;  %v3917_v24 = vpop.f32.mrf.mxu2 }
 0x2bf   : > { %v5554_v41 = vld [vmem:[%s7318_s6 + $0x858] sm:$0xf]  ;;  %v6355_v45 = vor.u32 %v6994_v43, %v6354_v39  ;;  %4121 = vmatpush.bf16.msrb.mxu2 %v6099_v5  ;;  %v5204_v39 = vld [vmem:[%s7318_s6 + $0x5b8] sm:$0xf0] }
 0x2c0   : > { %v6794_v6 = vld [vmem:[%s7318_s6 + $0x874] sm:$0xf0]  ;;  %v6766_v43 = vld [vmem:[%s7318_s6 + $0x79c] sm:$0xf]  ;;  %v5207_v10 = vor.u32 %v6702_v31, %v5204_v39 }
 0x2c1   : > { %v5810_v13 = vld [vmem:[%s7318_s6 + $0xa58] sm:$0xf]  ;;  %v5555_v50 = vor.u32 %v6794_v6, %v5554_v41  ;;  %4134 = vmatpush.bf16.msrb.mxu3 %v6355_v45  ;;  %v6566_v5 = vld [vmem:[%s7318_s6 + $0x15c] sm:$0xf] }
 0x2c2   : > { %v6858_v46 = vld [vmem:[%s7318_s6 + $0xa74] sm:$0xf0]  ;;  %v4660_v41 = vld [vmem:[%s7318_s6 + $0x178] sm:$0xf0] }
 0x2c3   : > { %v6066_v47 = vld [vmem:[%s7318_s6 + $0xc58] sm:$0xf]  ;;  %v5811_v51 = vor.u32 %v6858_v46, %v5810_v13  ;;  %4096 = vmatpush.bf16.msrb.mxu0 %v5555_v50  ;;  %v6630_v6 = vld [vmem:[%s7318_s6 + $0x35c] sm:$0xf]  ;;  %v5463_v13 = vor.u32 %v6766_v43, %v5460_v36  ;;  %v3930_v43 = vpop.f32.mrf.mxu3  ;;  %v8459_v36 = vld [vmem:[%s7324_s10] sm:$0xff] }
 0x2c4   : > { %v6922_v48 = vld [vmem:[%s7318_s6 + $0xc74] sm:$0xf0]  ;;  %v6694_v45 = vld [vmem:[%s7318_s6 + $0x55c] sm:$0xf] }
 0x2c5   : > { %v6322_v25 = vld [vmem:[%s7318_s6 + $0xe58] sm:$0xf]  ;;  %v6067_v23 = vor.u32 %v6922_v48, %v6066_v47  ;;  %4109 = vmatpush.bf16.msrb.mxu1 %v5811_v51  ;;  %v5172_v46 = vld [vmem:[%s7318_s6 + $0x578] sm:$0xf0]  ;;  %v4663_v48 = vor.u32 %v6566_v5, %v4660_v41 }
 0x2c6   : > { %v6986_v49 = vld [vmem:[%s7318_s6 + $0xe74] sm:$0xf0]  ;;  %v6758_v47 = vld [vmem:[%s7318_s6 + $0x75c] sm:$0xf]  ;;  %v5175_v50 = vor.u32 %v6694_v45, %v5172_v46 }
 0x2c7   : > { %v5522_v26 = vld [vmem:[%s7318_s6 + $0x818] sm:$0xf]  ;;  %v6323_v54 = vor.u32 %v6986_v49, %v6322_v25  ;;  %4122 = vmatpush.bf16.msrb.mxu2 %v6067_v23  ;;  %v5428_v22 = vld [vmem:[%s7318_s6 + $0x778] sm:$0xf0]  ;;  %v3879_v25 = vadd.f32 %v8384_v32, %v3866_v0  ;;  %v4919_v49 = vor.u32 %v6630_v6, %v4916_v44 }
 0x2c8   : > { %v6786_v28 = vld [vmem:[%s7318_s6 + $0x834] sm:$0xf0]  ;;  %v6622_v51 = vld [vmem:[%s7318_s6 + $0x31c] sm:$0xf]  ;;  %v5431_v23 = vor.u32 %v6758_v47, %v5428_v22 }
 0x2c9   : > { %v5778_v52 = vld [vmem:[%s7318_s6 + $0xa18] sm:$0xf]  ;;  %v5523_v62 = vor.u32 %v6786_v28, %v5522_v26  ;;  %4135 = vmatpush.bf16.msrb.mxu3 %v6323_v54  ;;  %v6558_v26 = vld [vmem:[%s7318_s6 + $0x11c] sm:$0xf] }
 0x2ca   : > { %v6850_v53 = vld [vmem:[%s7318_s6 + $0xa34] sm:$0xf0]  ;;  %v4628_v28 = vld [vmem:[%s7318_s6 + $0x138] sm:$0xf0] }
 0x2cb   : > { %v6034_v30 = vld [vmem:[%s7318_s6 + $0xc18] sm:$0xf]  ;;  %v5779_v55 = vor.u32 %v6850_v53, %v5778_v52  ;;  %4097 = vmatpush.bf16.msrb.mxu0 %v5523_v62  ;;  %v4884_v52 = vld [vmem:[%s7318_s6 + $0x338] sm:$0xf0]  ;;  %v4631_v32 = vor.u32 %v6558_v26, %v4628_v28  ;;  %v3904_v62 = vpop.f32.mrf.mxu1 }
 0x2cc   : > { %v6914_v56 = vld [vmem:[%s7318_s6 + $0xc34] sm:$0xf0]  ;;  %v6686_v53 = vld [vmem:[%s7318_s6 + $0x51c] sm:$0xf] }
 0x2cd   : > { %v6290_v57 = vld [vmem:[%s7318_s6 + $0xe18] sm:$0xf]  ;;  %v6035_v7 = vor.u32 %v6914_v56, %v6034_v30  ;;  %4110 = vmatpush.bf16.msrb.mxu1 %v5779_v55  ;;  %v5140_v30 = vld [vmem:[%s7318_s6 + $0x538] sm:$0xf0]  ;;  %v3891_v56 = vpop.f32.mrf.mxu0 }
 0x2ce   : > { %v6978_v58 = vld [vmem:[%s7318_s6 + $0xe34] sm:$0xf0]  ;;  %4098 = vmatmul.bf16.vlgmr.msrb.gmra.mxu0 %v7512_v37  ;;  %v5396_v54 = vld [vmem:[%s7318_s6 + $0x738] sm:$0xf0]  ;;  %v3892_v35 = vadd.f32 %v3891_v56, %v3879_v25 }
 0x2cf   : > { %v6291_v12 = vor.u32 %v6978_v58, %v6290_v57  ;;  %4123 = vmatpush.bf16.msrb.mxu2 %v6035_v7  ;;  %4142 = vmatpush.bf16.msra.mxu0 %v4727_v14  ;;  %v4887_v57 = vor.u32 %v6622_v51, %v4884_v52  ;;  %v5143_v58 = vor.u32 %v6686_v53, %v5140_v30  ;;  %v6678_v4 = vld [vmem:[%s7318_s6 + $0x4dc] sm:$0xf] }
 0x2d0   : > { %4111 = vmatmul.bf16.vlgmr.msrb.gmra.mxu1 %v7516_v40  ;;  %v5399_v1 = vor.u32 %v6750_v42, %v5396_v54  ;;  %v5108_v55 = vld [vmem:[%s7318_s6 + $0x4f8] sm:$0xf0]  ;;  %v3905_v11 = vadd.f32 %v3904_v62, %v3892_v35  ;;  %v3932_v35 = vpop.f32.mrf.mxu3 }
 0x2d1   : > { %4136 = vmatpush.bf16.msrb.mxu3 %v6291_v12  ;;  %4155 = vmatpush.bf16.msra.mxu1 %v4983_v15  ;;  %v6742_v7 = vld [vmem:[%s7318_s6 + $0x6dc] sm:$0xf]  ;;  %v4599_v12 = vor.u32 %v6550_v59, %v4596_v60  ;;  %v4855_v15 = vor.u32 %v6614_v61, %v4852_v2 }
 0x2d2   : > { %4124 = vmatmul.bf16.vlgmr.msrb.gmra.mxu2 %v7508_v34  ;;  %v5364_v8 = vld [vmem:[%s7318_s6 + $0x6f8] sm:$0xf0]  ;;  %v3918_v39 = vadd.f32 %v3917_v24, %v3905_v11 }
 0x2d3   : > { %4168 = vmatpush.bf16.msra.mxu2 %v5239_v18  ;;  %4143 = vmatpush.bf16.msra.mxu0 %v4695_v33  ;;  %v6542_v14 = vld [vmem:[%s7318_s6 + $0x9c] sm:$0xf]  ;;  %v5111_v18 = vor.u32 %v6678_v4, %v5108_v55  ;;  %v4279_v33 = vperm.slane %v8459_v36, 4  ;;  %v3906_v47 = vpop.f32.mrf.mxu1 }
 0x2d4   : > { %4137 = vmatmul.bf16.vlgmr.msrb.gmra.mxu3 %v7514_v38  ;;  %v4564_v19 = vld [vmem:[%s7318_s6 + $0xb8] sm:$0xf0]  ;;  %v3931_v5 = vadd.f32 %v3930_v43, %v3918_v39 }
 0x2d5   : > { %4181 = vmatpush.bf16.msra.mxu3 %v5495_v27  ;;  %4156 = vmatpush.bf16.msra.mxu1 %v4951_v3  ;;  %v6606_v20 = vld [vmem:[%s7318_s6 + $0x29c] sm:$0xf]  ;;  %v5367_v27 = vor.u32 %v6742_v7, %v5364_v8  ;;  %v4567_v0 = vor.u32 %v6542_v14, %v4564_v19  ;;  %v3893_v41 = vpop.f32.mrf.mxu0 }
 0x2d6   : > { %v4820_v21 = vld [vmem:[%s7318_s6 + $0x2b8] sm:$0xf0] }
 0x2d7   : > { %4169 = vmatpush.bf16.msra.mxu2 %v5207_v10  ;;  %4144 = vmatpush.bf16.msra.mxu0 %v4663_v48  ;;  %v6670_v29 = vld [vmem:[%s7318_s6 + $0x49c] sm:$0xf]  ;;  %v4823_v6 = vor.u32 %v6606_v20, %v4820_v21  ;;  %v4295_v48 = vadd.f32 %v4279_v33, %v3931_v5 }
 0x2d8   : > { %v5076_v31 = vld [vmem:[%s7318_s6 + $0x4b8] sm:$0xf0] }
 0x2d9   : > { %4182 = vmatpush.bf16.msra.mxu3 %v5463_v13  ;;  %4157 = vmatpush.bf16.msra.mxu1 %v4919_v49  ;;  %v6734_v3 = vld [vmem:[%s7318_s6 + $0x69c] sm:$0xf]  ;;  %v5079_v13 = vor.u32 %v6670_v29, %v5076_v31 }
 0x2da   : > { %v5332_v10 = vld [vmem:[%s7318_s6 + $0x6b8] sm:$0xf0] }
 0x2db   : > { %4170 = vmatpush.bf16.msra.mxu2 %v5175_v50  ;;  %4145 = vmatpush.bf16.msra.mxu0 %v4631_v32  ;;  %v6534_v44 = vld [vmem:[%s7318_s6 + $0x5c] sm:$0xf]  ;;  %v5335_v22 = vor.u32 %v6734_v3, %v5332_v10 }
 0x2dc   : > { %v4532_v45 = vld [vmem:[%s7318_s6 + $0x78] sm:$0xf0] }
 0x2dd   : > { %4183 = vmatpush.bf16.msra.mxu3 %v5431_v23  ;;  %4158 = vmatpush.bf16.msra.mxu1 %v4887_v57  ;;  %v6598_v46 = vld [vmem:[%s7318_s6 + $0x25c] sm:$0xf]  ;;  %v4303_v23 = vmax.f32 %v4295_v48, 0.0  ;;  %v4535_v52 = vor.u32 %v6534_v44, %v4532_v45 }
 0x2de   : > { %v4788_v25 = vld [vmem:[%s7318_s6 + $0x278] sm:$0xf0] }
 0x2df   : > { %4171 = vmatpush.bf16.msra.mxu2 %v5143_v58  ;;  %4146 = vmatpush.bf16.msra.mxu0 %v4599_v12  ;;  %v6662_v49 = vld [vmem:[%s7318_s6 + $0x45c] sm:$0xf]  ;;  %v4791_v42 = vor.u32 %v6598_v46, %v4788_v25  ;;  %v3919_v58 = vpop.f32.mrf.mxu2  ;;  %4311 = vst [vmem:[%s7862_s7 + $0x20] sm:$0xff] %v4303_v23 }
 0x2e0   : > { %v5044_v50 = vld [vmem:[%s7318_s6 + $0x478] sm:$0xf0] }
 0x2e1   : > { %4184 = vmatpush.bf16.msra.mxu3 %v5399_v1  ;;  %4159 = vmatpush.bf16.msra.mxu1 %v4855_v15  ;;  %v6726_v26 = vld [vmem:[%s7318_s6 + $0x65c] sm:$0xf]  ;;  %v5047_v54 = vor.u32 %v6662_v49, %v5044_v50 }
 0x2e2   : > { %v5300_v28 = vld [vmem:[%s7318_s6 + $0x678] sm:$0xf0] }
 0x2e3   : > { %4172 = vmatpush.bf16.msra.mxu2 %v5111_v18  ;;  %v6526_v51 = vld [vmem:[%s7318_s6 + $0x1c] sm:$0xf]  ;;  %4147 = vmatpush.bf16.msra.mxu0 %v4567_v0  ;;  %v5303_v59 = vor.u32 %v6726_v26, %v5300_v28 }
 0x2e4   : > { %v4500_v53 = vld [vmem:[%s7318_s6 + $0x38] sm:$0xf0] }
 0x2e5   : > { %4185 = vmatpush.bf16.msra.mxu3 %v5367_v27  ;;  %v6590_v30 = vld [vmem:[%s7318_s6 + $0x21c] sm:$0xf]  ;;  %4160 = vmatpush.bf16.msra.mxu1 %v4823_v6  ;;  %v4503_v4 = vor.u32 %v6526_v51, %v4500_v53 }
 0x2e6   : > { %v4756_v32 = vld [vmem:[%s7318_s6 + $0x238] sm:$0xf0] }
 0x2e7   : > { %4173 = vmatpush.bf16.msra.mxu2 %v5079_v13  ;;  %v6654_v56 = vld [vmem:[%s7318_s6 + $0x41c] sm:$0xf]  ;;  %4148 = vmatpush.bf16.msra.mxu0 %v4535_v52  ;;  %v4759_v11 = vor.u32 %v6590_v30, %v4756_v32 }
 0x2e8   : > { %v5012_v57 = vld [vmem:[%s7318_s6 + $0x438] sm:$0xf0] }
 0x2e9   : > { %4186 = vmatpush.bf16.msra.mxu3 %v5335_v22  ;;  %v6718_v60 = vld [vmem:[%s7318_s6 + $0x61c] sm:$0xf]  ;;  %4161 = vmatpush.bf16.msra.mxu1 %v4791_v42  ;;  %v5015_v12 = vor.u32 %v6654_v56, %v5012_v57  ;;  %v8517_v42 = vpop.f32.mrf.mxu0 }
 0x2ea   : > { %v5268_v61 = vld [vmem:[%s7318_s6 + $0x638] sm:$0xf0] }
 0x2eb   : > { %v6838_v62 = vld [vmem:[%s7318_s6 + $0x9dc] sm:$0xf]  ;;  %4174 = vmatpush.bf16.msra.mxu2 %v5047_v54  ;;  %v5271_v18 = vor.u32 %v6718_v60, %v5268_v61  ;;  %4149 = vmatpush.bf16.msra.mxu0 %v4503_v4 }
 0x2ec   : > { %v5748_v1 = vld [vmem:[%s7318_s6 + $0x9f8] sm:$0xf0] }
 0x2ed   : > { %v6902_v2 = vld [vmem:[%s7318_s6 + $0xbdc] sm:$0xf]  ;;  %4187 = vmatpush.bf16.msra.mxu3 %v5303_v59  ;;  %v5751_v19 = vor.u32 %v6838_v62, %v5748_v1  ;;  %4162 = vmatpush.bf16.msra.mxu1 %v4759_v11  ;;  %v8522_v59 = vpop.f32.mrf.mxu1 }
 0x2ee   : > { %v6004_v55 = vld [vmem:[%s7318_s6 + $0xbf8] sm:$0xf0]  ;;  %4150 = vmatmul.bf16.vlgmr.msra.gmra.mxu0 %v7430_v9 }
 0x2ef   : > { %v6966_v7 = vld [vmem:[%s7318_s6 + $0xddc] sm:$0xf]  ;;  %v6007_v20 = vor.u32 %v6902_v2, %v6004_v55  ;;  %4175 = vmatpush.bf16.msra.mxu2 %v5015_v12  ;;  %4194 = vmatpush.bf16.msrb.mxu0 %v5751_v19 }
 0x2f0   : > { %v6260_v8 = vld [vmem:[%s7318_s6 + $0xdf8] sm:$0xf0]  ;;  %4163 = vmatmul.bf16.vlgmr.msra.gmra.mxu1 %v7443_v17 }
 0x2f1   : > { %v7030_v14 = vld [vmem:[%s7318_s6 + $0xfdc] sm:$0xf]  ;;  %v6263_v21 = vor.u32 %v6966_v7, %v6260_v8  ;;  %4188 = vmatpush.bf16.msra.mxu3 %v5271_v18  ;;  %4207 = vmatpush.bf16.msrb.mxu1 %v6007_v20 }
 0x2f2   : > { %v6516_v15 = vld [vmem:[%s7318_s6 + $0xff8] sm:$0xf0]  ;;  %4176 = vmatmul.bf16.vlgmr.msra.gmra.mxu2 %v7419_v63 }
 0x2f3   : > { %v6830_v24 = vld [vmem:[%s7318_s6 + $0x99c] sm:$0xf]  ;;  %v6519_v31 = vor.u32 %v7030_v14, %v6516_v15  ;;  %4220 = vmatpush.bf16.msrb.mxu2 %v6263_v21  ;;  %v3969_v14 = vpop.f32.mrf.mxu2  ;;  %v3982_v21 = vpop.f32.mrf.mxu3 }
 0x2f4   : > { %v5716_v27 = vld [vmem:[%s7318_s6 + $0x9b8] sm:$0xf0]  ;;  %4189 = vmatmul.bf16.vlgmr.msra.gmra.mxu3 %v7441_v16 }
 0x2f5   : > { %v6894_v29 = vld [vmem:[%s7318_s6 + $0xb9c] sm:$0xf]  ;;  %v5719_v0 = vor.u32 %v6830_v24, %v5716_v27  ;;  %4233 = vmatpush.bf16.msrb.mxu3 %v6519_v31  ;;  %v3945_v31 = vpop.f32.mrf.mxu0 }
 0x2f6   : > { %v5972_v39 = vld [vmem:[%s7318_s6 + $0xbb8] sm:$0xf0] }
 0x2f7   : > { %v6958_v43 = vld [vmem:[%s7318_s6 + $0xd9c] sm:$0xf]  ;;  %v5975_v5 = vor.u32 %v6894_v29, %v5972_v39  ;;  %4195 = vmatpush.bf16.msrb.mxu0 %v5719_v0  ;;  %v3958_v0 = vpop.f32.mrf.mxu1 }
 0x2f8   : > { %v6228_v33 = vld [vmem:[%s7318_s6 + $0xdb8] sm:$0xf0] }
 0x2f9   : > { %v7022_v3 = vld [vmem:[%s7318_s6 + $0xf9c] sm:$0xf]  ;;  %v6231_v41 = vor.u32 %v6958_v43, %v6228_v33  ;;  %4208 = vmatpush.bf16.msrb.mxu1 %v5975_v5 }
 0x2fa   : > { %v6484_v10 = vld [vmem:[%s7318_s6 + $0xfb8] sm:$0xf0] }
 0x2fb   : > { %v6822_v6 = vld [vmem:[%s7318_s6 + $0x95c] sm:$0xf]  ;;  %v6487_v45 = vor.u32 %v7022_v3, %v6484_v10  ;;  %4221 = vmatpush.bf16.msrb.mxu2 %v6231_v41 }
 0x2fc   : > { %v5684_v13 = vld [vmem:[%s7318_s6 + $0x978] sm:$0xf0] }
 0x2fd   : > { %v6886_v44 = vld [vmem:[%s7318_s6 + $0xb5c] sm:$0xf]  ;;  %v5687_v49 = vor.u32 %v6822_v6, %v5684_v13  ;;  %4234 = vmatpush.bf16.msrb.mxu3 %v6487_v45 }
 0x2fe   : > { %v5940_v46 = vld [vmem:[%s7318_s6 + $0xb78] sm:$0xf0] }
 0x2ff   : > { %v6950_v47 = vld [vmem:[%s7318_s6 + $0xd5c] sm:$0xf]  ;;  %v5943_v63 = vor.u32 %v6886_v44, %v5940_v46  ;;  %4196 = vmatpush.bf16.msrb.mxu0 %v5687_v49 }
 0x300   : > { %v6196_v22 = vld [vmem:[%s7318_s6 + $0xd78] sm:$0xf0] }
 0x301   : > { %v7014_v48 = vld [vmem:[%s7318_s6 + $0xf5c] sm:$0xf]  ;;  %v6199_v50 = vor.u32 %v6950_v47, %v6196_v22  ;;  %4209 = vmatpush.bf16.msrb.mxu1 %v5943_v63  ;;  %v3971_v63 = vpop.f32.mrf.mxu2 }
 0x302   : > { %v6452_v25 = vld [vmem:[%s7318_s6 + $0xf78] sm:$0xf0] }
 0x303   : > { %v6814_v26 = vld [vmem:[%s7318_s6 + $0x91c] sm:$0xf]  ;;  %v6455_v51 = vor.u32 %v7014_v48, %v6452_v25  ;;  %4222 = vmatpush.bf16.msrb.mxu2 %v6199_v50 }
 0x304   : > { %v5652_v28 = vld [vmem:[%s7318_s6 + $0x938] sm:$0xf0] }
 0x305   : > { %v6878_v16 = vld [vmem:[%s7318_s6 + $0xb1c] sm:$0xf]  ;;  %v5655_v17 = vor.u32 %v6814_v26, %v5652_v28  ;;  %4235 = vmatpush.bf16.msrb.mxu3 %v6455_v51  ;;  %v3984_v51 = vpop.f32.mrf.mxu3 }
 0x306   : > { %v5908_v23 = vld [vmem:[%s7318_s6 + $0xb38] sm:$0xf0] }
 0x307   : > { %v6942_v9 = vld [vmem:[%s7318_s6 + $0xd1c] sm:$0xf]  ;;  %v5911_v54 = vor.u32 %v6878_v16, %v5908_v23  ;;  %4197 = vmatpush.bf16.msrb.mxu0 %v5655_v17 }
 0x308   : > { %v6164_v52 = vld [vmem:[%s7318_s6 + $0xd38] sm:$0xf0] }
 0x309   : > { %v7006_v53 = vld [vmem:[%s7318_s6 + $0xf1c] sm:$0xf]  ;;  %v6167_v32 = vor.u32 %v6942_v9, %v6164_v52  ;;  %4210 = vmatpush.bf16.msrb.mxu1 %v5911_v54  ;;  %v3957_v54 = vadd.f32 %v8522_v59, %v8517_v42  ;;  %v4021_v42 = vpop.f32.mrf.mxu2 }
 0x30a   : > { %v6420_v30 = vld [vmem:[%s7318_s6 + $0xf38] sm:$0xf0] }
 0x30b   : > { %v6806_v56 = vld [vmem:[%s7318_s6 + $0x8dc] sm:$0xf]  ;;  %v6423_v60 = vor.u32 %v7006_v53, %v6420_v30  ;;  %4223 = vmatpush.bf16.msrb.mxu2 %v6167_v32  ;;  %v3970_v32 = vadd.f32 %v3969_v14, %v3957_v54 }
 0x30c   : > { %v5620_v57 = vld [vmem:[%s7318_s6 + $0x8f8] sm:$0xf0] }
 0x30d   : > { %v6870_v58 = vld [vmem:[%s7318_s6 + $0xadc] sm:$0xf]  ;;  %v5623_v4 = vor.u32 %v6806_v56, %v5620_v57  ;;  %4236 = vmatpush.bf16.msrb.mxu3 %v6423_v60  ;;  %v3983_v56 = vadd.f32 %v3982_v21, %v3970_v32  ;;  %v3995_v57 = vpop.f32.mrf.mxu0  ;;  %v4008_v60 = vpop.f32.mrf.mxu1 }
 0x30e   : > { %v5876_v61 = vld [vmem:[%s7318_s6 + $0xaf8] sm:$0xf0] }
 0x30f   : > { %v6934_v35 = vld [vmem:[%s7318_s6 + $0xcdc] sm:$0xf]  ;;  %v5879_v55 = vor.u32 %v6870_v58, %v5876_v61  ;;  %4198 = vmatpush.bf16.msrb.mxu0 %v5623_v4  ;;  %v3996_v58 = vadd.f32 %v3995_v57, %v3983_v56 }
 0x310   : > { %v6132_v62 = vld [vmem:[%s7318_s6 + $0xcf8] sm:$0xf0] }
 0x311   : > { %v6998_v1 = vld [vmem:[%s7318_s6 + $0xedc] sm:$0xf]  ;;  %v6135_v7 = vor.u32 %v6934_v35, %v6132_v62  ;;  %4211 = vmatpush.bf16.msrb.mxu1 %v5879_v55  ;;  %v4009_v61 = vadd.f32 %v4008_v60, %v3996_v58  ;;  %v4034_v35 = vpop.f32.mrf.mxu3  ;;  %v4280_v62 = vperm.slane %v8459_v36, 5  ;;  %v4023_v55 = vpop.f32.mrf.mxu2 }
 0x312   : > { %v6388_v2 = vld [vmem:[%s7318_s6 + $0xef8] sm:$0xf0] }
 0x313   : > { %v6798_v8 = vld [vmem:[%s7318_s6 + $0x89c] sm:$0xf]  ;;  %v6391_v15 = vor.u32 %v6998_v1, %v6388_v2  ;;  %4224 = vmatpush.bf16.msrb.mxu2 %v6135_v7  ;;  %v4022_v59 = vadd.f32 %v4021_v42, %v4009_v61 }
 0x314   : > { %v5588_v11 = vld [vmem:[%s7318_s6 + $0x8b8] sm:$0xf0] }
 0x315   : > { %v6862_v12 = vld [vmem:[%s7318_s6 + $0xa9c] sm:$0xf]  ;;  %v5591_v29 = vor.u32 %v6798_v8, %v5588_v11  ;;  %4237 = vmatpush.bf16.msrb.mxu3 %v6391_v15  ;;  %v4035_v1 = vadd.f32 %v4034_v35, %v4022_v59  ;;  %v4010_v2 = vpop.f32.mrf.mxu1 }
 0x316   : > { %v5844_v18 = vld [vmem:[%s7318_s6 + $0xab8] sm:$0xf0] }
 0x317   : > { %v6926_v19 = vld [vmem:[%s7318_s6 + $0xc9c] sm:$0xf]  ;;  %v5847_v39 = vor.u32 %v6862_v12, %v5844_v18  ;;  %4199 = vmatpush.bf16.msrb.mxu0 %v5591_v29  ;;  %v4296_v4 = vadd.f32 %v4280_v62, %v4035_v1 }
 0x318   : > { %v6100_v20 = vld [vmem:[%s7318_s6 + $0xcb8] sm:$0xf0] }
 0x319   : > { %v6990_v24 = vld [vmem:[%s7318_s6 + $0xe9c] sm:$0xf]  ;;  %v6103_v43 = vor.u32 %v6926_v19, %v6100_v20  ;;  %4212 = vmatpush.bf16.msrb.mxu1 %v5847_v39  ;;  %v4073_v8 = vpop.f32.mrf.mxu2 }
 0x31a   : > { %v6356_v27 = vld [vmem:[%s7318_s6 + $0xeb8] sm:$0xf0] }
 0x31b   : > { %v6790_v33 = vld [vmem:[%s7318_s6 + $0x85c] sm:$0xf]  ;;  %v6359_v5 = vor.u32 %v6990_v24, %v6356_v27  ;;  %4225 = vmatpush.bf16.msrb.mxu2 %v6103_v43 }
 0x31c   : > { %v5556_v3 = vld [vmem:[%s7318_s6 + $0x878] sm:$0xf0] }
 0x31d   : > { %v6854_v10 = vld [vmem:[%s7318_s6 + $0xa5c] sm:$0xf]  ;;  %v5559_v46 = vor.u32 %v6790_v33, %v5556_v3  ;;  %4238 = vmatpush.bf16.msrb.mxu3 %v6359_v5  ;;  %v4060_v7 = vpop.f32.mrf.mxu1  ;;  %v4281_v3 = vperm.slane %v8459_v36, 6 }
 0x31e   : > { %v5812_v41 = vld [vmem:[%s7318_s6 + $0xa78] sm:$0xf0] }
 0x31f   : > { %v6918_v6 = vld [vmem:[%s7318_s6 + $0xc5c] sm:$0xf]  ;;  %v5815_v47 = vor.u32 %v6854_v10, %v5812_v41  ;;  %4200 = vmatpush.bf16.msrb.mxu0 %v5559_v46 }
 0x320   : > { %v6068_v13 = vld [vmem:[%s7318_s6 + $0xc78] sm:$0xf0] }
 0x321   : > { %v6982_v44 = vld [vmem:[%s7318_s6 + $0xe5c] sm:$0xf]  ;;  %v6071_v22 = vor.u32 %v6918_v6, %v6068_v13  ;;  %4213 = vmatpush.bf16.msrb.mxu1 %v5815_v47  ;;  %v4075_v15 = vpop.f32.mrf.mxu2 }
 0x322   : > { %v6324_v45 = vld [vmem:[%s7318_s6 + $0xe78] sm:$0xf0] }
 0x323   : > { %v6782_v48 = vld [vmem:[%s7318_s6 + $0x81c] sm:$0xf]  ;;  %v6327_v50 = vor.u32 %v6982_v44, %v6324_v45  ;;  %4226 = vmatpush.bf16.msrb.mxu2 %v6071_v22 }
 0x324   : > { %v5524_v25 = vld [vmem:[%s7318_s6 + $0x838] sm:$0xf0] }
 0x325   : > { %v6846_v49 = vld [vmem:[%s7318_s6 + $0xa1c] sm:$0xf]  ;;  %v5527_v52 = vor.u32 %v6782_v48, %v5524_v25  ;;  %4239 = vmatpush.bf16.msrb.mxu3 %v6327_v50  ;;  %v4062_v14 = vpop.f32.mrf.mxu1 }
 0x326   : > { %v5780_v26 = vld [vmem:[%s7318_s6 + $0xa38] sm:$0xf0] }
 0x327   : > { %v6910_v28 = vld [vmem:[%s7318_s6 + $0xc1c] sm:$0xf]  ;;  %v5783_v53 = vor.u32 %v6846_v49, %v5780_v26  ;;  %4201 = vmatpush.bf16.msrb.mxu0 %v5527_v52 }
 0x328   : > { %v6036_v16 = vld [vmem:[%s7318_s6 + $0xc38] sm:$0xf0] }
 0x329   : > { %v6974_v23 = vld [vmem:[%s7318_s6 + $0xe1c] sm:$0xf]  ;;  %v6039_v30 = vor.u32 %v6910_v28, %v6036_v16  ;;  %4214 = vmatpush.bf16.msrb.mxu1 %v5783_v53 }
 0x32a   : > { %v6292_v9 = vld [vmem:[%s7318_s6 + $0xe38] sm:$0xf0]  ;;  %4202 = vmatmul.bf16.vlgmr.msrb.gmra.mxu0 %v7512_v37  ;;  %v3997_v37 = vpop.f32.mrf.mxu0 }
 0x32b   : > { %v6295_v17 = vor.u32 %v6974_v23, %v6292_v9  ;;  %4227 = vmatpush.bf16.msrb.mxu2 %v6039_v30 }
 0x32c   : > { %4215 = vmatmul.bf16.vlgmr.msrb.gmra.mxu1 %v7516_v40  ;;  %v4304_v40 = vmax.f32 %v4296_v4, 0.0 }
 0x32d   : > { %4240 = vmatpush.bf16.msrb.mxu3 %v6295_v17  ;;  %v4282_v17 = vperm.slane %v8459_v36, 7 }
 0x32e   : > { %4228 = vmatmul.bf16.vlgmr.msrb.gmra.mxu2 %v7508_v34  ;;  %4312 = vst [vmem:[%s7862_s7 + $0x28] sm:$0xff] %v4304_v40  ;;  %v4036_v34 = vpop.f32.mrf.mxu3 }
 0x330   : > { %4241 = vmatmul.bf16.vlgmr.msrb.gmra.mxu3 %v7514_v38 }
 0x332   : > { %v4047_v38 = vpop.f32.mrf.mxu0 }
 0x333   : > { %v4061_v19 = vadd.f32 %v4060_v7, %v4047_v38 }
 0x335   : > { %v4074_v20 = vadd.f32 %v4073_v8, %v4061_v19 }
 0x336   : > { %v4086_v11 = vpop.f32.mrf.mxu3 }
 0x337   : > { %v4087_v21 = vadd.f32 %v4086_v11, %v4074_v20 }
 0x33a   : > { %v4049_v12 = vpop.f32.mrf.mxu0 }
 0x33e   : > { %v4088_v18 = vpop.f32.mrf.mxu3 }
 0x34b   : > { %v4099_v24 = vpop.f32.mrf.mxu0 }
 0x34c   : > { %v4100_v27 = vadd.f32 %v4099_v24, %v4087_v21 }
 0x34d   : > { %v4112_v29 = vpop.f32.mrf.mxu1 }
 0x34e   : > { %v4113_v31 = vadd.f32 %v4112_v29, %v4100_v27 }
 0x353   : > { %v4101_v0 = vpop.f32.mrf.mxu0 }
 0x355   : > { %v4125_v39 = vpop.f32.mrf.mxu2  ;;  %v4114_v5 = vpop.f32.mrf.mxu1 }
 0x356   : > { %v4126_v43 = vadd.f32 %v4125_v39, %v4113_v31 }
 0x357   : > { %v4138_v33 = vpop.f32.mrf.mxu3 }
 0x358   : > { %v4139_v10 = vadd.f32 %v4138_v33, %v4126_v43 }
 0x35a   : > { %v4297_v41 = vadd.f32 %v4281_v3, %v4139_v10 }
 0x35c   : > { %v4305_v6 = vmax.f32 %v4297_v41, 0.0 }
 0x35d   : > { %v4127_v13 = vpop.f32.mrf.mxu2 }
 0x35e   : > { %4313 = vst [vmem:[%s7862_s7 + $0x30] sm:$0xff] %v4305_v6 }
 0x35f   : > { %v4140_v44 = vpop.f32.mrf.mxu3 }
 0x36b   : > { %v4151_v45 = vpop.f32.mrf.mxu0 }
 0x36d   : > { %v4164_v46 = vpop.f32.mrf.mxu1 }
 0x36e   : > { %v4165_v50 = vadd.f32 %v4164_v46, %v4151_v45 }
 0x373   : > { %v4153_v48 = vpop.f32.mrf.mxu0 }
 0x375   : > { %v4177_v47 = vpop.f32.mrf.mxu2  ;;  %v4166_v25 = vpop.f32.mrf.mxu1 }
 0x376   : > { %v4178_v26 = vadd.f32 %v4177_v47, %v4165_v50 }
 0x377   : > { %v4190_v22 = vpop.f32.mrf.mxu3 }
 0x378   : > { %v4191_v28 = vadd.f32 %v4190_v22, %v4178_v26 }
 0x37d   : > { %v4179_v49 = vpop.f32.mrf.mxu2 }
 0x37f   : > { %v4192_v63 = vpop.f32.mrf.mxu3 }
 0x3a7   : > { %v4203_v16 = vpop.f32.mrf.mxu0 }
 0x3a8   : > { %v4204_v23 = vadd.f32 %v4203_v16, %v4191_v28 }
 0x3a9   : > { %v4216_v51 = vpop.f32.mrf.mxu1 }
 0x3aa   : > { %v4217_v9 = vadd.f32 %v4216_v51, %v4204_v23 }
 0x3af   : > { %v4205_v54 = vpop.f32.mrf.mxu0 }
 0x3b1   : > { %v4229_v52 = vpop.f32.mrf.mxu2  ;;  %v4218_v32 = vpop.f32.mrf.mxu1 }
 0x3b2   : > { %v4230_v53 = vadd.f32 %v4229_v52, %v4217_v9 }
 0x3b3   : > { %v4242_v30 = vpop.f32.mrf.mxu3 }
 0x3b4   : > { %v4243_v56 = vadd.f32 %v4242_v30, %v4230_v53 }
 0x3b6   : > { %v4298_v57 = vadd.f32 %v4282_v17, %v4243_v56 }
 0x3b8   : > { %v4306_v58 = vmax.f32 %v4298_v57, 0.0 }
 0x3b9   : > { %v4231_v60 = vpop.f32.mrf.mxu2 }
 0x3ba   : > { %4314 = vst [vmem:[%s7862_s7 + $0x38] sm:$0xff] %v4306_v58 }
 0x3bb   : > { %v4244_v61 = vpop.f32.mrf.mxu3 }
 0x3bc PF: > { %s19_s17 = sadd.s32 1, %s7214_s17   ;;  %s8591_s12 = smov %s7198_s13 }
 0x3bd   : > { %p16_p0 = scmp.ge.s32.totalorder %s19_s17, 4   ;;  %s8592_s13 = smov %s7202_s14 }
 0x3be   : > { %s8593_s14 = smov %s7288_s24  ;;  %s8594_s15 = smov %s7210_s16 }
 0x3bf   : > { %s8595_s16 = smov %s8597_s19  ;;  %18 = sbr.rel (!%p16_p0) target bundleno = 6 (0x6), region = 96 }
 0x3c4   :  { %4345 = vsyncpa [#allocation4], 1 }
 0x3c5   :  { %4347 = vsyncpa [#allocation4 + $0x1], 1 }
 0x3c6   :  { %4348 = vsyncpa [#allocation6], 1 }
 0x3c7   :  { %4350 = vsyncpa [#allocation6 + $0x1], 1 }

// kernel: ae_watermark_forward.9
= control target key start
LH: loop header
LB: loop body
LE: loop exit
PB: predicated region body
PF: predicated region fallthrough
CT: control target
= control target key end

     0   :  { %14 = vsyncpa [#allocation3], 0  ;;  %s4126_s0 = inlined_call_operand.vmem [shape: f32[8,128], index: 0, kind: input, shape index: {}]   ;;  %s4127_s1 = inlined_call_operand.vmem [shape: f32[50,10], index: 1, kind: input, shape index: {}]   ;;  %s4128_s2 = inlined_call_operand.vmem [shape: f32[50,1], index: 2, kind: input, shape index: {}]   ;;  %s4129_s3 = inlined_call_operand.hbm [shape: f32[10,500], index: 3, kind: input, shape index: {}]   ;;  %s4130_s4 = inlined_call_operand.vmem [shape: f32[10,1], index: 4, kind: input, shape index: {}]   ;;  %s4131_s5 = inlined_call_operand.hbm [shape: f32[14,2560], index: 5, kind: input, shape index: {}]   ;;  %s4132_s6 = inlined_call_operand.hbm [shape: f32[1,256], index: 6, kind: input, shape index: {}]   ;;  %s4133_s7 = inlined_call_operand.vmem [shape: f32[256,32], index: 7, kind: input, shape index: {}]   ;;  %s4134_s8 = inlined_call_operand.hbm [shape: f32[1,32], index: 8, kind: input, shape index: {}]   ;;  %s4135_s9 = inlined_call_operand.hbm [shape: f32[2,32], index: 9, kind: output, shape index: {}]  }
   0x1   :  { %15 = vsyncpa [#allocation6], 0 }
   0x2   :  { %16 = vsyncpa [#allocation9], 0  ;;  %s43_s11 = sshll.u32 %s4131_s5, 4  ;;  %s44_s11 = int_to_ptr.hbm [resolvable:$true] %s43_s11 }
   0x3   :  { %17 = vsyncpa [#allocation4], 0  ;;  %s3015_s12 = smov [#allocation5]   ;;  %s28_s16 = sshll.u32 %s4129_s3, 4  ;;  %s29_s16 = int_to_ptr.hbm [resolvable:$true] %s28_s16 }
   0x4   :  { %s45_s13 = sshll.u32 %s3015_s12, 4  ;;  %s3016_s17 = smov 2560   ;;  %s46_s13 = int_to_ptr.vmem [resolvable:$true] %s45_s13 }
   0x5   :  { %s3017_s18 = smov 160   ;;  %s3018_s19 = smov [#allocation2]  }
   0x6   :  { %51 = dma.hbm_to_vmem [thread:$0]  %s44_s11, 5120, %s46_s13, [#allocation6], %s3016_s17, %s3016_s17, %s3017_s18  }
   0x7   :  { %s30_s20 = sshll.u32 %s3018_s19, 4  ;;  %s3019_s21 = smov 512   ;;  %s31_s20 = int_to_ptr.vmem [resolvable:$true] %s30_s20 }
   0x8   :  { %s3020_s22 = smov 32   ;;  %s57_s24 = sshll.u32 %s4132_s6, 4  ;;  %s58_s24 = int_to_ptr.hbm [resolvable:$true] %s57_s24 }
   0x9   :  { %36 = dma.hbm_to_vmem [thread:$0]  %s29_s16, 1024, %s31_s20, [#allocation3], %s3019_s21, %s3019_s21, %s3020_s22  }
   0xa   :  { %s3021_s25 = smov [#allocation7]   ;;  %s70_s28 = sshll.u32 %s4134_s8, 4  ;;  %s71_s28 = int_to_ptr.hbm [resolvable:$true] %s70_s28 }
   0xb   :  { %s59_s26 = sshll.u32 %s3021_s25, 4  ;;  %s3022_s29 = smov [#allocation8]   ;;  %s60_s26 = int_to_ptr.vmem [resolvable:$true] %s59_s26 }
   0xc   :  { %62 = dma.hbm_to_vmem [thread:$0]  %s58_s24, 32, %s60_s26, [#allocation6]  }
   0xd   :  { %s72_s30 = sshll.u32 %s3022_s29, 4  ;;  %s73_s30 = int_to_ptr.vmem [resolvable:$true] %s72_s30 }
   0xe   :  { %75 = dma.hbm_to_vmem [thread:$0]  %s71_s28, 16, %s73_s30, [#allocation9]  }
   0xf   :  { %3007 = dma.done.wait [#allocation3], 1024  }
  0x10   :  { %3008 = vsyncadd [#allocation3], 4294966272 }
  0x11   :  { %3009 = dma.done.wait [#allocation6], 5152  }
  0x12   :  { %3010 = vsyncadd [#allocation6], 4294962144 }
  0x13   :  { %3011 = dma.done.wait [#allocation9], 16  }
  0x14   :  { %3012 = vsyncadd [#allocation9], 4294967280  ;;  %v190_v0 = vld [vmem:[%s4126_s0] sm:$0x1]  ;;  %s3023_s11 = smov 120   ;;  %s3024_s8 = smov 125  }
  0x15   :  { %v200_v1 = vrot.slane %v190_v0, 5  ;;  %v192_v2 = vrot.slane %v190_v0, 7  ;;  %220 = vrot.lane.b32.xlu2 %v190_v0, %s3023_s11  ;;  %s3025_s12 = smov 127   ;;  %v208_v3 = vrot.slane %v190_v0, 3  ;;  %v204_v4 = vrot.slane %v190_v0, 4  ;;  %s3026_s13 = smov 123  }
  0x16   :  { %v196_v5 = vrot.slane %v190_v0, 6  ;;  %s3027_s14 = smov 124   ;;  %s3028_s15 = smov 126   ;;  %v216_v6 = vrot.slane %v190_v0, 1  ;;  %v212_v7 = vrot.slane %v190_v0, 2  ;;  %v3032_v8 = vmov 0  }
  0x17   :  { %201 = vrot.lane.b32.xlu1 %v200_v1, %s3024_s8  ;;  %193 = vrot.lane.b32.xlu0 %v192_v2, %s3025_s12  ;;  %s3029_s16 = smov 121   ;;  %s3030_s17 = smov 122   ;;  %v102_v9 = vld [vmem:[%s4128_s2 + $0x18] sm:$0xff]  ;;  %v105_v10 = vld [vmem:[%s4128_s2 + $0x30] sm:$0x3]  ;;  %vm226_vm0 = vcmask 1040384  }
  0x18   :  { %s3031_s18 = smov 119   ;;  %2559 = vset.pattern.permute.xlu1 %v3032_v8  ;;  %2558 = vset.pattern.permute.xlu0 %v3032_v8  ;;  %v100_v12 = vld [vmem:[%s4128_s2 + $0x8] sm:$0xff]  ;;  %v99_v13 = vld [vmem:[%s4128_s2] sm:$0xff]  ;;  %vm228_vm1 = vcmask 1041408   ;;  %vm230_vm2 = vcmask 1042432   ;;  %vm232_vm3 = vcmask 1043456  }
  0x19   :  { %2560 = vset.pattern.permute.xlu2 %v3032_v8  ;;  %v104_v17 = vld [vmem:[%s4128_s2 + $0x28] sm:$0xff]  ;;  %vm234_vm4 = vcmask 1044480   ;;  %v103_v24 = vld [vmem:[%s4128_s2 + $0x20] sm:$0xff]  ;;  %vm236_vm5 = vcmask 1045504   ;;  %vm238_vm6 = vcmask 1046528   ;;  %vm276_vm7 = vcmask 80896  }
  0x1a   :  { %v92_v32 = vld [vmem:[%s4127_s1] sm:$0xff]  ;;  %v101_v34 = vld [vmem:[%s4128_s2 + $0x10] sm:$0xff]  ;;  %v3150_v35 = vld [vmem:[%s4127_s1 + $0x8] sm:$0xff]  ;;  %vm597_vm8 = vcmask 949248   ;;  %vm700_vm9 = vcmask 113664  }
  0x1b   :  { %v96_v33 = vld [vmem:[%s4127_s1 + $0x20] sm:$0xff]  ;;  %v97_v36 = vld [vmem:[%s4127_s1 + $0x28] sm:$0xff]  ;;  %v3161_v37 = vld [vmem:[%s4127_s1 + $0x10] sm:$0xff] }
  0x1c   :  { %v98_v38 = vld [vmem:[%s4127_s1 + $0x30] sm:$0x3]  ;;  %v3172_v39 = vld [vmem:[%s4127_s1 + $0x18] sm:$0xff] }
  0x1d   :  { %209 = vrot.lane.b32.xlu2 %v208_v3, %s3026_s13 }
  0x1f   :  { %205 = vrot.lane.b32.xlu1 %v204_v4, %s3027_s14  ;;  %197 = vrot.lane.b32.xlu0 %v196_v5, %s3028_s15 }
  0x25   :  { %217 = vrot.lane.b32.xlu2 %v216_v6, %s3029_s16 }
  0x27   :  { %213 = vrot.lane.b32.xlu1 %v212_v7, %s3030_s17  ;;  %223 = vrot.lane.b32.xlu0 %v192_v2, %s3031_s18 }
  0x2d   :  { %263 = vperm.xlu2 %2560, %v103_v24  }
  0x2f   :  { %258 = vperm.xlu1 %2559, %v102_v9   ;;  %243 = vperm.xlu0 %2558, %v99_v13  }
  0x35   :  { %253 = vperm.xlu2 %2560, %v101_v34  }
  0x37   :  { %273 = vperm.xlu1 %2559, %v105_v10   ;;  %268 = vperm.xlu0 %2558, %v104_v17  }
  0x3f   :  { %248 = vperm.xlu1 %2559, %v100_v12  }
  0x6f   :  { %v221_v11 = vpop.permute.xlu2 %220 }
  0x77   :  { %v210_v16 = vpop.permute.xlu2 %209 }
  0x7f   :  { %v218_v25 = vpop.permute.xlu2 %217 }
  0x87   :  { %v3185_v47 = vpop.permute.xlu2 %263 }
  0x89   :  { %v202_v14 = vpop.permute.xlu1 %201  ;;  %v194_v15 = vpop.permute.xlu0 %193 }
  0x8a   :  { %v227_v18 = vsel %vm226_vm0, %v190_v0, %v194_v15 }
  0x8f   :  { %v3206_v59 = vpop.permute.xlu2 %253 }
  0x91   :  { %v206_v19 = vpop.permute.xlu1 %205  ;;  %v198_v20 = vpop.permute.xlu0 %197 }
  0x92   :  { %v229_v21 = vsel %vm228_vm1, %v227_v18, %v198_v20 }
  0x93   :  { %v231_v22 = vsel %vm230_vm2, %v229_v21, %v202_v14 }
  0x94   :  { %v233_v23 = vsel %vm232_vm3, %v231_v22, %v206_v19 }
  0x95   :  { %v235_v26 = vsel %vm234_vm4, %v233_v23, %v210_v16 }
  0x99   :  { %v214_v27 = vpop.permute.xlu1 %213  ;;  %v224_v28 = vpop.permute.xlu0 %223 }
  0x9a   :  { %v237_v29 = vsel %vm236_vm5, %v235_v26, %v214_v27  ;;  %v240_v30 = vsel %vm226_vm0, %v221_v11, %v224_v28 }
  0x9b   :  { %2389 = vmatpush.msk.msra.mxu0 %vm228_vm1, %v240_v30  ;;  %2533 = vmatpush.msk.msra.mxu1 %vm228_vm1, %v240_v30  ;;  %v239_v31 = vsel %vm238_vm6, %v237_v29, %v218_v25 }
  0x9d   :  { %316 = vmatpush.msra.mxu0 %v239_v31  ;;  %2534 = vmatpush.msra.mxu1 %v239_v31 }
  0x9e   :  { %2390 = vmatmul.msk.f32.vlgmr.msra.gmra.mxu0 %vm276_vm7, %v92_v32  ;;  %2394 = vmatmul.msk.f32.vlgmr.msra.gmra.mxu1 %vm276_vm7, %v96_v33 }
  0xa1   :  { %v3176_v40 = vpop.permute.xlu1 %258  ;;  %v3180_v42 = vpop.permute.xlu0 %243 }
  0xa6   :  { %2391 = vmatmul.msk.f32.gmra.mxu0 %vm276_vm7, %v3150_v35  ;;  %2395 = vmatmul.msk.f32.gmra.mxu1 %vm276_vm7, %v97_v36 }
  0xa9   :  { %v3178_v41 = vpop.permute.xlu1 %273  ;;  %v3201_v55 = vpop.permute.xlu0 %268 }
  0xae   :  { %2392 = vmatmul.msk.f32.gmra.mxu0 %vm276_vm7, %v3161_v37  ;;  %2396 = vmatmul.msk.f32.gmra.mxu1 %vm276_vm7, %v98_v38 }
  0xb1   :  { %v3193_v50 = vpop.permute.xlu1 %248 }
  0xb6   :  { %2393 = vmatmul.msk.f32.gmra.mxu0 %vm276_vm7, %v3172_v39 }
 0x11b   :  { %v318_v43 = vpop.f32.mrf.mxu0  ;;  %v330_v44 = vpop.f32.mrf.mxu1 }
 0x11c   :  { %v319_v45 = vadd.f32 %v318_v43, %v3180_v42  ;;  %v331_v58 = vadd.f32 %v330_v44, %v3185_v47 }
 0x11e   :  { %v3183_v46 = vmax.f32 %v319_v45, 0.0  ;;  %v3214_v4 = vmax.f32 %v331_v58, 0.0 }
 0x120   :  { %455 = vrot.lane.b32.xlu1 %v3183_v46, %s3027_s14  ;;  %v3190_v48 = vrot.slane %v3183_v46, 2  ;;  %v353_v49 = vrot.slane %v3183_v46, 6  ;;  %v387_v56 = vrot.slane %v3183_v46, 4  ;;  %v428_v15 = vrot.slane %v3214_v4, 2 }
 0x121   :  { %v360_v21 = vrot.slane %v3214_v4, 6  ;;  %v394_v30 = vrot.slane %v3214_v4, 4 }
 0x122   :  { %518 = vrot.lane.b32.xlu0 %v3190_v48, %s3029_s16  ;;  %366 = vrot.lane.b32.xlu2 %v353_v49, %s3025_s12 }
 0x123   :  { %v321_v51 = vpop.f32.mrf.mxu0  ;;  %v333_v52 = vpop.f32.mrf.mxu1 }
 0x124   :  { %v322_v53 = vadd.f32 %v321_v51, %v3193_v50  ;;  %v334_v60 = vadd.f32 %v333_v52, %v3201_v55 }
 0x126   :  { %v3199_v54 = vmax.f32 %v322_v53, 0.0  ;;  %v3217_v5 = vmax.f32 %v334_v60, 0.0 }
 0x128   :  { %v388_v57 = vrot.slane %v3199_v54, 4  ;;  %v354_v3 = vrot.slane %v3199_v54, 6  ;;  %v422_v8 = vrot.slane %v3199_v54, 2  ;;  %v430_v16 = vrot.slane %v3217_v5, 2 }
 0x129   :  { %v362_v22 = vrot.slane %v3217_v5, 6  ;;  %v396_v31 = vrot.slane %v3217_v5, 4 }
 0x12a   :  { %497 = vrot.lane.b32.xlu0 %v387_v56, %s3030_s17  ;;  %v389_v61 = vsel %vm232_vm3, %v387_v56, %v388_v57  ;;  %v3230_v11 = vsel %vm228_vm1, %v353_v49, %v354_v3  ;;  %v423_v13 = vsel %vm236_vm5, %v3190_v48, %v422_v8  ;;  %v431_v23 = vsel %vm236_vm5, %v428_v15, %v430_v16 }
 0x12b   :  { %v324_v62 = vpop.f32.mrf.mxu0  ;;  %v336_v63 = vpop.f32.mrf.mxu1  ;;  %v2561_v0 = vpack.i.bf16 %v387_v56, %v389_v61  ;;  %v2566_v18 = vpack.i.bf16 %v353_v49, %v3230_v11  ;;  %v363_v27 = vsel %vm228_vm1, %v360_v21, %v362_v22  ;;  %v397_v36 = vsel %vm232_vm3, %v394_v30, %v396_v31 }
 0x12c   :  { %v325_v1 = vadd.f32 %v324_v62, %v3206_v59  ;;  %v337_v2 = vadd.f32 %v336_v63, %v3178_v41 }
 0x12d   :  { %2562 = vrot.lane.b32.xlu2 %v2561_v0, %s3028_s15 }
 0x12e   :  { %v3219_v6 = vmax.f32 %v325_v1, 0.0  ;;  %v3221_v7 = vmax.f32 %v337_v2, 0.0 }
 0x130   :  { %v3226_v9 = vpack.i.bf16 %v3199_v54, %v3219_v6  ;;  %v424_v10 = vrot.slane %v3219_v6, 2  ;;  %v432_v12 = vrot.slane %v3221_v7, 2  ;;  %v364_v19 = vrot.slane %v3221_v7, 6 }
 0x131   :  { %v2581_v25 = vpack.i.bf16 %v3217_v5, %v3221_v7  ;;  %v398_v29 = vrot.slane %v3221_v7, 4  ;;  %v390_v34 = vrot.slane %v3219_v6, 4  ;;  %v356_v43 = vrot.slane %v3219_v6, 6 }
 0x132   :  { %2577 = vrot.lane.b32.xlu0 %v3226_v9, %s3027_s14  ;;  %v425_v14 = vsel %vm236_vm5, %v422_v8, %v424_v10  ;;  %v433_v20 = vsel %vm236_vm5, %v430_v16, %v432_v12  ;;  %v365_v26 = vsel %vm228_vm1, %v362_v22, %v364_v19 }
 0x133   :  { %v2591_v17 = vpack.i.bf16 %v423_v13, %v425_v14  ;;  %v3248_v24 = vpack.i.bf16 %v431_v23, %v433_v20  ;;  %v2596_v28 = vpack.i.bf16 %v363_v27, %v365_v26  ;;  %v2586_v32 = vpack.i.bf16 %v365_v26, %v353_v49  ;;  %v327_v44 = vpop.f32.mrf.mxu0 }
 0x134   :  { %v399_v33 = vsel %vm232_vm3, %v396_v31, %v398_v29  ;;  %v391_v45 = vsel %vm232_vm3, %v388_v57, %v390_v34  ;;  %v328_v49 = vadd.f32 %v327_v44, %v3176_v40  ;;  %v357_v52 = vsel %vm228_vm1, %v354_v3, %v356_v43 }
 0x135   :  { %2592 = vrot.lane.b32.xlu1 %v2591_v17, %s3029_s16  ;;  %2567 = vrot.lane.b32.xlu2 %v2566_v18, %s3031_s18  ;;  %v2601_v38 = vpack.i.bf16 %v397_v36, %v399_v33  ;;  %v2616_v51 = vpack.i.bf16 %v389_v61, %v391_v45  ;;  %v2611_v53 = vpack.i.bf16 %v3230_v11, %v357_v52 }
 0x136   :  { %v3273_v56 = vmax.f32 %v328_v49, 0.0 }
 0x138   :  { %v2631_v58 = vpack.i.bf16 %v3273_v56, %v3214_v4  ;;  %v358_v57 = vrot.slane %v3273_v56, 6  ;;  %v426_v60 = vrot.slane %v3273_v56, 2  ;;  %v392_v61 = vrot.slane %v3273_v56, 4 }
 0x13a   :  { %2582 = vrot.lane.b32.xlu0 %v2581_v25, %s3023_s11  ;;  %v359_v62 = vsel %vm228_vm1, %v356_v43, %v358_v57  ;;  %v361_v63 = vsel %vm228_vm1, %v358_v57, %v360_v21  ;;  %v427_v1 = vsel %vm236_vm5, %v424_v10, %v426_v60  ;;  %v429_v2 = vsel %vm236_vm5, %v426_v60, %v428_v15  ;;  %v115_v10 = vld [vmem:[%s4130_s4 + $0x8] sm:$0x3]  ;;  %v114_v15 = vld [vmem:[%s4130_s4] sm:$0xff] }
 0x13b   :  { %v2646_v0 = vpack.i.bf16 %v359_v62, %v361_v63  ;;  %v393_v3 = vsel %vm232_vm3, %v390_v34, %v392_v61  ;;  %v2636_v8 = vpack.i.bf16 %v427_v1, %v429_v2  ;;  %v2656_v13 = vpack.i.bf16 %v361_v63, %v363_v27 }
 0x13c   :  { %v2641_v12 = vpack.i.bf16 %v391_v45, %v393_v3  ;;  %v395_v14 = vsel %vm232_vm3, %v392_v61, %v394_v30  ;;  %v2671_v16 = vpack.i.bf16 %v357_v52, %v359_v62 }
 0x13d   :  { %2597 = vrot.lane.b32.xlu1 %v2596_v28, %s3025_s12  ;;  %2572 = vrot.lane.b32.xlu2 %v2581_v25, %s3027_s14 }
 0x142   :  { %2587 = vrot.lane.b32.xlu0 %v2586_v32, %s3026_s13 }
 0x145   :  { %2607 = vrot.lane.b32.xlu1 %v3248_v24, %s3024_s8  ;;  %2602 = vrot.lane.b32.xlu2 %v2601_v38, %s3030_s17 }
 0x14a   :  { %2617 = vrot.lane.b32.xlu0 %v2616_v51, %s3030_s17 }
 0x14d   :  { %2612 = vrot.lane.b32.xlu1 %v2611_v53, %s3025_s12  ;;  %572 = vrot.lane.b32.xlu2 %v365_v26, %s3031_s18 }
 0x152   :  { %2632 = vrot.lane.b32.xlu0 %v2631_v58, %s3027_s14 }
 0x155   :  { %2622 = vrot.lane.b32.xlu1 %v2591_v17, %s3024_s8  ;;  %2627 = vrot.lane.b32.xlu2 %v2601_v38, %s3028_s15  ;;  %v2651_v17 = vpack.i.bf16 %v393_v3, %v395_v14 }
 0x15a   :  { %2647 = vrot.lane.b32.xlu0 %v2646_v0, %s3025_s12 }
 0x15d   :  { %2637 = vrot.lane.b32.xlu1 %v2636_v8, %s3029_s16  ;;  %2642 = vrot.lane.b32.xlu2 %v2641_v12, %s3028_s15 }
 0x162   :  { %2657 = vrot.lane.b32.xlu0 %v2656_v13, %s3031_s18 }
 0x165   :  { %2672 = vrot.lane.b32.xlu1 %v2671_v16, %s3031_s18  ;;  %2652 = vrot.lane.b32.xlu2 %v2651_v17, %s3030_s17 }
 0x16a   :  { %434 = vrot.lane.b32.xlu0 %v3190_v48, %s3024_s8 }
 0x16d   :  { %2677 = vrot.lane.b32.xlu1 %v2656_v13, %s3026_s13  ;;  %2662 = vrot.lane.b32.xlu2 %v2636_v8, %s3024_s8 }
 0x172   :  { %408 = vrot.lane.b32.xlu0 %v395_v14, %s3028_s15 }
 0x175   :  { %2682 = vrot.lane.b32.xlu1 %v2671_v16, %s3026_s13  ;;  %2667 = vrot.lane.b32.xlu2 %v2631_v58, %s3023_s11 }
 0x17a   :  { %539 = vrot.lane.b32.xlu0 %v3183_v46, %s3023_s11 }
 0x17c   :  { %v3310_v48 = vpop.permute.xlu2 %366 }
 0x17d   :  { %478 = vrot.lane.b32.xlu1 %v3230_v11, %s3026_s13  ;;  %2687 = vrot.lane.b32.xlu2 %v3226_v9, %s3023_s11 }
 0x182   :  { %594 = vperm.xlu0 %2558, %v115_v10  }
 0x185   :  { %2692 = vrot.lane.b32.xlu1 %v3248_v24, %s3029_s16  ;;  %589 = vperm.xlu2 %2560, %v114_v15  }
 0x187   :  { %v2563_v18 = vpop.permute.xlu2 %2562 }
 0x188   :  { %v2564_v49 = vunpack.i.l.bf16 %v2563_v18  ;;  %v2565_v51 = vunpack.i.h.bf16 %v2563_v18 }
 0x18f   :  { %v3320_v11 = vpop.permute.xlu2 %2567 }
 0x192   :  { %v456_v21 = vpop.permute.xlu1 %455 }
 0x194   :  { %v3322_v19 = vpop.permute.xlu0 %518 }
 0x197   :  { %v2573_v9 = vpop.permute.xlu2 %2572 }
 0x198   :  { %v2574_v30 = vunpack.i.l.bf16 %v2573_v9  ;;  %v2575_v38 = vunpack.i.h.bf16 %v2573_v9 }
 0x19c   :  { %v3324_v20 = vpop.permute.xlu0 %497 }
 0x19f   :  { %v3326_v22 = vpop.permute.xlu2 %2602 }
 0x1a4   :  { %v2578_v23 = vpop.permute.xlu0 %2577 }
 0x1a5   :  { %v2579_v0 = vunpack.i.l.bf16 %v2578_v23  ;;  %v2580_v1 = vunpack.i.h.bf16 %v2578_v23 }
 0x1a7   :  { %v3328_v25 = vpop.permute.xlu1 %2592  ;;  %v573_v26 = vpop.permute.xlu2 %572 }
 0x1a8   :  { %2397 = vmatpush.msk.msrb.mxu0 %vm232_vm3, %v573_v26  ;;  %v2594_v26 = vunpack.i.l.bf16 %v3328_v25 }
 0x1ac   :  { %v3331_v27 = vpop.permute.xlu0 %2582 }
 0x1af   :  { %v2598_v24 = vpop.permute.xlu1 %2597  ;;  %v3333_v28 = vpop.permute.xlu2 %2627 }
 0x1b0   :  { %v2599_v44 = vunpack.i.l.bf16 %v2598_v24  ;;  %v2600_v58 = vunpack.i.h.bf16 %v2598_v24 }
 0x1b2   :  { %v581_v53 = vsel %vm232_vm3, %v2599_v44, %v2565_v51  ;;  %v2584_v51 = vunpack.i.l.bf16 %v3331_v27 }
 0x1b4   :  { %v3335_v29 = vpop.permute.xlu0 %2587 }
 0x1b5   :  { %v2589_v31 = vunpack.i.l.bf16 %v3335_v29 }
 0x1b7   :  { %v2608_v32 = vpop.permute.xlu1 %2607  ;;  %v2643_v33 = vpop.permute.xlu2 %2642  ;;  %v583_v34 = vsel %vm228_vm1, %v2574_v30, %v2589_v31  ;;  %v580_v30 = vsel %vm228_vm1, %v3221_v7, %v3310_v48  ;;  %v2605_v48 = vunpack.i.h.bf16 %v3326_v22 }
 0x1b8   :  { %629 = vmatpush.msra.mxu2 %v583_v34  ;;  %v2644_v36 = vunpack.i.l.bf16 %v2643_v33  ;;  %v2645_v43 = vunpack.i.h.bf16 %v2643_v33  ;;  %v2609_v13 = vunpack.i.l.bf16 %v2608_v32  ;;  %v2610_v10 = vunpack.i.h.bf16 %v2608_v32 }
 0x1b9   :  { %v2595_v32 = vunpack.i.h.bf16 %v3328_v25  ;;  %v2629_v25 = vunpack.i.l.bf16 %v3333_v28 }
 0x1ba   :  { %606 = vmatpush.msrb.mxu1 %v2644_v36  ;;  %630 = vmatpush.msra.mxu2 %v2575_v38 }
 0x1bc   :  { %v3339_v45 = vpop.permute.xlu0 %2617  ;;  %607 = vmatpush.msrb.mxu1 %v2645_v43 }
 0x1be   :  { %608 = vmatpush.msrb.mxu1 %v2564_v49 }
 0x1bf   :  { %v2613_v52 = vpop.permute.xlu1 %2612  ;;  %v3342_v61 = vpop.permute.xlu2 %2652 }
 0x1c0   :  { %609 = vmatpush.msrb.mxu1 %v581_v53  ;;  %v2614_v17 = vunpack.i.l.bf16 %v2613_v52  ;;  %v2615_v18 = vunpack.i.h.bf16 %v2613_v52  ;;  %v2654_v52 = vunpack.i.l.bf16 %v3342_v61  ;;  %v2570_v53 = vunpack.i.h.bf16 %v3320_v11 }
 0x1c2   :  { %610 = vmatpush.msrb.mxu1 %v2600_v58  ;;  %v2655_v58 = vunpack.i.h.bf16 %v3342_v61  ;;  %v2620_v61 = vunpack.i.h.bf16 %v3339_v45 }
 0x1c4   :  { %v2633_v57 = vpop.permute.xlu0 %2632 }
 0x1c5   :  { %v2634_v60 = vunpack.i.l.bf16 %v2633_v57  ;;  %v2635_v63 = vunpack.i.h.bf16 %v2633_v57 }
 0x1c7   :  { %v2623_v62 = vpop.permute.xlu1 %2622  ;;  %631 = vmatpush.msra.mxu2 %v2634_v60  ;;  %v2663_v14 = vpop.permute.xlu2 %2662  ;;  %v2619_v60 = vunpack.i.l.bf16 %v3339_v45 }
 0x1c8   :  { %v2664_v9 = vunpack.i.l.bf16 %v2663_v14  ;;  %v2665_v31 = vunpack.i.h.bf16 %v2663_v14  ;;  %v2624_v36 = vunpack.i.l.bf16 %v2623_v62  ;;  %v2625_v7 = vunpack.i.h.bf16 %v2623_v62  ;;  %v110_v14 = vld [vmem:[#allocation2 + $0x20] sm:$0x3] }
 0x1c9   :  { %632 = vmatpush.msra.mxu2 %v2635_v63  ;;  %v2590_v62 = vunpack.i.h.bf16 %v3335_v29  ;;  %v107_v63 = vld [vmem:[#allocation2 + $0x8] sm:$0xff] }
 0x1cb   :  { %633 = vmatpush.msra.mxu2 %v2579_v0 }
 0x1cc   :  { %v2648_v2 = vpop.permute.xlu0 %2647 }
 0x1cd   :  { %634 = vmatpush.msra.mxu2 %v2580_v1  ;;  %v2649_v3 = vunpack.i.l.bf16 %v2648_v2  ;;  %v2650_v12 = vunpack.i.h.bf16 %v2648_v2 }
 0x1cf   :  { %v2638_v8 = vpop.permute.xlu1 %2637  ;;  %611 = vmatpush.msrb.mxu1 %v2649_v3  ;;  %635 = vmatpush.msra.mxu2 %v456_v21  ;;  %v2604_v21 = vunpack.i.l.bf16 %v3326_v22  ;;  %v2668_v44 = vpop.permute.xlu2 %2667  ;;  %v2569_v22 = vunpack.i.l.bf16 %v3320_v11  ;;  %v2585_v11 = vunpack.i.h.bf16 %v3331_v27  ;;  %v3377_v27 = vld [vmem:[%s4126_s0 + $0x1] sm:$0x1] }
 0x1d0   :  { %v2639_v16 = vunpack.i.l.bf16 %v2638_v8  ;;  %v2640_v15 = vunpack.i.h.bf16 %v2638_v8  ;;  %v2670_v29 = vunpack.i.h.bf16 %v2668_v44  ;;  %v1350_v45 = vrot.slane %v3377_v27, 7 }
 0x1d1   :  { %612 = vmatpush.msrb.mxu1 %v2650_v12  ;;  %636 = vmatpush.msra.mxu2 %v2609_v13  ;;  %v585_v43 = vsel %vm236_vm5, %v2604_v21, %v3322_v19  ;;  %v1358_v2 = vrot.slane %v3377_v27, 5  ;;  %v1354_v12 = vrot.slane %v3377_v27, 6  ;;  %v112_v21 = vld [vmem:[#allocation2 + $0x30] sm:$0x3] }
 0x1d2   :  { %652 = vmatpush.msra.mxu3 %v2639_v16  ;;  %1351 = vrot.lane.b32.xlu1 %v1350_v45, %s3025_s12 }
 0x1d3   :  { %613 = vmatpush.msrb.mxu1 %v2614_v17  ;;  %637 = vmatpush.msra.mxu2 %v2610_v10  ;;  %v111_v17 = vld [vmem:[#allocation2 + $0x28] sm:$0x3] }
 0x1d4   :  { %v2658_v23 = vpop.permute.xlu0 %2657  ;;  %653 = vmatpush.msra.mxu3 %v2640_v15  ;;  %1359 = vrot.lane.b32.xlu0 %v1358_v2, %s3024_s8 }
 0x1d5   :  { %614 = vmatpush.msrb.mxu1 %v2615_v18  ;;  %638 = vmatpush.msra.mxu2 %v2664_v9  ;;  %v2659_v24 = vunpack.i.l.bf16 %v2658_v23  ;;  %v2660_v34 = vunpack.i.h.bf16 %v2658_v23  ;;  %v1362_v18 = vrot.slane %v3377_v27, 4  ;;  %v108_v9 = vld [vmem:[#allocation2 + $0x10] sm:$0xff] }
 0x1d6   :  { %654 = vmatpush.msra.mxu3 %v2594_v26  ;;  %1355 = vrot.lane.b32.xlu2 %v1354_v12, %s3028_s15  ;;  %v1374_v26 = vrot.slane %v3377_v27, 1 }
 0x1d7   :  { %v2673_v33 = vpop.permute.xlu1 %2672  ;;  %677 = vmatpush.msrb.mxu0 %v2659_v24  ;;  %615 = vmatpush.msrb.mxu1 %v580_v30  ;;  %v2688_v0 = vpop.permute.xlu2 %2687 }
 0x1d8   :  { %639 = vmatpush.msra.mxu2 %v2665_v31  ;;  %655 = vmatpush.msra.mxu3 %v2595_v32  ;;  %v2674_v38 = vunpack.i.l.bf16 %v2673_v33  ;;  %v2675_v49 = vunpack.i.h.bf16 %v2673_v33  ;;  %v2689_v8 = vunpack.i.l.bf16 %v2688_v0  ;;  %v2690_v13 = vunpack.i.h.bf16 %v2688_v0  ;;  %v109_v32 = vld [vmem:[#allocation2 + $0x18] sm:$0xff] }
 0x1d9   :  { %616 = vmatpush.msrb.mxu1 %v3217_v5  ;;  %678 = vmatpush.msrb.mxu0 %v2660_v34  ;;  %v113_v33 = vld [vmem:[#allocation2 + $0x38] sm:$0x3]  ;;  %v1366_v34 = vrot.slane %v3377_v27, 3 }
 0x1da   :  { %640 = vmatpush.msra.mxu2 %v2624_v36  ;;  %656 = vmatpush.msra.mxu3 %v585_v43  ;;  %v1370_v36 = vrot.slane %v3377_v27, 2  ;;  %v140_v43 = vld [vmem:[#allocation5 + $0xc0] sm:$0x3f] }
 0x1db   :  { %617 = vmatpush.msrb.mxu1 %v3214_v4  ;;  %679 = vmatpush.msrb.mxu0 %v2674_v38  ;;  %v2630_v4 = vunpack.i.h.bf16 %v3333_v28  ;;  %v106_v28 = vld [vmem:[#allocation2] sm:$0xff] }
 0x1dc   :  { %641 = vmatpush.msra.mxu2 %v2625_v7  ;;  %v435_v5 = vpop.permute.xlu0 %434  ;;  %657 = vmatpush.msra.mxu3 %v2605_v48  ;;  %v136_v38 = vld [vmem:[#allocation5 + $0xa0] sm:$0x3f]  ;;  %v137_v48 = vld [vmem:[#allocation5 + $0xa8] sm:$0x3f] }
 0x1dd   :  { %618 = vmatpush.msrb.mxu1 %v3273_v56  ;;  %680 = vmatpush.msrb.mxu0 %v2675_v49  ;;  %v582_v19 = vsel %vm236_vm5, %v2629_v25, %v435_v5  ;;  %v586_v56 = vsel %vm228_vm1, %v2584_v51, %v2570_v53  ;;  %v120_v7 = vld [vmem:[#allocation5 + $0x20] sm:$0xff]  ;;  %v3401_v25 = vld [vmem:[#allocation5 + $0xb0] sm:$0x3f]  ;;  %v117_v49 = vld [vmem:[#allocation5 + $0x8] sm:$0xff] }
 0x1de   :  { %642 = vmatpush.msra.mxu2 %v582_v19  ;;  %658 = vmatpush.msra.mxu3 %v2654_v52  ;;  %v3406_v51 = vld [vmem:[#allocation5 + $0x10] sm:$0xff]  ;;  %v139_v5 = vld [vmem:[#allocation5 + $0xb8] sm:$0x3f]  ;;  %v141_v52 = vld [vmem:[#allocation5 + $0xc8] sm:$0x3f] }
 0x1df   :  { %v2678_v57 = vpop.permute.xlu1 %2677  ;;  %619 = vmatpush.msrb.mxu1 %v3219_v6  ;;  %681 = vmatpush.msrb.mxu0 %v2569_v22  ;;  %v2669_v6 = vunpack.i.l.bf16 %v2668_v44  ;;  %v116_v44 = vld [vmem:[#allocation5] sm:$0xff]  ;;  %v119_v22 = vld [vmem:[#allocation5 + $0x18] sm:$0xff]  ;;  %v121_v53 = vld [vmem:[#allocation5 + $0x28] sm:$0xff] }
 0x1e0   :  { %643 = vmatpush.msra.mxu2 %v2630_v4  ;;  %659 = vmatpush.msra.mxu3 %v2655_v58  ;;  %v144_v19 = vld [vmem:[#allocation5 + $0xe0] sm:$0x3f] }
 0x1e1   :  { %620 = vmatpush.msrb.mxu1 %v3199_v54  ;;  %682 = vmatpush.msrb.mxu0 %v586_v56  ;;  %v584_v54 = vsel %vm232_vm3, %v2590_v62, %v3324_v20  ;;  %v2680_v20 = vunpack.i.h.bf16 %v2678_v57  ;;  %v124_v4 = vld [vmem:[#allocation5 + $0x40] sm:$0xff]  ;;  %v3412_v56 = vpop.permute.xlu2 %589 }
 0x1e2   :  { %660 = vmatpush.msra.mxu3 %v2619_v60  ;;  %1363 = vrot.lane.b32.xlu1 %v1362_v18, %s3027_s14  ;;  %v125_v18 = vld [vmem:[#allocation5 + $0x48] sm:$0xff] }
 0x1e3   :  { %621 = vmatpush.msrb.mxu1 %v3183_v46  ;;  %683 = vmatpush.msrb.mxu0 %v2585_v11  ;;  %v2679_v46 = vunpack.i.l.bf16 %v2678_v57 }
 0x1e4   :  { %v409_v1 = vpop.permute.xlu0 %408  ;;  %622 = vmatmul.f32.vlgmr.msrb.gmra.mxu1 %v106_v28  ;;  %661 = vmatpush.msra.mxu3 %v2620_v61 }
 0x1e5   :  { %644 = vmatpush.msra.mxu2 %v409_v1  ;;  %684 = vmatpush.msrb.mxu0 %v2669_v6 }
 0x1e6   :  { %645 = vmatmul.f32.vlgmr.msra.gmra.mxu2 %v107_v63  ;;  %662 = vmatpush.msra.mxu3 %v584_v54 }
 0x1e7   :  { %v2683_v3 = vpop.permute.xlu1 %2682  ;;  %685 = vmatpush.msrb.mxu0 %v2670_v29  ;;  %1378 = vrot.lane.b32.xlu0 %v3377_v27, %s3023_s11 }
 0x1e8   :  { %663 = vmatpush.msra.mxu3 %v2679_v46  ;;  %v2684_v16 = vunpack.i.l.bf16 %v2683_v3  ;;  %v2685_v15 = vunpack.i.h.bf16 %v2683_v3  ;;  %1367 = vrot.lane.b32.xlu2 %v1366_v34, %s3026_s13  ;;  %v148_v46 = vld [vmem:[#allocation5 + $0x100] sm:$0x3f]  ;;  %v151_v34 = vld [vmem:[#allocation5 + $0x118] sm:$0x3f] }
 0x1e9   :  { %686 = vmatpush.msrb.mxu0 %v2689_v8  ;;  %2535 = vmatpush.msk.msra.mxu1 %vm236_vm5, %v136_v38  ;;  %v128_v3 = vld [vmem:[#allocation5 + $0x60] sm:$0xff] }
 0x1ea   :  { %664 = vmatpush.msra.mxu3 %v2680_v20  ;;  %1381 = vrot.lane.b32.xlu1 %v1350_v45, %s3031_s18 }
 0x1eb   :  { %687 = vmatpush.msrb.mxu0 %v2690_v13  ;;  %2412 = vmatpush.msk.msrb.mxu2 %vm236_vm5, %v140_v43  ;;  %v131_v43 = vld [vmem:[#allocation5 + $0x78] sm:$0xff] }
 0x1ec   :  { %v540_v10 = vpop.permute.xlu0 %539  ;;  %625 = vmatmul.f32.gmra.mxu1 %v110_v14  ;;  %665 = vmatpush.msra.mxu3 %v2684_v16  ;;  %v3430_v14 = vld [vmem:[#allocation5 + $0xd0] sm:$0x3f]  ;;  %v143_v16 = vld [vmem:[#allocation5 + $0xd8] sm:$0x3f] }
 0x1ed   :  { %688 = vmatpush.msrb.mxu0 %v540_v10  ;;  %2536 = vmatpush.msra.mxu1 %v116_v44  ;;  %v3440_v10 = vld [vmem:[#allocation5 + $0x30] sm:$0xff] }
 0x1ee   :  { %648 = vmatmul.f32.gmra.mxu2 %v111_v17  ;;  %666 = vmatpush.msra.mxu3 %v2685_v15  ;;  %v145_v17 = vld [vmem:[#allocation5 + $0xe8] sm:$0x3f]  ;;  %v123_v15 = vld [vmem:[#allocation5 + $0x38] sm:$0xff] }
 0x1ef   :  { %v479_v23 = vpop.permute.xlu1 %478  ;;  %1375 = vrot.lane.b32.xlu0 %v1374_v26, %s3029_s16  ;;  %870 = vmatpush.msrb.mxu2 %v120_v7  ;;  %v152_v26 = vld [vmem:[#allocation5 + $0x120] sm:$0x3f] }
 0x1f0   :  { %667 = vmatpush.msra.mxu3 %v479_v23  ;;  %1371 = vrot.lane.b32.xlu2 %v1370_v36, %s3030_s17  ;;  %v149_v23 = vld [vmem:[#allocation5 + $0x108] sm:$0x3f] }
 0x1f1   :  { %668 = vmatmul.f32.vlgmr.msra.gmra.mxu3 %v108_v9  ;;  %2409 = vmatpush.msk.msrb.mxu1 %vm236_vm5, %v139_v5  ;;  %v147_v9 = vld [vmem:[#allocation5 + $0xf8] sm:$0x3f]  ;;  %v153_v36 = vld [vmem:[#allocation5 + $0x128] sm:$0x3f] }
 0x1f2   :  { %2537 = vmatpush.msk.msrb.mxu3 %vm236_vm5, %v3401_v25  ;;  %2424 = vmatpush.msk.msra.mxu2 %vm236_vm5, %v144_v19  ;;  %v155_v19 = vld [vmem:[#allocation5 + $0x138] sm:$0x3f] }
 0x1f3   :  { %848 = vmatpush.msrb.mxu1 %v119_v22 }
 0x1f4   :  { %2538 = vmatpush.msrb.mxu3 %v3406_v51  ;;  %958 = vmatpush.msra.mxu2 %v124_v4  ;;  %v3415_v0 = vpop.permute.xlu0 %594 }
 0x1f6   :  { %2415 = vmatpush.msk.msra.mxu3 %vm236_vm5, %v141_v52  ;;  %v154_v52 = vld [vmem:[#allocation5 + $0x130] sm:$0x3f] }
 0x1f7   :  { %v2693_v24 = vpop.permute.xlu1 %2692 }
 0x1f8   :  { %v2694_v30 = vunpack.i.l.bf16 %v2693_v24  ;;  %v2695_v31 = vunpack.i.h.bf16 %v2693_v24  ;;  %892 = vmatpush.msra.mxu3 %v121_v53  ;;  %v129_v24 = vld [vmem:[#allocation5 + $0x68] sm:$0xff] }
 0x1f9   :  { %671 = vmatmul.f32.gmra.mxu3 %v112_v21  ;;  %v127_v21 = vld [vmem:[#allocation5 + $0x58] sm:$0xff] }
 0x1fa   :  { %689 = vmatpush.msrb.mxu0 %v2694_v30  ;;  %v132_v30 = vld [vmem:[#allocation5 + $0x80] sm:$0xff] }
 0x1fc   :  { %690 = vmatpush.msrb.mxu0 %v2695_v31  ;;  %v146_v31 = vld [vmem:[#allocation5 + $0xf0] sm:$0x3f] }
 0x1fd   :  { %2398 = vmatmul.msk.f32.vlgmr.msrb.gmra.mxu0 %vm597_vm8, %v109_v32  ;;  %v126_v32 = vld [vmem:[#allocation5 + $0x50] sm:$0xff] }
 0x1fe   :  { %2400 = vmatpush.msk.msra.mxu0 %vm236_vm5, %v136_v38  ;;  %v130_v38 = vld [vmem:[#allocation5 + $0x70] sm:$0xff] }
 0x200   :  { %782 = vmatpush.msra.mxu0 %v116_v44  ;;  %v133_v44 = vld [vmem:[#allocation5 + $0x88] sm:$0xff] }
 0x202   :  { %2403 = vmatpush.msk.msrb.mxu0 %vm236_vm5, %v137_v48 }
 0x204   :  { %804 = vmatpush.msrb.mxu0 %v117_v49 }
 0x205   :  { %2399 = vmatmul.msk.f32.gmra.mxu0 %vm597_vm8, %v113_v33  ;;  %v150_v33 = vld [vmem:[#allocation5 + $0x110] sm:$0x3f] }
 0x230   :  { %v1356_v7 = vpop.permute.xlu2 %1355 }
 0x242   :  { %v1368_v22 = vpop.permute.xlu2 %1367 }
 0x244   :  { %v1352_v48 = vpop.permute.xlu1 %1351 }
 0x245   :  { %v1384_v5 = vsel %vm226_vm0, %v3377_v27, %v1352_v48  ;;  %v135_v27 = vld [vmem:[#allocation5 + $0x98] sm:$0xff]  ;;  %v3604_v48 = vld [vmem:[%s4133_s7 + $0xe8] sm:$0xff] }
 0x246   :  { %v1360_v49 = vpop.permute.xlu0 %1359  ;;  %v1385_v53 = vsel %vm228_vm1, %v1384_v5, %v1356_v7  ;;  %v3599_v7 = vld [vmem:[%s4133_s7 + $0x68] sm:$0xff]  ;;  %v3613_v5 = vld [vmem:[%s4133_s7 + $0x60] sm:$0xff] }
 0x254   :  { %v1364_v4 = vpop.permute.xlu1 %1363 }
 0x261   :  { %v623_v58 = vpop.f32.mrf.mxu1 }
 0x262   :  { %v624_v62 = vadd.f32 %v623_v58, %v3412_v56  ;;  %v134_v58 = vld [vmem:[#allocation5 + $0x90] sm:$0xff] }
 0x269   :  { %v646_v57 = vpop.f32.mrf.mxu2  ;;  %v626_v61 = vpop.f32.mrf.mxu1 }
 0x26a   :  { %v647_v11 = vadd.f32 %v646_v57, %v624_v62  ;;  %v627_v54 = vadd.f32 %v626_v61, %v3415_v0  ;;  %v1379_v57 = vpop.permute.xlu0 %1378  ;;  %v1382_v61 = vpop.permute.xlu1 %1381 }
 0x271   :  { %v649_v1 = vpop.f32.mrf.mxu2 }
 0x272   :  { %v650_v2 = vadd.f32 %v649_v1, %v627_v54  ;;  %v1391_v1 = vsel %vm226_vm0, %v1379_v57, %v1382_v61  ;;  %v3666_v61 = vld [vmem:[%s4133_s7 + $0xc0] sm:$0xff] }
 0x274   :  { %v669_v60 = vpop.f32.mrf.mxu3 }
 0x275   :  { %v670_v28 = vadd.f32 %v669_v60, %v647_v11  ;;  %v1386_v60 = vsel %vm230_vm2, %v1385_v53, %v1360_v49 }
 0x276   :  { %v1387_v62 = vsel %vm232_vm3, %v1386_v60, %v1364_v4 }
 0x277   :  { %v1388_v11 = vsel %vm234_vm4, %v1387_v62, %v1368_v22  ;;  %v3630_v22 = vld [vmem:[%s4133_s7 + $0xd8] sm:$0xff]  ;;  %v3649_v62 = vld [vmem:[%s4133_s7 + $0x48] sm:$0xff] }
 0x27a   :  { %v692_v6 = vpop.f32.mrf.mxu0 }
 0x27b   :  { %v693_v63 = vadd.f32 %v692_v6, %v670_v28  ;;  %v1372_v28 = vpop.permute.xlu2 %1371 }
 0x27c   :  { %v672_v45 = vpop.f32.mrf.mxu3  ;;  %v1389_v6 = vsel %vm236_vm5, %v1388_v11, %v1372_v28  ;;  %v3654_v11 = vld [vmem:[%s4133_s7 + $0xc8] sm:$0xff]  ;;  %v3659_v28 = vld [vmem:[%s4133_s7 + $0x40] sm:$0xff] }
 0x27d   :  { %v3418_v29 = vmax.f32 %v693_v63, 0.0  ;;  %v673_v8 = vadd.f32 %v672_v45, %v650_v2  ;;  %v1376_v63 = vpop.permute.xlu0 %1375 }
 0x27e   :  { %v1390_v54 = vsel %vm238_vm6, %v1389_v6, %v1376_v63  ;;  %v3673_v63 = vld [vmem:[%s4133_s7 + $0x38] sm:$0xff] }
 0x27f   :  { %2401 = vmatmul.msk.f32.vlgmr.msra.gmra.mxu0 %vm700_vm9, %v3418_v29  ;;  %2413 = vmatmul.msk.f32.vlgmr.msrb.gmra.mxu2 %vm700_vm9, %v3418_v29 }
 0x280   :  { %2406 = vmatpush.msk.msra.mxu0 %vm236_vm5, %v3401_v25  ;;  %2436 = vmatpush.msk.msrb.mxu2 %vm236_vm5, %v148_v46  ;;  %v2839_v46 = vld [vmem:[%s4127_s1] sm:$0xff] }
 0x282   :  { %v695_v12 = vpop.f32.mrf.mxu0  ;;  %826 = vmatpush.msra.mxu0 %v3406_v51  ;;  %1046 = vmatpush.msrb.mxu2 %v128_v3 }
 0x283   :  { %v696_v20 = vadd.f32 %v695_v12, %v673_v8  ;;  %v2842_v12 = vld [vmem:[%s4127_s1 + $0x30] sm:$0x3] }
 0x285   :  { %v3428_v13 = vmax.f32 %v696_v20, 0.0 }
 0x287   :  { %2402 = vmatmul.msk.f32.vlgmr.msra.gmra.mxu1 %vm700_vm9, %v3428_v13  ;;  %2404 = vmatmul.msk.f32.vlgmr.msrb.gmra.mxu0 %vm700_vm9, %v3418_v29 }
 0x288   :  { %2408 = vmatmul.msk.f32.vlgmr.msrb.gmra.mxu3 %vm700_vm9, %v3428_v13  ;;  %2414 = vmatmul.msk.f32.gmra.mxu2 %vm700_vm9, %v3428_v13 }
 0x289   :  { %2418 = vmatpush.msk.msrb.mxu0 %vm236_vm5, %v3430_v14  ;;  %2421 = vmatpush.msk.msra.mxu1 %vm236_vm5, %v143_v16 }
 0x28a   :  { %2427 = vmatpush.msk.msrb.mxu3 %vm236_vm5, %v145_v17 }
 0x28b   :  { %914 = vmatpush.msrb.mxu0 %v3440_v10  ;;  %936 = vmatpush.msra.mxu1 %v123_v15 }
 0x28c   :  { %980 = vmatpush.msrb.mxu3 %v125_v18 }
 0x28f   :  { %2405 = vmatmul.msk.f32.gmra.mxu0 %vm700_vm9, %v3428_v13  ;;  %2410 = vmatmul.msk.f32.vlgmr.msrb.gmra.mxu1 %vm700_vm9, %v3418_v29 }
 0x290   :  { %2416 = vmatmul.msk.f32.vlgmr.msra.gmra.mxu3 %vm700_vm9, %v3418_v29  ;;  %2425 = vmatmul.msk.f32.vlgmr.msra.gmra.mxu2 %vm700_vm9, %v3418_v29 }
 0x291   :  { %2433 = vmatpush.msk.msrb.mxu1 %vm236_vm5, %v147_v9  ;;  %2439 = vmatpush.msk.msra.mxu3 %vm236_vm5, %v149_v23 }
 0x292   :  { %2448 = vmatpush.msk.msra.mxu2 %vm236_vm5, %v152_v26 }
 0x293   :  { %1024 = vmatpush.msrb.mxu1 %v127_v21  ;;  %1068 = vmatpush.msra.mxu3 %v129_v24 }
 0x294   :  { %1134 = vmatpush.msra.mxu2 %v132_v30 }
 0x297   :  { %2407 = vmatmul.msk.f32.vlgmr.msra.gmra.mxu0 %vm700_vm9, %v3418_v29  ;;  %2411 = vmatmul.msk.f32.gmra.mxu1 %vm700_vm9, %v3428_v13 }
 0x298   :  { %2417 = vmatmul.msk.f32.gmra.mxu3 %vm700_vm9, %v3428_v13  ;;  %2426 = vmatmul.msk.f32.gmra.mxu2 %vm700_vm9, %v3428_v13 }
 0x299   :  { %2430 = vmatpush.msk.msra.mxu0 %vm236_vm5, %v146_v31  ;;  %v3575_v31 = vld [vmem:[%s4133_s7 + $0x78] sm:$0xff] }
 0x29b   :  { %1002 = vmatpush.msra.mxu0 %v126_v32  ;;  %v3580_v32 = vld [vmem:[%s4133_s7 + $0xf8] sm:$0xff] }
 0x29f   :  { %2419 = vmatmul.msk.f32.vlgmr.msrb.gmra.mxu0 %vm700_vm9, %v3418_v29  ;;  %2422 = vmatmul.msk.f32.vlgmr.msra.gmra.mxu1 %vm700_vm9, %v3418_v29 }
 0x2a0   :  { %2428 = vmatmul.msk.f32.vlgmr.msrb.gmra.mxu3 %vm700_vm9, %v3418_v29  ;;  %2437 = vmatmul.msk.f32.vlgmr.msrb.gmra.mxu2 %vm700_vm9, %v3418_v29 }
 0x2a1   :  { %2442 = vmatpush.msk.msrb.mxu0 %vm236_vm5, %v150_v33  ;;  %2445 = vmatpush.msk.msra.mxu1 %vm236_vm5, %v151_v34 }
 0x2a2   :  { %2451 = vmatpush.msk.msrb.mxu3 %vm236_vm5, %v153_v36  ;;  %1289 = vmatpush.msrb.mxu2 %v3575_v31  ;;  %v3587_v36 = vld [vmem:[%s4133_s7 + $0x70] sm:$0xff] }
 0x2a3   :  { %1090 = vmatpush.msrb.mxu0 %v130_v38  ;;  %1112 = vmatpush.msra.mxu1 %v131_v43  ;;  %v3592_v38 = vld [vmem:[%s4133_s7 + $0xf0] sm:$0xff] }
 0x2a4   :  { %1156 = vmatpush.msrb.mxu3 %v133_v44  ;;  %1290 = vmatpush.msrb.mxu2 %v3587_v36 }
 0x2a6   :  { %1291 = vmatpush.msrb.mxu2 %v3599_v7 }
 0x2a7   :  { %2420 = vmatmul.msk.f32.gmra.mxu0 %vm700_vm9, %v3428_v13  ;;  %2423 = vmatmul.msk.f32.gmra.mxu1 %vm700_vm9, %v3428_v13 }
 0x2a8   :  { %2429 = vmatmul.msk.f32.gmra.mxu3 %vm700_vm9, %v3428_v13  ;;  %2438 = vmatmul.msk.f32.gmra.mxu2 %vm700_vm9, %v3428_v13 }
 0x2a9   :  { %1292 = vmatpush.msrb.mxu2 %v3613_v5 }
 0x2af   :  { %2431 = vmatmul.msk.f32.vlgmr.msra.gmra.mxu0 %vm700_vm9, %v3418_v29  ;;  %2434 = vmatmul.msk.f32.vlgmr.msrb.gmra.mxu1 %vm700_vm9, %v3418_v29 }
 0x2b0   :  { %2440 = vmatmul.msk.f32.vlgmr.msra.gmra.mxu3 %vm700_vm9, %v3418_v29  ;;  %2449 = vmatmul.msk.f32.vlgmr.msra.gmra.mxu2 %vm700_vm9, %v3418_v29 }
 0x2b1   :  { %2454 = vmatpush.msk.msra.mxu0 %vm236_vm5, %v154_v52  ;;  %2457 = vmatpush.msk.msrb.mxu1 %vm236_vm5, %v155_v19  ;;  %v3618_v52 = vld [vmem:[%s4133_s7 + $0xe0] sm:$0xff]  ;;  %v3625_v19 = vld [vmem:[%s4133_s7 + $0x58] sm:$0xff] }
 0x2b2   :  { %1309 = vmatpush.msra.mxu3 %v3580_v32  ;;  %1293 = vmatpush.msrb.mxu2 %v3625_v19 }
 0x2b3   :  { %1178 = vmatpush.msra.mxu0 %v134_v58  ;;  %1200 = vmatpush.msrb.mxu1 %v135_v27  ;;  %v3637_v58 = vld [vmem:[%s4133_s7 + $0x50] sm:$0xff] }
 0x2b4   :  { %1310 = vmatpush.msra.mxu3 %v3592_v38  ;;  %v3642_v27 = vld [vmem:[%s4133_s7 + $0xd0] sm:$0xff]  ;;  %1294 = vmatpush.msrb.mxu2 %v3637_v58 }
 0x2b6   :  { %1311 = vmatpush.msra.mxu3 %v3604_v48  ;;  %1295 = vmatpush.msrb.mxu2 %v3649_v62 }
 0x2b7   :  { %2432 = vmatmul.msk.f32.gmra.mxu0 %vm700_vm9, %v3428_v13  ;;  %2435 = vmatmul.msk.f32.gmra.mxu1 %vm700_vm9, %v3428_v13 }
 0x2b8   :  { %2441 = vmatmul.msk.f32.gmra.mxu3 %vm700_vm9, %v3428_v13  ;;  %2450 = vmatmul.msk.f32.gmra.mxu2 %vm700_vm9, %v3428_v13 }
 0x2b9   :  { %1312 = vmatpush.msra.mxu3 %v3618_v52  ;;  %1296 = vmatpush.msrb.mxu2 %v3659_v28 }
 0x2bb   :  { %1313 = vmatpush.msra.mxu3 %v3630_v22  ;;  %1297 = vmatpush.msrb.mxu2 %v3673_v63 }
 0x2bd   :  { %1314 = vmatpush.msra.mxu3 %v3642_v27 }
 0x2bf   :  { %2443 = vmatmul.msk.f32.vlgmr.msrb.gmra.mxu0 %vm700_vm9, %v3418_v29  ;;  %2446 = vmatmul.msk.f32.vlgmr.msra.gmra.mxu1 %vm700_vm9, %v3418_v29 }
 0x2c0   :  { %2452 = vmatmul.msk.f32.vlgmr.msrb.gmra.mxu3 %vm700_vm9, %v3418_v29  ;;  %2461 = vmatpush.msk.msrb.mxu0 %vm228_vm1, %v1391_v1  ;;  %v3678_v1 = vld [vmem:[%s4133_s7 + $0xb8] sm:$0xff] }
 0x2c1   :  { %1315 = vmatpush.msra.mxu3 %v3654_v11 }
 0x2c2   :  { %1410 = vmatpush.msrb.mxu0 %v1390_v54 }
 0x2c3   :  { %1316 = vmatpush.msra.mxu3 %v3666_v61 }
 0x2c5   :  { %1317 = vmatpush.msra.mxu3 %v3678_v1 }
 0x2c7   :  { %2444 = vmatmul.msk.f32.gmra.mxu0 %vm700_vm9, %v3428_v13  ;;  %2447 = vmatmul.msk.f32.gmra.mxu1 %vm700_vm9, %v3428_v13 }
 0x2c8   :  { %2453 = vmatmul.msk.f32.gmra.mxu3 %vm700_vm9, %v3428_v13 }
 0x2cf   :  { %2455 = vmatmul.msk.f32.vlgmr.msra.gmra.mxu0 %vm700_vm9, %v3418_v29  ;;  %2458 = vmatmul.msk.f32.vlgmr.msrb.gmra.mxu1 %vm700_vm9, %v3418_v29 }
 0x2d0   :  { %2478 = vmatpush.msk.msra.mxu0 %vm236_vm5, %v3401_v25 }
 0x2d2   :  { %1842 = vmatpush.msra.mxu0 %v3406_v51  ;;  %v2840_v51 = vld [vmem:[%s4127_s1 + $0x20] sm:$0xff] }
 0x2d7   :  { %2456 = vmatmul.msk.f32.gmra.mxu0 %vm700_vm9, %v3428_v13  ;;  %2459 = vmatmul.msk.f32.gmra.mxu1 %vm700_vm9, %v3428_v13 }
 0x2df   :  { %2462 = vmatmul.msk.f32.vlgmr.msrb.gmra.mxu0 %vm276_vm7, %v2839_v46  ;;  %v3685_v46 = vld [vmem:[%s4133_s7 + $0x30] sm:$0xff] }
 0x2e0   :  { %2490 = vmatpush.msk.msrb.mxu0 %vm236_vm5, %v3430_v14  ;;  %1298 = vmatpush.msrb.mxu2 %v3685_v46 }
 0x2e2   :  { %1930 = vmatpush.msrb.mxu0 %v3440_v10 }
 0x2e7   :  { %2463 = vmatmul.msk.f32.gmra.mxu0 %vm276_vm7, %v3150_v35  ;;  %v2841_v35 = vld [vmem:[%s4127_s1 + $0x28] sm:$0xff] }
 0x2ef   :  { %2464 = vmatmul.msk.f32.gmra.mxu0 %vm276_vm7, %v3161_v37 }
 0x2f7   :  { %2465 = vmatmul.msk.f32.gmra.mxu0 %vm276_vm7, %v3172_v39 }
 0x2fc   :  { %v3550_v25 = vpop.f32.mrf.mxu0 }
 0x2ff   :  { %2466 = vmatmul.msk.f32.gmra.mxu0 %vm276_vm7, %v2840_v51  ;;  %v3690_v51 = vld [vmem:[%s4133_s7 + $0xb0] sm:$0xff] }
 0x300   :  { %1318 = vmatpush.msra.mxu3 %v3690_v51 }
 0x302   :  { %v872_v29 = vpop.f32.mrf.mxu2 }
 0x304   :  { %v787_v45 = vpop.f32.mrf.mxu1  ;;  %v3556_v2 = vpop.f32.mrf.mxu0 }
 0x307   :  { %2467 = vmatmul.msk.f32.gmra.mxu0 %vm276_vm7, %v2841_v35  ;;  %v3697_v35 = vld [vmem:[%s4133_s7 + $0x28] sm:$0xff] }
 0x308   :  { %1299 = vmatpush.msrb.mxu2 %v3697_v35 }
 0x30b   :  { %v831_v37 = vpop.f32.mrf.mxu3  ;;  %v875_v39 = vpop.f32.mrf.mxu2 }
 0x30c   :  { %v809_v3 = vpop.f32.mrf.mxu0  ;;  %v850_v8 = vpop.f32.mrf.mxu1  ;;  %v3702_v37 = vld [vmem:[%s4133_s7 + $0xa8] sm:$0xff]  ;;  %v3707_v39 = vld [vmem:[%s4133_s7 + $0x20] sm:$0xff] }
 0x30d   :  { %1216 = vst [vmem:[#allocation1 + $0x9] sm:$0xff] %v850_v8  ;;  %1319 = vmatpush.msra.mxu3 %v3702_v37  ;;  %v3714_v3 = vld [vmem:[%s4133_s7 + $0xa0] sm:$0xff]  ;;  %v3719_v8 = vld [vmem:[%s4133_s7 + $0x18] sm:$0xff]  ;;  %1300 = vmatpush.msrb.mxu2 %v3707_v39 }
 0x30e   :  { %4147 = vst [vmem:[#allocation15_spill] sm:$0xff] %v3707_v39 }
 0x30f   :  { %2468 = vmatmul.msk.f32.gmra.mxu0 %vm276_vm7, %v2842_v12  ;;  %4148 = vst [vmem:[#allocation16_spill] sm:$0xff] %v3714_v3  ;;  %v3724_v12 = vld [vmem:[%s4133_s7 + $0x98] sm:$0xff]  ;;  %1320 = vmatpush.msra.mxu3 %v3714_v3 }
 0x310   :  { %4149 = vst [vmem:[#allocation17_spill] sm:$0xff] %v3719_v8  ;;  %1301 = vmatpush.msrb.mxu2 %v3719_v8 }
 0x311   :  { %4150 = vst [vmem:[#allocation18_spill] sm:$0xff] %v3724_v12  ;;  %1321 = vmatpush.msra.mxu3 %v3724_v12 }
 0x313   :  { %v894_v20 = vpop.f32.mrf.mxu3  ;;  %v960_v13 = vpop.f32.mrf.mxu2 }
 0x314   :  { %v828_v14 = vpop.f32.mrf.mxu0  ;;  %v853_v16 = vpop.f32.mrf.mxu1 }
 0x315   :  { %1215 = vst [vmem:[#allocation1] sm:$0xff] %v828_v14  ;;  %v3737_v14 = vld [vmem:[%s4133_s7 + $0x90] sm:$0xff]  ;;  %v1209_v16 = vrot.slane %v3556_v2, 7  ;;  %v3757_v2 = vld [vmem:[%s4133_s7] sm:$0xff] }
 0x316   :  { %4152 = vst [vmem:[#allocation20_spill] sm:$0xff] %v3737_v14  ;;  %1322 = vmatpush.msra.mxu3 %v3737_v14 }
 0x317   :  { %4155 = vst [vmem:[#allocation23_spill] sm:$0xff] %v3757_v2 }
 0x31b   :  { %v897_v17 = vpop.f32.mrf.mxu3  ;;  %v963_v10 = vpop.f32.mrf.mxu2 }
 0x31c   :  { %v3566_v15 = vld [vmem:[#allocation1 + $0x1] ss:$9 sm:$0xff]  ;;  %v916_v18 = vpop.f32.mrf.mxu0  ;;  %v938_v9 = vpop.f32.mrf.mxu1 }
 0x31d   :  { %1223 = vst [vmem:[#allocation1] sm:$0xff] %v872_v29  ;;  %v3745_v10 = vld [vmem:[%s4133_s7 + $0x8] sm:$0xff] }
 0x31e   :  { %1224 = vst [vmem:[#allocation1 + $0x9] sm:$0xff] %v894_v20 }
 0x31f   :  { %4153 = vst [vmem:[#allocation21_spill] sm:$0xff] %v3745_v10 }
 0x323   :  { %v982_v23 = vpop.f32.mrf.mxu3  ;;  %v3568_v26 = vpop.f32.mrf.mxu2 }
 0x324   :  { %v919_v21 = vpop.f32.mrf.mxu0  ;;  %v941_v24 = vpop.f32.mrf.mxu1 }
 0x325   :  { %v3570_v30 = vld [vmem:[#allocation1 + $0x2] ss:$9 sm:$0xff]  ;;  %v3766_v21 = vld [vmem:[#allocation7] sm:$0x3]  ;;  %v1210_v24 = vsel %vm226_vm0, %v3550_v25, %v1209_v16 }
 0x326   :  { %1231 = vst [vmem:[#allocation1] sm:$0xff] %v916_v18  ;;  %v3750_v18 = vld [vmem:[%s4133_s7 + $0x88] sm:$0xff] }
 0x327   :  { %1232 = vst [vmem:[#allocation1 + $0x9] sm:$0xff] %v938_v9  ;;  %1323 = vmatpush.msra.mxu3 %v3750_v18 }
 0x328   :  { %4154 = vst [vmem:[#allocation22_spill] sm:$0xff] %v3750_v18 }
 0x329   :  { %4157 = vst [vmem:[#allocation25_spill] sm:$0xff] %v3766_v21 }
 0x32b   :  { %v985_v33 = vpop.f32.mrf.mxu3  ;;  %v1051_v34 = vpop.f32.mrf.mxu2 }
 0x32c   :  { %v1004_v43 = vpop.f32.mrf.mxu0  ;;  %v1026_v44 = vpop.f32.mrf.mxu1  ;;  %v1212_v34 = vadd.f32 %v1210_v24, %v3766_v21 }
 0x32e   :  { %v3606_v49 = vld [vmem:[#allocation1 + $0x3] ss:$9 sm:$0xff] }
 0x32f   :  { %1239 = vst [vmem:[#allocation1] sm:$0xff] %v960_v13  ;;  %v3732_v13 = vld [vmem:[%s4133_s7 + $0x10] sm:$0xff] }
 0x330   :  { %1240 = vst [vmem:[#allocation1 + $0x9] sm:$0xff] %v982_v23  ;;  %1302 = vmatpush.msrb.mxu2 %v3732_v13 }
 0x331   :  { %4151 = vst [vmem:[#allocation19_spill] sm:$0xff] %v3732_v13 }
 0x332   :  { %1303 = vmatpush.msrb.mxu2 %v3745_v10 }
 0x333   :  { %v1070_v53 = vpop.f32.mrf.mxu3  ;;  %v1136_v4 = vpop.f32.mrf.mxu2 }
 0x334   :  { %v1007_v57 = vpop.f32.mrf.mxu0  ;;  %v1029_v60 = vpop.f32.mrf.mxu1  ;;  %1304 = vmatpush.msrb.mxu2 %v3757_v2 }
 0x337   :  { %v1242_v6 = vld [vmem:[#allocation1 + $0x4] ss:$9 sm:$0xff] }
 0x338   :  { %1247 = vst [vmem:[#allocation1] sm:$0xff] %v1004_v43  ;;  %v1220_v43 = vadd.f32 %v3566_v15, %v1212_v34 }
 0x339   :  { %1248 = vst [vmem:[#allocation1 + $0x9] sm:$0xff] %v1026_v44 }
 0x33a   :  { %v1228_v4 = vadd.f32 %v3570_v30, %v1220_v43 }
 0x33b   :  { %v1073_v54 = vpop.f32.mrf.mxu3 }
 0x33c   :  { %v1092_v29 = vpop.f32.mrf.mxu0  ;;  %v1114_v45 = vpop.f32.mrf.mxu1  ;;  %v1236_v57 = vadd.f32 %v3606_v49, %v1228_v4 }
 0x33e   :  { %v1244_v54 = vadd.f32 %v1242_v6, %v1236_v57 }
 0x340   :  { %v1250_v20 = vld [vmem:[#allocation1 + $0x5] ss:$9 sm:$0xff] }
 0x341   :  { %1255 = vst [vmem:[#allocation1] sm:$0xff] %v3568_v26  ;;  %v3762_v26 = vld [vmem:[%s4133_s7 + $0x80] sm:$0xff]  ;;  %v1252_v16 = vadd.f32 %v1250_v20, %v1244_v54  ;;  %s3033_s7 = smov [#allocation10]  }
 0x342   :  { %1256 = vst [vmem:[#allocation1 + $0x9] sm:$0xff] %v1070_v53  ;;  %1324 = vmatpush.msra.mxu3 %v3762_v26 }
 0x343   :  { %v1158_v17 = vpop.f32.mrf.mxu3  ;;  %4156 = vst [vmem:[#allocation24_spill] sm:$0xff] %v3762_v26 }
 0x344   :  { %v1095_v9 = vpop.f32.mrf.mxu0  ;;  %v1117_v23 = vpop.f32.mrf.mxu1 }
 0x349   :  { %v1258_v33 = vld [vmem:[#allocation1 + $0x6] ss:$9 sm:$0xff] }
 0x34a   :  { %1263 = vst [vmem:[#allocation1] sm:$0xff] %v1092_v29  ;;  %v1260_v26 = vadd.f32 %v1258_v33, %v1252_v16  ;;  %v1138_v29 = vpop.f32.mrf.mxu2 }
 0x34b   :  { %1264 = vst [vmem:[#allocation1 + $0x9] sm:$0xff] %v1114_v45  ;;  %v1160_v60 = vpop.f32.mrf.mxu3 }
 0x34c   :  { %v1180_v44 = vpop.f32.mrf.mxu0  ;;  %v1202_v53 = vpop.f32.mrf.mxu1  ;;  %v1271_v23 = vrot.slane %v1160_v60, 7 }
 0x34e   :  { %v1272_v15 = vsel %vm226_vm0, %v1138_v29, %v1271_v23 }
 0x352   :  { %v1266_v25 = vld [vmem:[#allocation1 + $0x7] ss:$9 sm:$0xff] }
 0x353   :  { %v1268_v45 = vadd.f32 %v1266_v25, %v1260_v26 }
 0x354   :  { %v1182_v17 = vpop.f32.mrf.mxu0  ;;  %v1204_v9 = vpop.f32.mrf.mxu1 }
 0x355   :  { %1277 = vst [vmem:[#allocation1] sm:$0xff] %v1182_v17  ;;  %v1274_v24 = vadd.f32 %v1272_v15, %v1268_v45 }
 0x356   :  { %1278 = vst [vmem:[#allocation1 + $0x9] sm:$0xff] %v1204_v9 }
 0x35c   :  { %v1412_v34 = vpop.f32.mrf.mxu0 }
 0x35d   :  { %v1280_v44 = vld [vmem:[#allocation1 + $0x1] ss:$9 sm:$0xff]  ;;  %v1413_v30 = vadd.f32 %v1412_v34, %v3180_v42 }
 0x35e   :  { %v1282_v49 = vadd.f32 %v1280_v44, %v1274_v24 }
 0x35f   :  { %v3778_v43 = vmax.f32 %v1413_v30, 0.0 }
 0x360   :  { %v1283_v6 = vmax.f32 %v1282_v49, 0.0 }
 0x361   :  { %1549 = vrot.lane.b32.xlu0 %v3778_v43, %s3027_s14  ;;  %v3783_v20 = vrot.slane %v3778_v43, 2  ;;  %v3786_v33 = vrot.slane %v3778_v43, 6  ;;  %v1481_v60 = vrot.slane %v3778_v43, 4 }
 0x362   :  { %v1285_v26 = vperm.slane %v1283_v6, 0  ;;  %v1286_v53 = vperm.slane %v1283_v6, 1 }
 0x363   :  { %1612 = vrot.lane.b32.xlu1 %v3783_v20, %s3029_s16  ;;  %1460 = vrot.lane.b32.xlu2 %v3786_v33, %s3025_s12 }
 0x364   :  { %1305 = vmatmul.f32.vlgmr.msrb.gmra.mxu2 %v1285_v26  ;;  %1325 = vmatmul.f32.vlgmr.msra.gmra.mxu3 %v1286_v53  ;;  %v1415_v42 = vpop.f32.mrf.mxu0 }
 0x365   :  { %v1416_v4 = vadd.f32 %v1415_v42, %v3193_v50 }
 0x367   :  { %v3793_v57 = vmax.f32 %v1416_v4, 0.0 }
 0x369   :  { %v1482_v54 = vrot.slane %v3793_v57, 4  ;;  %v1516_v23 = vrot.slane %v3793_v57, 2  ;;  %v1448_v29 = vrot.slane %v3793_v57, 6 }
 0x36b   :  { %1591 = vrot.lane.b32.xlu2 %v1481_v60, %s3030_s17  ;;  %v1483_v17 = vsel %vm232_vm3, %v1481_v60, %v1482_v54  ;;  %v1517_v24 = vsel %vm236_vm5, %v3783_v20, %v1516_v23  ;;  %v3812_v34 = vsel %vm228_vm1, %v3786_v33, %v1448_v29 }
 0x36c   :  { %v1418_v25 = vpop.f32.mrf.mxu0  ;;  %v2696_v50 = vpack.i.bf16 %v1481_v60, %v1483_v17 }
 0x36d   :  { %v1419_v16 = vadd.f32 %v1418_v25, %v3206_v59 }
 0x36f   :  { %v3800_v9 = vmax.f32 %v1419_v16, 0.0 }
 0x371   :  { %v1518_v45 = vrot.slane %v3800_v9, 2  ;;  %v1450_v15 = vrot.slane %v3800_v9, 6  ;;  %v1484_v53 = vrot.slane %v3800_v9, 4  ;;  %v3824_v4 = vpack.i.bf16 %v3793_v57, %v3800_v9 }
 0x373   :  { %2697 = vrot.lane.b32.xlu2 %v2696_v50, %s3028_s15  ;;  %v1519_v59 = vsel %vm236_vm5, %v1516_v23, %v1518_v45  ;;  %v1451_v44 = vsel %vm228_vm1, %v1448_v29, %v1450_v15  ;;  %v1485_v60 = vsel %vm232_vm3, %v1482_v54, %v1484_v53 }
 0x374   :  { %v1421_v30 = vpop.f32.mrf.mxu0  ;;  %v2706_v49 = vpack.i.bf16 %v1517_v24, %v1519_v59  ;;  %v2711_v6 = vpack.i.bf16 %v3812_v34, %v1451_v44  ;;  %v2716_v23 = vpack.i.bf16 %v1483_v17, %v1485_v60 }
 0x375   :  { %v1422_v26 = vadd.f32 %v1421_v30, %v3176_v40 }
 0x376   :  { %2707 = vrot.lane.b32.xlu0 %v2706_v49, %s3029_s16  ;;  %2712 = vrot.lane.b32.xlu1 %v2711_v6, %s3025_s12 }
 0x377   :  { %v3820_v42 = vmax.f32 %v1422_v26, 0.0 }
 0x379   :  { %v1486_v25 = vrot.slane %v3820_v42, 4  ;;  %v1452_v24 = vrot.slane %v3820_v42, 6 }
 0x37b   :  { %2702 = vrot.lane.b32.xlu2 %v3824_v4, %s3027_s14  ;;  %v1487_v40 = vsel %vm232_vm3, %v1484_v53, %v1486_v25  ;;  %v1453_v30 = vsel %vm228_vm1, %v1450_v15, %v1452_v24 }
 0x37c   :  { %v1424_v16 = vpop.f32.mrf.mxu0  ;;  %v2726_v29 = vpack.i.bf16 %v1485_v60, %v1487_v40  ;;  %v2731_v26 = vpack.i.bf16 %v1451_v44, %v1453_v30 }
 0x37d   :  { %v1425_v50 = vadd.f32 %v1424_v16, %v3185_v47  ;;  %v1520_v47 = vrot.slane %v3820_v42, 2 }
 0x37e   :  { %2717 = vrot.lane.b32.xlu0 %v2716_v23, %s3030_s17  ;;  %2727 = vrot.lane.b32.xlu1 %v2726_v29, %s3028_s15 }
 0x37f   :  { %v3835_v59 = vmax.f32 %v1425_v50, 0.0  ;;  %v1521_v15 = vsel %vm236_vm5, %v1518_v45, %v1520_v47 }
 0x381   :  { %v2736_v54 = vpack.i.bf16 %v3820_v42, %v3835_v59  ;;  %v1522_v6 = vrot.slane %v3835_v59, 2  ;;  %v1454_v53 = vrot.slane %v3835_v59, 6 }
 0x383   :  { %2737 = vrot.lane.b32.xlu2 %v2736_v54, %s3027_s14  ;;  %v1523_v16 = vsel %vm236_vm5, %v1520_v47, %v1522_v6  ;;  %v1455_v29 = vsel %vm228_vm1, %v1452_v24, %v1454_v53 }
 0x384   :  { %v1427_v17 = vpop.f32.mrf.mxu0  ;;  %v2756_v23 = vpack.i.bf16 %v1521_v15, %v1523_v16  ;;  %v2746_v21 = vpack.i.bf16 %v1453_v30, %v1455_v29 }
 0x385   :  { %v1428_v60 = vadd.f32 %v1427_v17, %v3201_v55  ;;  %v1488_v55 = vrot.slane %v3835_v59, 4 }
 0x386   :  { %2722 = vrot.lane.b32.xlu0 %v2706_v49, %s3024_s8  ;;  %2732 = vrot.lane.b32.xlu1 %v2731_v26, %s3031_s18 }
 0x387   :  { %v3850_v50 = vmax.f32 %v1428_v60, 0.0  ;;  %v1489_v24 = vsel %vm232_vm3, %v1486_v25, %v1488_v55 }
 0x388   :  { %v2751_v60 = vpack.i.bf16 %v1487_v40, %v1489_v24 }
 0x389   :  { %v1456_v49 = vrot.slane %v3850_v50, 6  ;;  %v1490_v40 = vrot.slane %v3850_v50, 4  ;;  %v1524_v15 = vrot.slane %v3850_v50, 2 }
 0x38b   :  { %2757 = vrot.lane.b32.xlu2 %v2756_v23, %s3024_s8  ;;  %v1457_v47 = vsel %vm228_vm1, %v1454_v53, %v1456_v49 }
 0x38c   :  { %v1430_v44 = vpop.f32.mrf.mxu0  ;;  %v2761_v16 = vpack.i.bf16 %v1455_v29, %v1457_v47 }
 0x38d   :  { %v1431_v2 = vadd.f32 %v1430_v44, %v3178_v41  ;;  %v1491_v44 = vsel %vm232_vm3, %v1488_v55, %v1490_v40 }
 0x38e   :  { %2742 = vrot.lane.b32.xlu0 %v2756_v23, %s3029_s16  ;;  %2747 = vrot.lane.b32.xlu1 %v2746_v21, %s3025_s12 }
 0x38f   :  { %v3858_v45 = vmax.f32 %v1431_v2, 0.0 }
 0x391   :  { %v1458_v17 = vrot.slane %v3858_v45, 6  ;;  %v2786_v21 = vpack.i.bf16 %v3850_v50, %v3858_v45  ;;  %v1492_v25 = vrot.slane %v3858_v45, 4  ;;  %v1526_v53 = vrot.slane %v3858_v45, 2 }
 0x393   :  { %v1459_v30 = vsel %vm228_vm1, %v1456_v49, %v1458_v17  ;;  %v1493_v23 = vsel %vm232_vm3, %v1490_v40, %v1492_v25  ;;  %v1527_v29 = vsel %vm236_vm5, %v1524_v15, %v1526_v53  ;;  %v1525_v49 = vsel %vm236_vm5, %v1522_v6, %v1524_v15 }
 0x394   :  { %v2781_v41 = vpack.i.bf16 %v1459_v30, %v3786_v33  ;;  %v2776_v2 = vpack.i.bf16 %v1457_v47, %v1459_v30  ;;  %v2791_v17 = vpack.i.bf16 %v1491_v44, %v1493_v23  ;;  %v2801_v47 = vpack.i.bf16 %v1525_v49, %v1527_v29 }
 0x396   :  { %2752 = vrot.lane.b32.xlu0 %v2751_v60, %s3030_s17  ;;  %2782 = vrot.lane.b32.xlu2 %v2781_v41, %s3026_s13  ;;  %v2771_v60 = vpack.i.bf16 %v3786_v33, %v3812_v34 }
 0x397   :  { %2762 = vrot.lane.b32.xlu1 %v2761_v16, %s3031_s18 }
 0x39e   :  { %2777 = vrot.lane.b32.xlu0 %v2776_v2, %s3025_s12  ;;  %2787 = vrot.lane.b32.xlu2 %v2786_v21, %s3023_s11 }
 0x39f   :  { %2767 = vrot.lane.b32.xlu1 %v2786_v21, %s3027_s14 }
 0x3a6   :  { %2792 = vrot.lane.b32.xlu0 %v2791_v17, %s3030_s17  ;;  %2802 = vrot.lane.b32.xlu2 %v2801_v47, %s3024_s8 }
 0x3a7   :  { %2772 = vrot.lane.b32.xlu1 %v2771_v60, %s3031_s18 }
 0x3ae   :  { %2797 = vrot.lane.b32.xlu0 %v2761_v16, %s3026_s13  ;;  %1528 = vrot.lane.b32.xlu2 %v3783_v20, %s3024_s8 }
 0x3af   :  { %1666 = vrot.lane.b32.xlu1 %v1459_v30, %s3031_s18 }
 0x3b6   :  { %2807 = vrot.lane.b32.xlu0 %v2731_v26, %s3026_s13  ;;  %1502 = vrot.lane.b32.xlu2 %v1489_v24, %s3028_s15 }
 0x3b7   :  { %2812 = vrot.lane.b32.xlu1 %v2736_v54, %s3023_s11 }
 0x3bd   :  { %v3901_v20 = vpop.permute.xlu2 %1460 }
 0x3be   :  { %1633 = vrot.lane.b32.xlu2 %v3778_v43, %s3023_s11  ;;  %1572 = vrot.lane.b32.xlu0 %v3812_v34, %s3026_s13  ;;  %s2377_s13 = sshll.u32 %s4135_s9, 4  ;;  %s2378_s13 = int_to_ptr.hbm [resolvable:$true] %s2377_s13 }
 0x3bf   :  { %2817 = vrot.lane.b32.xlu1 %v2791_v17, %s3028_s15 }
 0x3c5   :  { %v3903_v33 = vpop.permute.xlu2 %1591 }
 0x3c6   :  { %2827 = vrot.lane.b32.xlu0 %v2801_v47, %s3029_s16 }
 0x3c7   :  { %2822 = vrot.lane.b32.xlu1 %v3824_v4, %s3023_s11  ;;  %s2375_s11 = sshll.u32 %s3033_s7, 4  ;;  %s2376_s11 = int_to_ptr.vmem [resolvable:$true] %s2375_s11 }
 0x3cd   :  { %v2698_v26 = vpop.permute.xlu2 %2697 }
 0x3ce   :  { %v2699_v4 = vunpack.i.l.bf16 %v2698_v26 }
 0x3d3   :  { %v3905_v6 = vpop.permute.xlu0 %1549 }
 0x3d5   :  { %v1613_v54 = vpop.permute.xlu1 %1612  ;;  %v3909_v30 = vpop.permute.xlu2 %2702 }
 0x3dd   :  { %v2738_v21 = vpop.permute.xlu2 %2737 }
 0x3de   :  { %v2739_v13 = vunpack.i.l.bf16 %v2738_v21  ;;  %v2740_v8 = vunpack.i.h.bf16 %v2738_v21 }
 0x3e5   :  { %v3917_v29 = vpop.permute.xlu2 %2757 }
 0x3e8   :  { %v2708_v55 = vpop.permute.xlu0 %2707  ;;  %v3907_v24 = vpop.permute.xlu1 %2712 }
 0x3e9   :  { %v2709_v49 = vunpack.i.l.bf16 %v2708_v55  ;;  %v2710_v17 = vunpack.i.h.bf16 %v2708_v55 }
 0x3f0   :  { %v3911_v34 = vpop.permute.xlu0 %2717  ;;  %v2728_v41 = vpop.permute.xlu1 %2727 }
 0x3f1   :  { %v2729_v16 = vunpack.i.l.bf16 %v2728_v41  ;;  %v2730_v2 = vunpack.i.h.bf16 %v2728_v41  ;;  %v3921_v41 = vpop.permute.xlu2 %2782 }
 0x3f2   :  { %v2784_v10 = vunpack.i.l.bf16 %v3921_v41 }
 0x3f3   :  { %1683 = vmatpush.msra.mxu1 %v2729_v16 }
 0x3f5   :  { %1684 = vmatpush.msra.mxu1 %v2730_v2  ;;  %v2700_v2 = vunpack.i.h.bf16 %v2698_v26 }
 0x3f7   :  { %1685 = vmatpush.msra.mxu1 %v2699_v4 }
 0x3f8   :  { %v3913_v25 = vpop.permute.xlu0 %2722  ;;  %v3915_v53 = vpop.permute.xlu1 %2732 }
 0x400   :  { %v2743_v40 = vpop.permute.xlu0 %2742  ;;  %v2748_v23 = vpop.permute.xlu1 %2747 }
 0x401   :  { %v2744_v15 = vunpack.i.l.bf16 %v2743_v40  ;;  %v2745_v44 = vunpack.i.h.bf16 %v2743_v40  ;;  %v2750_v26 = vunpack.i.h.bf16 %v2748_v23 }
 0x403   :  { %1729 = vmatpush.msrb.mxu3 %v2744_v15  ;;  %v3925_v15 = vpop.permute.xlu2 %2787 }
 0x405   :  { %1730 = vmatpush.msrb.mxu3 %v2745_v44 }
 0x407   :  { %1731 = vmatpush.msrb.mxu3 %v2709_v49 }
 0x408   :  { %v2753_v47 = vpop.permute.xlu0 %2752 }
 0x409   :  { %v3919_v60 = vpop.permute.xlu1 %2762  ;;  %1732 = vmatpush.msrb.mxu3 %v2710_v17  ;;  %v2749_v17 = vunpack.i.l.bf16 %v2748_v23  ;;  %v2705_v23 = vunpack.i.h.bf16 %v3909_v30 }
 0x40b   :  { %v2803_v21 = vpop.permute.xlu2 %2802 }
 0x410   :  { %v2778_v16 = vpop.permute.xlu0 %2777 }
 0x411   :  { %v2779_v4 = vunpack.i.l.bf16 %v2778_v16  ;;  %v2768_v18 = vpop.permute.xlu1 %2767  ;;  %v2780_v44 = vunpack.i.h.bf16 %v2778_v16  ;;  %v2704_v16 = vunpack.i.l.bf16 %v3909_v30  ;;  %v2805_v30 = vunpack.i.h.bf16 %v2803_v21 }
 0x412   :  { %v2769_v14 = vunpack.i.l.bf16 %v2768_v18  ;;  %v2770_v49 = vunpack.i.h.bf16 %v2768_v18 }
 0x413   :  { %v1675_v40 = vsel %vm232_vm3, %v2779_v4, %v2700_v2  ;;  %v2714_v2 = vunpack.i.l.bf16 %v3907_v24  ;;  %v2754_v4 = vunpack.i.l.bf16 %v2753_v47 }
 0x414   :  { %1686 = vmatpush.msra.mxu1 %v1675_v40  ;;  %v1677_v55 = vsel %vm228_vm1, %v2769_v14, %v2784_v10  ;;  %v2715_v10 = vunpack.i.h.bf16 %v3907_v24  ;;  %v2785_v24 = vunpack.i.h.bf16 %v3921_v41 }
 0x415   :  { %1706 = vmatpush.msra.mxu2 %v1677_v55  ;;  %v2764_v55 = vunpack.i.l.bf16 %v3919_v60 }
 0x416   :  { %1687 = vmatpush.msra.mxu1 %v2780_v44  ;;  %v2720_v44 = vunpack.i.h.bf16 %v3911_v34 }
 0x417   :  { %1707 = vmatpush.msra.mxu2 %v2770_v49 }
 0x418   :  { %v2793_v12 = vpop.permute.xlu0 %2792  ;;  %1688 = vmatpush.msra.mxu1 %v2749_v17 }
 0x419   :  { %v2794_v3 = vunpack.i.l.bf16 %v2793_v12  ;;  %v3928_v39 = vpop.permute.xlu1 %2772  ;;  %1708 = vmatpush.msra.mxu2 %v2739_v13  ;;  %v2795_v18 = vunpack.i.h.bf16 %v2793_v12  ;;  %v1674_v13 = vsel %vm228_vm1, %v3858_v45, %v3901_v20  ;;  %v2759_v45 = vunpack.i.l.bf16 %v3917_v29 }
 0x41a   :  { %1689 = vmatpush.msra.mxu1 %v2750_v26  ;;  %v2760_v20 = vunpack.i.h.bf16 %v3917_v29  ;;  %v2734_v26 = vunpack.i.l.bf16 %v3915_v53 }
 0x41b   :  { %1709 = vmatpush.msra.mxu2 %v2740_v8  ;;  %v1679_v14 = vsel %vm236_vm5, %v2794_v3, %v1613_v54  ;;  %v2755_v8 = vunpack.i.h.bf16 %v2753_v47  ;;  %v2804_v3 = vunpack.i.l.bf16 %v2803_v21  ;;  %v2719_v54 = vunpack.i.l.bf16 %v3911_v34 }
 0x41c   :  { %1690 = vmatpush.msra.mxu1 %v2714_v2  ;;  %1733 = vmatpush.msrb.mxu3 %v1679_v14  ;;  %v2844_v2 = vld [vmem:[#allocation2 + $0x10] sm:$0xff]  ;;  %v2774_v21 = vunpack.i.l.bf16 %v3928_v39 }
 0x41d   :  { %1710 = vmatpush.msra.mxu2 %v2704_v16  ;;  %v2735_v16 = vunpack.i.h.bf16 %v3915_v53  ;;  %v2848_v53 = vld [vmem:[#allocation5 + $0xc8] sm:$0x3f] }
 0x41e   :  { %1691 = vmatpush.msra.mxu1 %v2715_v10  ;;  %1734 = vmatpush.msrb.mxu3 %v2795_v18  ;;  %v2845_v10 = vld [vmem:[#allocation5 + $0xa8] sm:$0x3f] }
 0x41f   :  { %1711 = vmatpush.msra.mxu2 %v2705_v23  ;;  %v2846_v23 = vld [vmem:[#allocation2 + $0x20] sm:$0x3] }
 0x420   :  { %v2798_v40 = vpop.permute.xlu0 %2797  ;;  %1735 = vmatpush.msrb.mxu3 %v2754_v4  ;;  %1692 = vmatpush.msra.mxu1 %v1674_v13  ;;  %v2847_v4 = vld [vmem:[#allocation5 + $0x8] sm:$0xff]  ;;  %v2789_v13 = vunpack.i.l.bf16 %v3925_v15 }
 0x421   :  { %v1667_v12 = vpop.permute.xlu1 %1666  ;;  %1712 = vmatpush.msra.mxu2 %v3905_v6  ;;  %v2799_v6 = vunpack.i.l.bf16 %v2798_v40  ;;  %v2800_v41 = vunpack.i.h.bf16 %v2798_v40 }
 0x422   :  { %1693 = vmatpush.msra.mxu1 %v3850_v50  ;;  %1736 = vmatpush.msrb.mxu3 %v2755_v8  ;;  %v1678_v50 = vsel %vm232_vm3, %v2785_v24, %v3903_v33  ;;  %v2843_v33 = vld [vmem:[#allocation2] sm:$0xff] }
 0x423   :  { %1713 = vmatpush.msra.mxu2 %v2804_v3  ;;  %v2849_v3 = vld [vmem:[#allocation5 + $0x28] sm:$0xff]  ;;  %v2852_v24 = vld [vmem:[#allocation5 + $0xa0] sm:$0x3f] }
 0x424   :  { %1694 = vmatpush.msra.mxu1 %v3835_v59  ;;  %1737 = vmatpush.msrb.mxu3 %v2719_v54  ;;  %v2724_v59 = vunpack.i.l.bf16 %v3913_v25  ;;  %v2850_v54 = vld [vmem:[#allocation2 + $0x8] sm:$0xff] }
 0x425   :  { %1714 = vmatpush.msra.mxu2 %v2805_v30 }
 0x426   :  { %1695 = vmatpush.msra.mxu1 %v3820_v42  ;;  %1738 = vmatpush.msrb.mxu3 %v2720_v44  ;;  %v2725_v42 = vunpack.i.h.bf16 %v3913_v25 }
 0x427   :  { %1715 = vmatpush.msra.mxu2 %v2759_v45  ;;  %v2853_v45 = vld [vmem:[#allocation5] sm:$0xff] }
 0x428   :  { %v2808_v47 = vpop.permute.xlu0 %2807  ;;  %1739 = vmatpush.msrb.mxu3 %v1678_v50  ;;  %1696 = vmatpush.msra.mxu1 %v3800_v9  ;;  %v1529_v9 = vpop.permute.xlu2 %1528  ;;  %v2854_v50 = vld [vmem:[#allocation5 + $0xc0] sm:$0x3f] }
 0x429   :  { %v3951_v34 = vpop.permute.xlu1 %2812  ;;  %1716 = vmatpush.msra.mxu2 %v2760_v20  ;;  %v2809_v29 = vunpack.i.l.bf16 %v2808_v47  ;;  %v2810_v49 = vunpack.i.h.bf16 %v2808_v47 }
 0x42a   :  { %1697 = vmatpush.msra.mxu1 %v3793_v57  ;;  %1740 = vmatpush.msrb.mxu3 %v2799_v6  ;;  %v2765_v57 = vunpack.i.h.bf16 %v3919_v60  ;;  %v2775_v60 = vunpack.i.h.bf16 %v3928_v39  ;;  %v2851_v39 = vld [vmem:[#allocation2 + $0x30] sm:$0x3]  ;;  %v2814_v30 = vunpack.i.l.bf16 %v3951_v34  ;;  %v2815_v20 = vunpack.i.h.bf16 %v3951_v34  ;;  %v2855_v6 = vld [vmem:[#allocation5 + $0x20] sm:$0xff]  ;;  %v2857_v34 = vld [vmem:[#allocation2 + $0x18] sm:$0xff] }
 0x42b   :  { %1717 = vmatpush.msra.mxu2 %v2724_v59  ;;  %v2856_v59 = vld [vmem:[#allocation2 + $0x28] sm:$0x3] }
 0x42c   :  { %1698 = vmatpush.msra.mxu1 %v3778_v43  ;;  %1741 = vmatpush.msrb.mxu3 %v2800_v41  ;;  %v1680_v40 = vsel %vm228_vm1, %v2789_v13, %v2775_v60 }
 0x42d   :  { %1718 = vmatpush.msra.mxu2 %v2725_v42  ;;  %1699 = vmatmul.f32.vlgmr.msra.gmra.mxu1 %v2843_v33 }
 0x42e   :  { %2469 = vmatpush.msk.msrb.mxu1 %vm232_vm3, %v1667_v12  ;;  %1742 = vmatpush.msrb.mxu3 %v2809_v29  ;;  %v2790_v12 = vunpack.i.h.bf16 %v3925_v15  ;;  %vm2368_vm3 = vcmask 254976  }
 0x430   :  { %1754 = vmatpush.msrb.mxu1 %v2764_v55  ;;  %1743 = vmatpush.msrb.mxu3 %v2810_v49  ;;  %v1573_v25 = vpop.permute.xlu0 %1572  ;;  %v1503_v8 = vpop.permute.xlu2 %1502  ;;  %v2859_v55 = vld [vmem:[#allocation5 + $0x18] sm:$0xff] }
 0x431   :  { %v2818_v17 = vpop.permute.xlu1 %2817  ;;  %v2860_v49 = vld [vmem:[#allocation5 + $0xd8] sm:$0x3f] }
 0x432   :  { %v2819_v43 = vunpack.i.l.bf16 %v2818_v17  ;;  %1755 = vmatpush.msrb.mxu1 %v2765_v57  ;;  %1744 = vmatpush.msrb.mxu3 %v1573_v25  ;;  %v2820_v18 = vunpack.i.h.bf16 %v2818_v17  ;;  %v2861_v57 = vld [vmem:[#allocation5 + $0x38] sm:$0xff]  ;;  %v3977_v17 = vpop.f32.mrf.mxu2 }
 0x433   :  { %1745 = vmatmul.f32.vlgmr.msrb.gmra.mxu3 %v2844_v2  ;;  %v2862_v25 = vld [vmem:[#allocation2 + $0x38] sm:$0x3] }
 0x434   :  { %1756 = vmatpush.msrb.mxu1 %v2734_v26  ;;  %v1676_v14 = vsel %vm236_vm5, %v2819_v43, %v1529_v9  ;;  %2475 = vmatpush.msk.msra.mxu3 %vm236_vm5, %v2845_v10  ;;  %v2858_v9 = vld [vmem:[#allocation5 + $0xb8] sm:$0x3f]  ;;  %v3979_v43 = vpop.f32.mrf.mxu3 }
 0x435   :  { %1719 = vmatpush.msra.mxu2 %v1676_v14  ;;  %1702 = vmatmul.f32.gmra.mxu1 %v2846_v23 }
 0x436   :  { %1757 = vmatpush.msrb.mxu1 %v2735_v16  ;;  %1820 = vmatpush.msra.mxu3 %v2847_v4 }
 0x437   :  { %1720 = vmatpush.msra.mxu2 %v2820_v18 }
 0x438   :  { %2487 = vmatpush.msk.msrb.mxu3 %vm236_vm5, %v2848_v53  ;;  %1758 = vmatpush.msrb.mxu1 %v2774_v21  ;;  %v2828_v41 = vpop.permute.xlu0 %2827  ;;  %v1634_v42 = vpop.permute.xlu2 %1633 }
 0x439   :  { %1721 = vmatpush.msra.mxu2 %v1503_v8  ;;  %v2823_v44 = vpop.permute.xlu1 %2822  ;;  %v2829_v29 = vunpack.i.l.bf16 %v2828_v41  ;;  %v2830_v33 = vunpack.i.h.bf16 %v2828_v41  ;;  %v2875_v41 = vld [vmem:[#allocation5 + $0x68] sm:$0xff] }
 0x43a   :  { %1908 = vmatpush.msrb.mxu3 %v2849_v3  ;;  %1722 = vmatmul.f32.vlgmr.msra.gmra.mxu2 %v2850_v54  ;;  %v2824_v15 = vunpack.i.l.bf16 %v2823_v44  ;;  %v2825_v47 = vunpack.i.h.bf16 %v2823_v44  ;;  %v2863_v3 = vld [vmem:[#allocation5 + $0xe8] sm:$0x3f]  ;;  %v2865_v54 = vld [vmem:[#allocation5 + $0xf0] sm:$0x3f]  ;;  %v2868_v44 = vld [vmem:[#allocation5 + $0x40] sm:$0xff] }
 0x43b   :  { %1759 = vmatpush.msrb.mxu1 %v1680_v40  ;;  %1748 = vmatmul.f32.gmra.mxu3 %v2851_v39  ;;  %v2866_v39 = vld [vmem:[#allocation5 + $0xf8] sm:$0x3f] }
 0x43c   :  { %2472 = vmatpush.msk.msrb.mxu2 %vm236_vm5, %v2852_v24 }
 0x43d   :  { %1760 = vmatpush.msrb.mxu1 %v2790_v12 }
 0x43e   :  { %1798 = vmatpush.msrb.mxu2 %v2853_v45  ;;  %v2869_v45 = vld [vmem:[#allocation5 + $0x50] sm:$0xff] }
 0x43f   :  { %1761 = vmatpush.msrb.mxu1 %v2814_v30  ;;  %v2867_v30 = vld [vmem:[#allocation5 + $0x48] sm:$0xff] }
 0x440   :  { %2484 = vmatpush.msk.msra.mxu2 %vm236_vm5, %v2854_v50 }
 0x441   :  { %1762 = vmatpush.msrb.mxu1 %v2815_v20  ;;  %v2870_v20 = vld [vmem:[#allocation5 + $0x58] sm:$0xff] }
 0x442   :  { %1886 = vmatpush.msra.mxu2 %v2855_v6  ;;  %v2872_v6 = vld [vmem:[#allocation5 + $0x100] sm:$0x3f] }
 0x443   :  { %1725 = vmatmul.f32.gmra.mxu2 %v2856_v59  ;;  %1763 = vmatpush.msrb.mxu1 %v2824_v15  ;;  %v2871_v15 = vld [vmem:[#allocation5 + $0x108] sm:$0x3f]  ;;  %v2874_v59 = vld [vmem:[#allocation5 + $0x118] sm:$0x3f] }
 0x445   :  { %1764 = vmatpush.msrb.mxu1 %v2825_v47  ;;  %v2873_v47 = vld [vmem:[#allocation5 + $0x110] sm:$0x3f] }
 0x447   :  { %1765 = vmatpush.msrb.mxu1 %v1634_v42  ;;  %v2876_v42 = vld [vmem:[#allocation5 + $0x60] sm:$0xff] }
 0x449   :  { %1766 = vmatpush.msrb.mxu1 %v2829_v29  ;;  %v2877_v29 = vld [vmem:[#allocation5 + $0x70] sm:$0xff] }
 0x44b   :  { %1767 = vmatpush.msrb.mxu1 %v2830_v33  ;;  %v2878_v33 = vld [vmem:[#allocation5 + $0x78] sm:$0xff] }
 0x44c   :  { %2470 = vmatmul.msk.f32.vlgmr.msrb.gmra.mxu1 %vm597_vm8, %v2857_v34  ;;  %v2879_v34 = vld [vmem:[#allocation5 + $0x128] sm:$0x3f] }
 0x44d   :  { %2481 = vmatpush.msk.msra.mxu1 %vm236_vm5, %v2858_v9  ;;  %v2880_v9 = vld [vmem:[#allocation5 + $0x120] sm:$0x3f] }
 0x44f   :  { %1864 = vmatpush.msra.mxu1 %v2859_v55  ;;  %v2881_v55 = vld [vmem:[#allocation5 + $0x130] sm:$0x3f] }
 0x451   :  { %2493 = vmatpush.msk.msrb.mxu1 %vm236_vm5, %v2860_v49  ;;  %v2882_v49 = vld [vmem:[#allocation5 + $0x138] sm:$0x3f] }
 0x453   :  { %1952 = vmatpush.msrb.mxu1 %v2861_v57  ;;  %v2883_v57 = vld [vmem:[#allocation5 + $0x88] sm:$0xff] }
 0x454   :  { %2471 = vmatmul.msk.f32.gmra.mxu1 %vm597_vm8, %v2862_v25  ;;  %v2884_v25 = vld [vmem:[#allocation5 + $0x80] sm:$0xff] }
 0x4aa   :  { %v1700_v26 = vpop.f32.mrf.mxu1 }
 0x4ab   :  { %v1701_v14 = vadd.f32 %v1700_v26, %v3412_v56  ;;  %v2885_v26 = vld [vmem:[#allocation5 + $0x90] sm:$0xff] }
 0x4b2   :  { %v1703_v16 = vpop.f32.mrf.mxu1 }
 0x4b3   :  { %v1704_v4 = vadd.f32 %v1703_v16, %v3415_v0  ;;  %v2864_v0 = vld [vmem:[#allocation5 + $0xe0] sm:$0x3f] }
 0x4b6   :  { %v1746_v10 = vpop.f32.mrf.mxu3 }
 0x4bd   :  { %v1723_v2 = vpop.f32.mrf.mxu2 }
 0x4be   :  { %v1724_v60 = vadd.f32 %v1723_v2, %v1701_v14  ;;  %v1749_v40 = vpop.f32.mrf.mxu3  ;;  %v2886_v2 = vld [vmem:[#allocation5 + $0x98] sm:$0xff] }
 0x4c0   :  { %v1747_v18 = vadd.f32 %v1746_v10, %v1724_v60 }
 0x4c6   :  { %v1726_v23 = vpop.f32.mrf.mxu2 }
 0x4c7   :  { %v1727_v53 = vadd.f32 %v1726_v23, %v1704_v4 }
 0x4c9   :  { %v1769_v21 = vpop.f32.mrf.mxu1  ;;  %v1750_v56 = vadd.f32 %v1749_v40, %v1727_v53 }
 0x4ca   :  { %v1770_v13 = vadd.f32 %v1769_v21, %v1747_v18 }
 0x4cc   :  { %v3983_v8 = vmax.f32 %v1770_v13, 0.0 }
 0x4ce   :  { %2473 = vmatmul.msk.f32.vlgmr.msrb.gmra.mxu2 %vm700_vm9, %v3983_v8  ;;  %2476 = vmatmul.msk.f32.vlgmr.msra.gmra.mxu3 %vm700_vm9, %v3983_v8 }
 0x4cf   :  { %2479 = vmatmul.msk.f32.vlgmr.msra.gmra.mxu0 %vm700_vm9, %v3983_v8  ;;  %2482 = vmatmul.msk.f32.vlgmr.msra.gmra.mxu1 %vm700_vm9, %v3983_v8 }
 0x4d0   :  { %2499 = vmatpush.msk.msra.mxu3 %vm236_vm5, %v2863_v3  ;;  %2496 = vmatpush.msk.msrb.mxu2 %vm236_vm5, %v2864_v0 }
 0x4d1   :  { %v1772_v12 = vpop.f32.mrf.mxu1  ;;  %2502 = vmatpush.msk.msra.mxu0 %vm236_vm5, %v2865_v54  ;;  %2505 = vmatpush.msk.msra.mxu1 %vm236_vm5, %v2866_v39 }
 0x4d2   :  { %v1773_v24 = vadd.f32 %v1772_v12, %v1750_v56  ;;  %1996 = vmatpush.msra.mxu3 %v2867_v30  ;;  %1974 = vmatpush.msrb.mxu2 %v2868_v44 }
 0x4d3   :  { %2018 = vmatpush.msra.mxu0 %v2869_v45  ;;  %2040 = vmatpush.msra.mxu1 %v2870_v20 }
 0x4d4   :  { %v3997_v50 = vmax.f32 %v1773_v24, 0.0 }
 0x4d6   :  { %2474 = vmatmul.msk.f32.gmra.mxu2 %vm700_vm9, %v3997_v50  ;;  %2477 = vmatmul.msk.f32.gmra.mxu3 %vm700_vm9, %v3997_v50 }
 0x4d7   :  { %2480 = vmatmul.msk.f32.gmra.mxu0 %vm700_vm9, %v3997_v50  ;;  %2483 = vmatmul.msk.f32.gmra.mxu1 %vm700_vm9, %v3997_v50 }
 0x4de   :  { %2485 = vmatmul.msk.f32.vlgmr.msra.gmra.mxu2 %vm700_vm9, %v3983_v8  ;;  %2488 = vmatmul.msk.f32.vlgmr.msrb.gmra.mxu3 %vm700_vm9, %v3983_v8 }
 0x4df   :  { %2491 = vmatmul.msk.f32.vlgmr.msrb.gmra.mxu0 %vm700_vm9, %v3983_v8  ;;  %2494 = vmatmul.msk.f32.vlgmr.msrb.gmra.mxu1 %vm700_vm9, %v3983_v8 }
 0x4e0   :  { %2511 = vmatpush.msk.msrb.mxu3 %vm236_vm5, %v2871_v15  ;;  %2508 = vmatpush.msk.msra.mxu2 %vm236_vm5, %v2872_v6 }
 0x4e1   :  { %2514 = vmatpush.msk.msrb.mxu0 %vm236_vm5, %v2873_v47  ;;  %2517 = vmatpush.msk.msrb.mxu1 %vm236_vm5, %v2874_v59  ;;  %v4168_v59 = vld [vmem:[#allocation25_spill] sm:$0xff] }
 0x4e2   :  { %2084 = vmatpush.msrb.mxu3 %v2875_v41  ;;  %2062 = vmatpush.msra.mxu2 %v2876_v42 }
 0x4e3   :  { %2106 = vmatpush.msrb.mxu0 %v2877_v29  ;;  %2128 = vmatpush.msrb.mxu1 %v2878_v33 }
 0x4e6   :  { %2486 = vmatmul.msk.f32.gmra.mxu2 %vm700_vm9, %v3997_v50  ;;  %2489 = vmatmul.msk.f32.gmra.mxu3 %vm700_vm9, %v3997_v50 }
 0x4e7   :  { %2492 = vmatmul.msk.f32.gmra.mxu0 %vm700_vm9, %v3997_v50  ;;  %2495 = vmatmul.msk.f32.gmra.mxu1 %vm700_vm9, %v3997_v50 }
 0x4ee   :  { %2497 = vmatmul.msk.f32.vlgmr.msrb.gmra.mxu2 %vm700_vm9, %v3983_v8  ;;  %2500 = vmatmul.msk.f32.vlgmr.msra.gmra.mxu3 %vm700_vm9, %v3983_v8 }
 0x4ef   :  { %2503 = vmatmul.msk.f32.vlgmr.msra.gmra.mxu0 %vm700_vm9, %v3983_v8  ;;  %2506 = vmatmul.msk.f32.vlgmr.msra.gmra.mxu1 %vm700_vm9, %v3983_v8 }
 0x4f0   :  { %2523 = vmatpush.msk.msra.mxu3 %vm236_vm5, %v2879_v34  ;;  %2520 = vmatpush.msk.msrb.mxu2 %vm236_vm5, %v2880_v9 }
 0x4f1   :  { %2526 = vmatpush.msk.msra.mxu0 %vm236_vm5, %v2881_v55  ;;  %2529 = vmatpush.msk.msra.mxu1 %vm236_vm5, %v2882_v49 }
 0x4f2   :  { %2172 = vmatpush.msra.mxu3 %v2883_v57  ;;  %2150 = vmatpush.msrb.mxu2 %v2884_v25 }
 0x4f3   :  { %2194 = vmatpush.msra.mxu0 %v2885_v26  ;;  %2216 = vmatpush.msra.mxu1 %v2886_v2 }
 0x4f6   :  { %2498 = vmatmul.msk.f32.gmra.mxu2 %vm700_vm9, %v3997_v50  ;;  %2501 = vmatmul.msk.f32.gmra.mxu3 %vm700_vm9, %v3997_v50 }
 0x4f7   :  { %2504 = vmatmul.msk.f32.gmra.mxu0 %vm700_vm9, %v3997_v50  ;;  %2507 = vmatmul.msk.f32.gmra.mxu1 %vm700_vm9, %v3997_v50 }
 0x4fe   :  { %2509 = vmatmul.msk.f32.vlgmr.msra.gmra.mxu2 %vm700_vm9, %v3983_v8  ;;  %2512 = vmatmul.msk.f32.vlgmr.msrb.gmra.mxu3 %vm700_vm9, %v3983_v8 }
 0x4ff   :  { %2515 = vmatmul.msk.f32.vlgmr.msrb.gmra.mxu0 %vm700_vm9, %v3983_v8  ;;  %2518 = vmatmul.msk.f32.vlgmr.msrb.gmra.mxu1 %vm700_vm9, %v3983_v8 }
 0x500   :  { %2305 = vmatpush.msra.mxu2 %v3575_v31  ;;  %2325 = vmatpush.msrb.mxu3 %v3580_v32  ;;  %v4158_v31 = vld [vmem:[#allocation15_spill] sm:$0xff]  ;;  %v4159_v32 = vld [vmem:[#allocation16_spill] sm:$0xff] }
 0x502   :  { %2306 = vmatpush.msra.mxu2 %v3587_v36  ;;  %2326 = vmatpush.msrb.mxu3 %v3592_v38  ;;  %v4160_v36 = vld [vmem:[#allocation17_spill] sm:$0xff]  ;;  %v4161_v38 = vld [vmem:[#allocation18_spill] sm:$0xff] }
 0x504   :  { %2307 = vmatpush.msra.mxu2 %v3599_v7  ;;  %2327 = vmatpush.msrb.mxu3 %v3604_v48  ;;  %v4162_v7 = vld [vmem:[#allocation19_spill] sm:$0xff]  ;;  %v4163_v48 = vld [vmem:[#allocation20_spill] sm:$0xff] }
 0x506   :  { %2510 = vmatmul.msk.f32.gmra.mxu2 %vm700_vm9, %v3997_v50  ;;  %2513 = vmatmul.msk.f32.gmra.mxu3 %vm700_vm9, %v3997_v50 }
 0x507   :  { %2516 = vmatmul.msk.f32.gmra.mxu0 %vm700_vm9, %v3997_v50  ;;  %2519 = vmatmul.msk.f32.gmra.mxu1 %vm700_vm9, %v3997_v50 }
 0x508   :  { %2308 = vmatpush.msra.mxu2 %v3613_v5  ;;  %2328 = vmatpush.msrb.mxu3 %v3618_v52  ;;  %v4164_v5 = vld [vmem:[#allocation21_spill] sm:$0xff]  ;;  %v4165_v52 = vld [vmem:[#allocation22_spill] sm:$0xff] }
 0x50a   :  { %2309 = vmatpush.msra.mxu2 %v3625_v19  ;;  %2329 = vmatpush.msrb.mxu3 %v3630_v22  ;;  %v4166_v19 = vld [vmem:[#allocation23_spill] sm:$0xff]  ;;  %v4167_v22 = vld [vmem:[#allocation24_spill] sm:$0xff] }
 0x50c   :  { %2310 = vmatpush.msra.mxu2 %v3637_v58  ;;  %2330 = vmatpush.msrb.mxu3 %v3642_v27 }
 0x50e   :  { %2521 = vmatmul.msk.f32.vlgmr.msrb.gmra.mxu2 %vm700_vm9, %v3983_v8  ;;  %2524 = vmatmul.msk.f32.vlgmr.msra.gmra.mxu3 %vm700_vm9, %v3983_v8 }
 0x50f   :  { %2527 = vmatmul.msk.f32.vlgmr.msra.gmra.mxu0 %vm700_vm9, %v3983_v8  ;;  %2530 = vmatmul.msk.f32.vlgmr.msra.gmra.mxu1 %vm700_vm9, %v3983_v8 }
 0x510   :  { %2311 = vmatpush.msra.mxu2 %v3649_v62  ;;  %2331 = vmatpush.msrb.mxu3 %v3654_v11 }
 0x512   :  { %2312 = vmatpush.msra.mxu2 %v3659_v28  ;;  %2332 = vmatpush.msrb.mxu3 %v3666_v61 }
 0x514   :  { %2313 = vmatpush.msra.mxu2 %v3673_v63  ;;  %2333 = vmatpush.msrb.mxu3 %v3678_v1 }
 0x516   :  { %2522 = vmatmul.msk.f32.gmra.mxu2 %vm700_vm9, %v3997_v50  ;;  %2525 = vmatmul.msk.f32.gmra.mxu3 %vm700_vm9, %v3997_v50 }
 0x517   :  { %2528 = vmatmul.msk.f32.gmra.mxu0 %vm700_vm9, %v3997_v50  ;;  %2531 = vmatmul.msk.f32.gmra.mxu1 %vm700_vm9, %v3997_v50 }
 0x518   :  { %2314 = vmatpush.msra.mxu2 %v3685_v46  ;;  %2334 = vmatpush.msrb.mxu3 %v3690_v51 }
 0x51a   :  { %2315 = vmatpush.msra.mxu2 %v3697_v35  ;;  %2335 = vmatpush.msrb.mxu3 %v3702_v37 }
 0x51c   :  { %2316 = vmatpush.msra.mxu2 %v4158_v31  ;;  %2336 = vmatpush.msrb.mxu3 %v4159_v32 }
 0x51e   :  { %2317 = vmatpush.msra.mxu2 %v4160_v36  ;;  %2337 = vmatpush.msrb.mxu3 %v4161_v38 }
 0x520   :  { %2318 = vmatpush.msra.mxu2 %v4162_v7  ;;  %2338 = vmatpush.msrb.mxu3 %v4163_v48 }
 0x522   :  { %2319 = vmatpush.msra.mxu2 %v4164_v5  ;;  %2339 = vmatpush.msrb.mxu3 %v4165_v52 }
 0x524   :  { %2320 = vmatpush.msra.mxu2 %v4166_v19  ;;  %2340 = vmatpush.msrb.mxu3 %v4167_v22 }
 0x54c   :  { %v1844_v58 = vpop.f32.mrf.mxu0  ;;  %v1866_v27 = vpop.f32.mrf.mxu1 }
 0x54d   :  { %2231 = vst [vmem:[#allocation1] sm:$0xff] %v1844_v58 }
 0x54e   :  { %2232 = vst [vmem:[#allocation1 + $0x9] sm:$0xff] %v1866_v27 }
 0x551   :  { %v1800_v62 = vpop.f32.mrf.mxu2  ;;  %v1822_v11 = vpop.f32.mrf.mxu3 }
 0x552   :  { %v2225_v44 = vrot.slane %v1822_v11, 7 }
 0x554   :  { %v1847_v28 = vpop.f32.mrf.mxu0  ;;  %v1869_v61 = vpop.f32.mrf.mxu1  ;;  %v2226_v15 = vsel %vm226_vm0, %v1800_v62, %v2225_v44 }
 0x555   :  { %v2234_v35 = vld [vmem:[#allocation1 + $0x1] ss:$9 sm:$0xff]  ;;  %v2228_v41 = vadd.f32 %v2226_v15, %v4168_v59 }
 0x556   :  { %v189_v28 = vld [vmem:[#allocation8] sm:$0x1] }
 0x557   :  { %v2236_v34 = vadd.f32 %v2234_v35, %v2228_v41  ;;  %v1307_v61 = vadd.f32 %v3977_v17, %v189_v28 }
 0x559   :  { %v1803_v63 = vpop.f32.mrf.mxu2  ;;  %v1825_v1 = vpop.f32.mrf.mxu3 }
 0x55a   :  { %v1327_v63 = vadd.f32 %v3979_v43, %v1307_v61 }
 0x55c   :  { %v1932_v46 = vpop.f32.mrf.mxu0  ;;  %v1954_v51 = vpop.f32.mrf.mxu1  ;;  %v2460_v1 = vmul.f32 -1.442695, %v1327_v63 }
 0x55e   :  { %2831 = vpow2.f32 %v2460_v1 }
 0x561   :  { %v1888_v37 = vpop.f32.mrf.mxu2  ;;  %v1910_v16 = vpop.f32.mrf.mxu3 }
 0x562   :  { %2239 = vst [vmem:[#allocation1] sm:$0xff] %v1888_v37 }
 0x563   :  { %2240 = vst [vmem:[#allocation1 + $0x9] sm:$0xff] %v1910_v16 }
 0x564   :  { %v1935_v14 = vpop.f32.mrf.mxu0  ;;  %v1957_v10 = vpop.f32.mrf.mxu1 }
 0x569   :  { %v1891_v60 = vpop.f32.mrf.mxu2  ;;  %v1913_v18 = vpop.f32.mrf.mxu3 }
 0x56a   :  { %v2242_v23 = vld [vmem:[#allocation1 + $0x2] ss:$9 sm:$0xff] }
 0x56b   :  { %2247 = vst [vmem:[#allocation1] sm:$0xff] %v1932_v46  ;;  %v2244_v49 = vadd.f32 %v2242_v23, %v2236_v34  ;;  %v2832_v46 = vpop.eup %2831 }
 0x56c   :  { %v2020_v21 = vpop.f32.mrf.mxu0  ;;  %v2042_v4 = vpop.f32.mrf.mxu1  ;;  %2248 = vst [vmem:[#allocation1 + $0x9] sm:$0xff] %v1954_v51  ;;  %v1332_v37 = vadd.f32 1.0, %v2832_v46 }
 0x56e   :  { %2833 = vrcp.f32 %v1332_v37  ;;  %vm1338_vm12 = vweird.f32 %v1332_v37 }
 0x571   :  { %v1976_v13 = vpop.f32.mrf.mxu2  ;;  %v1998_v53 = vpop.f32.mrf.mxu3 }
 0x573   :  { %v2250_v8 = vld [vmem:[#allocation1 + $0x3] ss:$9 sm:$0xff] }
 0x574   :  { %v2023_v40 = vpop.f32.mrf.mxu0  ;;  %v2045_v56 = vpop.f32.mrf.mxu1  ;;  %2255 = vst [vmem:[#allocation1] sm:$0xff] %v1976_v13  ;;  %v2252_v57 = vadd.f32 %v2250_v8, %v2244_v49 }
 0x575   :  { %2256 = vst [vmem:[#allocation1 + $0x9] sm:$0xff] %v1998_v53  ;;  %v2834_v60 = vpop.eup %2833 }
 0x576   :  { %vm1339_vm10 = vweird.f32 %v2834_v60 }
 0x577   :  { %vm4116_vm14 = vmor %vm1338_vm12, %vm1339_vm10 }
 0x579   :  { %v1979_v3 = vpop.f32.mrf.mxu2  ;;  %v2001_v0 = vpop.f32.mrf.mxu3 }
 0x57a   :  { %v1344_v0 = vand.u32 2147483648, %v1332_v37 }
 0x57c   :  { %v2108_v12 = vpop.f32.mrf.mxu0  ;;  %v2130_v54 = vpop.f32.mrf.mxu1  ;;  %v2258_v39 = vld [vmem:[#allocation1 + $0x4] ss:$9 sm:$0xff] }
 0x57d   :  { %2263 = vst [vmem:[#allocation1] sm:$0xff] %v2020_v21  ;;  %v2260_v26 = vadd.f32 %v2258_v39, %v2252_v57  ;;  %v1334_v21 = vmul.f32 %v2834_v60, %v1332_v37 }
 0x57e   :  { %2264 = vst [vmem:[#allocation1 + $0x9] sm:$0xff] %v2042_v4 }
 0x57f   :  { %v1335_v4 = vsub.f32 1.0, %v1334_v21 }
 0x581   :  { %v2064_v24 = vpop.f32.mrf.mxu2  ;;  %v2086_v30 = vpop.f32.mrf.mxu3  ;;  %v1336_v43 = vmul.f32 %v2834_v60, %v1335_v4 }
 0x583   :  { %v1337_v56 = vadd.f32 %v2834_v60, %v1336_v43 }
 0x584   :  { %v2111_v45 = vpop.f32.mrf.mxu0  ;;  %v2133_v20 = vpop.f32.mrf.mxu1 }
 0x585   :  { %v2266_v50 = vld [vmem:[#allocation1 + $0x5] ss:$9 sm:$0xff]  ;;  %v1345_v45 = vor.u32 1.1754944e-38, %v1344_v0 }
 0x586   :  { %2271 = vst [vmem:[#allocation1] sm:$0xff] %v2064_v24  ;;  %v2268_v31 = vadd.f32 %v2266_v50, %v2260_v26 }
 0x587   :  { %2272 = vst [vmem:[#allocation1 + $0x9] sm:$0xff] %v2086_v30  ;;  %v1341_v30 = vsel %vm4116_vm14, %v2834_v60, %v1337_v56 }
 0x589   :  { %v2067_v6 = vpop.f32.mrf.mxu2  ;;  %v2089_v47 = vpop.f32.mrf.mxu3 }
 0x58c   :  { %v2196_v42 = vpop.f32.mrf.mxu0  ;;  %v2218_v29 = vpop.f32.mrf.mxu1 }
 0x58e   :  { %v2274_v33 = vld [vmem:[#allocation1 + $0x6] ss:$9 sm:$0xff] }
 0x58f   :  { %2279 = vst [vmem:[#allocation1] sm:$0xff] %v2108_v12  ;;  %v2276_v38 = vadd.f32 %v2274_v33, %v2268_v31 }
 0x590   :  { %2280 = vst [vmem:[#allocation1 + $0x9] sm:$0xff] %v2130_v54  ;;  %v1342_v54 = vand.u32 2147483647, %v1332_v37 }
 0x591   :  { %v2152_v9 = vpop.f32.mrf.mxu2  ;;  %v2174_v55 = vpop.f32.mrf.mxu3 }
 0x592   :  { %vm1343_vm2 = vcmp.eq.f32.partialorder %v1342_v54, 8.507059e+37 }
 0x593   :  { %v1346_v15 = vsel %vm1343_vm2, %v1345_v45, %v1341_v30 }
 0x594   :  { %v2198_v25 = vpop.f32.mrf.mxu0  ;;  %v2220_v2 = vpop.f32.mrf.mxu1 }
 0x597   :  { %v2282_v32 = vld [vmem:[#allocation1 + $0x7] ss:$9 sm:$0xff] }
 0x598   :  { %2293 = vst [vmem:[#allocation1] sm:$0xff] %v2198_v25  ;;  %v2284_v5 = vadd.f32 %v2282_v32, %v2276_v38 }
 0x599   :  { %v2176_v36 = vpop.f32.mrf.mxu3  ;;  %2294 = vst [vmem:[#allocation1 + $0x9] sm:$0xff] %v2220_v2  ;;  %v2154_v48 = vpop.f32.mrf.mxu2 }
 0x59a   :  { %v2287_v7 = vrot.slane %v2176_v36, 7 }
 0x59c   :  { %v2288_v52 = vsel %vm226_vm0, %v2154_v48, %v2287_v7 }
 0x59d   :  { %v2290_v19 = vadd.f32 %v2288_v52, %v2284_v5 }
 0x5a0   :  { %v2296_v22 = vld [vmem:[#allocation1 + $0x1] ss:$9 sm:$0xff] }
 0x5a1   :  { %v2298_v58 = vadd.f32 %v2296_v22, %v2290_v19 }
 0x5a3   :  { %v2299_v27 = vmax.f32 %v2298_v58, 0.0 }
 0x5a5   :  { %v2302_v62 = vperm.slane %v2299_v27, 1  ;;  %v2301_v11 = vperm.slane %v2299_v27, 0 }
 0x5a7   :  { %2321 = vmatmul.f32.vlgmr.msra.gmra.mxu2 %v2301_v11  ;;  %2341 = vmatmul.f32.vlgmr.msrb.gmra.mxu3 %v2302_v62 }
 0x62a   :  { %v2322_v51 = vpop.f32.mrf.mxu2  ;;  %v2342_v16 = vpop.f32.mrf.mxu3 }
 0x62b   :  { %v2323_v35 = vadd.f32 %v2322_v51, %v189_v28 }
 0x62d   :  { %v2343_v14 = vadd.f32 %v2342_v16, %v2323_v35 }
 0x62f   :  { %v2532_v10 = vmul.f32 -1.442695, %v2343_v14 }
 0x631   :  { %2835 = vpow2.f32 %v2532_v10 }
 0x637   :  { %v2836_v18 = vpop.eup %2835 }
 0x638   :  { %v2348_v23 = vadd.f32 1.0, %v2836_v18 }
 0x63a   :  { %2837 = vrcp.f32 %v2348_v23  ;;  %v2360_v8 = vand.u32 2147483648, %v2348_v23  ;;  %v2358_v3 = vand.u32 2147483647, %v2348_v23  ;;  %vm2354_vm13 = vweird.f32 %v2348_v23 }
 0x63c   :  { %v2361_v24 = vor.u32 1.1754944e-38, %v2360_v8  ;;  %vm2359_vm1 = vcmp.eq.f32.partialorder %v2358_v3, 8.507059e+37 }
 0x640   :  { %v2838_v17 = vpop.eup %2837 }
 0x641   :  { %v2350_v13 = vmul.f32 %v2838_v17, %v2348_v23  ;;  %vm2355_vm11 = vweird.f32 %v2838_v17 }
 0x642   :  { %vm2356_vm15 = vmor %vm2354_vm13, %vm2355_vm11 }
 0x643   :  { %v2351_v53 = vsub.f32 1.0, %v2350_v13 }
 0x645   :  { %v2352_v40 = vmul.f32 %v2838_v17, %v2351_v53 }
 0x647   :  { %v2353_v39 = vadd.f32 %v2838_v17, %v2352_v40 }
 0x649   :  { %v2357_v44 = vsel %vm2356_vm15, %v2838_v17, %v2353_v39 }
 0x64a   :  { %v2362_v20 = vsel %vm2359_vm1, %v2361_v24, %v2357_v44 }
 0x64b   :  { %v2365_v50 = vrot.slane %v2362_v20, 7 }
 0x64d   :  { %v2367_v6 = vsel %vm226_vm0, %v1346_v15, %v2365_v50 }
 0x64e   :  { %2369 = vst.msk [vmem:[#allocation10] sm:$0x3] %vm2368_vm3, %v2367_v6 }
 0x64f   :  { %2380 = dma.vmem_to_hbm [thread:$0]  %s2376_s11, 32, %s2378_s13, [#allocation4]  }
 0x650   :  { %3013 = dma.done.wait [#allocation4], 32  }
 0x651   :  { %3014 = vsyncadd [#allocation4], 4294967264 }
 0x652   :  { %2385 = vsyncpa [#allocation3], 1 }
 0x653   :  { %2386 = vsyncpa [#allocation6], 1 }
 0x654   :  { %2387 = vsyncpa [#allocation9], 1 }
 0x655   :  { %2388 = vsyncpa [#allocation4], 1 }

</bundles_post_ra>
